<compile_context>
chip_gen: v5e
topology: v5e:2x2
jax: 0.10.0
libtpu: 0.0.40
codegen_flags: <defaults>
</compile_context>

<pallas_src>
import jax
import jax.numpy as jnp
from jax.experimental import pallas as pl
from jax.experimental.pallas import tpu as pltpu


def _round_up(v, m):
    return ((v + m - 1) // m) * m


def _pick_row_tile(ho):
    """Pick a row-tile height that divides ho, preferring 4-16 rows and >=2 tiles."""
    divs = [d for d in range(1, ho + 1) if ho % d == 0]
    cands = [d for d in divs if 4 <= d <= 16 and ho // d >= 2]
    if cands:
        return max(cands)
    cands = [d for d in divs if d <= 16]
    return max(cands) if cands else ho


# ---------------------------------------------------------------------------
# Fused ResidualBlock kernel for one (batch, row-tile) grid step.
#   x_ref    : (s*s, Hph, Wph, Cin_p)  bf16 stride-phase images of the padded input
#   w1_ref   : (9*Cin_p, Cp) bf16, b1_ref : (1, Cp) f32   (BN1 folded)
#   w2_ref   : (9*Cp,   Cp) bf16, b2_ref : (1, Cp) f32    (BN2 folded)
#   wsc_ref  : (Cin_p,  Cp) bf16, bsc_ref: (1, Cp) f32    (projection shortcut only)
#   o_ref    : (1, Th, Wo1, Cp) f32
#   o1_ref   : (Th+2, Wo1+2, Cp) bf16 VMEM scratch (conv1 output tile, W-padded)
# ---------------------------------------------------------------------------
def _make_block_kernel(s, Th, Ho1, Wo1, Cin_p, Cp, has_projection):
    # conv1 tap -> (phase index, out1-row offset, phase-col offset).
    # Padded-input coords of out1(r, c), tap (dy, dx): row = r*s + dy + s, col = c*s + dx
    # (top pad = s+1, left pad = 1). Phase (a, b) = padded[a::s, b::s].
    taps1 = []
    for dy in range(3):
        for dx in range(3):
            dy_tot = dy + s
            ph = (dy_tot % s) * s + (dx % s)
            taps1.append((ph, dy_tot // s - 1, dx // s))
    # 1x1 shortcut reads original pixel (y*s, x*s) = padded[y*s + s + 1, x*s + 1].
    sc_ph = ((s + 1) % s) * s + (1 % s)
    sc_roff = (s + 1) // s
    sc_coff = 1 // s

    def kernel(*refs):
        if has_projection:
            (x_ref, w1_ref, b1_ref, w2_ref, b2_ref,
             wsc_ref, bsc_ref, o_ref, o1_ref) = refs
        else:
            (x_ref, w1_ref, b1_ref, w2_ref, b2_ref, o_ref, o1_ref) = refs

        t = pl.program_id(1)
        row0 = t * Th                      # first output row of this tile (out1 coords)

        # ---- conv1 (3x3, stride s) + bn1 bias + ReLU over Th+2 out1 rows (1-row halo)
        parts = [x_ref[ph, pl.ds(row0 + roff, Th + 2), coff:coff + Wo1, :]
                 for (ph, roff, coff) in taps1]
        p1 = jnp.concatenate(parts, axis=-1).reshape((Th + 2) * Wo1, 9 * Cin_p)
        a1 = jnp.dot(p1, w1_ref[...], preferred_element_type=jnp.float32) + b1_ref[...]
        a1 = jnp.maximum(a1, 0.0).reshape(Th + 2, Wo1, Cp)
        # halo rows outside [0, Ho1) are conv2's zero padding -> mask to 0
        g = row0 - 1 + jax.lax.broadcasted_iota(jnp.int32, (Th + 2, 1, 1), 0)
        a1 = jnp.where((g >= 0) & (g < Ho1), a1, 0.0)
        # stash the W-padded out1 tile in VMEM scratch for conv2
        zcol = jnp.zeros((Th + 2, 1, Cp), o1_ref.dtype)
        o1_ref[:, 0:1, :] = zcol
        o1_ref[:, Wo1 + 1:Wo1 + 2, :] = zcol
        o1_ref[:, 1:Wo1 + 1, :] = a1.astype(o1_ref.dtype)

        # ---- conv2 (3x3, stride 1) + bn2 bias
        parts2 = [o1_ref[dy:dy + Th, dx:dx + Wo1, :]
                  for dy in range(3) for dx in range(3)]
        p2 = jnp.concatenate(parts2, axis=-1).reshape(Th * Wo1, 9 * Cp)
        acc = jnp.dot(p2, w2_ref[...], preferred_element_type=jnp.float32) + b2_ref[...]

        # ---- shortcut (identity or 1x1-conv projection + bn)
        xs = x_ref[sc_ph, pl.ds(row0 + sc_roff, Th), sc_coff:sc_coff + Wo1, :]
        xs = xs.reshape(Th * Wo1, Cin_p)
        if has_projection:
            res = jnp.dot(xs, wsc_ref[...], preferred_element_type=jnp.float32) + bsc_ref[...]
        else:
            res = xs.astype(jnp.float32)          # Cin_p == Cp on the identity path

        out = jnp.maximum(acc + res, 0.0)
        o_ref[0] = out.reshape(Th, Wo1, Cp).astype(o_ref.dtype)

    return kernel


# ---------------------------------------------------------------------------
# ResidualBlock forward (NCHW in / NCHW out, matching the PyTorch module)
# ---------------------------------------------------------------------------
def residual_block_forward(x_nchw, params, stride, eps=1e-5):
    N, Cin, H, W = x_nchw.shape
    Cout = params["conv1_w"].shape[0]
    s = int(stride)
    has_projection = (s != 1) or (Cin != Cout)

    Cin_p = _round_up(Cin, 128)           # lane-dense activation channels
    Cp = _round_up(Cout, 128)             # lane-dense output channels

    Ho1 = (H + 2 - 3) // s + 1
    Wo1 = (W + 2 - 3) // s + 1
    Th = _pick_row_tile(Ho1)
    T = Ho1 // Th

    # NCHW -> NHWC, cast to bf16 immediately (single conversion, pad in bf16)
    x = jnp.transpose(x_nchw, (0, 2, 3, 1)).astype(jnp.bfloat16)

    # spatial + channel zero padding (extra +s rows so every halo slice is in range)
    pt = pb = s + 1
    plft = prt = 1
    Htot, Wtot = H + pt + pb, W + plft + prt
    Htot_pad, Wtot_pad = _round_up(Htot, s), _round_up(Wtot, s)
    xp = jnp.pad(x, ((0, 0),
                     (pt, pb + (Htot_pad - Htot)),
                     (plft, prt + (Wtot_pad - Wtot)),
                     (0, Cin_p - Cin)))

    # stride-phase decomposition: kernel only ever takes contiguous stride-1 slices
    if s == 1:
        xph = xp[:, None]
    else:
        xph = jnp.stack([xp[:, a::s, b::s, :] for a in range(s) for b in range(s)], axis=1)
    _, s2, Hph, Wph, _ = xph.shape
    xph = xph.reshape(N * s2, Hph, Wph, Cin_p)

    # fold BN (inference / running stats) into weights + bias
    def fold(w_oihw, gamma, beta, mean, var, cin_pad):
        scale = gamma / jnp.sqrt(var + eps)
        bias = beta - mean * scale
        k = w_oihw.shape[-1]
        wm = jnp.transpose(w_oihw, (2, 3, 1, 0)) * scale            # (k, k, Ci, Co)
        wm = jnp.pad(wm, ((0, 0), (0, 0),
                          (0, cin_pad - w_oihw.shape[1]), (0, Cp - Cout)))
        wm = wm.reshape(k * k * cin_pad, Cp).astype(jnp.bfloat16)
        bm = jnp.pad(bias, (0, Cp - Cout)).reshape(1, Cp).astype(jnp.float32)
        return wm, bm

    w1, b1 = fold(params["conv1_w"], params["bn1_gamma"], params["bn1_beta"],
                  params["bn1_mean"], params["bn1_var"], Cin_p)
    w2, b2 = fold(params["conv2_w"], params["bn2_gamma"], params["bn2_beta"],
                  params["bn2_mean"], params["bn2_var"], Cp)
    args = [xph, w1, b1, w2, b2]
    if has_projection:
        wsc, bsc = fold(params["convsc_w"], params["bnsc_gamma"], params["bnsc_beta"],
                        params["bnsc_mean"], params["bnsc_var"], Cin_p)
        args += [wsc, bsc]

    K1, K2 = 9 * Cin_p, 9 * Cp

    # VMEM budget from the actual tiles, clamped to ~80% of per-core capacity
    est = (2 * s2 * Hph * Wph * Cin_p * 2                      # x phases (double-buffered)
           + (K1 + K2 + (Cin_p if has_projection else 0)) * Cp * 2   # weights
           + 3 * Cp * 4                                        # biases
           + 2 * Th * Wo1 * Cp * 4                             # output (double-buffered f32)
           + (Th + 2) * (Wo1 + 2) * Cp * 2                     # out1 scratch (bf16)
           + ((Th + 2) * Wo1 * K1 + Th * Wo1 * K2) * 2         # in-kernel patch temps
           + 4 * Th * Wo1 * Cp * 4)                            # f32 epilogue temps
    try:
        cap = int(0.8 * pltpu.get_tpu_info().vmem_capacity_bytes)
    except Exception:
        cap = int(0.8 * 64 * 1024 * 1024)                      # v7x-safe fallback (64 MiB)
    vmem_limit = int(min(max(2 * est, 32 * 1024 * 1024), cap))

    kernel = _make_block_kernel(s, Th, Ho1, Wo1, Cin_p, Cp, has_projection)
    out_shape = jax.ShapeDtypeStruct((N, Ho1, Wo1, Cp), jnp.float32)

    def build_call(single_buffer_weights):
        def const_spec(shape):
            nm = len(shape)
            if single_buffer_weights:
                return pl.BlockSpec(shape, lambda n, t: (0,) * nm,
                                    pipeline_mode=pl.Buffered(1))
            return pl.BlockSpec(shape, lambda n, t: (0,) * nm)

        in_specs = [pl.BlockSpec((s2, Hph, Wph, Cin_p), lambda n, t: (n, 0, 0, 0)),
                    const_spec((K1, Cp)), const_spec((1, Cp)),
                    const_spec((K2, Cp)), const_spec((1, Cp))]
        if has_projection:
            in_specs += [const_spec((Cin_p, Cp)), const_spec((1, Cp))]
        return pl.pallas_call(
            kernel,
            out_shape=out_shape,
            grid=(N, T),
            in_specs=in_specs,
            out_specs=pl.BlockSpec((1, Th, Wo1, Cp), lambda n, t: (n, t, 0, 0)),
            scratch_shapes=[pltpu.VMEM((Th + 2, Wo1 + 2, Cp), jnp.bfloat16)],
            compiler_params=pltpu.CompilerParams(
                dimension_semantics=("parallel", "arbitrary"),
                vmem_limit_bytes=vmem_limit),
        )

    try:
        out = build_call(True)(*args)          # single-buffered grid-invariant weights
    except Exception:
        out = build_call(False)(*args)         # fallback: default double buffering

    out = out[:, :, :, :Cout].astype(jnp.float32)      # drop channel padding
    return jnp.transpose(out, (0, 3, 1, 2))            # NHWC -> NCHW


# ---------------------------------------------------------------------------
# Pure-JAX f32 reference (correctness check)
# ---------------------------------------------------------------------------
def _conv_ref(x_nchw, w, stride, pad):
    return jax.lax.conv_general_dilated(
        x_nchw, w, (stride, stride), ((pad, pad), (pad, pad)),
        dimension_numbers=("NCHW", "OIHW", "NCHW"),
        precision=jax.lax.Precision.HIGHEST)


def _bn_ref(x_nchw, gamma, beta, mean, var, eps=1e-5):
    shp = (1, -1, 1, 1)
    return (x_nchw - mean.reshape(shp)) / jnp.sqrt(var.reshape(shp) + eps) \
        * gamma.reshape(shp) + beta.reshape(shp)


def residual_block_ref(x, params, stride):
    in_channels = x.shape[1]
    out_channels = params["conv1_w"].shape[0]
    out = jax.nn.relu(_bn_ref(_conv_ref(x, params["conv1_w"], stride, 1),
                              params["bn1_gamma"], params["bn1_beta"],
                              params["bn1_mean"], params["bn1_var"]))
    out = _bn_ref(_conv_ref(out, params["conv2_w"], 1, 1),
                  params["bn2_gamma"], params["bn2_beta"],
                  params["bn2_mean"], params["bn2_var"])
    if stride != 1 or in_channels != out_channels:
        sc = _bn_ref(_conv_ref(x, params["convsc_w"], stride, 0),
                     params["bnsc_gamma"], params["bnsc_beta"],
                     params["bnsc_mean"], params["bnsc_var"])
    else:
        sc = x
    return jax.nn.relu(out + sc)


# ---------------------------------------------------------------------------
def make_params(key, in_channels, out_channels, stride):
    ks = jax.random.split(key, 12)
    p = {
        "conv1_w": 0.1 * jax.random.normal(ks[0], (out_channels, in_channels, 3, 3), jnp.float32),
        "conv2_w": 0.1 * jax.random.normal(ks[1], (out_channels, out_channels, 3, 3), jnp.float32),
        "bn1_gamma": 1.0 + 0.1 * jax.random.normal(ks[2], (out_channels,), jnp.float32),
        "bn1_beta": 0.05 * jax.random.normal(ks[3], (out_channels,), jnp.float32),
        "bn1_mean": 0.1 * jax.random.normal(ks[4], (out_channels,), jnp.float32),
        "bn1_var": 0.5 + jnp.abs(jax.random.normal(ks[5], (out_channels,), jnp.float32)) * 0.5,
        "bn2_gamma": 1.0 + 0.1 * jax.random.normal(ks[6], (out_channels,), jnp.float32),
        "bn2_beta": 0.05 * jax.random.normal(ks[7], (out_channels,), jnp.float32),
        "bn2_mean": 0.1 * jax.random.normal(ks[8], (out_channels,), jnp.float32),
        "bn2_var": 0.5 + jnp.abs(jax.random.normal(ks[9], (out_channels,), jnp.float32)) * 0.5,
    }
    if stride != 1 or in_channels != out_channels:
        p["convsc_w"] = 0.1 * jax.random.normal(ks[10], (out_channels, in_channels, 1, 1), jnp.float32)
        p["bnsc_gamma"] = jnp.ones((out_channels,), jnp.float32)
        p["bnsc_beta"] = jnp.zeros((out_channels,), jnp.float32)
        p["bnsc_mean"] = 0.1 * jax.random.normal(ks[11], (out_channels,), jnp.float32)
        p["bnsc_var"] = jnp.ones((out_channels,), jnp.float32)
    return p


if __name__ == "__main__":
    key = jax.random.PRNGKey(0)
    N, H, W = 2, 16, 16
    configs = [
        (4, 8, 1),   # Cin != Cout  -> projection (1x1 conv) shortcut
        (8, 8, 1),   # Cin == Cout, stride 1 -> identity shortcut
        (4, 8, 2),   # stride-2 downsample block (projection shortcut, phase path)
    ]
    for idx, (Cin, Cout, stride) in enumerate(configs):
        kx, kp, key = jax.random.split(key, 3)
        x = jax.random.normal(kx, (N, Cin, H, W), jnp.float32)
        params = make_params(kp, Cin, Cout, stride)

        out = jax.block_until_ready(residual_block_forward(x, params, stride))
        ref = jax.block_until_ready(residual_block_ref(x, params, stride))

        Hout = (H + 2 - 3) // stride + 1
        assert out.shape == ref.shape == (N, Cout, Hout, Hout), (out.shape, ref.shape)
        err = float(jnp.max(jnp.abs(out - ref)))
        assert jnp.allclose(out, ref, atol=5e-2, rtol=5e-2), \
            f"config {idx}: max abs diff {err}"

    print("KERNEL_OK")
</pallas_src>

<mosaic_0001>
module attributes {stable_mosaic.version = 11 : i64} {
  func.func @kernel(%arg0: i32, %arg1: i32, %arg2: memref<1x20x18x128xbf16, #tpu.memory_space<vmem>>, %arg3: memref<1152x128xbf16, #tpu.memory_space<vmem>>, %arg4: memref<1x128xf32, #tpu.memory_space<vmem>>, %arg5: memref<1152x128xbf16, #tpu.memory_space<vmem>>, %arg6: memref<1x128xf32, #tpu.memory_space<vmem>>, %arg7: memref<128x128xbf16, #tpu.memory_space<vmem>>, %arg8: memref<1x128xf32, #tpu.memory_space<vmem>>, %arg9: memref<1x8x16x128xf32, #tpu.memory_space<vmem>>, %arg10: memref<10x18x128xbf16, #tpu.memory_space<vmem>>) attributes {dimension_semantics = [#tpu.dimension_semantics<parallel>, #tpu.dimension_semantics<arbitrary>], iteration_bounds = array<i64: 2, 2>, scalar_prefetch = 0 : i64, scratch_operands = 1 : i64, tpu.core_type = #tpu.core_type<tc>, window_params = [{transform_indices = @transform_0, window_bounds = array<i64: 1, 20, 18, 128>}, {pipeline_mode = #tpu.pipeline_mode<synchronous>, transform_indices = @transform_1, window_bounds = array<i64: 1152, 128>}, {pipeline_mode = #tpu.pipeline_mode<synchronous>, transform_indices = @transform_2, window_bounds = array<i64: 1, 128>}, {pipeline_mode = #tpu.pipeline_mode<synchronous>, transform_indices = @transform_3, window_bounds = array<i64: 1152, 128>}, {pipeline_mode = #tpu.pipeline_mode<synchronous>, transform_indices = @transform_4, window_bounds = array<i64: 1, 128>}, {pipeline_mode = #tpu.pipeline_mode<synchronous>, transform_indices = @transform_5, window_bounds = array<i64: 128, 128>}, {pipeline_mode = #tpu.pipeline_mode<synchronous>, transform_indices = @transform_6, window_bounds = array<i64: 1, 128>}, {transform_indices = @transform_7, window_bounds = array<i64: 1, 8, 16, 128>}]} {
    %c8_i32 = arith.constant 8 : i32
    %0 = arith.muli %arg1, %c8_i32 : i32
    %c0_i32 = arith.constant 0 : i32
    %1 = arith.addi %0, %c0_i32 : i32
    %c0 = arith.constant 0 : index
    %2 = arith.index_cast %1 : i32 to index
    %c0_0 = arith.constant 0 : index
    %c0_1 = arith.constant 0 : index
    %3 = vector.load %arg2[%c0, %2, %c0_0, %c0_1] : memref<1x20x18x128xbf16, #tpu.memory_space<vmem>>, vector<1x10x16x128xbf16>
    %4 = vector.shape_cast %3 : vector<1x10x16x128xbf16> to vector<10x16x128xbf16>
    %c0_i32_2 = arith.constant 0 : i32
    %5 = arith.addi %0, %c0_i32_2 : i32
    %c0_3 = arith.constant 0 : index
    %6 = arith.index_cast %5 : i32 to index
    %c1 = arith.constant 1 : index
    %c0_4 = arith.constant 0 : index
    %7 = vector.load %arg2[%c0_3, %6, %c1, %c0_4] : memref<1x20x18x128xbf16, #tpu.memory_space<vmem>>, vector<1x10x16x128xbf16>
    %8 = vector.shape_cast %7 : vector<1x10x16x128xbf16> to vector<10x16x128xbf16>
    %c0_i32_5 = arith.constant 0 : i32
    %9 = arith.addi %0, %c0_i32_5 : i32
    %c0_6 = arith.constant 0 : index
    %10 = arith.index_cast %9 : i32 to index
    %c2 = arith.constant 2 : index
    %c0_7 = arith.constant 0 : index
    %11 = vector.load %arg2[%c0_6, %10, %c2, %c0_7] : memref<1x20x18x128xbf16, #tpu.memory_space<vmem>>, vector<1x10x16x128xbf16>
    %12 = vector.shape_cast %11 : vector<1x10x16x128xbf16> to vector<10x16x128xbf16>
    %c1_i32 = arith.constant 1 : i32
    %13 = arith.addi %0, %c1_i32 : i32
    %c0_8 = arith.constant 0 : index
    %14 = arith.index_cast %13 : i32 to index
    %c0_9 = arith.constant 0 : index
    %c0_10 = arith.constant 0 : index
    %15 = vector.load %arg2[%c0_8, %14, %c0_9, %c0_10] : memref<1x20x18x128xbf16, #tpu.memory_space<vmem>>, vector<1x10x16x128xbf16>
    %16 = vector.shape_cast %15 : vector<1x10x16x128xbf16> to vector<10x16x128xbf16>
    %c1_i32_11 = arith.constant 1 : i32
    %17 = arith.addi %0, %c1_i32_11 : i32
    %c0_12 = arith.constant 0 : index
    %18 = arith.index_cast %17 : i32 to index
    %c1_13 = arith.constant 1 : index
    %c0_14 = arith.constant 0 : index
    %19 = vector.load %arg2[%c0_12, %18, %c1_13, %c0_14] : memref<1x20x18x128xbf16, #tpu.memory_space<vmem>>, vector<1x10x16x128xbf16>
    %20 = vector.shape_cast %19 : vector<1x10x16x128xbf16> to vector<10x16x128xbf16>
    %c1_i32_15 = arith.constant 1 : i32
    %21 = arith.addi %0, %c1_i32_15 : i32
    %c0_16 = arith.constant 0 : index
    %22 = arith.index_cast %21 : i32 to index
    %c2_17 = arith.constant 2 : index
    %c0_18 = arith.constant 0 : index
    %23 = vector.load %arg2[%c0_16, %22, %c2_17, %c0_18] : memref<1x20x18x128xbf16, #tpu.memory_space<vmem>>, vector<1x10x16x128xbf16>
    %24 = vector.shape_cast %23 : vector<1x10x16x128xbf16> to vector<10x16x128xbf16>
    %c2_i32 = arith.constant 2 : i32
    %25 = arith.addi %0, %c2_i32 : i32
    %c0_19 = arith.constant 0 : index
    %26 = arith.index_cast %25 : i32 to index
    %c0_20 = arith.constant 0 : index
    %c0_21 = arith.constant 0 : index
    %27 = vector.load %arg2[%c0_19, %26, %c0_20, %c0_21] : memref<1x20x18x128xbf16, #tpu.memory_space<vmem>>, vector<1x10x16x128xbf16>
    %28 = vector.shape_cast %27 : vector<1x10x16x128xbf16> to vector<10x16x128xbf16>
    %c2_i32_22 = arith.constant 2 : i32
    %29 = arith.addi %0, %c2_i32_22 : i32
    %c0_23 = arith.constant 0 : index
    %30 = arith.index_cast %29 : i32 to index
    %c1_24 = arith.constant 1 : index
    %c0_25 = arith.constant 0 : index
    %31 = vector.load %arg2[%c0_23, %30, %c1_24, %c0_25] : memref<1x20x18x128xbf16, #tpu.memory_space<vmem>>, vector<1x10x16x128xbf16>
    %32 = vector.shape_cast %31 : vector<1x10x16x128xbf16> to vector<10x16x128xbf16>
    %c2_i32_26 = arith.constant 2 : i32
    %33 = arith.addi %0, %c2_i32_26 : i32
    %c0_27 = arith.constant 0 : index
    %34 = arith.index_cast %33 : i32 to index
    %c2_28 = arith.constant 2 : index
    %c0_29 = arith.constant 0 : index
    %35 = vector.load %arg2[%c0_27, %34, %c2_28, %c0_29] : memref<1x20x18x128xbf16, #tpu.memory_space<vmem>>, vector<1x10x16x128xbf16>
    %36 = vector.shape_cast %35 : vector<1x10x16x128xbf16> to vector<10x16x128xbf16>
    %37 = tpu.concatenate %4, %8, %12, %16, %20, %24, %28, %32, %36 in 2 : vector<10x16x128xbf16>, vector<10x16x128xbf16>, vector<10x16x128xbf16>, vector<10x16x128xbf16>, vector<10x16x128xbf16>, vector<10x16x128xbf16>, vector<10x16x128xbf16>, vector<10x16x128xbf16>, vector<10x16x128xbf16> -> vector<10x16x1152xbf16>
    %38 = vector.shape_cast %37 : vector<10x16x1152xbf16> to vector<160x1152xbf16>
    %c0_30 = arith.constant 0 : index
    %c0_31 = arith.constant 0 : index
    %39 = vector.load %arg3[%c0_30, %c0_31] : memref<1152x128xbf16, #tpu.memory_space<vmem>>, vector<1152x128xbf16>
    %cst = arith.constant dense<0.000000e+00> : vector<160x128xf32>
    %40 = tpu.matmul %38, %39, %cst {dimension_numbers = #tpu.dot_dimension_numbers<[1], [0], [0], [1], [0, 0, 1, 1], [], []>} : vector<160x1152xbf16>, vector<1152x128xbf16>, vector<160x128xf32> -> vector<160x128xf32>
    %c0_32 = arith.constant 0 : index
    %c0_33 = arith.constant 0 : index
    %41 = vector.load %arg4[%c0_32, %c0_33] : memref<1x128xf32, #tpu.memory_space<vmem>>, vector<1x128xf32>
    %42 = vector.broadcast %41 : vector<1x128xf32> to vector<160x128xf32>
    %43 = arith.addf %40, %42 : vector<160x128xf32>
    %cst_34 = arith.constant 0.000000e+00 : f32
    %44 = vector.broadcast %cst_34 : f32 to vector<160x128xf32>
    %45 = arith.maximumf %43, %44 : vector<160x128xf32>
    %46 = vector.shape_cast %45 : vector<160x128xf32> to vector<10x16x128xf32>
    %c1_i32_35 = arith.constant 1 : i32
    %47 = arith.subi %0, %c1_i32_35 : i32
    %48 = tpu.iota {dimensions = array<i32: 0>} : vector<10x1x1xi32>
    %49 = vector.broadcast %47 : i32 to vector<10x1x1xi32>
    %50 = arith.addi %49, %48 : vector<10x1x1xi32>
    %c0_i32_36 = arith.constant 0 : i32
    %51 = vector.broadcast %c0_i32_36 : i32 to vector<10x1x1xi32>
    %52 = arith.cmpi sge, %50, %51 : vector<10x1x1xi32>
    %c16_i32 = arith.constant 16 : i32
    %53 = vector.broadcast %c16_i32 : i32 to vector<10x1x1xi32>
    %54 = arith.cmpi slt, %50, %53 : vector<10x1x1xi32>
    %55 = arith.andi %52, %54 : vector<10x1x1xi1>
    %cst_37 = arith.constant 0.000000e+00 : f32
    %56 = vector.shape_cast %55 : vector<10x1x1xi1> to vector<10x1x1xi1>
    %57 = vector.broadcast %56 : vector<10x1x1xi1> to vector<10x16x128xi1>
    %58 = vector.broadcast %cst_37 : f32 to vector<10x16x128xf32>
    %59 = arith.select %57, %46, %58 : vector<10x16x128xi1>, vector<10x16x128xf32>
    %cst_38 = arith.constant 0.000000e+00 : bf16
    %60 = vector.broadcast %cst_38 : bf16 to vector<10x1x128xbf16>
    %c0_39 = arith.constant 0 : index
    %c0_40 = arith.constant 0 : index
    %c0_41 = arith.constant 0 : index
    %61 = vector.load %arg10[%c0_39, %c0_40, %c0_41] : memref<10x18x128xbf16, #tpu.memory_space<vmem>>, vector<10x1x128xbf16>
    tpu.vector_store %arg10[%c0_39, %c0_40, %c0_41], %60 {strides = array<i32>} : memref<10x18x128xbf16, #tpu.memory_space<vmem>>, vector<10x1x128xbf16>,
    %c0_42 = arith.constant 0 : index
    %c17 = arith.constant 17 : index
    %c0_43 = arith.constant 0 : index
    %62 = vector.load %arg10[%c0_42, %c17, %c0_43] : memref<10x18x128xbf16, #tpu.memory_space<vmem>>, vector<10x1x128xbf16>
    tpu.vector_store %arg10[%c0_42, %c17, %c0_43], %60 {strides = array<i32>} : memref<10x18x128xbf16, #tpu.memory_space<vmem>>, vector<10x1x128xbf16>,
    %63 = arith.truncf %59 : vector<10x16x128xf32> to vector<10x16x128xbf16>
    %c0_44 = arith.constant 0 : index
    %c1_45 = arith.constant 1 : index
    %c0_46 = arith.constant 0 : index
    %64 = vector.load %arg10[%c0_44, %c1_45, %c0_46] : memref<10x18x128xbf16, #tpu.memory_space<vmem>>, vector<10x16x128xbf16>
    tpu.vector_store %arg10[%c0_44, %c1_45, %c0_46], %63 {strides = array<i32>} : memref<10x18x128xbf16, #tpu.memory_space<vmem>>, vector<10x16x128xbf16>,
    %c0_47 = arith.constant 0 : index
    %c0_48 = arith.constant 0 : index
    %c0_49 = arith.constant 0 : index
    %65 = vector.load %arg10[%c0_47, %c0_48, %c0_49] : memref<10x18x128xbf16, #tpu.memory_space<vmem>>, vector<8x16x128xbf16>
    %c0_50 = arith.constant 0 : index
    %c1_51 = arith.constant 1 : index
    %c0_52 = arith.constant 0 : index
    %66 = vector.load %arg10[%c0_50, %c1_51, %c0_52] : memref<10x18x128xbf16, #tpu.memory_space<vmem>>, vector<8x16x128xbf16>
    %c0_53 = arith.constant 0 : index
    %c2_54 = arith.constant 2 : index
    %c0_55 = arith.constant 0 : index
    %67 = vector.load %arg10[%c0_53, %c2_54, %c0_55] : memref<10x18x128xbf16, #tpu.memory_space<vmem>>, vector<8x16x128xbf16>
    %c1_56 = arith.constant 1 : index
    %c0_57 = arith.constant 0 : index
    %c0_58 = arith.constant 0 : index
    %68 = vector.load %arg10[%c1_56, %c0_57, %c0_58] : memref<10x18x128xbf16, #tpu.memory_space<vmem>>, vector<8x16x128xbf16>
    %c1_59 = arith.constant 1 : index
    %c1_60 = arith.constant 1 : index
    %c0_61 = arith.constant 0 : index
    %69 = vector.load %arg10[%c1_59, %c1_60, %c0_61] : memref<10x18x128xbf16, #tpu.memory_space<vmem>>, vector<8x16x128xbf16>
    %c1_62 = arith.constant 1 : index
    %c2_63 = arith.constant 2 : index
    %c0_64 = arith.constant 0 : index
    %70 = vector.load %arg10[%c1_62, %c2_63, %c0_64] : memref<10x18x128xbf16, #tpu.memory_space<vmem>>, vector<8x16x128xbf16>
    %c2_65 = arith.constant 2 : index
    %c0_66 = arith.constant 0 : index
    %c0_67 = arith.constant 0 : index
    %71 = vector.load %arg10[%c2_65, %c0_66, %c0_67] : memref<10x18x128xbf16, #tpu.memory_space<vmem>>, vector<8x16x128xbf16>
    %c2_68 = arith.constant 2 : index
    %c1_69 = arith.constant 1 : index
    %c0_70 = arith.constant 0 : index
    %72 = vector.load %arg10[%c2_68, %c1_69, %c0_70] : memref<10x18x128xbf16, #tpu.memory_space<vmem>>, vector<8x16x128xbf16>
    %c2_71 = arith.constant 2 : index
    %c2_72 = arith.constant 2 : index
    %c0_73 = arith.constant 0 : index
    %73 = vector.load %arg10[%c2_71, %c2_72, %c0_73] : memref<10x18x128xbf16, #tpu.memory_space<vmem>>, vector<8x16x128xbf16>
    %74 = tpu.concatenate %65, %66, %67, %68, %69, %70, %71, %72, %73 in 2 : vector<8x16x128xbf16>, vector<8x16x128xbf16>, vector<8x16x128xbf16>, vector<8x16x128xbf16>, vector<8x16x128xbf16>, vector<8x16x128xbf16>, vector<8x16x128xbf16>, vector<8x16x128xbf16>, vector<8x16x128xbf16> -> vector<8x16x1152xbf16>
    %75 = vector.shape_cast %74 : vector<8x16x1152xbf16> to vector<128x1152xbf16>
    %c0_74 = arith.constant 0 : index
    %c0_75 = arith.constant 0 : index
    %76 = vector.load %arg5[%c0_74, %c0_75] : memref<1152x128xbf16, #tpu.memory_space<vmem>>, vector<1152x128xbf16>
    %cst_76 = arith.constant dense<0.000000e+00> : vector<128x128xf32>
    %77 = tpu.matmul %75, %76, %cst_76 {dimension_numbers = #tpu.dot_dimension_numbers<[1], [0], [0], [1], [0, 0, 1, 1], [], []>} : vector<128x1152xbf16>, vector<1152x128xbf16>, vector<128x128xf32> -> vector<128x128xf32>
    %c0_77 = arith.constant 0 : index
    %c0_78 = arith.constant 0 : index
    %78 = vector.load %arg6[%c0_77, %c0_78] : memref<1x128xf32, #tpu.memory_space<vmem>>, vector<1x128xf32>
    %79 = vector.broadcast %78 : vector<1x128xf32> to vector<128x128xf32>
    %80 = arith.addf %77, %79 : vector<128x128xf32>
    %c2_i32_79 = arith.constant 2 : i32
    %81 = arith.addi %0, %c2_i32_79 : i32
    %c0_80 = arith.constant 0 : index
    %82 = arith.index_cast %81 : i32 to index
    %c1_81 = arith.constant 1 : index
    %c0_82 = arith.constant 0 : index
    %83 = vector.load %arg2[%c0_80, %82, %c1_81, %c0_82] : memref<1x20x18x128xbf16, #tpu.memory_space<vmem>>, vector<1x8x16x128xbf16>
    %84 = vector.shape_cast %83 : vector<1x8x16x128xbf16> to vector<8x16x128xbf16>
    %85 = vector.shape_cast %84 : vector<8x16x128xbf16> to vector<128x128xbf16>
    %c0_83 = arith.constant 0 : index
    %c0_84 = arith.constant 0 : index
    %86 = vector.load %arg7[%c0_83, %c0_84] : memref<128x128xbf16, #tpu.memory_space<vmem>>, vector<128x128xbf16>
    %cst_85 = arith.constant dense<0.000000e+00> : vector<128x128xf32>
    %87 = tpu.matmul %85, %86, %cst_85 {dimension_numbers = #tpu.dot_dimension_numbers<[1], [0], [0], [1], [0, 0, 1, 1], [], []>} : vector<128x128xbf16>, vector<128x128xbf16>, vector<128x128xf32> -> vector<128x128xf32>
    %c0_86 = arith.constant 0 : index
    %c0_87 = arith.constant 0 : index
    %88 = vector.load %arg8[%c0_86, %c0_87] : memref<1x128xf32, #tpu.memory_space<vmem>>, vector<1x128xf32>
    %89 = vector.broadcast %88 : vector<1x128xf32> to vector<128x128xf32>
    %90 = arith.addf %87, %89 : vector<128x128xf32>
    %91 = arith.addf %80, %90 : vector<128x128xf32>
    %cst_88 = arith.constant 0.000000e+00 : f32
    %92 = vector.broadcast %cst_88 : f32 to vector<128x128xf32>
    %93 = arith.maximumf %91, %92 : vector<128x128xf32>
    %94 = vector.shape_cast %93 : vector<128x128xf32> to vector<8x16x128xf32>
    %c0_89 = arith.constant 0 : index
    %c0_90 = arith.constant 0 : index
    %c0_91 = arith.constant 0 : index
    %c0_92 = arith.constant 0 : index
    %95 = vector.load %arg9[%c0_89, %c0_90, %c0_91, %c0_92] : memref<1x8x16x128xf32, #tpu.memory_space<vmem>>, vector<1x8x16x128xf32>
    %96 = vector.shape_cast %95 : vector<1x8x16x128xf32> to vector<8x16x128xf32>
    %97 = vector.shape_cast %94 : vector<8x16x128xf32> to vector<1x8x16x128xf32>
    tpu.vector_store %arg9[%c0_89, %c0_90, %c0_91, %c0_92], %97 {strides = array<i32>} : memref<1x8x16x128xf32, #tpu.memory_space<vmem>>, vector<1x8x16x128xf32>,
    return
  }
  func.func @transform_0(%arg0: i32, %arg1: i32) -> (i32, i32, i32, i32) {
    %c0_i32 = arith.constant 0 : i32
    %c0_i32_0 = arith.constant 0 : i32
    %c0_i32_1 = arith.constant 0 : i32
    %c0_i32_2 = arith.constant 0 : i32
    return %arg0, %c0_i32, %c0_i32_0, %c0_i32_1 : i32, i32, i32, i32
  }
  func.func @transform_1(%arg0: i32, %arg1: i32) -> (i32, i32) {
    %c0_i32 = arith.constant 0 : i32
    %c0_i32_0 = arith.constant 0 : i32
    %c0_i32_1 = arith.constant 0 : i32
    return %c0_i32, %c0_i32_0 : i32, i32
  }
  func.func @transform_2(%arg0: i32, %arg1: i32) -> (i32, i32) {
    %c0_i32 = arith.constant 0 : i32
    %c0_i32_0 = arith.constant 0 : i32
    %c0_i32_1 = arith.constant 0 : i32
    return %c0_i32, %c0_i32_0 : i32, i32
  }
  func.func @transform_3(%arg0: i32, %arg1: i32) -> (i32, i32) {
    %c0_i32 = arith.constant 0 : i32
    %c0_i32_0 = arith.constant 0 : i32
    %c0_i32_1 = arith.constant 0 : i32
    return %c0_i32, %c0_i32_0 : i32, i32
  }
  func.func @transform_4(%arg0: i32, %arg1: i32) -> (i32, i32) {
    %c0_i32 = arith.constant 0 : i32
    %c0_i32_0 = arith.constant 0 : i32
    %c0_i32_1 = arith.constant 0 : i32
    return %c0_i32, %c0_i32_0 : i32, i32
  }
  func.func @transform_5(%arg0: i32, %arg1: i32) -> (i32, i32) {
    %c0_i32 = arith.constant 0 : i32
    %c0_i32_0 = arith.constant 0 : i32
    %c0_i32_1 = arith.constant 0 : i32
    return %c0_i32, %c0_i32_0 : i32, i32
  }
  func.func @transform_6(%arg0: i32, %arg1: i32) -> (i32, i32) {
    %c0_i32 = arith.constant 0 : i32
    %c0_i32_0 = arith.constant 0 : i32
    %c0_i32_1 = arith.constant 0 : i32
    return %c0_i32, %c0_i32_0 : i32, i32
  }
  func.func @transform_7(%arg0: i32, %arg1: i32) -> (i32, i32, i32, i32) {
    %c0_i32 = arith.constant 0 : i32
    %c0_i32_0 = arith.constant 0 : i32
    %c0_i32_1 = arith.constant 0 : i32
    return %arg0, %arg1, %c0_i32, %c0_i32_0 : i32, i32, i32, i32
  }
}

module attributes {stable_mosaic.version = 11 : i64} {
  func.func @kernel(%arg0: i32, %arg1: i32, %arg2: memref<1x20x18x128xbf16, #tpu.memory_space<vmem>>, %arg3: memref<1152x128xbf16, #tpu.memory_space<vmem>>, %arg4: memref<1x128xf32, #tpu.memory_space<vmem>>, %arg5: memref<1152x128xbf16, #tpu.memory_space<vmem>>, %arg6: memref<1x128xf32, #tpu.memory_space<vmem>>, %arg7: memref<128x128xbf16, #tpu.memory_space<vmem>>, %arg8: memref<1x128xf32, #tpu.memory_space<vmem>>, %arg9: memref<1x8x16x128xf32, #tpu.memory_space<vmem>>, %arg10: memref<10x18x128xbf16, #tpu.memory_space<vmem>>) attributes {dimension_semantics = [#tpu.dimension_semantics<parallel>, #tpu.dimension_semantics<arbitrary>], iteration_bounds = array<i64: 2, 2>, scalar_prefetch = 0 : i64, scratch_operands = 1 : i64, tpu.core_type = #tpu.core_type<tc>, window_params = [{transform_indices = @transform_0, window_bounds = array<i64: 1, 20, 18, 128>}, {pipeline_mode = #tpu.pipeline_mode<synchronous>, transform_indices = @transform_1, window_bounds = array<i64: 1152, 128>}, {pipeline_mode = #tpu.pipeline_mode<synchronous>, transform_indices = @transform_2, window_bounds = array<i64: 1, 128>}, {pipeline_mode = #tpu.pipeline_mode<synchronous>, transform_indices = @transform_3, window_bounds = array<i64: 1152, 128>}, {pipeline_mode = #tpu.pipeline_mode<synchronous>, transform_indices = @transform_4, window_bounds = array<i64: 1, 128>}, {pipeline_mode = #tpu.pipeline_mode<synchronous>, transform_indices = @transform_5, window_bounds = array<i64: 128, 128>}, {pipeline_mode = #tpu.pipeline_mode<synchronous>, transform_indices = @transform_6, window_bounds = array<i64: 1, 128>}, {transform_indices = @transform_7, window_bounds = array<i64: 1, 8, 16, 128>}]} {
    %c8_i32 = arith.constant 8 : i32
    %0 = arith.muli %arg1, %c8_i32 : i32
    %c0_i32 = arith.constant 0 : i32
    %1 = arith.addi %0, %c0_i32 : i32
    %c0 = arith.constant 0 : index
    %2 = arith.index_cast %1 : i32 to index
    %c0_0 = arith.constant 0 : index
    %c0_1 = arith.constant 0 : index
    %3 = vector.load %arg2[%c0, %2, %c0_0, %c0_1] : memref<1x20x18x128xbf16, #tpu.memory_space<vmem>>, vector<1x10x16x128xbf16>
    %4 = vector.shape_cast %3 : vector<1x10x16x128xbf16> to vector<10x16x128xbf16>
    %c0_i32_2 = arith.constant 0 : i32
    %5 = arith.addi %0, %c0_i32_2 : i32
    %c0_3 = arith.constant 0 : index
    %6 = arith.index_cast %5 : i32 to index
    %c1 = arith.constant 1 : index
    %c0_4 = arith.constant 0 : index
    %7 = vector.load %arg2[%c0_3, %6, %c1, %c0_4] : memref<1x20x18x128xbf16, #tpu.memory_space<vmem>>, vector<1x10x16x128xbf16>
    %8 = vector.shape_cast %7 : vector<1x10x16x128xbf16> to vector<10x16x128xbf16>
    %c0_i32_5 = arith.constant 0 : i32
    %9 = arith.addi %0, %c0_i32_5 : i32
    %c0_6 = arith.constant 0 : index
    %10 = arith.index_cast %9 : i32 to index
    %c2 = arith.constant 2 : index
    %c0_7 = arith.constant 0 : index
    %11 = vector.load %arg2[%c0_6, %10, %c2, %c0_7] : memref<1x20x18x128xbf16, #tpu.memory_space<vmem>>, vector<1x10x16x128xbf16>
    %12 = vector.shape_cast %11 : vector<1x10x16x128xbf16> to vector<10x16x128xbf16>
    %c1_i32 = arith.constant 1 : i32
    %13 = arith.addi %0, %c1_i32 : i32
    %c0_8 = arith.constant 0 : index
    %14 = arith.index_cast %13 : i32 to index
    %c0_9 = arith.constant 0 : index
    %c0_10 = arith.constant 0 : index
    %15 = vector.load %arg2[%c0_8, %14, %c0_9, %c0_10] : memref<1x20x18x128xbf16, #tpu.memory_space<vmem>>, vector<1x10x16x128xbf16>
    %16 = vector.shape_cast %15 : vector<1x10x16x128xbf16> to vector<10x16x128xbf16>
    %c1_i32_11 = arith.constant 1 : i32
    %17 = arith.addi %0, %c1_i32_11 : i32
    %c0_12 = arith.constant 0 : index
    %18 = arith.index_cast %17 : i32 to index
    %c1_13 = arith.constant 1 : index
    %c0_14 = arith.constant 0 : index
    %19 = vector.load %arg2[%c0_12, %18, %c1_13, %c0_14] : memref<1x20x18x128xbf16, #tpu.memory_space<vmem>>, vector<1x10x16x128xbf16>
    %20 = vector.shape_cast %19 : vector<1x10x16x128xbf16> to vector<10x16x128xbf16>
    %c1_i32_15 = arith.constant 1 : i32
    %21 = arith.addi %0, %c1_i32_15 : i32
    %c0_16 = arith.constant 0 : index
    %22 = arith.index_cast %21 : i32 to index
    %c2_17 = arith.constant 2 : index
    %c0_18 = arith.constant 0 : index
    %23 = vector.load %arg2[%c0_16, %22, %c2_17, %c0_18] : memref<1x20x18x128xbf16, #tpu.memory_space<vmem>>, vector<1x10x16x128xbf16>
    %24 = vector.shape_cast %23 : vector<1x10x16x128xbf16> to vector<10x16x128xbf16>
    %c2_i32 = arith.constant 2 : i32
    %25 = arith.addi %0, %c2_i32 : i32
    %c0_19 = arith.constant 0 : index
    %26 = arith.index_cast %25 : i32 to index
    %c0_20 = arith.constant 0 : index
    %c0_21 = arith.constant 0 : index
    %27 = vector.load %arg2[%c0_19, %26, %c0_20, %c0_21] : memref<1x20x18x128xbf16, #tpu.memory_space<vmem>>, vector<1x10x16x128xbf16>
    %28 = vector.shape_cast %27 : vector<1x10x16x128xbf16> to vector<10x16x128xbf16>
    %c2_i32_22 = arith.constant 2 : i32
    %29 = arith.addi %0, %c2_i32_22 : i32
    %c0_23 = arith.constant 0 : index
    %30 = arith.index_cast %29 : i32 to index
    %c1_24 = arith.constant 1 : index
    %c0_25 = arith.constant 0 : index
    %31 = vector.load %arg2[%c0_23, %30, %c1_24, %c0_25] : memref<1x20x18x128xbf16, #tpu.memory_space<vmem>>, vector<1x10x16x128xbf16>
    %32 = vector.shape_cast %31 : vector<1x10x16x128xbf16> to vector<10x16x128xbf16>
    %c2_i32_26 = arith.constant 2 : i32
    %33 = arith.addi %0, %c2_i32_26 : i32
    %c0_27 = arith.constant 0 : index
    %34 = arith.index_cast %33 : i32 to index
    %c2_28 = arith.constant 2 : index
    %c0_29 = arith.constant 0 : index
    %35 = vector.load %arg2[%c0_27, %34, %c2_28, %c0_29] : memref<1x20x18x128xbf16, #tpu.memory_space<vmem>>, vector<1x10x16x128xbf16>
    %36 = vector.shape_cast %35 : vector<1x10x16x128xbf16> to vector<10x16x128xbf16>
    %37 = tpu.concatenate %4, %8, %12, %16, %20, %24, %28, %32, %36 in 2 : vector<10x16x128xbf16>, vector<10x16x128xbf16>, vector<10x16x128xbf16>, vector<10x16x128xbf16>, vector<10x16x128xbf16>, vector<10x16x128xbf16>, vector<10x16x128xbf16>, vector<10x16x128xbf16>, vector<10x16x128xbf16> -> vector<10x16x1152xbf16>
    %38 = vector.shape_cast %37 : vector<10x16x1152xbf16> to vector<160x1152xbf16>
    %c0_30 = arith.constant 0 : index
    %c0_31 = arith.constant 0 : index
    %39 = vector.load %arg3[%c0_30, %c0_31] : memref<1152x128xbf16, #tpu.memory_space<vmem>>, vector<1152x128xbf16>
    %cst = arith.constant dense<0.000000e+00> : vector<160x128xf32>
    %40 = tpu.matmul %38, %39, %cst {dimension_numbers = #tpu.dot_dimension_numbers<[1], [0], [0], [1], [0, 0, 1, 1], [], []>} : vector<160x1152xbf16>, vector<1152x128xbf16>, vector<160x128xf32> -> vector<160x128xf32>
    %c0_32 = arith.constant 0 : index
    %c0_33 = arith.constant 0 : index
    %41 = vector.load %arg4[%c0_32, %c0_33] : memref<1x128xf32, #tpu.memory_space<vmem>>, vector<1x128xf32>
    %42 = vector.broadcast %41 : vector<1x128xf32> to vector<160x128xf32>
    %43 = arith.addf %40, %42 : vector<160x128xf32>
    %cst_34 = arith.constant 0.000000e+00 : f32
    %44 = vector.broadcast %cst_34 : f32 to vector<160x128xf32>
    %45 = arith.maximumf %43, %44 : vector<160x128xf32>
    %46 = vector.shape_cast %45 : vector<160x128xf32> to vector<10x16x128xf32>
    %c1_i32_35 = arith.constant 1 : i32
    %47 = arith.subi %0, %c1_i32_35 : i32
    %48 = tpu.iota {dimensions = array<i32: 0>} : vector<10x1x1xi32>
    %49 = vector.broadcast %47 : i32 to vector<10x1x1xi32>
    %50 = arith.addi %49, %48 : vector<10x1x1xi32>
    %c0_i32_36 = arith.constant 0 : i32
    %51 = vector.broadcast %c0_i32_36 : i32 to vector<10x1x1xi32>
    %52 = arith.cmpi sge, %50, %51 : vector<10x1x1xi32>
    %c16_i32 = arith.constant 16 : i32
    %53 = vector.broadcast %c16_i32 : i32 to vector<10x1x1xi32>
    %54 = arith.cmpi slt, %50, %53 : vector<10x1x1xi32>
    %55 = arith.andi %52, %54 : vector<10x1x1xi1>
    %cst_37 = arith.constant 0.000000e+00 : f32
    %56 = vector.shape_cast %55 : vector<10x1x1xi1> to vector<10x1x1xi1>
    %57 = vector.broadcast %56 : vector<10x1x1xi1> to vector<10x16x128xi1>
    %58 = vector.broadcast %cst_37 : f32 to vector<10x16x128xf32>
    %59 = arith.select %57, %46, %58 : vector<10x16x128xi1>, vector<10x16x128xf32>
    %cst_38 = arith.constant 0.000000e+00 : bf16
    %60 = vector.broadcast %cst_38 : bf16 to vector<10x1x128xbf16>
    %c0_39 = arith.constant 0 : index
    %c0_40 = arith.constant 0 : index
    %c0_41 = arith.constant 0 : index
    %61 = vector.load %arg10[%c0_39, %c0_40, %c0_41] : memref<10x18x128xbf16, #tpu.memory_space<vmem>>, vector<10x1x128xbf16>
    tpu.vector_store %arg10[%c0_39, %c0_40, %c0_41], %60 {strides = array<i32>} : memref<10x18x128xbf16, #tpu.memory_space<vmem>>, vector<10x1x128xbf16>,
    %c0_42 = arith.constant 0 : index
    %c17 = arith.constant 17 : index
    %c0_43 = arith.constant 0 : index
    %62 = vector.load %arg10[%c0_42, %c17, %c0_43] : memref<10x18x128xbf16, #tpu.memory_space<vmem>>, vector<10x1x128xbf16>
    tpu.vector_store %arg10[%c0_42, %c17, %c0_43], %60 {strides = array<i32>} : memref<10x18x128xbf16, #tpu.memory_space<vmem>>, vector<10x1x128xbf16>,
    %63 = arith.truncf %59 : vector<10x16x128xf32> to vector<10x16x128xbf16>
    %c0_44 = arith.constant 0 : index
    %c1_45 = arith.constant 1 : index
    %c0_46 = arith.constant 0 : index
    %64 = vector.load %arg10[%c0_44, %c1_45, %c0_46] : memref<10x18x128xbf16, #tpu.memory_space<vmem>>, vector<10x16x128xbf16>
    tpu.vector_store %arg10[%c0_44, %c1_45, %c0_46], %63 {strides = array<i32>} : memref<10x18x128xbf16, #tpu.memory_space<vmem>>, vector<10x16x128xbf16>,
    %c0_47 = arith.constant 0 : index
    %c0_48 = arith.constant 0 : index
    %c0_49 = arith.constant 0 : index
    %65 = vector.load %arg10[%c0_47, %c0_48, %c0_49] : memref<10x18x128xbf16, #tpu.memory_space<vmem>>, vector<8x16x128xbf16>
    %c0_50 = arith.constant 0 : index
    %c1_51 = arith.constant 1 : index
    %c0_52 = arith.constant 0 : index
    %66 = vector.load %arg10[%c0_50, %c1_51, %c0_52] : memref<10x18x128xbf16, #tpu.memory_space<vmem>>, vector<8x16x128xbf16>
    %c0_53 = arith.constant 0 : index
    %c2_54 = arith.constant 2 : index
    %c0_55 = arith.constant 0 : index
    %67 = vector.load %arg10[%c0_53, %c2_54, %c0_55] : memref<10x18x128xbf16, #tpu.memory_space<vmem>>, vector<8x16x128xbf16>
    %c1_56 = arith.constant 1 : index
    %c0_57 = arith.constant 0 : index
    %c0_58 = arith.constant 0 : index
    %68 = vector.load %arg10[%c1_56, %c0_57, %c0_58] : memref<10x18x128xbf16, #tpu.memory_space<vmem>>, vector<8x16x128xbf16>
    %c1_59 = arith.constant 1 : index
    %c1_60 = arith.constant 1 : index
    %c0_61 = arith.constant 0 : index
    %69 = vector.load %arg10[%c1_59, %c1_60, %c0_61] : memref<10x18x128xbf16, #tpu.memory_space<vmem>>, vector<8x16x128xbf16>
    %c1_62 = arith.constant 1 : index
    %c2_63 = arith.constant 2 : index
    %c0_64 = arith.constant 0 : index
    %70 = vector.load %arg10[%c1_62, %c2_63, %c0_64] : memref<10x18x128xbf16, #tpu.memory_space<vmem>>, vector<8x16x128xbf16>
    %c2_65 = arith.constant 2 : index
    %c0_66 = arith.constant 0 : index
    %c0_67 = arith.constant 0 : index
    %71 = vector.load %arg10[%c2_65, %c0_66, %c0_67] : memref<10x18x128xbf16, #tpu.memory_space<vmem>>, vector<8x16x128xbf16>
    %c2_68 = arith.constant 2 : index
    %c1_69 = arith.constant 1 : index
    %c0_70 = arith.constant 0 : index
    %72 = vector.load %arg10[%c2_68, %c1_69, %c0_70] : memref<10x18x128xbf16, #tpu.memory_space<vmem>>, vector<8x16x128xbf16>
    %c2_71 = arith.constant 2 : index
    %c2_72 = arith.constant 2 : index
    %c0_73 = arith.constant 0 : index
    %73 = vector.load %arg10[%c2_71, %c2_72, %c0_73] : memref<10x18x128xbf16, #tpu.memory_space<vmem>>, vector<8x16x128xbf16>
    %74 = tpu.concatenate %65, %66, %67, %68, %69, %70, %71, %72, %73 in 2 : vector<8x16x128xbf16>, vector<8x16x128xbf16>, vector<8x16x128xbf16>, vector<8x16x128xbf16>, vector<8x16x128xbf16>, vector<8x16x128xbf16>, vector<8x16x128xbf16>, vector<8x16x128xbf16>, vector<8x16x128xbf16> -> vector<8x16x1152xbf16>
    %75 = vector.shape_cast %74 : vector<8x16x1152xbf16> to vector<128x1152xbf16>
    %c0_74 = arith.constant 0 : index
    %c0_75 = arith.constant 0 : index
    %76 = vector.load %arg5[%c0_74, %c0_75] : memref<1152x128xbf16, #tpu.memory_space<vmem>>, vector<1152x128xbf16>
    %cst_76 = arith.constant dense<0.000000e+00> : vector<128x128xf32>
    %77 = tpu.matmul %75, %76, %cst_76 {dimension_numbers = #tpu.dot_dimension_numbers<[1], [0], [0], [1], [0, 0, 1, 1], [], []>} : vector<128x1152xbf16>, vector<1152x128xbf16>, vector<128x128xf32> -> vector<128x128xf32>
    %c0_77 = arith.constant 0 : index
    %c0_78 = arith.constant 0 : index
    %78 = vector.load %arg6[%c0_77, %c0_78] : memref<1x128xf32, #tpu.memory_space<vmem>>, vector<1x128xf32>
    %79 = vector.broadcast %78 : vector<1x128xf32> to vector<128x128xf32>
    %80 = arith.addf %77, %79 : vector<128x128xf32>
    %c2_i32_79 = arith.constant 2 : i32
    %81 = arith.addi %0, %c2_i32_79 : i32
    %c0_80 = arith.constant 0 : index
    %82 = arith.index_cast %81 : i32 to index
    %c1_81 = arith.constant 1 : index
    %c0_82 = arith.constant 0 : index
    %83 = vector.load %arg2[%c0_80, %82, %c1_81, %c0_82] : memref<1x20x18x128xbf16, #tpu.memory_space<vmem>>, vector<1x8x16x128xbf16>
    %84 = vector.shape_cast %83 : vector<1x8x16x128xbf16> to vector<8x16x128xbf16>
    %85 = vector.shape_cast %84 : vector<8x16x128xbf16> to vector<128x128xbf16>
    %c0_83 = arith.constant 0 : index
    %c0_84 = arith.constant 0 : index
    %86 = vector.load %arg7[%c0_83, %c0_84] : memref<128x128xbf16, #tpu.memory_space<vmem>>, vector<128x128xbf16>
    %cst_85 = arith.constant dense<0.000000e+00> : vector<128x128xf32>
    %87 = tpu.matmul %85, %86, %cst_85 {dimension_numbers = #tpu.dot_dimension_numbers<[1], [0], [0], [1], [0, 0, 1, 1], [], []>} : vector<128x128xbf16>, vector<128x128xbf16>, vector<128x128xf32> -> vector<128x128xf32>
    %c0_86 = arith.constant 0 : index
    %c0_87 = arith.constant 0 : index
    %88 = vector.load %arg8[%c0_86, %c0_87] : memref<1x128xf32, #tpu.memory_space<vmem>>, vector<1x128xf32>
    %89 = vector.broadcast %88 : vector<1x128xf32> to vector<128x128xf32>
    %90 = arith.addf %87, %89 : vector<128x128xf32>
    %91 = arith.addf %80, %90 : vector<128x128xf32>
    %cst_88 = arith.constant 0.000000e+00 : f32
    %92 = vector.broadcast %cst_88 : f32 to vector<128x128xf32>
    %93 = arith.maximumf %91, %92 : vector<128x128xf32>
    %94 = vector.shape_cast %93 : vector<128x128xf32> to vector<8x16x128xf32>
    %c0_89 = arith.constant 0 : index
    %c0_90 = arith.constant 0 : index
    %c0_91 = arith.constant 0 : index
    %c0_92 = arith.constant 0 : index
    %95 = vector.load %arg9[%c0_89, %c0_90, %c0_91, %c0_92] : memref<1x8x16x128xf32, #tpu.memory_space<vmem>>, vector<1x8x16x128xf32>
    %96 = vector.shape_cast %95 : vector<1x8x16x128xf32> to vector<8x16x128xf32>
    %97 = vector.shape_cast %94 : vector<8x16x128xf32> to vector<1x8x16x128xf32>
    tpu.vector_store %arg9[%c0_89, %c0_90, %c0_91, %c0_92], %97 {strides = array<i32>} : memref<1x8x16x128xf32, #tpu.memory_space<vmem>>, vector<1x8x16x128xf32>,
    return
  }
  func.func @transform_0(%arg0: i32, %arg1: i32) -> (i32, i32, i32, i32) {
    %c0_i32 = arith.constant 0 : i32
    %c0_i32_0 = arith.constant 0 : i32
    %c0_i32_1 = arith.constant 0 : i32
    %c0_i32_2 = arith.constant 0 : i32
    return %arg0, %c0_i32, %c0_i32_0, %c0_i32_1 : i32, i32, i32, i32
  }
  func.func @transform_1(%arg0: i32, %arg1: i32) -> (i32, i32) {
    %c0_i32 = arith.constant 0 : i32
    %c0_i32_0 = arith.constant 0 : i32
    %c0_i32_1 = arith.constant 0 : i32
    return %c0_i32, %c0_i32_0 : i32, i32
  }
  func.func @transform_2(%arg0: i32, %arg1: i32) -> (i32, i32) {
    %c0_i32 = arith.constant 0 : i32
    %c0_i32_0 = arith.constant 0 : i32
    %c0_i32_1 = arith.constant 0 : i32
    return %c0_i32, %c0_i32_0 : i32, i32
  }
  func.func @transform_3(%arg0: i32, %arg1: i32) -> (i32, i32) {
    %c0_i32 = arith.constant 0 : i32
    %c0_i32_0 = arith.constant 0 : i32
    %c0_i32_1 = arith.constant 0 : i32
    return %c0_i32, %c0_i32_0 : i32, i32
  }
  func.func @transform_4(%arg0: i32, %arg1: i32) -> (i32, i32) {
    %c0_i32 = arith.constant 0 : i32
    %c0_i32_0 = arith.constant 0 : i32
    %c0_i32_1 = arith.constant 0 : i32
    return %c0_i32, %c0_i32_0 : i32, i32
  }
  func.func @transform_5(%arg0: i32, %arg1: i32) -> (i32, i32) {
    %c0_i32 = arith.constant 0 : i32
    %c0_i32_0 = arith.constant 0 : i32
    %c0_i32_1 = arith.constant 0 : i32
    return %c0_i32, %c0_i32_0 : i32, i32
  }
  func.func @transform_6(%arg0: i32, %arg1: i32) -> (i32, i32) {
    %c0_i32 = arith.constant 0 : i32
    %c0_i32_0 = arith.constant 0 : i32
    %c0_i32_1 = arith.constant 0 : i32
    return %c0_i32, %c0_i32_0 : i32, i32
  }
  func.func @transform_7(%arg0: i32, %arg1: i32) -> (i32, i32, i32, i32) {
    %c0_i32 = arith.constant 0 : i32
    %c0_i32_0 = arith.constant 0 : i32
    %c0_i32_1 = arith.constant 0 : i32
    return %arg0, %arg1, %c0_i32, %c0_i32_0 : i32, i32, i32, i32
  }
}

</mosaic_0001>

<bundles_post_ra>
// kernel: tpu_custom_call.1
= control target key start
LH: loop header
LB: loop body
LE: loop exit
PB: predicated region body
PF: predicated region fallthrough
CT: control target
= control target key end

     0   :  { %s8499_s0 = inlined_call_operand.vmem [shape: bf16[2,20,18,128], index: 0, kind: input, shape index: {}]   ;;  %s8500_s1 = inlined_call_operand.vmem [shape: bf16[1152,128], index: 1, kind: input, shape index: {}]   ;;  %s8501_s2 = inlined_call_operand.vmem [shape: f32[1,128], index: 2, kind: input, shape index: {}]   ;;  %s8502_s3 = inlined_call_operand.hbm [shape: bf16[1152,128], index: 3, kind: input, shape index: {}]   ;;  %s8503_s4 = inlined_call_operand.vmem [shape: f32[1,128], index: 4, kind: input, shape index: {}]   ;;  %s8504_s5 = inlined_call_operand.vmem [shape: bf16[128,128], index: 5, kind: input, shape index: {}]   ;;  %s8505_s6 = inlined_call_operand.vmem [shape: f32[1,128], index: 6, kind: input, shape index: {}]   ;;  %s8506_s7 = inlined_call_operand.hbm [shape: f32[2,16,16,128], index: 7, kind: output, shape index: {}]  }
   0x1   :  { %8509 = sst [smem:[#allocation22_spill]] %s8502_s3 }
   0x2   :  { %12 = vsyncpa [#allocation4], 0 }
   0x3   :  { %13 = vsyncpa [#allocation5], 0 }
   0x4   :  { %15 = vsyncpa [#allocation5 + $0x1], 0  ;;  %s6708_s24 = smov 0   ;;  %s6710_s25 = smov 0  }
   0x5   :  { %s6712_s26 = smov 0   ;;  %s6714_s27 = smov 0  }
   0x6   :  { %s6716_s28 = smov 0   ;;  %s6718_s29 = smov 0  }
   0x7   :  { %s6720_s30 = smov 0   ;;  %s6722_s8 = smov 0  }
   0x8 LB: > { %s5233_s9 = sadd.s32 4294967295, %s6661_s8   ;;  %s5234_s10 = sadd.s32 4294967294, %s6661_s8   ;;  %s6661_s8 = sphi %s6722_s8, %s21_s8   ;;  %s6657_s30 = sphi %s6720_s30, %s8577_s30   ;;  %s6653_s29 = sphi %s6718_s29, %s8576_s29   ;;  %s6649_s28 = sphi %s6716_s28, %s8575_s28   ;;  %s6645_s27 = sphi %s6714_s27, %s8574_s27   ;;  %s6641_s26 = sphi %s6712_s26, %s8573_s26   ;;  %s6637_s25 = sphi %s6710_s25, %s8572_s25   ;;  %s6633_s24 = sphi %s6708_s24, %s8571_s24  }
   0x9   : > { %s30_s11 = sadd.s32 1, %s6653_s29  ;;  %s33_s12 = sadd.s32 1, %s6657_s30 }
   0xa   : > { %p31_p0 = scmp.ge.s32.totalorder %s30_s11, 2  ;;  %s194_s13 = sadd.s32 1, %s6641_s26 }
   0xb   : > { %p204_p1 = scmp.ne.s32.totalorder %s6641_s26, %s6637_s25  ;;  %p205_p2 = scmp.eq.s32.totalorder %s5233_s9, 3 }
   0xc   : > { %s8579_s11 = smov (%p31_p0, %s30_s11), 0  ;;  %s8581_s12 = smov (!%p31_p0, %s33_s12), %s6657_s30 }
   0xd   : > { %8510 = sst [smem:[#allocation9_spill]] %s8579_s11  ;;  %s190_s14 = ssub.s32 %s6653_s29, %s8579_s11 }
   0xe   : > { %p6760_p3 = por %p205_p2, %p204_p1  ;;  %p35_p4 = scmp.ge.s32.totalorder %s8581_s12, 2 }
   0xf   : > { %p210_p5 = scmp.ne.s32.totalorder %s6637_s25, %s6633_s24  ;;  %p211_p6 = scmp.eq.s32.totalorder %s5234_s10, 3 }
  0x10   : > { %p5235_p7 = scmp.ge.s32.totalorder %s6661_s8, 1  ;;  %s8583_s12 = smov (%p35_p4, %s8581_s12), 0 }
  0x11   : > { %8512 = sst [smem:[#allocation10_spill]] %s8583_s12  ;;  %p6769_p8 = por %p211_p6, %p210_p5 }
  0x12   : > { %p218_p9 = scmp.lt.s32.totalorder %s6661_s8, 5  ;;  %s189_s17 = ssub.s32 %s6657_s30, %s8583_s12 }
  0x13   : > { %s191_s18 = sor.u32 %s190_s14, %s189_s17  ;;  %p6780_p12 = scmp.eq.s32.totalorder %s5233_s9, 0 }
  0x14   : > { %p6776_p10 = pnand %p5235_p7, %p218_p9  ;;  %p192_p11 = scmp.eq.s32.totalorder %s191_s18, 0 }
  0x15   : > { %s8516_s3 = sld [smem:[#allocation22_spill]]  ;;  %s6663_s14 = smov [#allocation3]  }
  0x16   : > { %p6367_p13 = pneg %p6776_p10  ;;  %s237_s17 = sshll.u32 %s6663_s14, 4  ;;  %s238_s17 = int_to_ptr.vmem [resolvable:$true] %s237_s17 }
  0x17   : > { %s6790_s10 = scalar_select %p192_p11, %s6641_s26, %s194_s13  }
  0x18   : > { %p6368_p0 = pnand %p6780_p12, %p6367_p13  ;;  %s6664_s18 = smov 64  }
  0x19   : > { %s6665_s9 = smov 4   ;;  %270 = sbr.rel (%p6776_p10) target bundleno = 1052 (0x41c), region = 48 }
  0x1b   : > { %s235_s23 = sshll.u32 %s8516_s3, 4  ;;  %s236_s23 = int_to_ptr.hbm [resolvable:$true] %s235_s23 }
  0x1c   : > { %6370 = dma.hbm_to_vmem [thread:$0]  (!%p6368_p0), %s236_s23, 9216, %s238_s17, [#allocation4], %s6664_s18, %s6664_s18, %s6665_s9  }
  0x1e   : > { %6624 = dma.done.wait (%p6780_p12), [#allocation4], 9216  }
  0x1f   : > { %6626 = vsyncadd (%p6780_p12), [#allocation4], 4294958080  ;;  %p303_p1 = scmp.lt.s32.totalorder %s6649_s28, 1  ;;  %v5977_v0 = vld [vmem:[%s8500_s1 + $0x38] sm:$0xff]  ;;  %v5976_v4 = vld [vmem:[%s8500_s1 + $0x30] sm:$0xff]  ;;  %s5969_s20 = smul.u32 96, %s6645_s27 }
  0x20   : > { %v5993_v1 = vld [vmem:[%s8500_s1 + $0xb8] sm:$0xff]  ;;  %1894 = vmatpush.bf16.msra.mxu0 %v5977_v0  ;;  %v5992_v5 = vld [vmem:[%s8500_s1 + $0xb0] sm:$0xff]  ;;  %v5975_v8 = vld [vmem:[%s8500_s1 + $0x28] sm:$0xff]  ;;  %vm693_vm0 = vcmask 1046528   ;;  %vm532_vm1 = vsmask.f32 7424 }
  0x21   : > { %s304_s13 = scalar_select %p303_p1, %s6649_s28, 1  ;;  %v5985_v2 = vld [vmem:[%s8500_s1 + $0x78] sm:$0xff]  ;;  %2012 = vmatpush.bf16.msra.mxu2 %v5993_v1  ;;  %v5984_v6 = vld [vmem:[%s8500_s1 + $0x70] sm:$0xff]  ;;  %v5991_v9 = vld [vmem:[%s8500_s1 + $0xa8] sm:$0xff]  ;;  %vm2526_vm2 = vcmask 1040384   ;;  %vm2813_vm10 = vcmask 1043456  }
  0x22   : > { %v6001_v3 = vld [vmem:[%s8500_s1 + $0xf8] sm:$0xff]  ;;  %1953 = vmatpush.bf16.msra.mxu1 %v5985_v2  ;;  %v6000_v7 = vld [vmem:[%s8500_s1 + $0xf0] sm:$0xff]  ;;  %v5983_v10 = vld [vmem:[%s8500_s1 + $0x68] sm:$0xff]  ;;  %vm2527_vm3 = vsmask.f32 256  ;;  %s5242_s12 = sshll.u32 %s6645_s27, 3 }
  0x23   : > { %s6360_s14 = smul.u32 240, %s304_s13  ;;  %2071 = vmatpush.bf16.msra.mxu3 %v6001_v3  ;;  %v5999_v11 = vld [vmem:[%s8500_s1 + $0xe8] sm:$0xff]  ;;  %v5974_v12 = vld [vmem:[%s8500_s1 + $0x20] sm:$0xff]  ;;  %v5973_v17 = vld [vmem:[%s8500_s1 + $0x18] sm:$0xff]  ;;  %vm2559_vm5 = vsmask.f32 7938 }
  0x24   : > { %1895 = vmatpush.bf16.msra.mxu0 %v5976_v4  ;;  %v5990_v13 = vld [vmem:[%s8500_s1 + $0xa0] sm:$0xff]  ;;  %v5989_v18 = vld [vmem:[%s8500_s1 + $0x98] sm:$0xff]  ;;  %v5972_v23 = vld [vmem:[%s8500_s1 + $0x10] sm:$0xff]  ;;  %vm2611_vm14 = vsmask.f32 4368  ;;  %s5965_s13 = sshll.u32 %s6649_s28, 5 }
  0x25   : > { %2013 = vmatpush.bf16.msra.mxu2 %v5992_v5  ;;  %s307_s23 = scalar_lea.vmem %s8499_s0, %s6360_s14  ;;  %v5982_v14 = vld [vmem:[%s8500_s1 + $0x60] sm:$0xff]  ;;  %v5981_v19 = vld [vmem:[%s8500_s1 + $0x58] sm:$0xff]  ;;  %v5988_v24 = vld [vmem:[%s8500_s1 + $0x90] sm:$0xff]  ;;  %s5617_s14 = sadd.s32 4294967295, %s5242_s12 }
  0x26   : > { %1954 = vmatpush.bf16.msra.mxu1 %v5984_v6  ;;  %s6842_s3 = scalar_lea.vmem %s307_s23, %s5969_s20  ;;  %v5998_v15 = vld [vmem:[%s8500_s1 + $0xe0] sm:$0xff]  ;;  %v5997_v20 = vld [vmem:[%s8500_s1 + $0xd8] sm:$0xff]  ;;  %v5980_v25 = vld [vmem:[%s8500_s1 + $0x50] sm:$0xff]  ;;  %s300_s12 = sand.u32 1, %s6637_s25  }
  0x27   : > { %2072 = vmatpush.bf16.msra.mxu3 %v6000_v7  ;;  %v334_v16 = vld [vmem:[%s6842_s3 + $0x8] sm:$0x1]  ;;  %v6124_v22 = vld [vmem:[%s6842_s3] sm:$0xff]   ;;  %v5996_v26 = vld [vmem:[%s8500_s1 + $0xd0] sm:$0xff]  ;;  %s5117_s18 = scalar_lea.sflag [#allocation5], %s300_s12 }
  0x28   : > { %1896 = vmatpush.bf16.msra.mxu0 %v5975_v8  ;;  %v512_v21 = vunpack.c.l.b16 %v334_v16  ;;  %v536_v27 = vshll.u32 %v6124_v22, 16  ;;  %v6245_v28 = vld [vmem:[%s6842_s3] sm:$0xf0]  ;;  %v6246_v29 = vld [vmem:[%s6842_s3] sm:$0xe]  ;;  %v5971_v31 = vld [vmem:[%s8500_s1 + $0x8] sm:$0xff] }
  0x29   : > { %2014 = vmatpush.bf16.msra.mxu2 %v5991_v9  ;;  %v5987_v32 = vld [vmem:[%s8500_s1 + $0x88] sm:$0xff]  ;;  %v6247_v33 = vor.u32 %v6246_v29, %v6245_v28  ;;  %v534_v36 = vshrl.u32 %v6124_v22, 16  ;;  %v6900_v40 = vld [vmem:[%s6842_s3 + $0xc] sm:$0xf0]  ;;  %v5970_v43 = vld [vmem:[%s8500_s1] sm:$0xff] }
  0x2a   : > { %1955 = vmatpush.bf16.msra.mxu1 %v5983_v10  ;;  %v522_v30 = vpack.c.b16 %v512_v21, %v512_v21  ;;  %v5979_v34 = vld [vmem:[%s8500_s1 + $0x48] sm:$0xff]  ;;  %v538_v37 = vrot.slane %v536_v27, 1  ;;  %v6452_v42 = vld [vmem:[%s6842_s3 + $0xc] sm:$0xf0]  ;;  %v5986_v44 = vld [vmem:[%s8500_s1 + $0x80] sm:$0xff] }
  0x2b   : > { %2073 = vmatpush.bf16.msra.mxu3 %v5999_v11  ;;  %v5995_v35 = vld [vmem:[%s8500_s1 + $0xc8] sm:$0xff]  ;;  %v694_v45 = vrot.slane %v6247_v33, 1  ;;  %v5978_v47 = vld [vmem:[%s8500_s1 + $0x40] sm:$0xff]  ;;  %v6009_v51 = vld [vmem:[%s8500_s1 + $0x138] sm:$0xff] }
  0x2c   : > { %1897 = vmatpush.bf16.msra.mxu0 %v5974_v12  ;;  %v541_v38 = vshll.u32 %v522_v30, 16  ;;  %v6897_v39 = vld [vmem:[%s6842_s3 + $0xc] sm:$0xff]   ;;  %v695_v46 = vrot.slane %v522_v30, 1  ;;  %v5994_v48 = vld [vmem:[%s8500_s1 + $0xc0] sm:$0xff]  ;;  %v539_v49 = vor.u32 %v538_v37, %v534_v36  ;;  %v335_v52 = vld [vmem:[%s6842_s3 + $0x14] sm:$0x1] }
  0x2d   : > { %2015 = vmatpush.bf16.msra.mxu2 %v5990_v13  ;;  %v316_v41 = vld [vmem:[%s6842_s3 + $0xc] sm:$0xff]   ;;  %v513_v56 = vunpack.c.l.b16 %v335_v52  ;;  %v336_v5 = vld [vmem:[%s6842_s3 + $0x20] sm:$0x1]  ;;  %v6934_v8 = vld [vmem:[%s6842_s3 + $0x18] sm:$0xff]  }
  0x2e   : > { %1956 = vmatpush.bf16.msra.mxu1 %v5982_v14  ;;  %v543_v50 = vrot.slane %v541_v38, 1  ;;  %v696_v53 = vsel %vm693_vm0, %v694_v45, %v695_v46  ;;  %v6453_v55 = vld [vmem:[%s6842_s3 + $0xc] sm:$0xe]  ;;  %v6008_v57 = vld [vmem:[%s8500_s1 + $0x130] sm:$0xff]  ;;  %v548_v59 = vshll.u32 %v316_v41, 16  ;;  %v546_v62 = vshrl.u32 %v316_v41, 16  ;;  %vm7494_vm4 = vmand %vm2526_vm2, %vm2527_vm3 }
  0x2f   : > { %2074 = vmatpush.bf16.msra.mxu3 %v5998_v15  ;;  %v523_v58 = vpack.c.b16 %v513_v56, %v513_v56  ;;  %v6007_v60 = vld [vmem:[%s8500_s1 + $0x128] sm:$0xff]  ;;  %v6454_v61 = vor.u32 %v6453_v55, %v6452_v42  ;;  %v514_v9 = vunpack.c.l.b16 %v336_v5  ;;  %v6006_v10 = vld [vmem:[%s8500_s1 + $0x120] sm:$0xff]  ;;  %v839_v11 = vshll.u32 %v6934_v8, 16  ;;  %v6248_v12 = vld [vmem:[%s6842_s3 + $0x18] sm:$0xf0] }
  0x30   : > { %1898 = vmatpush.bf16.msra.mxu0 %v5973_v17  ;;  %v544_v54 = vsel %vm532_vm1, %v539_v49, %v543_v50  ;;  %v550_v63 = vrot.slane %v548_v59, 1  ;;  %v6249_v13 = vld [vmem:[%s6842_s3 + $0x18] sm:$0xe]  ;;  %v837_v16 = vshrl.u32 %v6934_v8, 16  ;;  %v320_v21 = vld [vmem:[%s6842_s3 + $0x24] sm:$0xff]   ;;  %vm7510_vm6 = vmand %vm2526_vm2, %vm2559_vm5 }
  0x31   : > { %2016 = vmatpush.bf16.msra.mxu2 %v5989_v18  ;;  %v553_v0 = vshll.u32 %v523_v58, 16  ;;  %v697_v1 = vrot.slane %v6454_v61, 1  ;;  %v698_v2 = vrot.slane %v523_v58, 1  ;;  %v524_v14 = vpack.c.b16 %v514_v9, %v514_v9  ;;  %v337_v27 = vld [vmem:[%s6842_s3 + $0x2c] sm:$0x1]  ;;  %v6005_v49 = vld [vmem:[%s8500_s1 + $0x118] sm:$0xff]  ;;  %vm7578_vm11 = vmand %vm2813_vm10, %vm2559_vm5 }
  0x32   : > { %1957 = vmatpush.bf16.msra.mxu1 %v5981_v19  ;;  %v551_v3 = vor.u32 %v550_v63, %v546_v62  ;;  %v6250_v15 = vor.u32 %v6249_v13, %v6248_v12  ;;  %v841_v17 = vrot.slane %v839_v11, 1  ;;  %v6945_v19 = vld [vmem:[%s6842_s3 + $0x24] sm:$0xff]   ;;  %v572_v33 = vshll.u32 %v320_v21, 16  ;;  %v6252_v52 = vld [vmem:[%s6842_s3 + $0x30] sm:$0xe]  ;;  %v6976_v58 = vld [vmem:[%s6842_s3 + $0x3c] sm:$0xff]  }
  0x33   : > { %2075 = vmatpush.bf16.msra.mxu3 %v5997_v20  ;;  %v555_v4 = vrot.slane %v553_v0, 1  ;;  %v699_v6 = vsel %vm693_vm0, %v697_v1, %v698_v2  ;;  %v565_v18 = vshll.u32 %v524_v14, 16  ;;  %v6948_v20 = vld [vmem:[%s6842_s3 + $0x24] sm:$0xf0]  ;;  %v6456_v30 = vld [vmem:[%s6842_s3 + $0x24] sm:$0xe]  ;;  %vm7606_vm2 = vmor %vm2527_vm3, %vm2611_vm14 }
  0x34   : > { %1899 = vmatpush.bf16.msra.mxu0 %v5972_v23  ;;  %v700_v23 = vrot.slane %v6250_v15, 1  ;;  %v574_v36 = vrot.slane %v572_v33, 1  ;;  %v6979_v59 = vld [vmem:[%s6842_s3 + $0x3c] sm:$0xf0]  ;;  %v339_v2 = vld [vmem:[%s6842_s3 + $0x44] sm:$0x1] }
  0x35   : > { %2017 = vmatpush.bf16.msra.mxu2 %v5988_v24  ;;  %v556_v7 = vsel %vm532_vm1, %v551_v3, %v555_v4  ;;  %v701_v24 = vrot.slane %v524_v14, 1  ;;  %v6458_v61 = vld [vmem:[%s6842_s3 + $0x3c] sm:$0xf0]  ;;  %v6459_v5 = vld [vmem:[%s6842_s3 + $0x3c] sm:$0xe] }
  0x36   : > { %1958 = vmatpush.bf16.msra.mxu1 %v5980_v25  ;;  %v6952_v25 = vor.u32 %v841_v17, %v837_v16  ;;  %v6460_v11 = vor.u32 %v6459_v5, %v6458_v61  ;;  %v6016_v61 = vld [vmem:[%s8500_s1 + $0x170] sm:$0xff] }
  0x37   : > { %2076 = vmatpush.bf16.msra.mxu3 %v5996_v26  ;;  %v567_v26 = vrot.slane %v565_v18, 1  ;;  %v702_v28 = vsel %vm693_vm0, %v700_v23, %v701_v24  ;;  %v6999_v24 = vld [vmem:[%s6842_s3 + $0x48] sm:$0xff]  }
  0x38   : > { %1900 = vmatpush.bf16.msra.mxu0 %v5971_v31  ;;  %v515_v31 = vunpack.c.l.b16 %v337_v27  ;;  %v709_v15 = vrot.slane %v6460_v11, 1  ;;  %v6003_v27 = vld [vmem:[%s8500_s1 + $0x108] sm:$0xff]  ;;  %v885_v33 = vshrl.u32 %v6999_v24, 16 }
  0x39   : > { %2018 = vmatpush.bf16.msra.mxu2 %v5987_v32  ;;  %v568_v29 = vsel %vm532_vm1, %v6952_v25, %v567_v26  ;;  %v342_v11 = vld [vmem:[%s6842_s3 + $0x68] sm:$0x1] }
  0x3a   : > { %1959 = vmatpush.bf16.msra.mxu1 %v5979_v34  ;;  %v525_v32 = vpack.c.b16 %v515_v31, %v515_v31 }
  0x3b   : > { %2077 = vmatpush.bf16.msra.mxu3 %v5995_v35  ;;  %v570_v35 = vshrl.u32 %v320_v21, 16 }
  0x3c   : > { %1901 = vmatpush.bf16.msra.mxu0 %v5970_v43  ;;  %v577_v37 = vshll.u32 %v525_v32, 16 }
  0x3d   : > { %2019 = vmatpush.bf16.msra.mxu2 %v5986_v44  ;;  %v575_v42 = vor.u32 %v574_v36, %v570_v35  ;;  %v338_v44 = vld [vmem:[%s6842_s3 + $0x38] sm:$0x1] }
  0x3e   : > { %1960 = vmatpush.bf16.msra.mxu1 %v5978_v47  ;;  %v579_v43 = vrot.slane %v577_v37, 1  ;;  %v6965_v47 = vld [vmem:[%s6842_s3 + $0x30] sm:$0xff]   ;;  %v7013_v37 = vld [vmem:[%s6842_s3 + $0x54] sm:$0xf0] }
  0x3f   : > { %2078 = vmatpush.bf16.msra.mxu3 %v5994_v48  ;;  %1902 = vmatmul.bf16.vlgmr.msra.gmra.mxu0 %v6124_v22  ;;  %v6455_v22 = vld [vmem:[%s6842_s3 + $0x24] sm:$0xf0]  ;;  %v516_v48 = vunpack.c.l.b16 %v338_v44  ;;  %v863_v50 = vshll.u32 %v6965_v47, 16  ;;  %v861_v55 = vshrl.u32 %v6965_v47, 16  ;;  %v7010_v36 = vld [vmem:[%s6842_s3 + $0x54] sm:$0xff]  }
  0x40   : > { %2130 = vmatpush.bf16.msrb.mxu0 %v6009_v51  ;;  %2020 = vmatmul.bf16.vlgmr.msra.gmra.mxu2 %v696_v53  ;;  %v6457_v34 = vor.u32 %v6456_v30, %v6455_v22  ;;  %v580_v46 = vsel %vm532_vm1, %v575_v42, %v579_v43  ;;  %v6251_v51 = vld [vmem:[%s6842_s3 + $0x30] sm:$0xf0]  ;;  %v6255_v30 = vld [vmem:[%s6842_s3 + $0x48] sm:$0xe] }
  0x41   : > { %1961 = vmatmul.bf16.vlgmr.msra.gmra.mxu1 %v544_v54  ;;  %v526_v53 = vpack.c.b16 %v516_v48, %v516_v48  ;;  %v6253_v54 = vor.u32 %v6252_v52, %v6251_v51  ;;  %v865_v56 = vrot.slane %v863_v50, 1  ;;  %v6462_v50 = vld [vmem:[%s6842_s3 + $0x54] sm:$0xe]  ;;  %v6025_v52 = vld [vmem:[%s8500_s1 + $0x1b8] sm:$0xff] }
  0x42   : > { %2079 = vmatmul.bf16.vlgmr.msra.gmra.mxu3 %v6897_v39  ;;  %v703_v38 = vrot.slane %v6457_v34, 1  ;;  %2248 = vmatpush.bf16.msrb.mxu2 %v6025_v52  ;;  %v6027_v52 = vld [vmem:[%s8500_s1 + $0x1c8] sm:$0xff] }
  0x43   : > { %v706_v62 = vrot.slane %v6253_v54, 1  ;;  %v707_v63 = vrot.slane %v526_v53, 1  ;;  %v6983_v0 = vor.u32 %v865_v56, %v861_v55  ;;  %v6033_v54 = vld [vmem:[%s8500_s1 + $0x1f8] sm:$0xff] }
  0x44   : > { %2131 = vmatpush.bf16.msrb.mxu0 %v6008_v57  ;;  %v589_v57 = vshll.u32 %v526_v53, 16  ;;  %v6017_v53 = vld [vmem:[%s8500_s1 + $0x178] sm:$0xff]  ;;  %2307 = vmatpush.bf16.msrb.mxu3 %v6033_v54  ;;  %v7113_v54 = vld [vmem:[%s8501_s2] ss:$0 sm:$0xff] }
  0x45   : > { %v708_v3 = vsel %vm693_vm0, %v706_v62, %v707_v63  ;;  %2189 = vmatpush.bf16.msrb.mxu1 %v6017_v53  ;;  %v6032_v62 = vld [vmem:[%s8500_s1 + $0x1f0] sm:$0xff] }
  0x46   : > { %v591_v1 = vrot.slane %v589_v57, 1  ;;  %v6024_v57 = vld [vmem:[%s8500_s1 + $0x1b0] sm:$0xff] }
  0x47   : > { %2249 = vmatpush.bf16.msrb.mxu2 %v6024_v57  ;;  %v6018_v57 = vld [vmem:[%s8500_s1 + $0x180] sm:$0xff] }
  0x48   : > { %2132 = vmatpush.bf16.msrb.mxu0 %v6007_v60  ;;  %v324_v60 = vld [vmem:[%s6842_s3 + $0x3c] sm:$0xff]   ;;  %v592_v4 = vsel %vm532_vm1, %v6983_v0, %v591_v1  ;;  %2308 = vmatpush.bf16.msrb.mxu3 %v6032_v62 }
  0x49   : > { %v594_v12 = vshrl.u32 %v324_v60, 16  ;;  %2190 = vmatpush.bf16.msrb.mxu1 %v6016_v61  ;;  %v6010_v62 = vld [vmem:[%s8500_s1 + $0x140] sm:$0xff] }
  0x4c   : > { %2133 = vmatpush.bf16.msrb.mxu0 %v6006_v10  ;;  %v596_v10 = vshll.u32 %v324_v60, 16 }
  0x4e   : > { %v598_v13 = vrot.slane %v596_v10, 1 }
  0x4f   : > { %1907 = vmatmul.bf16.gmra.mxu0 %v316_v41  ;;  %v704_v41 = vrot.slane %v525_v32, 1 }
  0x50   : > { %2025 = vmatmul.bf16.gmra.mxu2 %v699_v6  ;;  %2134 = vmatpush.bf16.msrb.mxu0 %v6005_v49  ;;  %v517_v6 = vunpack.c.l.b16 %v339_v2  ;;  %v599_v17 = vor.u32 %v598_v13, %v594_v12  ;;  %v6022_v12 = vld [vmem:[%s8500_s1 + $0x1a0] sm:$0xff] }
  0x51   : > { %1966 = vmatmul.bf16.gmra.mxu1 %v556_v7  ;;  %v705_v45 = vsel %vm693_vm0, %v703_v38, %v704_v41  ;;  %v6004_v7 = vld [vmem:[%s8500_s1 + $0x110] sm:$0xff]  ;;  %v6461_v41 = vld [vmem:[%s6842_s3 + $0x54] sm:$0xf0]  ;;  %v6002_v13 = vld [vmem:[%s8500_s1 + $0x100] sm:$0xff] }
  0x52   : > { %2084 = vmatmul.bf16.gmra.mxu3 %v6934_v8  ;;  %v527_v9 = vpack.c.b16 %v517_v6, %v517_v6  ;;  %v328_v38 = vld [vmem:[%s6842_s3 + $0x54] sm:$0xff]   ;;  %v6015_v6 = vld [vmem:[%s8500_s1 + $0x168] sm:$0xff] }
  0x53   : > { %v620_v56 = vshll.u32 %v328_v38, 16  ;;  %v618_v63 = vshrl.u32 %v328_v38, 16  ;;  %2191 = vmatpush.bf16.msrb.mxu1 %v6015_v6 }
  0x54   : > { %2135 = vmatpush.bf16.msrb.mxu0 %v6004_v7  ;;  %v601_v14 = vshll.u32 %v527_v9, 16  ;;  %v710_v16 = vrot.slane %v527_v9, 1  ;;  %v6031_v7 = vld [vmem:[%s8500_s1 + $0x1e8] sm:$0xff] }
  0x55   : > { %v622_v1 = vrot.slane %v620_v56, 1  ;;  %2309 = vmatpush.bf16.msrb.mxu3 %v6031_v7  ;;  %v343_v56 = vld [vmem:[%s6842_s3 + $0x74] sm:$0x1]  ;;  %v6041_v7 = vld [vmem:[%s8500_s1 + $0x238] sm:$0xff] }
  0x56   : > { %v603_v18 = vrot.slane %v601_v14, 1  ;;  %v711_v22 = vsel %vm693_vm0, %v709_v15, %v710_v16  ;;  %v6014_v15 = vld [vmem:[%s8500_s1 + $0x160] sm:$0xff] }
  0x57   : > { %v623_v9 = vor.u32 %v622_v1, %v618_v63  ;;  %v6030_v16 = vld [vmem:[%s8500_s1 + $0x1e0] sm:$0xff]  ;;  %2192 = vmatpush.bf16.msrb.mxu1 %v6014_v15 }
  0x58   : > { %v604_v23 = vsel %vm532_vm1, %v599_v17, %v603_v18  ;;  %2136 = vmatpush.bf16.msrb.mxu0 %v6003_v27  ;;  %v6238_v18 = vld [vmem:[%s6842_s3 + $0x60] sm:$0xff]  }
  0x59   : > { %2310 = vmatpush.bf16.msrb.mxu3 %v6030_v16  ;;  %v911_v27 = vshll.u32 %v6238_v18, 16  ;;  %v6026_v63 = vld [vmem:[%s8500_s1 + $0x1c0] sm:$0xff] }
  0x5c   : > { %2137 = vmatpush.bf16.msrb.mxu0 %v6002_v13 }
  0x5f   : > { %1912 = vmatmul.bf16.gmra.mxu0 %v6934_v8 }
  0x60   : > { %2030 = vmatmul.bf16.gmra.mxu2 %v702_v28  ;;  %v887_v28 = vshll.u32 %v6999_v24, 16  ;;  %2366 = vmatpush.bf16.msra.mxu0 %v6041_v7 }
  0x61   : > { %1971 = vmatmul.bf16.gmra.mxu1 %v568_v29  ;;  %v6254_v29 = vld [vmem:[%s6842_s3 + $0x48] sm:$0xf0] }
  0x62   : > { %2089 = vmatmul.bf16.gmra.mxu3 %v6945_v19  ;;  %v6256_v32 = vor.u32 %v6255_v30, %v6254_v29  ;;  %v889_v34 = vrot.slane %v887_v28, 1  ;;  %v6257_v28 = vld [vmem:[%s6842_s3 + $0x60] sm:$0xf0]  ;;  %v6258_v29 = vld [vmem:[%s6842_s3 + $0x60] sm:$0xe] }
  0x64   : > { %v712_v42 = vrot.slane %v6256_v32, 1  ;;  %v7017_v44 = vor.u32 %v889_v34, %v885_v33  ;;  %v6259_v32 = vor.u32 %v6258_v29, %v6257_v28  ;;  %v6012_v33 = vld [vmem:[%s8500_s1 + $0x150] sm:$0xff] }
  0x65   : > { %v6028_v34 = vld [vmem:[%s8500_s1 + $0x1d0] sm:$0xff] }
  0x66   : > { %v5267_v29 = vld [vmem:[%s6842_s3 + $0x14] sm:$0x1] }
  0x6f   : > { %1917 = vmatmul.bf16.gmra.mxu0 %v320_v21  ;;  %v340_v21 = vld [vmem:[%s6842_s3 + $0x50] sm:$0x1] }
  0x70   : > { %2035 = vmatmul.bf16.gmra.mxu2 %v705_v45  ;;  %v518_v26 = vunpack.c.l.b16 %v340_v21  ;;  %v520_v21 = vunpack.c.l.b16 %v342_v11 }
  0x71   : > { %1976 = vmatmul.bf16.gmra.mxu1 %v580_v46  ;;  %v341_v46 = vld [vmem:[%s6842_s3 + $0x5c] sm:$0x1] }
  0x72   : > { %2094 = vmatmul.bf16.gmra.mxu3 %v6965_v47  ;;  %v528_v31 = vpack.c.b16 %v518_v26, %v518_v26  ;;  %v519_v51 = vunpack.c.l.b16 %v341_v46  ;;  %v6029_v26 = vld [vmem:[%s8500_s1 + $0x1d8] sm:$0xff]  ;;  %v530_v30 = vpack.c.b16 %v520_v21, %v520_v21  ;;  %v6464_v46 = vld [vmem:[%s6842_s3 + $0x6c] sm:$0xf0] }
  0x73   : > { %2311 = vmatpush.bf16.msrb.mxu3 %v6029_v26 }
  0x74   : > { %v613_v35 = vshll.u32 %v528_v31, 16  ;;  %v713_v43 = vrot.slane %v528_v31, 1  ;;  %v529_v55 = vpack.c.b16 %v519_v51, %v519_v51  ;;  %v6020_v31 = vld [vmem:[%s8500_s1 + $0x190] sm:$0xff]  ;;  %v6011_v51 = vld [vmem:[%s8500_s1 + $0x148] sm:$0xff] }
  0x76   : > { %v615_v45 = vrot.slane %v613_v35, 1  ;;  %v714_v48 = vsel %vm693_vm0, %v712_v42, %v713_v43  ;;  %v625_v2 = vshll.u32 %v529_v55, 16  ;;  %v716_v5 = vrot.slane %v529_v55, 1  ;;  %v7090_v42 = vld [vmem:[%s6842_s3 + $0x6c] sm:$0xff]  }
  0x77   : > { %v909_v35 = vshrl.u32 %v6238_v18, 16  ;;  %v7093_v43 = vld [vmem:[%s6842_s3 + $0x6c] sm:$0xf0]  ;;  %2312 = vmatpush.bf16.msrb.mxu3 %v6028_v34 }
  0x78   : > { %v616_v49 = vsel %vm532_vm1, %v7017_v44, %v615_v45  ;;  %v627_v10 = vrot.slane %v625_v2, 1  ;;  %v7096_v45 = vld [vmem:[%s6842_s3 + $0x6c] sm:$0xff]  }
  0x79   : > { %v642_v16 = vshrl.u32 %v7096_v45, 16 }
  0x7a   : > { %v628_v17 = vsel %vm532_vm1, %v623_v9, %v627_v10  ;;  %v644_v10 = vshll.u32 %v7096_v45, 16 }
  0x7b   : > { %2313 = vmatpush.bf16.msrb.mxu3 %v6027_v52 }
  0x7f   : > { %1922 = vmatmul.bf16.gmra.mxu0 %v6965_v47  ;;  %2314 = vmatpush.bf16.msrb.mxu3 %v6026_v63 }
  0x80   : > { %2040 = vmatmul.bf16.gmra.mxu2 %v708_v3  ;;  %v6023_v3 = vld [vmem:[%s8500_s1 + $0x1a8] sm:$0xff] }
  0x81   : > { %1981 = vmatmul.bf16.gmra.mxu1 %v592_v4  ;;  %2250 = vmatpush.bf16.msrb.mxu2 %v6023_v3 }
  0x82   : > { %2099 = vmatmul.bf16.gmra.mxu3 %v6976_v58 }
  0x85   : > { %2251 = vmatpush.bf16.msrb.mxu2 %v6022_v12 }
  0x8f   : > { %1927 = vmatmul.bf16.gmra.mxu0 %v324_v60  ;;  %v6463_v60 = vor.u32 %v6462_v50, %v6461_v41  ;;  %v637_v41 = vshll.u32 %v530_v30, 16  ;;  %v719_v50 = vrot.slane %v530_v30, 1 }
  0x90   : > { %2045 = vmatmul.bf16.gmra.mxu2 %v711_v22  ;;  %v6021_v22 = vld [vmem:[%s8500_s1 + $0x198] sm:$0xff] }
  0x91   : > { %1986 = vmatmul.bf16.gmra.mxu1 %v604_v23  ;;  %v715_v4 = vrot.slane %v6463_v60, 1  ;;  %v6013_v23 = vld [vmem:[%s8500_s1 + $0x158] sm:$0xff]  ;;  %2252 = vmatpush.bf16.msrb.mxu2 %v6021_v22  ;;  %v639_v55 = vrot.slane %v637_v41, 1  ;;  %v646_v22 = vrot.slane %v644_v10, 1 }
  0x92   : > { %2104 = vmatmul.bf16.gmra.mxu3 %v6999_v24  ;;  %2193 = vmatpush.bf16.msrb.mxu1 %v6013_v23 }
  0x93   : > { %v717_v14 = vsel %vm693_vm0, %v715_v4, %v716_v5  ;;  %v6465_v4 = vld [vmem:[%s6842_s3 + $0x6c] sm:$0xe]  ;;  %v521_v5 = vunpack.c.l.b16 %v343_v56  ;;  %v647_v30 = vor.u32 %v646_v22, %v642_v16 }
  0x94   : > { %v6466_v15 = vor.u32 %v6465_v4, %v6464_v46  ;;  %v6468_v56 = vld [vmem:[%s6842_s3 + $0xc] sm:$0xe] }
  0x95   : > { %2253 = vmatpush.bf16.msrb.mxu2 %v6020_v31  ;;  %v531_v9 = vpack.c.b16 %v521_v5, %v521_v5  ;;  %v6469_v7 = vor.u32 %v6468_v56, %v6900_v40  ;;  %v5268_v40 = vld [vmem:[%s6842_s3 + $0x20] sm:$0x1] }
  0x96   : > { %2194 = vmatpush.bf16.msrb.mxu1 %v6012_v33 }
  0x97   : > { %v649_v23 = vshll.u32 %v531_v9, 16  ;;  %v722_v28 = vrot.slane %v531_v9, 1 }
  0x99   : > { %v651_v31 = vrot.slane %v649_v23, 1 }
  0x9a   : > { %2195 = vmatpush.bf16.msrb.mxu1 %v6011_v51 }
  0x9b   : > { %v652_v52 = vsel %vm532_vm1, %v647_v30, %v651_v31 }
  0x9e   : > { %2196 = vmatpush.bf16.msrb.mxu1 %v6010_v62 }
  0x9f   : > { %1932 = vmatmul.bf16.gmra.mxu0 %v6999_v24 }
  0xa0   : > { %2050 = vmatmul.bf16.gmra.mxu2 %v714_v48  ;;  %v6019_v48 = vld [vmem:[%s8500_s1 + $0x188] sm:$0xff] }
  0xa1   : > { %1991 = vmatmul.bf16.gmra.mxu1 %v616_v49  ;;  %v718_v49 = vrot.slane %v6259_v32, 1  ;;  %2254 = vmatpush.bf16.msrb.mxu2 %v6019_v48  ;;  %v5309_v32 = vld [vmem:[%s6842_s3 + $0x20] sm:$0x1] }
  0xa2   : > { %2109 = vmatmul.bf16.gmra.mxu3 %v7010_v36  ;;  %v1094_v48 = vunpack.c.l.b16 %v5309_v32 }
  0xa3   : > { %v720_v61 = vsel %vm693_vm0, %v718_v49, %v719_v50 }
  0xa4   : > { %v7153_v62 = vpack.c.b16 %v1094_v48, %v1094_v48 }
  0xa5   : > { %2255 = vmatpush.bf16.msrb.mxu2 %v6018_v57  ;;  %v827_v57 = vshll.u32 %v6897_v39, 16 }
  0xa6   : > { %v1122_v9 = vshll.u32 %v7153_v62, 16 }
  0xa7   : > { %v829_v4 = vrot.slane %v827_v57, 1 }
  0xa8   : > { %v1124_v22 = vrot.slane %v1122_v9, 1  ;;  %v6039_v9 = vld [vmem:[%s8500_s1 + $0x228] sm:$0xff] }
  0xaa   : > { %v1125_v32 = vsel %vm532_vm1, %v6952_v25, %v1124_v22 }
  0xaf   : > { %1937 = vmatmul.bf16.gmra.mxu0 %v328_v38  ;;  %v913_v38 = vrot.slane %v911_v27, 1  ;;  %v721_v27 = vrot.slane %v6466_v15, 1 }
  0xb0   : > { %2055 = vmatmul.bf16.gmra.mxu2 %v717_v14 }
  0xb1   : > { %1996 = vmatmul.bf16.gmra.mxu1 %v628_v17  ;;  %v7108_v53 = vor.u32 %v913_v38, %v909_v35  ;;  %v804_v38 = vunpack.c.l.b16 %v5267_v29  ;;  %v723_v46 = vsel %vm693_vm0, %v721_v27, %v722_v28 }
  0xb2   : > { %2114 = vmatmul.bf16.gmra.mxu3 %v6238_v18 }
  0xb3   : > { %v640_v3 = vsel %vm532_vm1, %v7108_v53, %v639_v55  ;;  %v7147_v55 = vld [vmem:[%s6842_s3 + $0x78] sm:$0xff]  }
  0xbc   : > { %v1903_v60 = vpop.f32.mrf.mxu0 }
  0xbd   : > { %v1904_v1 = vadd.f32 %v7113_v54, %v1903_v60 }
  0xbe   : > { %v1962_v2 = vpop.f32.mrf.mxu1 }
  0xbf   : > { %v1963_v6 = vadd.f32 %v1962_v2, %v1904_v1  ;;  %1942 = vmatmul.bf16.gmra.mxu0 %v6238_v18 }
  0xc0   : > { %2060 = vmatmul.bf16.gmra.mxu2 %v720_v61  ;;  %v814_v61 = vpack.c.b16 %v804_v38, %v804_v38 }
  0xc1   : > { %2001 = vmatmul.bf16.gmra.mxu1 %v640_v3  ;;  %v825_v3 = vshrl.u32 %v6897_v39, 16  ;;  %v7165_v39 = vld [vmem:[%s6842_s3 + $0x24] sm:$0xff]  }
  0xc2   : > { %2119 = vmatmul.bf16.gmra.mxu3 %v7090_v42  ;;  %v832_v5 = vshll.u32 %v814_v61, 16  ;;  %v1129_v56 = vshll.u32 %v7165_v39, 16 }
  0xc3   : > { %v2021_v11 = vpop.f32.mrf.mxu2  ;;  %v830_v15 = vor.u32 %v829_v4, %v825_v3  ;;  %v1127_v3 = vshrl.u32 %v7165_v39, 16 }
  0xc4   : > { %v2022_v12 = vadd.f32 %v2021_v11, %v1963_v6  ;;  %v1905_v14 = vpop.f32.mrf.mxu0  ;;  %v834_v16 = vrot.slane %v832_v5, 1 }
  0xc5   : > { %v2080_v13 = vpop.f32.mrf.mxu3  ;;  %v1906_v17 = vadd.f32 %v7113_v54, %v1905_v14 }
  0xc6   : > { %v7137_v18 = vadd.f32 %v2080_v13, %v2022_v12  ;;  %v1964_v21 = vpop.f32.mrf.mxu1  ;;  %v7168_v13 = vld [vmem:[%s6842_s3 + $0x24] sm:$0xf0]  ;;  %v835_v30 = vsel %vm532_vm1, %v830_v15, %v834_v16 }
  0xc7   : > { %v1965_v26 = vadd.f32 %v1964_v21, %v1906_v17  ;;  %v984_v17 = vrot.slane %v6469_v7, 1  ;;  %v985_v21 = vrot.slane %v814_v61, 1 }
  0xc9   : > { %v986_v31 = vsel %vm693_vm0, %v984_v17, %v985_v21  ;;  %v5269_v17 = vld [vmem:[%s6842_s3 + $0x2c] sm:$0x1]  ;;  %v5311_v21 = vld [vmem:[%s6842_s3 + $0x38] sm:$0x1] }
  0xcb   : > { %v2023_v33 = vpop.f32.mrf.mxu2 }
  0xcc   : > { %v2024_v34 = vadd.f32 %v2023_v33, %v1965_v26  ;;  %v1908_v41 = vpop.f32.mrf.mxu0  ;;  %v5310_v26 = vld [vmem:[%s6842_s3 + $0x2c] sm:$0x1]  ;;  %v805_v33 = vunpack.c.l.b16 %v5268_v40 }
  0xcd   : > { %v2082_v35 = vpop.f32.mrf.mxu3  ;;  %v1909_v49 = vadd.f32 %v7113_v54, %v1908_v41  ;;  %v1095_v41 = vunpack.c.l.b16 %v5310_v26 }
  0xce   : > { %v7143_v50 = vadd.f32 %v2082_v35, %v2024_v34  ;;  %v1967_v51 = vpop.f32.mrf.mxu1  ;;  %v815_v48 = vpack.c.b16 %v805_v33, %v805_v33 }
  0xcf   : > { %v1968_v60 = vadd.f32 %v1967_v51, %v1909_v49  ;;  %1947 = vmatmul.bf16.gmra.mxu0 %v7096_v45  ;;  %v6040_v45 = vld [vmem:[%s8500_s1 + $0x230] sm:$0xff]  ;;  %v6260_v49 = vld [vmem:[%s6842_s3 + $0x18] sm:$0xf0]  ;;  %v6261_v51 = vld [vmem:[%s6842_s3 + $0x18] sm:$0xe] }
  0xd0   : > { %2065 = vmatmul.bf16.gmra.mxu2 %v723_v46  ;;  %2367 = vmatpush.bf16.msra.mxu0 %v6040_v45  ;;  %v1131_v45 = vrot.slane %v1129_v56, 1 }
  0xd1   : > { %2006 = vmatmul.bf16.gmra.mxu1 %v652_v52  ;;  %v7182_v52 = vpack.c.b16 %v1095_v41, %v1095_v41  ;;  %v851_v41 = vshll.u32 %v6945_v19, 16 }
  0xd2   : > { %2124 = vmatmul.bf16.gmra.mxu3 %v7147_v55  ;;  %v1132_v15 = vor.u32 %v1131_v45, %v1127_v3  ;;  %v7217_v45 = vld [vmem:[%s6842_s3 + $0x3c] sm:$0xf0] }
  0xd3   : > { %v2026_v63 = vpop.f32.mrf.mxu2 }
  0xd4   : > { %v2027_v1 = vadd.f32 %v2026_v63, %v1968_v60  ;;  %v1910_v6 = vpop.f32.mrf.mxu0  ;;  %2368 = vmatpush.bf16.msra.mxu0 %v6039_v9 }
  0xd5   : > { %v2085_v2 = vpop.f32.mrf.mxu3  ;;  %v1911_v10 = vadd.f32 %v7113_v54, %v1910_v6  ;;  %v1134_v6 = vshll.u32 %v7182_v52, 16 }
  0xd6   : > { %v7162_v11 = vadd.f32 %v2085_v2, %v2027_v1  ;;  %v1969_v12 = vpop.f32.mrf.mxu1  ;;  %v844_v1 = vshll.u32 %v815_v48, 16  ;;  %v6262_v2 = vor.u32 %v6261_v51, %v6260_v49 }
  0xd7   : > { %v1970_v14 = vadd.f32 %v1969_v12, %v1911_v10  ;;  %v1136_v16 = vrot.slane %v1134_v6, 1 }
  0xd8   : > { %v846_v10 = vrot.slane %v844_v1, 1  ;;  %v987_v12 = vrot.slane %v6262_v2, 1 }
  0xdb   : > { %v2028_v23 = vpop.f32.mrf.mxu2 }
  0xdc   : > { %v2029_v27 = vadd.f32 %v2028_v23, %v1970_v14  ;;  %v1913_v29 = vpop.f32.mrf.mxu0  ;;  %v988_v14 = vrot.slane %v815_v48, 1 }
  0xdd   : > { %v2087_v28 = vpop.f32.mrf.mxu3  ;;  %v1914_v34 = vadd.f32 %v7113_v54, %v1913_v29  ;;  %v1096_v29 = vunpack.c.l.b16 %v5311_v21  ;;  %v6038_v21 = vld [vmem:[%s8500_s1 + $0x220] sm:$0xff] }
  0xde   : > { %v7177_v35 = vadd.f32 %v2087_v28, %v2029_v27  ;;  %v1972_v38 = vpop.f32.mrf.mxu1  ;;  %v847_v27 = vsel %vm532_vm1, %v6952_v25, %v846_v10  ;;  %v806_v28 = vunpack.c.l.b16 %v5269_v17  ;;  %v989_v33 = vsel %vm693_vm0, %v987_v12, %v988_v14  ;;  %v5270_v14 = vld [vmem:[%s6842_s3 + $0x38] sm:$0x1]  ;;  %2369 = vmatpush.bf16.msra.mxu0 %v6038_v21 }
  0xdf   : > { %v1973_v46 = vadd.f32 %v1972_v38, %v1914_v34  ;;  %2138 = vmatmul.bf16.vlgmr.msrb.gmra.mxu0 %v835_v30  ;;  %v1137_v34 = vsel %vm532_vm1, %v1132_v15, %v1136_v16  ;;  %v6471_v38 = vld [vmem:[%s6842_s3 + $0x24] sm:$0xe]  ;;  %v7205_v48 = vpack.c.b16 %v1096_v29, %v1096_v29 }
  0xe0   : > { %2256 = vmatmul.bf16.vlgmr.msrb.gmra.mxu2 %v6934_v8  ;;  %v816_v25 = vpack.c.b16 %v806_v28, %v806_v28  ;;  %v6472_v1 = vor.u32 %v6471_v38, %v6948_v20  ;;  %v5312_v20 = vld [vmem:[%s6842_s3 + $0x44] sm:$0x1] }
  0xe1   : > { %2197 = vmatmul.bf16.vlgmr.msrb.gmra.mxu1 %v986_v31 }
  0xe2   : > { %2315 = vmatmul.bf16.vlgmr.msrb.gmra.mxu3 %v1125_v32  ;;  %v990_v9 = vrot.slane %v6472_v1, 1  ;;  %v991_v10 = vrot.slane %v816_v25, 1 }
  0xe3   : > { %v2031_v57 = vpop.f32.mrf.mxu2 }
  0xe4   : > { %v2032_v60 = vadd.f32 %v2031_v57, %v1973_v46  ;;  %v1915_v63 = vpop.f32.mrf.mxu0  ;;  %v849_v57 = vshrl.u32 %v6945_v19, 16 }
  0xe5   : > { %v2090_v61 = vpop.f32.mrf.mxu3  ;;  %v1916_v8 = vadd.f32 %v7113_v54, %v1915_v63  ;;  %v856_v63 = vshll.u32 %v816_v25, 16 }
  0xe6   : > { %v7187_v4 = vadd.f32 %v2090_v61, %v2032_v60  ;;  %v1974_v5 = vpop.f32.mrf.mxu1  ;;  %v853_v60 = vrot.slane %v851_v41, 1  ;;  %v6263_v41 = vld [vmem:[%s6842_s3 + $0x30] sm:$0xf0] }
  0xe7   : > { %v1975_v7 = vadd.f32 %v1974_v5, %v1916_v8  ;;  %v7214_v5 = vld [vmem:[%s6842_s3 + $0x3c] sm:$0xff]  }
  0xe8   : > { %v854_v19 = vor.u32 %v853_v60, %v849_v57  ;;  %v1153_v38 = vshll.u32 %v7214_v5, 16 }
  0xeb   : > { %v2033_v22 = vpop.f32.mrf.mxu2 }
  0xec   : > { %v2034_v40 = vadd.f32 %v2033_v22, %v1975_v7  ;;  %v1918_v26 = vpop.f32.mrf.mxu0  ;;  %v858_v7 = vrot.slane %v856_v63, 1  ;;  %v1151_v63 = vshrl.u32 %v7214_v5, 16 }
  0xed   : > { %v2092_v23 = vpop.f32.mrf.mxu3  ;;  %v1919_v30 = vadd.f32 %v7113_v54, %v1918_v26 }
  0xee   : > { %v7198_v31 = vadd.f32 %v2092_v23, %v2034_v40  ;;  %v1977_v32 = vpop.f32.mrf.mxu1  ;;  %v859_v40 = vsel %vm532_vm1, %v854_v19, %v858_v7  ;;  %v992_v23 = vsel %vm693_vm0, %v990_v9, %v991_v10 }
  0xef   : > { %v1978_v46 = vadd.f32 %v1977_v32, %v1919_v30  ;;  %2143 = vmatmul.bf16.gmra.mxu0 %v847_v27  ;;  %v807_v27 = vunpack.c.l.b16 %v5270_v14  ;;  %v1097_v32 = vunpack.c.l.b16 %v5312_v20  ;;  %v5271_v14 = vld [vmem:[%s6842_s3 + $0x44] sm:$0x1] }
  0xf0   : > { %2261 = vmatmul.bf16.gmra.mxu2 %v7165_v39  ;;  %v1146_v39 = vshll.u32 %v7205_v48, 16 }
  0xf1   : > { %2202 = vmatmul.bf16.gmra.mxu1 %v989_v33  ;;  %v7235_v25 = vpack.c.b16 %v1097_v32, %v1097_v32 }
  0xf2   : > { %2320 = vmatmul.bf16.gmra.mxu3 %v1137_v34  ;;  %v1148_v12 = vrot.slane %v1146_v39, 1  ;;  %v817_v34 = vpack.c.b16 %v807_v27, %v807_v27 }
  0xf3   : > { %v2036_v49 = vpop.f32.mrf.mxu2 }
  0xf4   : > { %v2037_v51 = vadd.f32 %v2036_v49, %v1978_v46  ;;  %v1920_v61 = vpop.f32.mrf.mxu0  ;;  %v1149_v26 = vsel %vm532_vm1, %v6983_v0, %v1148_v12  ;;  %v6264_v46 = vld [vmem:[%s6842_s3 + $0x30] sm:$0xe]  ;;  %v868_v60 = vshll.u32 %v817_v34, 16  ;;  %v994_v9 = vrot.slane %v817_v34, 1 }
  0xf5   : > { %v2095_v56 = vpop.f32.mrf.mxu3  ;;  %v1921_v2 = vadd.f32 %v7113_v54, %v1920_v61  ;;  %v6265_v61 = vor.u32 %v6264_v46, %v6263_v41  ;;  %v875_v34 = vshll.u32 %v6976_v58, 16 }
  0xf6   : > { %v7211_v3 = vadd.f32 %v2095_v56, %v2037_v51  ;;  %v1979_v8 = vpop.f32.mrf.mxu1  ;;  %v870_v19 = vrot.slane %v868_v60, 1 }
  0xf7   : > { %v1980_v6 = vadd.f32 %v1979_v8, %v1921_v2  ;;  %v1155_v2 = vrot.slane %v1153_v38, 1  ;;  %v1158_v8 = vshll.u32 %v7235_v25, 16  ;;  %v993_v7 = vrot.slane %v6265_v61, 1 }
  0xf8   : > { %v877_v60 = vrot.slane %v875_v34, 1 }
  0xf9   : > { %v1156_v10 = vor.u32 %v1155_v2, %v1151_v63  ;;  %v1160_v12 = vrot.slane %v1158_v8, 1 }
  0xfb   : > { %v2038_v15 = vpop.f32.mrf.mxu2  ;;  %v1161_v32 = vsel %vm532_vm1, %v1156_v10, %v1160_v12 }
  0xfc   : > { %v2039_v16 = vadd.f32 %v2038_v15, %v1980_v6  ;;  %v1923_v22 = vpop.f32.mrf.mxu0  ;;  %v5313_v15 = vld [vmem:[%s6842_s3 + $0x50] sm:$0x1] }
  0xfd   : > { %v2097_v17 = vpop.f32.mrf.mxu3  ;;  %v1924_v28 = vadd.f32 %v7113_v54, %v1923_v22  ;;  %v871_v22 = vsel %vm532_vm1, %v6983_v0, %v870_v19  ;;  %v6037_v0 = vld [vmem:[%s8500_s1 + $0x218] sm:$0xff] }
  0xfe   : > { %v7229_v29 = vadd.f32 %v2097_v17, %v2039_v16  ;;  %v1982_v30 = vpop.f32.mrf.mxu1  ;;  %2370 = vmatpush.bf16.msra.mxu0 %v6037_v0  ;;  %v7269_v19 = vld [vmem:[%s6842_s3 + $0x54] sm:$0xf0] }
  0xff   : > { %v1983_v33 = vadd.f32 %v1982_v30, %v1924_v28  ;;  %2148 = vmatmul.bf16.gmra.mxu0 %v859_v40  ;;  %v808_v40 = vunpack.c.l.b16 %v5271_v14  ;;  %v995_v30 = vsel %vm693_vm0, %v993_v7, %v994_v9 }
 0x100   : > { %2266 = vmatmul.bf16.gmra.mxu2 %v6965_v47 }
 0x101   : > { %2207 = vmatmul.bf16.gmra.mxu1 %v992_v23  ;;  %v1098_v23 = vunpack.c.l.b16 %v5313_v15  ;;  %v818_v41 = vpack.c.b16 %v808_v40, %v808_v40  ;;  %v5272_v15 = vld [vmem:[%s6842_s3 + $0x50] sm:$0x1] }
 0x102   : > { %2325 = vmatmul.bf16.gmra.mxu3 %v1149_v26 }
 0x103   : > { %v2041_v49 = vpop.f32.mrf.mxu2  ;;  %v7257_v46 = vpack.c.b16 %v1098_v23, %v1098_v23  ;;  %v880_v61 = vshll.u32 %v818_v41, 16  ;;  %v997_v12 = vrot.slane %v818_v41, 1  ;;  %v6266_v41 = vld [vmem:[%s6842_s3 + $0x48] sm:$0xf0] }
 0x104   : > { %v2042_v51 = vadd.f32 %v2041_v49, %v1983_v33  ;;  %v1925_v57 = vpop.f32.mrf.mxu0  ;;  %v6474_v33 = vld [vmem:[%s6842_s3 + $0x3c] sm:$0xe] }
 0x105   : > { %v2100_v56 = vpop.f32.mrf.mxu3  ;;  %v1926_v47 = vadd.f32 %v7113_v54, %v1925_v57  ;;  %v873_v57 = vshrl.u32 %v6976_v58, 16  ;;  %v6475_v63 = vor.u32 %v6474_v33, %v6979_v59  ;;  %v882_v9 = vrot.slane %v880_v61, 1  ;;  %v5314_v59 = vld [vmem:[%s6842_s3 + $0x5c] sm:$0x1] }
 0x106   : > { %v7239_v1 = vadd.f32 %v2100_v56, %v2042_v51  ;;  %v1984_v39 = vpop.f32.mrf.mxu1  ;;  %v1099_v33 = vunpack.c.l.b16 %v5314_v59 }
 0x107   : > { %v1985_v6 = vadd.f32 %v1984_v39, %v1926_v47  ;;  %v1170_v47 = vshll.u32 %v7257_v46, 16  ;;  %v878_v58 = vor.u32 %v877_v60, %v873_v57  ;;  %v996_v10 = vrot.slane %v6475_v63, 1 }
 0x109   : > { %v1172_v14 = vrot.slane %v1170_v47, 1  ;;  %v998_v40 = vsel %vm693_vm0, %v996_v10, %v997_v12 }
 0x10b   : > { %v2043_v20 = vpop.f32.mrf.mxu2  ;;  %v1173_v23 = vsel %vm532_vm1, %v7017_v44, %v1172_v14  ;;  %v5273_v14 = vld [vmem:[%s6842_s3 + $0x5c] sm:$0x1] }
 0x10c   : > { %v2044_v16 = vadd.f32 %v2043_v20, %v1985_v6  ;;  %v1928_v21 = vpop.f32.mrf.mxu0  ;;  %v7266_v6 = vld [vmem:[%s6842_s3 + $0x54] sm:$0xff]  }
 0x10d   : > { %v2102_v17 = vpop.f32.mrf.mxu3  ;;  %v1929_v26 = vadd.f32 %v7113_v54, %v1928_v21  ;;  %v1177_v0 = vshll.u32 %v7266_v6, 16  ;;  %v1175_v47 = vshrl.u32 %v7266_v6, 16 }
 0x10e   : > { %v7247_v27 = vadd.f32 %v2102_v17, %v2044_v16  ;;  %v1987_v28 = vpop.f32.mrf.mxu1 }
 0x10f   : > { %v1988_v38 = vadd.f32 %v1987_v28, %v1929_v26  ;;  %2153 = vmatmul.bf16.gmra.mxu0 %v871_v22  ;;  %v883_v22 = vsel %vm532_vm1, %v878_v58, %v882_v9  ;;  %v809_v26 = vunpack.c.l.b16 %v5272_v15  ;;  %v1179_v58 = vrot.slane %v1177_v0, 1 }
 0x110   : > { %2271 = vmatmul.bf16.gmra.mxu2 %v7214_v5 }
 0x111   : > { %2212 = vmatmul.bf16.gmra.mxu1 %v995_v30  ;;  %v1180_v59 = vor.u32 %v1179_v58, %v1175_v47 }
 0x112   : > { %2330 = vmatmul.bf16.gmra.mxu3 %v1161_v32 }
 0x113   : > { %v2046_v49 = vpop.f32.mrf.mxu2 }
 0x114   : > { %v2047_v51 = vadd.f32 %v2046_v49, %v1988_v38  ;;  %v1930_v5 = vpop.f32.mrf.mxu0  ;;  %v819_v38 = vpack.c.b16 %v809_v26, %v809_v26  ;;  %v6267_v49 = vld [vmem:[%s6842_s3 + $0x48] sm:$0xe] }
 0x115   : > { %v2105_v56 = vpop.f32.mrf.mxu3  ;;  %v1931_v39 = vadd.f32 %v7113_v54, %v1930_v5  ;;  %v6036_v5 = vld [vmem:[%s8500_s1 + $0x210] sm:$0xff] }
 0x116   : > { %v7263_v2 = vadd.f32 %v2105_v56, %v2047_v51  ;;  %v1989_v8 = vpop.f32.mrf.mxu1  ;;  %v7284_v51 = vpack.c.b16 %v1099_v33, %v1099_v33  ;;  %v892_v63 = vshll.u32 %v819_v38, 16  ;;  %2371 = vmatpush.bf16.msra.mxu0 %v6036_v5 }
 0x117   : > { %v1990_v7 = vadd.f32 %v1989_v8, %v1931_v39 }
 0x118   : > { %v1182_v9 = vshll.u32 %v7284_v51, 16  ;;  %v894_v12 = vrot.slane %v892_v63, 1 }
 0x11b   : > { %v2048_v20 = vpop.f32.mrf.mxu2 }
 0x11c   : > { %v2049_v16 = vadd.f32 %v2048_v20, %v1990_v7  ;;  %v1933_v21 = vpop.f32.mrf.mxu0  ;;  %v1000_v20 = vrot.slane %v819_v38, 1 }
 0x11d   : > { %v2107_v17 = vpop.f32.mrf.mxu3  ;;  %v1934_v28 = vadd.f32 %v7113_v54, %v1933_v21 }
 0x11e   : > { %v7278_v30 = vadd.f32 %v2107_v17, %v2049_v16  ;;  %v1992_v32 = vpop.f32.mrf.mxu1  ;;  %v1184_v16 = vrot.slane %v1182_v9, 1  ;;  %v5315_v17 = vld [vmem:[%s6842_s3 + $0x68] sm:$0x1] }
 0x11f   : > { %v1993_v34 = vadd.f32 %v1992_v32, %v1934_v28  ;;  %2158 = vmatmul.bf16.gmra.mxu0 %v883_v22  ;;  %v895_v28 = vsel %vm532_vm1, %v7017_v44, %v894_v12  ;;  %v1100_v32 = vunpack.c.l.b16 %v5315_v17  ;;  %v7319_v17 = vld [vmem:[%s6842_s3 + $0x6c] sm:$0xf0] }
 0x120   : > { %2276 = vmatmul.bf16.gmra.mxu2 %v6999_v24  ;;  %v6268_v24 = vor.u32 %v6267_v49, %v6266_v41  ;;  %v1185_v41 = vsel %vm532_vm1, %v1180_v59, %v1184_v16  ;;  %v6243_v49 = vld [vmem:[%s6842_s3 + $0x60] sm:$0xff]   ;;  %v7316_v16 = vld [vmem:[%s6842_s3 + $0x6c] sm:$0xff]  }
 0x121   : > { %2217 = vmatmul.bf16.gmra.mxu1 %v998_v40  ;;  %v1189_v44 = vshll.u32 %v6243_v49, 16 }
 0x122   : > { %2335 = vmatmul.bf16.gmra.mxu3 %v1173_v23  ;;  %v999_v15 = vrot.slane %v6268_v24, 1  ;;  %v810_v23 = vunpack.c.l.b16 %v5273_v14 }
 0x123   : > { %v2051_v56 = vpop.f32.mrf.mxu2  ;;  %v1191_v12 = vrot.slane %v1189_v44, 1 }
 0x124   : > { %v2052_v57 = vadd.f32 %v2051_v56, %v1993_v34  ;;  %v1935_v61 = vpop.f32.mrf.mxu0  ;;  %v1001_v38 = vsel %vm693_vm0, %v999_v15, %v1000_v20  ;;  %v6477_v56 = vld [vmem:[%s6842_s3 + $0x54] sm:$0xe]  ;;  %v820_v5 = vpack.c.b16 %v810_v23, %v810_v23 }
 0x125   : > { %v2110_v60 = vpop.f32.mrf.mxu3  ;;  %v1936_v39 = vadd.f32 %v7113_v54, %v1935_v61  ;;  %v7307_v61 = vpack.c.b16 %v1100_v32, %v1100_v32  ;;  %v5274_v32 = vld [vmem:[%s6842_s3 + $0x68] sm:$0x1] }
 0x126   : > { %v7291_v8 = vadd.f32 %v2110_v60, %v2052_v57  ;;  %v1994_v7 = vpop.f32.mrf.mxu1  ;;  %v899_v57 = vshll.u32 %v7010_v36, 16  ;;  %v904_v58 = vshll.u32 %v820_v5, 16 }
 0x127   : > { %v1995_v10 = vadd.f32 %v1994_v7, %v1936_v39  ;;  %v897_v39 = vshrl.u32 %v7010_v36, 16  ;;  %v1194_v14 = vshll.u32 %v7307_v61, 16 }
 0x128   : > { %v901_v7 = vrot.slane %v899_v57, 1 }
 0x12b   : > { %v2053_v21 = vpop.f32.mrf.mxu2 }
 0x12c   : > { %v2054_v22 = vadd.f32 %v2053_v21, %v1995_v10  ;;  %v1938_v26 = vpop.f32.mrf.mxu0  ;;  %v1187_v10 = vshrl.u32 %v6243_v49, 16  ;;  %v902_v21 = vor.u32 %v901_v7, %v897_v39 }
 0x12d   : > { %v2112_v40 = vpop.f32.mrf.mxu3  ;;  %v1939_v33 = vadd.f32 %v7113_v54, %v1938_v26  ;;  %v1003_v26 = vrot.slane %v820_v5, 1 }
 0x12e   : > { %v7299_v34 = vadd.f32 %v2112_v40, %v2054_v22  ;;  %v1997_v0 = vpop.f32.mrf.mxu1  ;;  %v906_v22 = vrot.slane %v904_v58, 1  ;;  %v6035_v40 = vld [vmem:[%s8500_s1 + $0x208] sm:$0xff] }
 0x12f   : > { %v1998_v60 = vadd.f32 %v1997_v0, %v1939_v33  ;;  %2163 = vmatmul.bf16.gmra.mxu0 %v895_v28  ;;  %v1196_v28 = vrot.slane %v1194_v14, 1  ;;  %v5316_v0 = vld [vmem:[%s6842_s3 + $0x74] sm:$0x1] }
 0x130   : > { %2281 = vmatmul.bf16.gmra.mxu2 %v7266_v6  ;;  %v6478_v6 = vor.u32 %v6477_v56, %v7013_v37  ;;  %v1192_v37 = vor.u32 %v1191_v12, %v1187_v10  ;;  %2372 = vmatpush.bf16.msra.mxu0 %v6035_v40  ;;  %v907_v57 = vsel %vm532_vm1, %v902_v21, %v906_v22  ;;  %v1101_v39 = vunpack.c.l.b16 %v5316_v0  ;;  %v6269_v10 = vld [vmem:[%s6842_s3 + $0x60] sm:$0xf0]  ;;  %v6270_v12 = vld [vmem:[%s6842_s3 + $0x60] sm:$0xe] }
 0x131   : > { %2222 = vmatmul.bf16.gmra.mxu1 %v1001_v38  ;;  %v6271_v22 = vor.u32 %v6270_v12, %v6269_v10  ;;  %v6480_v10 = vld [vmem:[%s6842_s3 + $0x6c] sm:$0xe] }
 0x132   : > { %2340 = vmatmul.bf16.gmra.mxu3 %v1185_v41  ;;  %v1002_v23 = vrot.slane %v6478_v6, 1  ;;  %v1197_v44 = vsel %vm532_vm1, %v1192_v37, %v1196_v28  ;;  %v7335_v6 = vpack.c.b16 %v1101_v39, %v1101_v39  ;;  %v1199_v37 = vshrl.u32 %v7316_v16, 16 }
 0x133   : > { %v2056_v63 = vpop.f32.mrf.mxu2 }
 0x134   : > { %v2057_v24 = vadd.f32 %v2056_v63, %v1998_v60  ;;  %v1940_v9 = vpop.f32.mrf.mxu0  ;;  %v1004_v60 = vsel %vm693_vm0, %v1002_v23, %v1003_v26  ;;  %v811_v63 = vunpack.c.l.b16 %v5274_v32  ;;  %v1206_v26 = vshll.u32 %v7335_v6, 16 }
 0x135   : > { %v2115_v47 = vpop.f32.mrf.mxu3  ;;  %v1941_v15 = vadd.f32 %v7113_v54, %v1940_v9  ;;  %v1201_v9 = vshll.u32 %v7316_v16, 16  ;;  %v1005_v32 = vrot.slane %v6271_v22, 1 }
 0x136   : > { %v7313_v20 = vadd.f32 %v2115_v47, %v2057_v24  ;;  %v1999_v59 = vpop.f32.mrf.mxu1  ;;  %v821_v58 = vpack.c.b16 %v811_v63, %v811_v63 }
 0x137   : > { %v2000_v36 = vadd.f32 %v1999_v59, %v1941_v15  ;;  %v1203_v23 = vrot.slane %v1201_v9, 1 }
 0x138   : > { %v916_v21 = vshll.u32 %v821_v58, 16 }
 0x139   : > { %v1204_v0 = vor.u32 %v1203_v23, %v1199_v37 }
 0x13a   : > { %v918_v28 = vrot.slane %v916_v21, 1 }
 0x13b   : > { %v2058_v33 = vpop.f32.mrf.mxu2 }
 0x13c   : > { %v2059_v38 = vadd.f32 %v2058_v33, %v2000_v36  ;;  %v1943_v56 = vpop.f32.mrf.mxu0  ;;  %v1006_v33 = vrot.slane %v821_v58, 1 }
 0x13d   : > { %v2117_v41 = vpop.f32.mrf.mxu3  ;;  %v1944_v24 = vadd.f32 %v7113_v54, %v1943_v56 }
 0x13e   : > { %v7330_v5 = vadd.f32 %v2117_v41, %v2059_v38  ;;  %v2002_v47 = vpop.f32.mrf.mxu1  ;;  %v1208_v38 = vrot.slane %v1206_v26, 1  ;;  %v5275_v41 = vld [vmem:[%s6842_s3 + $0x74] sm:$0x1]  ;;  %v1007_v58 = vsel %vm693_vm0, %v1005_v32, %v1006_v33  ;;  %v921_v26 = vshrl.u32 %v7090_v42, 16 }
 0x13f   : > { %v2003_v7 = vadd.f32 %v2002_v47, %v1944_v24  ;;  %2168 = vmatmul.bf16.gmra.mxu0 %v907_v57  ;;  %v5317_v57 = vld [vmem:[%s6842_s3 + $0x80] sm:$0x1]  ;;  %v919_v24 = vsel %vm532_vm1, %v7108_v53, %v918_v28  ;;  %v812_v47 = vunpack.c.l.b16 %v5275_v41  ;;  %v6481_v32 = vor.u32 %v6480_v10, %v7093_v43  ;;  %v5318_v43 = vld [vmem:[%s6842_s3 + $0x8c] sm:$0x1] }
 0x140   : > { %2286 = vmatmul.bf16.gmra.mxu2 %v6243_v49  ;;  %v1209_v9 = vsel %vm532_vm1, %v1204_v0, %v1208_v38  ;;  %v1102_v12 = vunpack.c.l.b16 %v5317_v57  ;;  %v933_v33 = vshrl.u32 %v7147_v55, 16  ;;  %v5307_v57 = vld [vmem:[%s6842_s3 + $0x84] sm:$0xff]  }
 0x141   : > { %2227 = vmatmul.bf16.gmra.mxu1 %v1004_v60  ;;  %v822_v53 = vpack.c.b16 %v812_v47, %v812_v47  ;;  %v1008_v47 = vrot.slane %v6481_v32, 1 }
 0x142   : > { %2345 = vmatmul.bf16.gmra.mxu3 %v1197_v44  ;;  %v6034_v44 = vld [vmem:[%s8500_s1 + $0x200] sm:$0xff] }
 0x143   : > { %v2061_v14 = vpop.f32.mrf.mxu2  ;;  %2373 = vmatpush.bf16.msra.mxu0 %v6034_v44  ;;  %v928_v28 = vshll.u32 %v822_v53, 16  ;;  %v7375_v44 = vld [vmem:[%s6842_s3 + $0x84] sm:$0xf0] }
 0x144   : > { %v2062_v15 = vadd.f32 %v2061_v14, %v2003_v7  ;;  %v7337_v36 = vpop.f32.mrf.mxu0 }
 0x145   : > { %v2120_v59 = vpop.f32.mrf.mxu3 }
 0x146   : > { %v7339_v40 = vadd.f32 %v2120_v59, %v2062_v15  ;;  %v7341_v49 = vpop.f32.mrf.mxu1  ;;  %v923_v15 = vshll.u32 %v7090_v42, 16  ;;  %v7363_v59 = vpack.c.b16 %v1102_v12, %v1102_v12  ;;  %v1009_v42 = vrot.slane %v822_v53, 1 }
 0x148   : > { %v1218_v41 = vshll.u32 %v7363_v59, 16  ;;  %v1010_v12 = vsel %vm693_vm0, %v1008_v47, %v1009_v42 }
 0x14b   : > { %v7346_v56 = vpop.f32.mrf.mxu2 }
 0x14c   : > { %v1948_v63 = vpop.f32.mrf.mxu0 }
 0x14d   : > { %v7349_v60 = vpop.f32.mrf.mxu3  ;;  %v1949_v39 = vadd.f32 %v7113_v54, %v1948_v63  ;;  %v935_v54 = vshll.u32 %v7147_v55, 16 }
 0x14e   : > { %v2007_v7 = vpop.f32.mrf.mxu1 }
 0x14f   : > { %v2008_v14 = vadd.f32 %v2007_v7, %v1949_v39  ;;  %2173 = vmatmul.bf16.gmra.mxu0 %v919_v24  ;;  %v937_v0 = vrot.slane %v935_v54, 1  ;;  %v930_v24 = vrot.slane %v928_v28, 1  ;;  %v1220_v7 = vrot.slane %v1218_v41, 1 }
 0x150   : > { %2291 = vmatmul.bf16.gmra.mxu2 %v7316_v16  ;;  %v925_v16 = vrot.slane %v923_v15, 1 }
 0x151   : > { %2232 = vmatmul.bf16.gmra.mxu1 %v1007_v58  ;;  %v938_v39 = vor.u32 %v937_v0, %v933_v33  ;;  %v5276_v58 = vld [vmem:[%s6842_s3 + $0x80] sm:$0x1]  ;;  %v1223_v0 = vshrl.u32 %v5307_v57, 16 }
 0x152   : > { %2350 = vmatmul.bf16.gmra.mxu3 %v1209_v9  ;;  %v926_v63 = vor.u32 %v925_v16, %v921_v26  ;;  %v6273_v26 = vld [vmem:[%s6842_s3 + $0x78] sm:$0xe] }
 0x153   : > { %v2066_v21 = vpop.f32.mrf.mxu2  ;;  %v1221_v54 = vsel %vm532_vm1, %v938_v39, %v1220_v7 }
 0x154   : > { %v2067_v22 = vadd.f32 %v2066_v21, %v2008_v14  ;;  %v7365_v23 = vpop.f32.mrf.mxu0  ;;  %v931_v10 = vsel %vm532_vm1, %v926_v63, %v930_v24  ;;  %v813_v14 = vunpack.c.l.b16 %v5276_v58  ;;  %v1103_v21 = vunpack.c.l.b16 %v5318_v43  ;;  %v6057_v24 = vld [vmem:[#allocation3 + $0x78] sm:$0xff] }
 0x155   : > { %v2125_v37 = vpop.f32.mrf.mxu3  ;;  %4308 = vmatpush.bf16.msra.mxu2 %v6057_v24 }
 0x156   : > { %v7370_v38 = vadd.f32 %v2125_v37, %v2067_v22  ;;  %v823_v53 = vpack.c.b16 %v813_v14, %v813_v14  ;;  %v1225_v22 = vshll.u32 %v5307_v57, 16  ;;  %v6272_v37 = vld [vmem:[%s6842_s3 + $0x78] sm:$0xf0]  ;;  %v7388_v16 = vpack.c.b16 %v1103_v21, %v1103_v21 }
 0x157   : > { %v6274_v33 = vor.u32 %v6273_v26, %v6272_v37  ;;  %v6275_v21 = vld [vmem:[%s6842_s3 + $0x18] sm:$0xf0] }
 0x158   : > { %v940_v32 = vshll.u32 %v823_v53, 16  ;;  %v1227_v41 = vrot.slane %v1225_v22, 1  ;;  %v1230_v63 = vshll.u32 %v7388_v16, 16  ;;  %v1012_v7 = vrot.slane %v823_v53, 1  ;;  %v6276_v53 = vld [vmem:[%s6842_s3 + $0x18] sm:$0xe] }
 0x159   : > { %v1011_v42 = vrot.slane %v6274_v33, 1  ;;  %v6277_v37 = vor.u32 %v6276_v53, %v6275_v21 }
 0x15a   : > { %v942_v47 = vrot.slane %v940_v32, 1  ;;  %v1228_v58 = vor.u32 %v1227_v41, %v1223_v0  ;;  %v1232_v43 = vrot.slane %v1230_v63, 1  ;;  %v6064_v32 = vld [vmem:[#allocation3 + $0xb0] sm:$0xff] }
 0x15b   : > { %v1013_v14 = vsel %vm693_vm0, %v1011_v42, %v1012_v7  ;;  %v6048_v63 = vld [vmem:[#allocation3 + $0x30] sm:$0xff] }
 0x15c   : > { %v2139_v9 = vpop.f32.mrf.mxu0 }
 0x15d   : > { %v7382_v15 = vadd.f32 %v2139_v9, %v7137_v18  ;;  %v6049_v9 = vld [vmem:[#allocation3 + $0x38] sm:$0xff] }
 0x15e   : > { %4259 = vmatpush.bf16.msra.mxu1 %v6049_v9  ;;  %v6278_v9 = vld [vmem:[%s6842_s3 + $0x30] sm:$0xf0] }
 0x15f   : > { %2178 = vmatmul.bf16.gmra.mxu0 %v931_v10 }
 0x160   : > { %2296 = vmatmul.bf16.gmra.mxu2 %v7147_v55  ;;  %v6065_v55 = vld [vmem:[#allocation3 + $0xb8] sm:$0xff] }
 0x161   : > { %2237 = vmatmul.bf16.gmra.mxu1 %v1010_v12  ;;  %4357 = vmatpush.bf16.msra.mxu3 %v6065_v55 }
 0x162   : > { %2355 = vmatmul.bf16.gmra.mxu3 %v1221_v54  ;;  %v1233_v54 = vsel %vm532_vm1, %v1228_v58, %v1232_v43  ;;  %4260 = vmatpush.bf16.msra.mxu1 %v6048_v63  ;;  %v6055_v58 = vld [vmem:[#allocation3 + $0x68] sm:$0xff]  ;;  %v6281_v63 = vld [vmem:[%s6842_s3 + $0x48] sm:$0xf0] }
 0x163   : > { %v6063_v43 = vld [vmem:[#allocation3 + $0xa8] sm:$0xff] }
 0x164   : > { %v2141_v28 = vpop.f32.mrf.mxu0 }
 0x165   : > { %v7391_v18 = vadd.f32 %v2141_v28, %v7143_v50  ;;  %v943_v50 = vsel %vm532_vm1, %v938_v39, %v942_v47  ;;  %v1274_v39 = vrot.slane %v6277_v37, 1  ;;  %v6056_v28 = vld [vmem:[#allocation3 + $0x70] sm:$0xff]  ;;  %4358 = vmatpush.bf16.msra.mxu3 %v6064_v32  ;;  %v1278_v47 = vrot.slane %v7182_v52, 1  ;;  %v6054_v37 = vld [vmem:[#allocation3 + $0x60] sm:$0xff] }
 0x166   : > { %4309 = vmatpush.bf16.msra.mxu2 %v6056_v28 }
 0x169   : > { %4359 = vmatpush.bf16.msra.mxu3 %v6063_v43 }
 0x16a   : > { %4310 = vmatpush.bf16.msra.mxu2 %v6055_v58  ;;  %v7446_v58 = vpop.f32.mrf.mxu1 }
 0x16c   : > { %v2144_v10 = vpop.f32.mrf.mxu0 }
 0x16d   : > { %v7396_v12 = vadd.f32 %v2144_v10, %v7162_v11  ;;  %v1275_v11 = vrot.slane %v7153_v62, 1  ;;  %v6279_v10 = vld [vmem:[%s6842_s3 + $0x30] sm:$0xe] }
 0x16e   : > { %4311 = vmatpush.bf16.msra.mxu2 %v6054_v37 }
 0x16f   : > { %2183 = vmatmul.bf16.gmra.mxu0 %v943_v50  ;;  %v1276_v0 = vsel %vm693_vm0, %v1274_v39, %v1275_v11  ;;  %v6280_v50 = vor.u32 %v6279_v10, %v6278_v9  ;;  %v6062_v39 = vld [vmem:[#allocation3 + $0xa0] sm:$0xff]  ;;  %v6489_v10 = vld [vmem:[%s6842_s3 + $0x54] sm:$0xe] }
 0x170   : > { %2301 = vmatmul.bf16.gmra.mxu2 %v5307_v57  ;;  %v6483_v57 = vld [vmem:[%s6842_s3 + $0x24] sm:$0xe]  ;;  %4360 = vmatpush.bf16.msra.mxu3 %v6062_v39 }
 0x171   : > { %2242 = vmatmul.bf16.gmra.mxu1 %v1013_v14  ;;  %v6484_v24 = vor.u32 %v6483_v57, %v7168_v13  ;;  %v6047_v13 = vld [vmem:[#allocation3 + $0x28] sm:$0xff]  ;;  %v1280_v52 = vrot.slane %v6280_v50, 1 }
 0x172   : > { %2360 = vmatmul.bf16.gmra.mxu3 %v1233_v54  ;;  %4261 = vmatpush.bf16.msra.mxu1 %v6047_v13  ;;  %v1281_v54 = vrot.slane %v7205_v48, 1  ;;  %v6046_v48 = vld [vmem:[#allocation3 + $0x20] sm:$0xff]  ;;  %v7455_v13 = vpop.f32.mrf.mxu3 }
 0x173   : > { %v1277_v55 = vrot.slane %v6484_v24, 1 }
 0x174   : > { %v2146_v22 = vpop.f32.mrf.mxu0  ;;  %v1282_v21 = vsel %vm693_vm0, %v1280_v52, %v1281_v54  ;;  %v7461_v52 = vpop.f32.mrf.mxu1 }
 0x175   : > { %v7403_v26 = vadd.f32 %v2146_v22, %v7177_v35  ;;  %v6486_v22 = vld [vmem:[%s6842_s3 + $0x3c] sm:$0xe] }
 0x176   : > { %4262 = vmatpush.bf16.msra.mxu1 %v6046_v48  ;;  %v6284_v48 = vld [vmem:[%s6842_s3 + $0x60] sm:$0xf0] }
 0x17c   : > { %v2149_v33 = vpop.f32.mrf.mxu0 }
 0x17d   : > { %v7408_v41 = vadd.f32 %v2149_v33, %v7187_v4  ;;  %v1279_v4 = vsel %vm693_vm0, %v1277_v55, %v1278_v47  ;;  %v1284_v33 = vrot.slane %v7235_v25, 1  ;;  %v6053_v55 = vld [vmem:[#allocation3 + $0x58] sm:$0xff]  ;;  %v1287_v25 = vrot.slane %v7257_v46, 1 }
 0x17e   : > { %v6061_v47 = vld [vmem:[#allocation3 + $0x98] sm:$0xff]  ;;  %4312 = vmatpush.bf16.msra.mxu2 %v6053_v55  ;;  %v6490_v46 = vor.u32 %v6489_v10, %v7269_v19  ;;  %v7470_v19 = vpop.f32.mrf.mxu3 }
 0x17f   : > { %2374 = vmatmul.bf16.vlgmr.msra.gmra.mxu0 %v1276_v0  ;;  %4361 = vmatpush.bf16.msra.mxu3 %v6061_v47 }
 0x184   : > { %v2151_v35 = vpop.f32.mrf.mxu0 }
 0x185   : > { %v7413_v62 = vadd.f32 %v2151_v35, %v7198_v31 }
 0x18c   : > { %v2154_v42 = vpop.f32.mrf.mxu0 }
 0x18d   : > { %v7418_v7 = vadd.f32 %v2154_v42, %v7211_v3 }
 0x18f   : > { %2379 = vmatmul.bf16.gmra.mxu0 %v1279_v4  ;;  %v6045_v4 = vld [vmem:[#allocation3 + $0x18] sm:$0xff] }
 0x190   : > { %4263 = vmatpush.bf16.msra.mxu1 %v6045_v4 }
 0x194   : > { %v2156_v31 = vpop.f32.mrf.mxu0 }
 0x195   : > { %v7423_v14 = vadd.f32 %v2156_v31, %v7229_v29  ;;  %v6487_v29 = vor.u32 %v6486_v22, %v7217_v45  ;;  %v6282_v45 = vld [vmem:[%s6842_s3 + $0x48] sm:$0xe] }
 0x196   : > { %v6060_v22 = vld [vmem:[#allocation3 + $0x90] sm:$0xff] }
 0x197   : > { %v1283_v32 = vrot.slane %v6487_v29, 1  ;;  %4362 = vmatpush.bf16.msra.mxu3 %v6060_v22  ;;  %v7472_v29 = vpop.f32.mrf.mxu1 }
 0x199   : > { %v1285_v0 = vsel %vm693_vm0, %v1283_v32, %v1284_v33  ;;  %v6285_v32 = vld [vmem:[%s6842_s3 + $0x60] sm:$0xe] }
 0x19c   : > { %v2159_v3 = vpop.f32.mrf.mxu0 }
 0x19d   : > { %v7428_v53 = vadd.f32 %v2159_v3, %v7239_v1  ;;  %v1290_v3 = vrot.slane %v7284_v51, 1 }
 0x19f   : > { %2384 = vmatmul.bf16.gmra.mxu0 %v1282_v21  ;;  %v6052_v21 = vld [vmem:[#allocation3 + $0x50] sm:$0xff] }
 0x1a0   : > { %4313 = vmatpush.bf16.msra.mxu2 %v6052_v21  ;;  %v2561_v21 = vld [vmem:[#allocation2 + $0x8] sm:$0x1] }
 0x1a1   : > { %v2562_v22 = vsel %vm7510_vm6, 0, %v2561_v21 }
 0x1a2   : > { %2563 = vst [vmem:[#allocation2 + $0x8] sm:$0x1] %v2562_v22 }
 0x1a4   : > { %v2161_v11 = vpop.f32.mrf.mxu0 }
 0x1a5   : > { %v7433_v28 = vadd.f32 %v2161_v11, %v7247_v27  ;;  %v6283_v27 = vor.u32 %v6282_v45, %v6281_v63  ;;  %v1293_v45 = vrot.slane %v7307_v61, 1 }
 0x1a7   : > { %v1286_v42 = vrot.slane %v6283_v27, 1 }
 0x1a9   : > { %v1288_v43 = vsel %vm693_vm0, %v1286_v42, %v1287_v25  ;;  %v6492_v25 = vld [vmem:[%s6842_s3 + $0x6c] sm:$0xe] }
 0x1aa   : > { %v6493_v10 = vor.u32 %v6492_v25, %v7319_v17  ;;  %v6059_v17 = vld [vmem:[#allocation3 + $0x88] sm:$0xff] }
 0x1ab   : > { %4363 = vmatpush.bf16.msra.mxu3 %v6059_v17  ;;  %v2564_v17 = vld [vmem:[#allocation2 + $0x14] sm:$0x1] }
 0x1ac   : > { %v2164_v1 = vpop.f32.mrf.mxu0 }
 0x1ad   : > { %v7438_v57 = vadd.f32 %v2164_v1, %v7263_v2  ;;  %v6286_v1 = vor.u32 %v6285_v32, %v6284_v48 }
 0x1af   : > { %2389 = vmatmul.bf16.gmra.mxu0 %v1285_v0  ;;  %v1292_v63 = vrot.slane %v6286_v1, 1 }
 0x1b1   : > { %v1294_v47 = vsel %vm693_vm0, %v1292_v63, %v1293_v45  ;;  %v6287_v63 = vld [vmem:[%s6842_s3 + $0x78] sm:$0xf0]  ;;  %v6288_v45 = vld [vmem:[%s6842_s3 + $0x78] sm:$0xe] }
 0x1b4   : > { %v2166_v35 = vpop.f32.mrf.mxu0 }
 0x1b5   : > { %v7443_v24 = vadd.f32 %v2166_v35, %v7278_v30  ;;  %v7453_v30 = vpop.f32.mrf.mxu2  ;;  %v7484_v35 = vpop.f32.mrf.mxu1 }
 0x1bc   : > { %v2169_v2 = vpop.f32.mrf.mxu0 }
 0x1bd   : > { %v7450_v9 = vadd.f32 %v2169_v2, %v7291_v8  ;;  %v7463_v54 = vpop.f32.mrf.mxu2  ;;  %v1289_v8 = vrot.slane %v6490_v46, 1 }
 0x1bf   : > { %2394 = vmatmul.bf16.gmra.mxu0 %v1288_v43  ;;  %v1291_v39 = vsel %vm693_vm0, %v1289_v8, %v1290_v3  ;;  %v7502_v43 = vpop.f32.mrf.mxu1  ;;  %v1295_v8 = vrot.slane %v6493_v10, 1  ;;  %v1296_v3 = vrot.slane %v7335_v6, 1 }
 0x1c1   : > { %v1297_v32 = vsel %vm693_vm0, %v1295_v8, %v1296_v3  ;;  %v7539_v8 = vstv %s5617_s14  ;;  %v6042_v3 = vld [vmem:[#allocation3] sm:$0xff]  ;;  %s5240_s14 = sshll.u32 %s300_s12, 7 }
 0x1c2   : > { %vm2456_vm7 = vcmp.ge.s32.totalorder %v7539_v8, 0  ;;  %vm2466_vm8 = vcmp.lt.s32.totalorder %v7539_v8, 16  ;;  %s8342_s22 = scalar_lea.vmem [#allocation6], %s5240_s14 }
 0x1c3   : > { %vm7557_vm9 = vmand %vm2456_vm7, %vm2466_vm8  ;;  %s5132_s19 = sshll.u32 %s8342_s22, 4  ;;  %s5133_s19 = int_to_ptr.vmem [resolvable:$true] %s5132_s19 }
 0x1c4   : > { %v2171_v31 = vpop.f32.mrf.mxu0 }
 0x1c5   : > { %v7459_v50 = vadd.f32 %v2171_v31, %v7299_v34  ;;  %v6044_v34 = vld [vmem:[#allocation3 + $0x10] sm:$0xff]  ;;  %v7476_v51 = vpop.f32.mrf.mxu2 }
 0x1c6   : > { %4264 = vmatpush.bf16.msra.mxu1 %v6044_v34 }
 0x1c7   : > { %v7523_v6 = vpop.f32.mrf.mxu1 }
 0x1cc   : > { %v2174_v37 = vpop.f32.mrf.mxu0 }
 0x1cd   : > { %v7468_v11 = vadd.f32 %v2174_v37, %v7313_v20  ;;  %v7481_v20 = vpop.f32.mrf.mxu3  ;;  %v7486_v27 = vpop.f32.mrf.mxu2  ;;  %v6051_v37 = vld [vmem:[#allocation3 + $0x48] sm:$0xff] }
 0x1ce   : > { %4314 = vmatpush.bf16.msra.mxu2 %v6051_v37  ;;  %v1299_v37 = vrot.slane %v7363_v59, 1 }
 0x1cf   : > { %2399 = vmatmul.bf16.gmra.mxu0 %v1291_v39  ;;  %v6043_v39 = vld [vmem:[#allocation3 + $0x8] sm:$0xff]  ;;  %v7541_v21 = vpop.f32.mrf.mxu1 }
 0x1d0   : > { %4265 = vmatpush.bf16.msra.mxu1 %v6043_v39 }
 0x1d4   : > { %v2176_v33 = vpop.f32.mrf.mxu0  ;;  %4266 = vmatpush.bf16.msra.mxu1 %v6042_v3 }
 0x1d5   : > { %v7479_v0 = vadd.f32 %v2176_v33, %v7330_v5  ;;  %v2529_v5 = vld [vmem:[#allocation2] sm:$0x1]  ;;  %v7498_v61 = vpop.f32.mrf.mxu3  ;;  %v7507_v31 = vpop.f32.mrf.mxu2 }
 0x1d6   : > { %v2530_v2 = vsel %vm7494_vm4, 0, %v2529_v5  ;;  %v2199_v5 = vadd.f32 %v7461_v52, %v7382_v15  ;;  %v2565_v15 = vsel %vm7510_vm6, 0, %v2564_v17 }
 0x1d7   : > { %2531 = vst [vmem:[#allocation2] sm:$0x1] %v2530_v2 }
 0x1d8   : > { %v2258_v10 = vadd.f32 %v7463_v54, %v2199_v5  ;;  %v6050_v54 = vld [vmem:[#allocation3 + $0x40] sm:$0xff]  ;;  %2566 = vst [vmem:[#allocation2 + $0x14] sm:$0x1] %v2565_v15 }
 0x1d9   : > { %4315 = vmatpush.bf16.msra.mxu2 %v6050_v54 }
 0x1da   : > { %v2317_v52 = vadd.f32 %v7470_v19, %v2258_v10  ;;  %v6096_v10 = vld [vmem:[#allocation3 + $0x1b0] sm:$0xff] }
 0x1dc   : > { %v2179_v55 = vpop.f32.mrf.mxu0 }
 0x1dd   : > { %v7490_v42 = vadd.f32 %v2179_v55, %v7339_v40  ;;  %v7517_v34 = vpop.f32.mrf.mxu3  ;;  %v7525_v1 = vpop.f32.mrf.mxu2  ;;  %v2532_v55 = vld [vmem:[#allocation2 + $0xc] sm:$0x1] }
 0x1df   : > { %2404 = vmatmul.bf16.gmra.mxu0 %v1294_v47  ;;  %v2533_v47 = vsel %vm7494_vm4, 0, %v2532_v55 }
 0x1e0   : > { %2534 = vst [vmem:[#allocation2 + $0xc] sm:$0x1] %v2533_v47  ;;  %v6495_v47 = vld [vmem:[%s6842_s3 + $0x84] sm:$0xe] }
 0x1e4   : > { %v7504_v40 = vpop.f32.mrf.mxu0 }
 0x1e5   : > { %v7536_v2 = vpop.f32.mrf.mxu3  ;;  %v7544_v39 = vpop.f32.mrf.mxu2 }
 0x1ec   : > { %v2184_v48 = vpop.f32.mrf.mxu0 }
 0x1ed   : > { %v7521_v33 = vadd.f32 %v2184_v48, %v7370_v38  ;;  %v6289_v38 = vor.u32 %v6288_v45, %v6287_v63  ;;  %v6058_v48 = vld [vmem:[#allocation3 + $0x80] sm:$0xff]  ;;  %v2201_v45 = vadd.f32 %v7472_v29, %v7391_v18  ;;  %v7562_v3 = vpop.f32.mrf.mxu3 }
 0x1ee   : > { %4364 = vmatpush.bf16.msra.mxu3 %v6058_v48  ;;  %v2535_v29 = vld [vmem:[#allocation2 + $0x18] sm:$0x1]  ;;  %v6496_v48 = vor.u32 %v6495_v47, %v7375_v44 }
 0x1ef   : > { %2409 = vmatmul.bf16.gmra.mxu0 %v1297_v32  ;;  %v1298_v22 = vrot.slane %v6289_v38, 1  ;;  %v6097_v32 = vld [vmem:[#allocation3 + $0x1b8] sm:$0xff]  ;;  %v2260_v38 = vadd.f32 %v7476_v51, %v2201_v45  ;;  %v2536_v17 = vsel %vm7494_vm4, 0, %v2535_v29  ;;  %v7571_v51 = vpop.f32.mrf.mxu2  ;;  %v1302_v29 = vrot.slane %v7388_v16, 1 }
 0x1f0   : > { %4553 = vmatpush.bf16.msrb.mxu0 %v6097_v32  ;;  %2537 = vst [vmem:[#allocation2 + $0x18] sm:$0x1] %v2536_v17  ;;  %v6095_v32 = vld [vmem:[#allocation3 + $0x1a8] sm:$0xff]  ;;  %v1301_v47 = vrot.slane %v6496_v48, 1 }
 0x1f1   : > { %v1300_v59 = vsel %vm693_vm0, %v1298_v22, %v1299_v37  ;;  %v7566_v22 = vpop.f32.mrf.mxu1  ;;  %v2319_v15 = vadd.f32 %v7481_v20, %v2260_v38  ;;  %v2815_v38 = vld [vmem:[#allocation2] sm:$0xf] }
 0x1f2   : > { %v6107_v20 = vld [vmem:[#allocation3 + $0x208] sm:$0xff] }
 0x1f4   : > { %v7532_v25 = vpop.f32.mrf.mxu0  ;;  %4554 = vmatpush.bf16.msrb.mxu0 %v6096_v10 }
 0x1f5   : > { %v7586_v17 = vpop.f32.mrf.mxu3 }
 0x1f8   : > { %4555 = vmatpush.bf16.msrb.mxu0 %v6095_v32  ;;  %v1303_v32 = vsel %vm693_vm0, %v1301_v47, %v1302_v29  ;;  %v2819_v47 = vld [vmem:[#allocation2 + $0x8] sm:$0x1] }
 0x1f9   : > { %v7593_v16 = vpop.f32.mrf.mxu1 }
 0x1fc   : > { %v2375_v63 = vpop.f32.mrf.mxu0 }
 0x1fd   : > { %v2376_v55 = vadd.f32 %v2375_v63, %v2317_v52  ;;  %v2204_v63 = vadd.f32 %v7484_v35, %v7396_v12  ;;  %v6094_v12 = vld [vmem:[#allocation3 + $0x1a0] sm:$0xff] }
 0x1fe   : > { %4556 = vmatpush.bf16.msrb.mxu0 %v6094_v12 }
 0x1ff   : > { %v2425_v5 = vmax.f32 %v2376_v55, 0.0  ;;  %2414 = vmatmul.bf16.gmra.mxu0 %v1300_v59 }
 0x201   : > { %v2506_v18 = vsel %vm7557_vm9, %v2425_v5, 0.0  ;;  %v2263_v5 = vadd.f32 %v7486_v27, %v2204_v63  ;;  %v6093_v63 = vld [vmem:[#allocation3 + $0x198] sm:$0xff] }
 0x202   : > { %v2591_v37 = vpack.c.bf16 %v2506_v18, %v2506_v18  ;;  %v2447_v18 = vadd.s32 1, %v7539_v8  ;;  %4557 = vmatpush.bf16.msrb.mxu0 %v6093_v63 }
 0x204   : > { %v2614_v52 = vshrl.u32 %v2591_v37, 16  ;;  %v2377_v54 = vpop.f32.mrf.mxu0  ;;  %v2617_v55 = vshll.u32 %v2591_v37, 16  ;;  %v2567_v37 = vld [vmem:[#allocation2 + $0x20] sm:$0x1]  ;;  %vm2457_vm12 = vcmp.ge.s32.totalorder %v2447_v18, 0  ;;  %vm2467_vm13 = vcmp.lt.s32.totalorder %v2447_v18, 16 }
 0x205   : > { %v2378_v59 = vadd.f32 %v2377_v54, %v2319_v15  ;;  %v2322_v54 = vadd.f32 %v7498_v61, %v2263_v5  ;;  %vm7600_vm15 = vmand %vm2457_vm12, %vm2467_vm13 }
 0x206   : > { %v2616_v45 = vrot.slane %v2614_v52, 7  ;;  %v2568_v52 = vsel %vm7510_vm6, 0, %v2567_v37 }
 0x207   : > { %v2426_v10 = vmax.f32 %v2378_v59, 0.0  ;;  %2569 = vst [vmem:[#allocation2 + $0x20] sm:$0x1] %v2568_v52  ;;  %v2206_v59 = vadd.f32 %v7502_v43, %v7403_v26  ;;  %v2538_v52 = vld [vmem:[#allocation2 + $0x24] sm:$0x1] }
 0x208   : > { %v2619_v44 = vor.u32 %v2617_v55, %v2616_v45  ;;  %v2620_v26 = vrot.slane %v2616_v45, 4  ;;  %v2539_v45 = vsel %vm7494_vm4, 0, %v2538_v52 }
 0x209   : > { %v2507_v35 = vsel %vm7557_vm9, %v2426_v10, 0.0  ;;  %v2265_v18 = vadd.f32 %v7507_v31, %v2206_v59  ;;  %v6081_v59 = vld [vmem:[#allocation3 + $0x138] sm:$0xff]  ;;  %2540 = vst [vmem:[#allocation2 + $0x24] sm:$0x1] %v2539_v45 }
 0x20a   : > { %v2816_v27 = vsel %vm7578_vm11, %v2619_v44, %v2815_v38  ;;  %v2592_v15 = vpack.c.bf16 %v2507_v35, %v2507_v35  ;;  %v7598_v38 = vpop.f32.mrf.mxu2  ;;  %v6092_v35 = vld [vmem:[#allocation3 + $0x190] sm:$0xff]  ;;  %4455 = vmatpush.bf16.msrb.mxu2 %v6081_v59 }
 0x20b   : > { %2817 = vst [vmem:[#allocation2] sm:$0xf] %v2816_v27  ;;  %4558 = vmatpush.bf16.msrb.mxu0 %v6092_v35 }
 0x20c   : > { %v2622_v19 = vshrl.u32 %v2592_v15, 16  ;;  %v2380_v48 = vpop.f32.mrf.mxu0  ;;  %v2625_v61 = vshll.u32 %v2592_v15, 16 }
 0x20d   : > { %v2381_v55 = vadd.f32 %v2380_v48, %v2322_v54  ;;  %v2324_v54 = vadd.f32 %v7517_v34, %v2265_v18  ;;  %v7621_v48 = vpop.f32.mrf.mxu3  ;;  %v7624_v18 = vpop.f32.mrf.mxu1 }
 0x20e   : > { %v2624_v10 = vrot.slane %v2622_v19, 7  ;;  %v2209_v19 = vadd.f32 %v7523_v6, %v7408_v41  ;;  %v2822_v41 = vld [vmem:[#allocation2 + $0xc] sm:$0xf] }
 0x20f   : > { %v2427_v29 = vmax.f32 %v2381_v55, 0.0  ;;  %2419 = vmatmul.bf16.gmra.mxu0 %v1303_v32  ;;  %v6089_v55 = vld [vmem:[#allocation3 + $0x178] sm:$0xff] }
 0x210   : > { %v2627_v43 = vor.u32 %v2625_v61, %v2624_v10  ;;  %v2629_v12 = vrot.slane %v2624_v10, 4  ;;  %v6073_v61 = vld [vmem:[#allocation3 + $0xf8] sm:$0xff]  ;;  %v2268_v34 = vadd.f32 %v7525_v1, %v2209_v19  ;;  %4504 = vmatpush.bf16.msrb.mxu3 %v6089_v55  ;;  %v2570_v19 = vld [vmem:[#allocation2 + $0x2c] sm:$0x1] }
 0x211   : > { %v2508_v37 = vsel %vm7600_vm15, %v2427_v29, 0.0  ;;  %4406 = vmatpush.bf16.msrb.mxu1 %v6073_v61  ;;  %v2571_v61 = vsel %vm7510_vm6, 0, %v2570_v19 }
 0x212   : > { %v2628_v27 = vsel %vm7606_vm2, %v2620_v26, %v2627_v43  ;;  %v2820_v31 = vsel %vm7494_vm4, %v2629_v12, %v2819_v47  ;;  %v2593_v15 = vpack.c.bf16 %v2508_v37, %v2508_v37  ;;  %v6091_v47 = vld [vmem:[#allocation3 + $0x188] sm:$0xff]  ;;  %v2448_v43 = vadd.s32 2, %v7539_v8  ;;  %v7627_v12 = vpop.f32.mrf.mxu2  ;;  %v6090_v37 = vld [vmem:[#allocation3 + $0x180] sm:$0xff]  ;;  %2572 = vst [vmem:[#allocation2 + $0x2c] sm:$0x1] %v2571_v61 }
 0x213   : > { %2818 = vst [vmem:[#allocation2 + $0x4] sm:$0xf] %v2628_v27  ;;  %4559 = vmatpush.bf16.msrb.mxu0 %v6091_v47  ;;  %v6301_v1 = vld [vmem:[#allocation2] sm:$0xe]  ;;  %v2214_v61 = vadd.f32 %v7566_v22, %v7418_v7 }
 0x214   : > { %2821 = vst [vmem:[#allocation2 + $0x8] sm:$0x1] %v2820_v31  ;;  %v2631_v32 = vshrl.u32 %v2593_v15, 16  ;;  %v2382_v63 = vpop.f32.mrf.mxu0  ;;  %v2634_v26 = vshll.u32 %v2593_v15, 16  ;;  %v2327_v31 = vadd.f32 %v7536_v2, %v2268_v34  ;;  %vm2458_vm3 = vcmp.ge.s32.totalorder %v2448_v43, 0 }
 0x215   : > { %v2383_v10 = vadd.f32 %v2382_v63, %v2324_v54  ;;  %vm2468_vm5 = vcmp.lt.s32.totalorder %v2448_v43, 16 }
 0x216   : > { %v2633_v29 = vrot.slane %v2631_v32, 7  ;;  %v2211_v32 = vadd.f32 %v7541_v21, %v7413_v62  ;;  %vm7642_vm7 = vmand %vm2458_vm3, %vm2468_vm5 }
 0x217   : > { %v2428_v6 = vmax.f32 %v2383_v10, 0.0  ;;  %4560 = vmatpush.bf16.msrb.mxu0 %v6090_v37  ;;  %v2826_v37 = vld [vmem:[#allocation2 + $0x14] sm:$0x1] }
 0x218   : > { %v2636_v35 = vor.u32 %v2634_v26, %v2633_v29  ;;  %v2270_v47 = vadd.f32 %v7544_v39, %v2211_v32  ;;  %v7639_v26 = vpop.f32.mrf.mxu3 }
 0x219   : > { %v2509_v27 = vsel %vm7600_vm15, %v2428_v6, 0.0 }
 0x21a   : > { %v2823_v15 = vsel %vm7578_vm11, %v2636_v35, %v2822_v41  ;;  %v2594_v52 = vpack.c.bf16 %v2509_v27, %v2509_v27  ;;  %v6184_v54 = vld [vmem:[#allocation2] sm:$0xff]   ;;  %v2637_v35 = vrot.slane %v2633_v29, 4 }
 0x21b   : > { %v6300_v45 = vld [vmem:[#allocation2] sm:$0xf0]  ;;  %2824 = vst [vmem:[#allocation2 + $0xc] sm:$0xf] %v2823_v15  ;;  %v3058_v63 = vshll.u32 %v6184_v54, 16  ;;  %4267 = vmatmul.bf16.vlgmr.msra.gmra.mxu1 %v6184_v54 }
 0x21c   : > { %v2901_v5 = vld [vmem:[#allocation2 + $0x8] sm:$0x1]  ;;  %v6302_v59 = vor.u32 %v6301_v1, %v6300_v45  ;;  %v2639_v55 = vshrl.u32 %v2594_v52, 16  ;;  %v2385_v2 = vpop.f32.mrf.mxu0  ;;  %v2642_v21 = vshll.u32 %v2594_v52, 16  ;;  %v7646_v45 = vpop.f32.mrf.mxu1  ;;  %v3056_v52 = vshrl.u32 %v6184_v54, 16 }
 0x21d   : > { %v3039_v10 = vunpack.c.l.b16 %v2901_v5  ;;  %v2386_v34 = vadd.f32 %v2385_v2, %v2327_v31  ;;  %v3060_v27 = vrot.slane %v3058_v63, 1  ;;  %v2329_v5 = vadd.f32 %v7562_v3, %v2270_v47 }
 0x21e   : > { %v2641_v62 = vrot.slane %v2639_v55, 7  ;;  %v3183_v15 = vrot.slane %v6302_v59, 1  ;;  %v7651_v55 = vpop.f32.mrf.mxu2 }
 0x21f   : > { %v3047_v6 = vpack.c.b16 %v3039_v10, %v3039_v10  ;;  %v2429_v1 = vmax.f32 %v2386_v34, 0.0  ;;  %v2541_v10 = vld [vmem:[#allocation2 + $0x30] sm:$0x1]  ;;  %v3061_v3 = vor.u32 %v3060_v27, %v3056_v52  ;;  %v2449_v27 = vadd.s32 3, %v7539_v8 }
 0x220   : > { %v2644_v39 = vor.u32 %v2642_v21, %v2641_v62  ;;  %v2646_v31 = vrot.slane %v2641_v62, 4  ;;  %v2542_v47 = vsel %vm7494_vm4, 0, %v2541_v10  ;;  %v2273_v21 = vadd.f32 %v7571_v51, %v2214_v61  ;;  %v2573_v10 = vld [vmem:[#allocation2 + $0x38] sm:$0x1] }
 0x221   : > { %v3184_v19 = vrot.slane %v3047_v6, 1  ;;  %v3063_v32 = vshll.u32 %v3047_v6, 16  ;;  %v2510_v43 = vsel %vm7642_vm7, %v2429_v1, 0.0  ;;  %v6088_v1 = vld [vmem:[#allocation3 + $0x170] sm:$0xff]  ;;  %2543 = vst [vmem:[#allocation2 + $0x30] sm:$0x1] %v2542_v47 }
 0x222   : > { %v2645_v29 = vsel %vm7606_vm2, %v2637_v35, %v2644_v39  ;;  %v2827_v63 = vsel %vm7494_vm4, %v2646_v31, %v2826_v37  ;;  %v2595_v59 = vpack.c.bf16 %v2510_v43, %v2510_v43  ;;  %v6080_v37 = vld [vmem:[#allocation3 + $0x130] sm:$0xff]  ;;  %v2829_v39 = vld [vmem:[#allocation2 + $0x18] sm:$0xf]  ;;  %4505 = vmatpush.bf16.msrb.mxu3 %v6088_v1  ;;  %vm2459_vm8 = vcmp.ge.s32.totalorder %v2449_v27, 0 }
 0x223   : > { %v3185_v2 = vsel %vm693_vm0, %v3183_v15, %v3184_v19  ;;  %2825 = vst [vmem:[#allocation2 + $0x10] sm:$0xf] %v2645_v29  ;;  %v3065_v54 = vrot.slane %v3063_v32, 1  ;;  %v6072_v15 = vld [vmem:[#allocation3 + $0xf0] sm:$0xff]  ;;  %4456 = vmatpush.bf16.msrb.mxu2 %v6080_v37  ;;  %v7665_v19 = vpop.f32.mrf.mxu3  ;;  %vm2469_vm9 = vcmp.lt.s32.totalorder %v2449_v27, 16  ;;  %v2221_v1 = vadd.f32 %v7646_v45, %v7433_v28 }
 0x224   : > { %4365 = vmatmul.bf16.vlgmr.msra.gmra.mxu3 %v3185_v2  ;;  %2828 = vst [vmem:[#allocation2 + $0x14] sm:$0x1] %v2827_v63  ;;  %v2648_v34 = vshrl.u32 %v2595_v59, 16  ;;  %v2387_v62 = vpop.f32.mrf.mxu0  ;;  %v2651_v22 = vshll.u32 %v2595_v59, 16  ;;  %v6498_v51 = vld [vmem:[#allocation2 + $0xc] sm:$0xe]  ;;  %4407 = vmatpush.bf16.msrb.mxu1 %v6072_v15  ;;  %v7670_v43 = vpop.f32.mrf.mxu1  ;;  %vm7683_vm10 = vmand %vm2459_vm8, %vm2469_vm9 }
 0x225   : > { %v2388_v6 = vadd.f32 %v2387_v62, %v2329_v5  ;;  %v3066_v35 = vsel %vm532_vm1, %v3061_v3, %v3065_v54  ;;  %v2332_v5 = vadd.f32 %v7586_v17, %v2273_v21  ;;  %v2574_v3 = vsel %vm7510_vm6, 0, %v2573_v10 }
 0x226   : > { %v2650_v7 = vrot.slane %v2648_v34, 7  ;;  %4316 = vmatmul.bf16.vlgmr.msra.gmra.mxu2 %v3066_v35  ;;  %v2216_v17 = vadd.f32 %v7593_v16, %v7423_v14  ;;  %v7678_v41 = vpop.f32.mrf.mxu2  ;;  %2575 = vst [vmem:[#allocation2 + $0x38] sm:$0x1] %v2574_v3  ;;  %v2833_v16 = vld [vmem:[#allocation2 + $0x20] sm:$0x1] }
 0x227   : > { %v2430_v31 = vmax.f32 %v2388_v6, 0.0  ;;  %v2544_v3 = vld [vmem:[#allocation2 + $0x3c] sm:$0x1] }
 0x228   : > { %v2653_v32 = vor.u32 %v2651_v22, %v2650_v7  ;;  %v2275_v6 = vadd.f32 %v7598_v38, %v2216_v17  ;;  %v2654_v14 = vrot.slane %v2650_v7, 4 }
 0x229   : > { %v2511_v52 = vsel %vm7642_vm7, %v2430_v31, 0.0 }
 0x22a   : > { %v2830_v29 = vsel %vm7578_vm11, %v2653_v32, %v2829_v39  ;;  %v2596_v63 = vpack.c.bf16 %v2511_v52, %v2511_v52  ;;  %v2887_v59 = vld [vmem:[#allocation2 + $0xc] sm:$0xff]   ;;  %v2334_v17 = vadd.f32 %v7621_v48, %v2275_v6  ;;  %v2545_v48 = vsel %vm7494_vm4, 0, %v2544_v3 }
 0x22b   : > { %v6497_v2 = vld [vmem:[#allocation2 + $0xc] sm:$0xf0]  ;;  %2831 = vst [vmem:[#allocation2 + $0x18] sm:$0xf] %v2830_v29  ;;  %v2902_v61 = vld [vmem:[#allocation2 + $0x14] sm:$0x1]  ;;  %4272 = vmatmul.bf16.gmra.mxu1 %v2887_v59 }
 0x22c   : > { %v2656_v54 = vshrl.u32 %v2596_v63, 16  ;;  %v2390_v47 = vpop.f32.mrf.mxu0  ;;  %v3040_v34 = vunpack.c.l.b16 %v2902_v61  ;;  %v6499_v21 = vor.u32 %v6498_v51, %v6497_v2  ;;  %v2659_v37 = vshll.u32 %v2596_v63, 16  ;;  %v7689_v63 = vpop.f32.mrf.mxu3  ;;  %2546 = vst [vmem:[#allocation2 + $0x3c] sm:$0x1] %v2545_v48 }
 0x22d   : > { %v2391_v62 = vadd.f32 %v2390_v47, %v2332_v5  ;;  %v3070_v39 = vshll.u32 %v2887_v59, 16  ;;  %v3068_v29 = vshrl.u32 %v2887_v59, 16  ;;  %v7697_v59 = vpop.f32.mrf.mxu1 }
 0x22e   : > { %v2658_v35 = vrot.slane %v2656_v54, 7  ;;  %v3048_v15 = vpack.c.b16 %v3040_v34, %v3040_v34  ;;  %v3186_v31 = vrot.slane %v6499_v21, 1  ;;  %v6079_v21 = vld [vmem:[#allocation3 + $0x128] sm:$0xff]  ;;  %v7704_v6 = vpop.f32.mrf.mxu2 }
 0x22f   : > { %v2431_v22 = vmax.f32 %v2391_v62, 0.0  ;;  %v3072_v27 = vrot.slane %v3070_v39, 1  ;;  %4457 = vmatpush.bf16.msrb.mxu2 %v6079_v21 }
 0x230   : > { %v2661_v32 = vor.u32 %v2659_v37, %v2658_v35  ;;  %v2663_v5 = vrot.slane %v2658_v35, 4  ;;  %v3187_v51 = vrot.slane %v3048_v15, 1  ;;  %v3075_v52 = vshll.u32 %v3048_v15, 16  ;;  %v6087_v35 = vld [vmem:[#allocation3 + $0x168] sm:$0xff] }
 0x231   : > { %v2512_v38 = vsel %vm7683_vm10, %v2431_v22, 0.0  ;;  %v3073_v54 = vor.u32 %v3072_v27, %v3068_v29  ;;  %v2219_v37 = vadd.f32 %v7624_v18, %v7428_v53  ;;  %4506 = vmatpush.bf16.msrb.mxu3 %v6087_v35 }
 0x232   : > { %v2662_v2 = vsel %vm7606_vm2, %v2654_v14, %v2661_v32  ;;  %v2834_v7 = vsel %vm7494_vm4, %v2663_v5, %v2833_v16  ;;  %v2597_v10 = vpack.c.bf16 %v2512_v38, %v2512_v38  ;;  %v3188_v61 = vsel %vm693_vm0, %v3186_v31, %v3187_v51  ;;  %v6071_v16 = vld [vmem:[#allocation3 + $0xe8] sm:$0xff] }
 0x233   : > { %2832 = vst [vmem:[#allocation2 + $0x1c] sm:$0xf] %v2662_v2  ;;  %v3077_v47 = vrot.slane %v3075_v52, 1  ;;  %v2450_v31 = vadd.s32 4, %v7539_v8  ;;  %v2278_v32 = vadd.f32 %v7627_v12, %v2219_v37  ;;  %v2836_v5 = vld [vmem:[#allocation2 + $0x24] sm:$0xf]  ;;  %4408 = vmatpush.bf16.msrb.mxu1 %v6071_v16 }
 0x234   : > { %4370 = vmatmul.bf16.gmra.mxu3 %v3188_v61  ;;  %2835 = vst [vmem:[#allocation2 + $0x20] sm:$0x1] %v2834_v7  ;;  %v2665_v34 = vshrl.u32 %v2597_v10, 16  ;;  %v2392_v62 = vpop.f32.mrf.mxu0  ;;  %v2668_v39 = vshll.u32 %v2597_v10, 16  ;;  %v6304_v52 = vld [vmem:[#allocation2 + $0x18] sm:$0xe] }
 0x235   : > { %v2393_v15 = vadd.f32 %v2392_v62, %v2334_v17  ;;  %v3078_v14 = vsel %vm532_vm1, %v3073_v54, %v3077_v47  ;;  %vm2460_vm12 = vcmp.ge.s32.totalorder %v2450_v31, 0  ;;  %v2576_v7 = vld [vmem:[#allocation2 + $0x44] sm:$0x1]  ;;  %v2337_v10 = vadd.f32 %v7639_v26, %v2278_v32  ;;  %v7715_v17 = vpop.f32.mrf.mxu3  ;;  %v7720_v35 = vpop.f32.mrf.mxu1  ;;  %v2840_v16 = vld [vmem:[#allocation2 + $0x2c] sm:$0x1] }
 0x236   : > { %v2667_v22 = vrot.slane %v2665_v34, 7  ;;  %4321 = vmatmul.bf16.gmra.mxu2 %v3078_v14  ;;  %vm2470_vm13 = vcmp.lt.s32.totalorder %v2450_v31, 16  ;;  %v2577_v62 = vsel %vm7510_vm6, 0, %v2576_v7  ;;  %v2280_v26 = vadd.f32 %v7651_v55, %v2221_v1 }
 0x237   : > { %v2432_v53 = vmax.f32 %v2393_v15, 0.0  ;;  %2578 = vst [vmem:[#allocation2 + $0x44] sm:$0x1] %v2577_v62  ;;  %vm7724_vm14 = vmand %vm2460_vm12, %vm2470_vm13  ;;  %v6086_v62 = vld [vmem:[#allocation3 + $0x160] sm:$0xff] }
 0x238   : > { %v2670_v18 = vor.u32 %v2668_v39, %v2667_v22  ;;  %v2671_v14 = vrot.slane %v2667_v22, 4  ;;  %v2339_v7 = vadd.f32 %v7665_v19, %v2280_v26  ;;  %v6070_v19 = vld [vmem:[#allocation3 + $0xe0] sm:$0xff]  ;;  %v2451_v26 = vadd.s32 5, %v7539_v8  ;;  %4507 = vmatpush.bf16.msrb.mxu3 %v6086_v62 }
 0x239   : > { %v2513_v51 = vsel %vm7683_vm10, %v2432_v53, 0.0  ;;  %4409 = vmatpush.bf16.msrb.mxu1 %v6070_v19  ;;  %v2847_v62 = vld [vmem:[#allocation2 + $0x38] sm:$0x1] }
 0x23a   : > { %v2837_v38 = vsel %vm7578_vm11, %v2670_v18, %v2836_v5  ;;  %v2598_v29 = vpack.c.bf16 %v2513_v51, %v2513_v51  ;;  %v6216_v27 = vld [vmem:[#allocation2 + $0x18] sm:$0xff]   ;;  %v7728_v5 = vpop.f32.mrf.mxu2  ;;  %vm2461_vm15 = vcmp.ge.s32.totalorder %v2451_v26, 0  ;;  %vm2471_vm3 = vcmp.lt.s32.totalorder %v2451_v26, 16 }
 0x23b   : > { %v6303_v2 = vld [vmem:[#allocation2 + $0x18] sm:$0xf0]  ;;  %2838 = vst [vmem:[#allocation2 + $0x24] sm:$0xf] %v2837_v38  ;;  %v3522_v12 = vshll.u32 %v6216_v27, 16  ;;  %4561 = vmatmul.bf16.vlgmr.msrb.gmra.mxu0 %v6216_v27  ;;  %4277 = vmatmul.bf16.gmra.mxu1 %v6216_v27  ;;  %vm7769_vm5 = vmand %vm2461_vm15, %vm2471_vm3 }
 0x23c   : > { %v2903_v61 = vld [vmem:[#allocation2 + $0x20] sm:$0x1]  ;;  %v6305_v3 = vor.u32 %v6304_v52, %v6303_v2  ;;  %v2673_v54 = vshrl.u32 %v2598_v29, 16  ;;  %v2395_v47 = vpop.f32.mrf.mxu0  ;;  %v2676_v15 = vshll.u32 %v2598_v29, 16  ;;  %v3520_v52 = vshrl.u32 %v6216_v27, 16 }
 0x23d   : > { %v3041_v34 = vunpack.c.l.b16 %v2903_v61  ;;  %v2396_v21 = vadd.f32 %v2395_v47, %v2337_v10  ;;  %v3524_v48 = vrot.slane %v3522_v12, 1  ;;  %v2224_v10 = vadd.f32 %v7670_v43, %v7438_v57 }
 0x23e   : > { %v2675_v37 = vrot.slane %v2673_v54, 7  ;;  %v3189_v32 = vrot.slane %v6305_v3, 1 }
 0x23f   : > { %v3049_v45 = vpack.c.b16 %v3041_v34, %v3041_v34  ;;  %v2433_v39 = vmax.f32 %v2396_v21, 0.0  ;;  %v7740_v12 = vor.u32 %v3524_v48, %v3520_v52  ;;  %v2283_v1 = vadd.f32 %v7678_v41, %v2224_v10  ;;  %v6078_v34 = vld [vmem:[#allocation3 + $0x120] sm:$0xff]  ;;  %v7745_v21 = vpop.f32.mrf.mxu3 }
 0x240   : > { %v2678_v55 = vor.u32 %v2676_v15, %v2675_v37  ;;  %v2680_v53 = vrot.slane %v2675_v37, 4  ;;  %v2547_v37 = vld [vmem:[#allocation2 + $0x48] sm:$0x1]  ;;  %v2843_v15 = vld [vmem:[#allocation2 + $0x30] sm:$0xf]  ;;  %4458 = vmatpush.bf16.msrb.mxu2 %v6078_v34  ;;  %v2226_v10 = vadd.f32 %v7697_v59, %v7443_v24 }
 0x241   : > { %v3190_v18 = vrot.slane %v3049_v45, 1  ;;  %v3087_v51 = vshll.u32 %v3049_v45, 16  ;;  %v2514_v31 = vsel %vm7724_vm14, %v2433_v39, 0.0  ;;  %v2548_v41 = vsel %vm7494_vm4, 0, %v2547_v37 }
 0x242   : > { %v2679_v38 = vsel %vm7606_vm2, %v2671_v14, %v2678_v55  ;;  %v2841_v22 = vsel %vm7494_vm4, %v2680_v53, %v2840_v16  ;;  %v2599_v29 = vpack.c.bf16 %v2514_v31, %v2514_v31  ;;  %v7750_v14 = vpop.f32.mrf.mxu1  ;;  %2549 = vst [vmem:[#allocation2 + $0x48] sm:$0x1] %v2548_v41  ;;  %v2342_v48 = vadd.f32 %v7689_v63, %v2283_v1  ;;  %v7755_v55 = vpop.f32.mrf.mxu2 }
 0x243   : > { %v3191_v2 = vsel %vm693_vm0, %v3189_v32, %v3190_v18  ;;  %2839 = vst [vmem:[#allocation2 + $0x28] sm:$0xf] %v2679_v38  ;;  %v3089_v27 = vrot.slane %v3087_v51, 1  ;;  %v6501_v32 = vld [vmem:[#allocation2 + $0x24] sm:$0xe]  ;;  %v2285_v34 = vadd.f32 %v7704_v6, %v2226_v10  ;;  %v6077_v10 = vld [vmem:[#allocation3 + $0x118] sm:$0xff] }
 0x244   : > { %4375 = vmatmul.bf16.gmra.mxu3 %v3191_v2  ;;  %2842 = vst [vmem:[#allocation2 + $0x2c] sm:$0x1] %v2841_v22  ;;  %v2682_v61 = vshrl.u32 %v2599_v29, 16  ;;  %v2397_v3 = vpop.f32.mrf.mxu0  ;;  %v2685_v43 = vshll.u32 %v2599_v29, 16  ;;  %v2579_v22 = vld [vmem:[#allocation2 + $0x50] sm:$0x1]  ;;  %4459 = vmatpush.bf16.msrb.mxu2 %v6077_v10 }
 0x245   : > { %v2398_v54 = vadd.f32 %v2397_v3, %v2339_v7  ;;  %v3090_v47 = vsel %vm532_vm1, %v7740_v12, %v3089_v27  ;;  %v2580_v7 = vsel %vm7510_vm6, 0, %v2579_v22 }
 0x246   : > { %v2684_v57 = vrot.slane %v2682_v61, 7  ;;  %4326 = vmatmul.bf16.gmra.mxu2 %v3090_v47  ;;  %2581 = vst [vmem:[#allocation2 + $0x50] sm:$0x1] %v2580_v7 }
 0x247   : > { %v2434_v45 = vmax.f32 %v2398_v54, 0.0  ;;  %v7775_v24 = vpop.f32.mrf.mxu3 }
 0x248   : > { %v2687_v16 = vor.u32 %v2685_v43, %v2684_v57  ;;  %v2688_v59 = vrot.slane %v2684_v57, 4  ;;  %v2344_v57 = vadd.f32 %v7715_v17, %v2285_v34  ;;  %v2850_v34 = vld [vmem:[#allocation2 + $0x3c] sm:$0xf] }
 0x249   : > { %v2515_v39 = vsel %vm7724_vm14, %v2434_v45, 0.0 }
 0x24a   : > { %v2844_v53 = vsel %vm7578_vm11, %v2687_v16, %v2843_v15  ;;  %v2600_v18 = vpack.c.bf16 %v2515_v39, %v2515_v39  ;;  %v2891_v51 = vld [vmem:[#allocation2 + $0x24] sm:$0xff]  }
 0x24b   : > { %v6500_v52 = vld [vmem:[#allocation2 + $0x24] sm:$0xf0]  ;;  %2845 = vst [vmem:[#allocation2 + $0x30] sm:$0xf] %v2844_v53  ;;  %v2904_v63 = vld [vmem:[#allocation2 + $0x2c] sm:$0x1]  ;;  %4282 = vmatmul.bf16.gmra.mxu1 %v2891_v51 }
 0x24c   : > { %v7759_v31 = vld [vmem:[#allocation2 + $0x24] sm:$0xff]   ;;  %v2690_v28 = vshrl.u32 %v2600_v18, 16  ;;  %v2400_v29 = vpop.f32.mrf.mxu0  ;;  %v3042_v2 = vunpack.c.l.b16 %v2904_v63  ;;  %v2693_v3 = vshll.u32 %v2600_v18, 16  ;;  %v6502_v47 = vor.u32 %v6501_v32, %v6500_v52 }
 0x24d   : > { %v7761_v38 = vld [vmem:[#allocation2 + $0x24] sm:$0xf0]  ;;  %v2401_v27 = vadd.f32 %v2400_v29, %v2342_v48  ;;  %v3094_v43 = vshll.u32 %v2891_v51, 16  ;;  %4566 = vmatmul.bf16.gmra.mxu0 %v7759_v31  ;;  %v3092_v16 = vshrl.u32 %v2891_v51, 16  ;;  %v7779_v48 = vpop.f32.mrf.mxu1  ;;  %v2229_v63 = vadd.f32 %v7720_v35, %v7450_v9  ;;  %v7789_v51 = vpop.f32.mrf.mxu2 }
 0x24e   : > { %v2692_v61 = vrot.slane %v2690_v28, 7  ;;  %v3050_v54 = vpack.c.b16 %v3042_v2, %v3042_v2  ;;  %v3192_v26 = vrot.slane %v6502_v47, 1  ;;  %v2452_v35 = vadd.s32 6, %v7539_v8 }
 0x24f   : > { %v2435_v19 = vmax.f32 %v2401_v27, 0.0  ;;  %v3096_v53 = vrot.slane %v3094_v43, 1  ;;  %v6085_v27 = vld [vmem:[#allocation3 + $0x158] sm:$0xff]  ;;  %v2288_v17 = vadd.f32 %v7728_v5, %v2229_v63 }
 0x250   : > { %v2695_v37 = vor.u32 %v2693_v3, %v2692_v61  ;;  %v2697_v15 = vrot.slane %v2692_v61, 4  ;;  %v3193_v41 = vrot.slane %v3050_v54, 1  ;;  %v3099_v52 = vshll.u32 %v3050_v54, 16  ;;  %v6069_v61 = vld [vmem:[#allocation3 + $0xd8] sm:$0xff]  ;;  %4508 = vmatpush.bf16.msrb.mxu3 %v6085_v27 }
 0x251   : > { %v2516_v45 = vsel %vm7769_vm5, %v2435_v19, 0.0  ;;  %v3097_v29 = vor.u32 %v3096_v53, %v3092_v16  ;;  %v2550_v54 = vld [vmem:[#allocation2 + $0x54] sm:$0x1]  ;;  %4410 = vmatpush.bf16.msrb.mxu1 %v6069_v61  ;;  %v2347_v16 = vadd.f32 %v7745_v21, %v2288_v17  ;;  %vm2462_vm7 = vcmp.ge.s32.totalorder %v2452_v35, 0 }
 0x252   : > { %v2696_v6 = vsel %vm7606_vm2, %v2688_v59, %v2695_v37  ;;  %v2848_v39 = vsel %vm7494_vm4, %v2697_v15, %v2847_v62  ;;  %v2601_v32 = vpack.c.bf16 %v2516_v45, %v2516_v45  ;;  %v3194_v18 = vsel %vm693_vm0, %v3192_v26, %v3193_v41  ;;  %v7798_v59 = vpop.f32.mrf.mxu3  ;;  %v6307_v41 = vld [vmem:[#allocation2 + $0x30] sm:$0xe] }
 0x253   : > { %2846 = vst [vmem:[#allocation2 + $0x34] sm:$0xf] %v2696_v6  ;;  %v3101_v7 = vrot.slane %v3099_v52, 1  ;;  %v2551_v19 = vsel %vm7494_vm4, 0, %v2550_v54  ;;  %vm2472_vm8 = vcmp.lt.s32.totalorder %v2452_v35, 16  ;;  %v2231_v52 = vadd.f32 %v7750_v14, %v7459_v50 }
 0x254   : > { %2849 = vst [vmem:[#allocation2 + $0x38] sm:$0x1] %v2848_v39  ;;  %v2699_v22 = vshrl.u32 %v2601_v32, 16  ;;  %4380 = vmatmul.bf16.gmra.mxu3 %v3194_v18  ;;  %v2402_v28 = vpop.f32.mrf.mxu0  ;;  %v2702_v47 = vshll.u32 %v2601_v32, 16  ;;  %v2582_v18 = vld [vmem:[#allocation2 + $0x5c] sm:$0x1]  ;;  %vm7813_vm9 = vmand %vm2462_vm7, %vm2472_vm8 }
 0x255   : > { %v2403_v2 = vadd.f32 %v2402_v28, %v2344_v57  ;;  %v3102_v9 = vsel %vm532_vm1, %v3097_v29, %v3101_v7  ;;  %2552 = vst [vmem:[#allocation2 + $0x54] sm:$0x1] %v2551_v19  ;;  %v7803_v32 = vpop.f32.mrf.mxu1  ;;  %v2583_v28 = vsel %vm7510_vm6, 0, %v2582_v18  ;;  %v7809_v21 = vpop.f32.mrf.mxu2  ;;  %v2290_v27 = vadd.f32 %v7755_v55, %v2231_v52  ;;  %v2854_v14 = vld [vmem:[#allocation2 + $0x44] sm:$0x1]  ;;  %v6068_v18 = vld [vmem:[#allocation3 + $0xd0] sm:$0xff] }
 0x256   : > { %v2701_v3 = vrot.slane %v2699_v22, 7  ;;  %4331 = vmatmul.bf16.gmra.mxu2 %v3102_v9  ;;  %2584 = vst [vmem:[#allocation2 + $0x5c] sm:$0x1] %v2583_v28  ;;  %v2553_v52 = vld [vmem:[#allocation2 + $0x60] sm:$0x1]  ;;  %4411 = vmatpush.bf16.msrb.mxu1 %v6068_v18  ;;  %v2236_v7 = vadd.f32 %v7803_v32, %v7479_v0 }
 0x257   : > { %v2436_v62 = vmax.f32 %v2403_v2, 0.0  ;;  %v2857_v28 = vld [vmem:[#allocation2 + $0x48] sm:$0xf] }
 0x258   : > { %v2704_v43 = vor.u32 %v2702_v47, %v2701_v3  ;;  %v2705_v50 = vrot.slane %v2701_v3, 4 }
 0x259   : > { %v2517_v5 = vsel %vm7769_vm5, %v2436_v62, 0.0 }
 0x25a   : > { %v2851_v37 = vsel %vm7578_vm11, %v2704_v43, %v2850_v34  ;;  %v2602_v15 = vpack.c.bf16 %v2517_v5, %v2517_v5  ;;  %v6291_v26 = vld [vmem:[#allocation2 + $0x30] sm:$0xff]   ;;  %v2349_v5 = vadd.f32 %v7775_v24, %v2290_v27 }
 0x25b   : > { %v6306_v45 = vld [vmem:[#allocation2 + $0x30] sm:$0xf0]  ;;  %2852 = vst [vmem:[#allocation2 + $0x3c] sm:$0xf] %v2851_v37  ;;  %v2905_v6 = vld [vmem:[#allocation2 + $0x38] sm:$0x1]  ;;  %4287 = vmatmul.bf16.gmra.mxu1 %v6291_v26  ;;  %v2234_v37 = vadd.f32 %v7779_v48, %v7468_v11 }
 0x25c   : > { %v6308_v39 = vor.u32 %v6307_v41, %v6306_v45  ;;  %v2707_v1 = vshrl.u32 %v2602_v15, 16  ;;  %v2405_v53 = vpop.f32.mrf.mxu0  ;;  %v3043_v57 = vunpack.c.l.b16 %v2905_v6  ;;  %v3106_v22 = vshll.u32 %v6291_v26, 16  ;;  %v7831_v41 = vld [vmem:[%s8501_s2] ss:$0 sm:$0xff]  ;;  %v7835_v6 = vpop.f32.mrf.mxu3 }
 0x25d   : > { %v2406_v63 = vadd.f32 %v2405_v53, %v2347_v16  ;;  %v2710_v2 = vshll.u32 %v2602_v15, 16  ;;  %4571 = vmatmul.bf16.gmra.mxu0 %v6291_v26  ;;  %v3104_v15 = vshrl.u32 %v6291_v26, 16  ;;  %v1946_v16 = vadd.f32 %v7831_v41, %v7337_v36  ;;  %v6084_v53 = vld [vmem:[#allocation3 + $0x150] sm:$0xff]  ;;  %v7849_v27 = vpop.f32.mrf.mxu2 }
 0x25e   : > { %v2709_v29 = vrot.slane %v2707_v1, 7  ;;  %v3051_v10 = vpack.c.b16 %v3043_v57, %v3043_v57  ;;  %v3195_v17 = vrot.slane %v6308_v39, 1  ;;  %v3108_v35 = vrot.slane %v3106_v22, 1  ;;  %v6076_v1 = vld [vmem:[#allocation3 + $0x110] sm:$0xff]  ;;  %4509 = vmatpush.bf16.msrb.mxu3 %v6084_v53 }
 0x25f   : > { %v2437_v61 = vmax.f32 %v2406_v63, 0.0  ;;  %v2293_v11 = vadd.f32 %v7789_v51, %v2234_v37  ;;  %v2453_v57 = vadd.s32 7, %v7539_v8  ;;  %v7841_v63 = vpop.f32.mrf.mxu1  ;;  %4460 = vmatpush.bf16.msrb.mxu2 %v6076_v1  ;;  %v7869_v37 = vld [vmem:[#allocation3 + $0x1f0] sm:$0xff]  ;;  %v2295_v53 = vadd.f32 %v7809_v21, %v2236_v7 }
 0x260   : > { %v2712_v47 = vor.u32 %v2710_v2, %v2709_v29  ;;  %v2714_v54 = vrot.slane %v2709_v29, 4  ;;  %v3196_v34 = vrot.slane %v3051_v10, 1  ;;  %v3111_v62 = vshll.u32 %v3051_v10, 16 }
 0x261   : > { %v2518_v9 = vsel %vm7813_vm9, %v2437_v61, 0.0  ;;  %v7838_v48 = vor.u32 %v3108_v35, %v3104_v15  ;;  %v2554_v29 = vsel %vm7494_vm4, 0, %v2553_v52  ;;  %v2005_v61 = vadd.f32 %v7341_v49, %v1946_v16 }
 0x262   : > { %v2713_v19 = vsel %vm7606_vm2, %v2705_v50, %v2712_v47  ;;  %v2855_v55 = vsel %vm7494_vm4, %v2714_v54, %v2854_v14  ;;  %v2603_v3 = vpack.c.bf16 %v2518_v9, %v2518_v9  ;;  %v3197_v43 = vsel %vm693_vm0, %v3195_v17, %v3196_v34  ;;  %v6504_v10 = vld [vmem:[#allocation2 + $0x3c] sm:$0xe]  ;;  %2555 = vst [vmem:[#allocation2 + $0x60] sm:$0x1] %v2554_v29  ;;  %v7852_v14 = vld [vmem:[#allocation3 + $0x1f8] sm:$0xff] }
 0x263   : > { %2853 = vst [vmem:[#allocation2 + $0x40] sm:$0xf] %v2713_v19  ;;  %v3113_v45 = vrot.slane %v3111_v62, 1  ;;  %v2352_v17 = vadd.f32 %v7798_v59, %v2293_v11  ;;  %vm2463_vm10 = vcmp.ge.s32.totalorder %v2453_v57, 0  ;;  %vm2473_vm12 = vcmp.lt.s32.totalorder %v2453_v57, 16  ;;  %4602 = vmatpush.bf16.msra.mxu0 %v7852_v14 }
 0x264   : > { %2856 = vst [vmem:[#allocation2 + $0x44] sm:$0x1] %v2855_v55  ;;  %v2716_v39 = vshrl.u32 %v2603_v3, 16  ;;  %4385 = vmatmul.bf16.gmra.mxu3 %v3197_v43  ;;  %v2407_v24 = vpop.f32.mrf.mxu0  ;;  %v2719_v22 = vshll.u32 %v2603_v3, 16  ;;  %v2585_v59 = vld [vmem:[#allocation2 + $0x68] sm:$0x1]  ;;  %v2064_v16 = vadd.f32 %v7346_v56, %v2005_v61  ;;  %vm7876_vm13 = vmand %vm2463_vm10, %vm2473_vm12 }
 0x265   : > { %v2408_v26 = vadd.f32 %v2407_v24, %v2349_v5  ;;  %v3114_v51 = vsel %vm532_vm1, %v7838_v48, %v3113_v45  ;;  %v2586_v5 = vsel %vm7510_vm6, 0, %v2585_v59  ;;  %v2861_v11 = vld [vmem:[#allocation2 + $0x50] sm:$0x1]  ;;  %v2299_v61 = vpop.f32.mrf.mxu2 }
 0x266   : > { %v7843_v36 = vrot.slane %v2716_v39, 7  ;;  %4336 = vmatmul.bf16.gmra.mxu2 %v3114_v51  ;;  %2587 = vst [vmem:[#allocation2 + $0x68] sm:$0x1] %v2586_v5  ;;  %v7872_v39 = vpop.f32.mrf.mxu3  ;;  %v6075_v5 = vld [vmem:[#allocation3 + $0x108] sm:$0xff] }
 0x267   : > { %v2438_v2 = vmax.f32 %v2408_v26, 0.0  ;;  %4603 = vmatpush.bf16.msra.mxu0 %v7869_v37  ;;  %v2240_v52 = vpop.f32.mrf.mxu1  ;;  %4461 = vmatpush.bf16.msrb.mxu2 %v6075_v5 }
 0x268   : > { %v2721_v50 = vor.u32 %v2719_v22, %v7843_v36  ;;  %v2722_v22 = vrot.slane %v7843_v36, 4 }
 0x269   : > { %v2519_v47 = vsel %vm7813_vm9, %v2438_v2, 0.0  ;;  %v7884_v2 = vld [vmem:[#allocation3 + $0x1e8] sm:$0xff] }
 0x26a   : > { %v2858_v54 = vsel %vm7578_vm11, %v2721_v50, %v2857_v28  ;;  %v2604_v34 = vpack.c.bf16 %v2519_v47, %v2519_v47  ;;  %v2895_v62 = vld [vmem:[#allocation2 + $0x3c] sm:$0xff]  }
 0x26b   : > { %v6503_v9 = vld [vmem:[#allocation2 + $0x3c] sm:$0xf0]  ;;  %2859 = vst [vmem:[#allocation2 + $0x48] sm:$0xf] %v2858_v54  ;;  %v2906_v49 = vld [vmem:[#allocation2 + $0x44] sm:$0x1]  ;;  %4292 = vmatmul.bf16.gmra.mxu1 %v2895_v62  ;;  %4604 = vmatpush.bf16.msra.mxu0 %v7884_v2 }
 0x26c   : > { %v7860_v35 = vld [vmem:[#allocation2 + $0x3c] sm:$0xff]   ;;  %v2724_v55 = vshrl.u32 %v2604_v34, 16  ;;  %v2410_v3 = vpop.f32.mrf.mxu0  ;;  %v3044_v43 = vunpack.c.l.b16 %v2906_v49  ;;  %v6505_v45 = vor.u32 %v6504_v10, %v6503_v9  ;;  %v2727_v1 = vshll.u32 %v2604_v34, 16 }
 0x26d   : > { %v7862_v19 = vld [vmem:[#allocation2 + $0x3c] sm:$0xf0]  ;;  %v2411_v15 = vadd.f32 %v2410_v3, %v2352_v17  ;;  %v3118_v18 = vshll.u32 %v2895_v62, 16  ;;  %4576 = vmatmul.bf16.gmra.mxu0 %v7860_v35  ;;  %v3116_v10 = vshrl.u32 %v2895_v62, 16  ;;  %v2354_v34 = vadd.f32 %v7835_v6, %v2295_v53 }
 0x26e   : > { %v2726_v24 = vrot.slane %v2724_v55, 7  ;;  %v3052_v32 = vpack.c.b16 %v3044_v43, %v3044_v43  ;;  %v3198_v56 = vrot.slane %v6505_v45, 1  ;;  %v2239_v62 = vadd.f32 %v7841_v63, %v7490_v42  ;;  %v6067_v45 = vld [vmem:[#allocation3 + $0xc8] sm:$0xff]  ;;  %v2556_v63 = vld [vmem:[#allocation2 + $0x6c] sm:$0x1] }
 0x26f   : > { %v2439_v26 = vmax.f32 %v2411_v15, 0.0  ;;  %v3120_v21 = vrot.slane %v3118_v18, 1  ;;  %v2123_v55 = vadd.f32 %v7349_v60, %v2064_v16  ;;  %v6083_v15 = vld [vmem:[#allocation3 + $0x148] sm:$0xff]  ;;  %v1951_v6 = vadd.f32 %v7831_v41, %v7365_v23  ;;  %v2864_v60 = vld [vmem:[#allocation2 + $0x54] sm:$0xf]  ;;  %v2358_v23 = vpop.f32.mrf.mxu3  ;;  %4412 = vmatpush.bf16.msrb.mxu1 %v6067_v45 }
 0x270   : > { %v2729_v57 = vor.u32 %v2727_v1, %v2726_v24  ;;  %v2731_v28 = vrot.slane %v2726_v24, 4  ;;  %v3199_v29 = vrot.slane %v3052_v32, 1  ;;  %v3123_v50 = vshll.u32 %v3052_v32, 16  ;;  %v7904_v32 = vld [vmem:[#allocation3 + $0x1e0] sm:$0xff]  ;;  %4510 = vmatpush.bf16.msrb.mxu3 %v6083_v15 }
 0x271   : > { %v2520_v51 = vsel %vm7876_vm13, %v2439_v26, 0.0  ;;  %v3121_v9 = vor.u32 %v3120_v21, %v3116_v10  ;;  %v2298_v24 = vadd.f32 %v7849_v27, %v2239_v62  ;;  %v2182_v53 = vadd.f32 %v7504_v40, %v2123_v55  ;;  %4605 = vmatpush.bf16.msra.mxu0 %v7904_v32  ;;  %v7914_v40 = vld [vmem:[#allocation3 + $0x1d8] sm:$0xff] }
 0x272   : > { %v2730_v17 = vsel %vm7606_vm2, %v2722_v22, %v2729_v57  ;;  %v2862_v47 = vsel %vm7494_vm4, %v2731_v28, %v2861_v11  ;;  %v2605_v54 = vpack.c.bf16 %v2520_v51, %v2520_v51  ;;  %v3200_v36 = vsel %vm693_vm0, %v3198_v56, %v3199_v29  ;;  %v2243_v22 = vpop.f32.mrf.mxu1  ;;  %v6310_v10 = vld [vmem:[#allocation2 + $0x48] sm:$0xe] }
 0x273   : > { %2860 = vst [vmem:[#allocation2 + $0x4c] sm:$0xf] %v2730_v17  ;;  %v3125_v49 = vrot.slane %v3123_v50, 1  ;;  %v2454_v11 = vadd.s32 8, %v7539_v8  ;;  %v2557_v26 = vsel %vm7494_vm4, 0, %v2556_v63  ;;  %v2010_v18 = vadd.f32 %v7446_v58, %v1951_v6  ;;  %v2302_v58 = vpop.f32.mrf.mxu2 }
 0x274   : > { %2863 = vst [vmem:[#allocation2 + $0x50] sm:$0x1] %v2862_v47  ;;  %v2733_v59 = vshrl.u32 %v2605_v54, 16  ;;  %4390 = vmatmul.bf16.gmra.mxu3 %v3200_v36  ;;  %v2412_v7 = vpop.f32.mrf.mxu0  ;;  %v2736_v42 = vshll.u32 %v2605_v54, 16  ;;  %v2357_v56 = vadd.f32 %v7872_v39, %v2298_v24  ;;  %v2241_v21 = vadd.f32 %v2240_v52, %v2182_v53  ;;  %v2588_v36 = vld [vmem:[#allocation2 + $0x74] sm:$0x1] }
 0x275   : > { %v2413_v3 = vadd.f32 %v2412_v7, %v2354_v34  ;;  %v3126_v43 = vsel %vm532_vm1, %v3121_v9, %v3125_v49  ;;  %2558 = vst [vmem:[#allocation2 + $0x6c] sm:$0x1] %v2557_v26  ;;  %vm2464_vm14 = vcmp.ge.s32.totalorder %v2454_v11, 0  ;;  %vm2474_vm15 = vcmp.lt.s32.totalorder %v2454_v11, 16  ;;  %4606 = vmatpush.bf16.msra.mxu0 %v7914_v40  ;;  %v7927_v52 = vld [vmem:[#allocation3 + $0x1d0] sm:$0xff] }
 0x276   : > { %v7902_v1 = vrot.slane %v2733_v59, 7  ;;  %4341 = vmatmul.bf16.gmra.mxu2 %v3126_v43  ;;  %v2069_v17 = vadd.f32 %v7453_v30, %v2010_v18  ;;  %v2300_v34 = vadd.f32 %v2299_v61, %v2241_v21  ;;  %v2589_v62 = vsel %vm7510_vm6, 0, %v2588_v36  ;;  %vm7931_vm3 = vmand %vm2464_vm14, %vm2474_vm15  ;;  %v6066_v61 = vld [vmem:[#allocation3 + $0xc0] sm:$0xff]  ;;  %v2871_v36 = vld [vmem:[#allocation2 + $0x60] sm:$0xf] }
 0x277   : > { %v2440_v16 = vmax.f32 %v2413_v3, 0.0  ;;  %2590 = vst [vmem:[#allocation2 + $0x74] sm:$0x1] %v2589_v62  ;;  %v2868_v43 = vld [vmem:[#allocation2 + $0x5c] sm:$0x1]  ;;  %4413 = vmatpush.bf16.msrb.mxu1 %v6066_v61  ;;  %v2361_v11 = vpop.f32.mrf.mxu3  ;;  %v6112_v30 = vld [vmem:[#allocation3 + $0x230] sm:$0xff] }
 0x278   : > { %v2738_v41 = vor.u32 %v2736_v42, %v7902_v1  ;;  %v2739_v3 = vrot.slane %v7902_v1, 4  ;;  %v2128_v42 = vadd.f32 %v7455_v13, %v2069_v17  ;;  %v2359_v63 = vadd.f32 %v2358_v23, %v2300_v34  ;;  %v6082_v1 = vld [vmem:[#allocation3 + $0x140] sm:$0xff] }
 0x279   : > { %v2521_v27 = vsel %vm7876_vm13, %v2440_v16, 0.0  ;;  %4607 = vmatpush.bf16.msra.mxu0 %v7927_v52  ;;  %v7942_v16 = vld [vmem:[#allocation3 + $0x1c8] sm:$0xff]  ;;  %4511 = vmatpush.bf16.msrb.mxu3 %v6082_v1  ;;  %v2455_v17 = vadd.s32 9, %v7539_v8 }
 0x27a   : > { %v2865_v57 = vsel %vm7578_vm11, %v2738_v41, %v2864_v60  ;;  %v2606_v28 = vpack.c.bf16 %v2521_v27, %v2521_v27  ;;  %v7920_v29 = vld [vmem:[#allocation2 + $0x48] sm:$0xff]   ;;  %v2244_v27 = vadd.f32 %v2243_v22, %v7521_v33  ;;  %v2187_v18 = vadd.f32 %v7532_v25, %v2128_v42  ;;  %v7957_v33 = vld [vmem:[#allocation3 + $0x1c0] sm:$0xff]  ;;  %v6113_v25 = vld [vmem:[#allocation3 + $0x238] sm:$0xff] }
 0x27b   : > { %v6309_v51 = vld [vmem:[#allocation2 + $0x48] sm:$0xf0]  ;;  %2866 = vst [vmem:[#allocation2 + $0x54] sm:$0xf] %v2865_v57  ;;  %v2907_v0 = vld [vmem:[#allocation2 + $0x50] sm:$0x1]  ;;  %4297 = vmatmul.bf16.gmra.mxu1 %v7920_v29  ;;  %v2304_v22 = vpop.f32.mrf.mxu2 }
 0x27c   : > { %v6311_v50 = vor.u32 %v6310_v10, %v6309_v51  ;;  %v2741_v47 = vshrl.u32 %v2606_v28, 16  ;;  %v2415_v39 = vpop.f32.mrf.mxu0  ;;  %v3045_v54 = vunpack.c.l.b16 %v2907_v0  ;;  %v3130_v49 = vshll.u32 %v7920_v29, 16  ;;  %6336 = vmatpush.bf16.msra.mxu1 %v7852_v14  ;;  %v2245_v14 = vpop.f32.mrf.mxu1  ;;  %v6074_v10 = vld [vmem:[#allocation3 + $0x100] sm:$0xff] }
 0x27d   : > { %v2416_v9 = vadd.f32 %v2415_v39, %v2357_v56  ;;  %v2744_v7 = vshll.u32 %v2606_v28, 16  ;;  %4581 = vmatmul.bf16.gmra.mxu0 %v7920_v29  ;;  %v3128_v56 = vshrl.u32 %v7920_v29, 16  ;;  %v2303_v21 = vadd.f32 %v2302_v58, %v2244_v27  ;;  %4462 = vmatpush.bf16.msrb.mxu2 %v6074_v10 }
 0x27e   : > { %v2743_v59 = vrot.slane %v2741_v47, 7  ;;  %v3053_v55 = vpack.c.b16 %v3045_v54, %v3045_v54  ;;  %v3201_v5 = vrot.slane %v6311_v50, 1  ;;  %v3132_v60 = vrot.slane %v3130_v49, 1  ;;  %4608 = vmatpush.bf16.msra.mxu0 %v7942_v16 }
 0x27f   : > { %v2441_v46 = vmax.f32 %v2416_v9, 0.0  ;;  %v2246_v54 = vadd.f32 %v2245_v14, %v2187_v18  ;;  %v2362_v49 = vadd.f32 %v2361_v11, %v2303_v21  ;;  %vm2465_vm6 = vcmp.ge.s32.totalorder %v2455_v17, 0  ;;  %v6111_v11 = vld [vmem:[#allocation3 + $0x228] sm:$0xff]  ;;  %v7990_v14 = vld [vmem:[#allocation2 + $0xc] sm:$0xff]  }
 0x280   : > { %v2746_v15 = vor.u32 %v2744_v7, %v2743_v59  ;;  %v2748_v45 = vrot.slane %v2743_v59, 4  ;;  %v3202_v6 = vrot.slane %v3053_v55, 1  ;;  %v3135_v24 = vshll.u32 %v3053_v55, 16  ;;  %6337 = vmatpush.bf16.msra.mxu1 %v7869_v37  ;;  %v7968_v37 = vld [vmem:[%s8504_s5 + $0x38] sm:$0xff] }
 0x281   : > { %v2522_v53 = vsel %vm7931_vm3, %v2441_v46, 0.0  ;;  %v7953_v0 = vor.u32 %v3132_v60, %v3128_v56  ;;  %6344 = vmatpush.bf16.msra.mxu2 %v6113_v25  ;;  %v2305_v62 = vadd.f32 %v2304_v22, %v2246_v54  ;;  %vm2475_vm5 = vcmp.lt.s32.totalorder %v2455_v17, 16  ;;  %6352 = vmatpush.bf16.msra.mxu3 %v7968_v37 }
 0x282   : > { %v2747_v26 = vsel %vm7606_vm2, %v2739_v3, %v2746_v15  ;;  %v2869_v41 = vsel %vm7494_vm4, %v2748_v45, %v2868_v43  ;;  %v2607_v13 = vpack.c.bf16 %v2522_v53, %v2522_v53  ;;  %v3203_v23 = vsel %vm693_vm0, %v3201_v5, %v3202_v6  ;;  %v6507_v9 = vld [vmem:[#allocation2 + $0x54] sm:$0xe]  ;;  %4609 = vmatpush.bf16.msra.mxu0 %v7957_v33  ;;  %v2363_v15 = vpop.f32.mrf.mxu3  ;;  %vm7984_vm7 = vmand %vm2465_vm6, %vm2475_vm5 }
 0x283   : > { %2867 = vst [vmem:[#allocation2 + $0x58] sm:$0xf] %v2747_v26  ;;  %v3137_v57 = vrot.slane %v3135_v24, 1  ;;  %v2364_v26 = vadd.f32 %v2363_v15, %v2305_v62 }
 0x284   : > { %2870 = vst [vmem:[#allocation2 + $0x5c] sm:$0x1] %v2869_v41  ;;  %v2750_v28 = vshrl.u32 %v2607_v13, 16  ;;  %4395 = vmatmul.bf16.gmra.mxu3 %v3203_v23  ;;  %v2417_v51 = vpop.f32.mrf.mxu0  ;;  %v2753_v39 = vshll.u32 %v2607_v13, 16  ;;  %6338 = vmatpush.bf16.msra.mxu1 %v7884_v2  ;;  %v2875_v41 = vld [vmem:[#allocation2 + $0x68] sm:$0x1] }
 0x285   : > { %v2418_v50 = vadd.f32 %v2417_v51, %v2359_v63  ;;  %v3138_v34 = vsel %vm532_vm1, %v7953_v0, %v3137_v57  ;;  %6345 = vmatpush.bf16.msra.mxu2 %v6112_v30 }
 0x286   : > { %v7960_v47 = vrot.slane %v2750_v28, 7  ;;  %4346 = vmatmul.bf16.gmra.mxu2 %v3138_v34  ;;  %4651 = vmatpush.bf16.msrb.mxu0 %v6113_v25  ;;  %v6509_v28 = vld [vmem:[#allocation2 + $0xc] sm:$0xf0] }
 0x287   : > { %v2442_v58 = vmax.f32 %v2418_v50, 0.0 }
 0x288   : > { %v2755_v8 = vor.u32 %v2753_v39, %v7960_v47  ;;  %6339 = vmatpush.bf16.msra.mxu1 %v7904_v32  ;;  %v2756_v32 = vrot.slane %v7960_v47, 4  ;;  %v6110_v39 = vld [vmem:[#allocation3 + $0x220] sm:$0xff] }
 0x289   : > { %v2523_v59 = vsel %vm7931_vm3, %v2442_v58, 0.0  ;;  %6346 = vmatpush.bf16.msra.mxu2 %v6111_v11 }
 0x28a   : > { %v2872_v7 = vsel %vm7578_vm11, %v2755_v8, %v2871_v36  ;;  %v2608_v55 = vpack.c.bf16 %v2523_v59, %v2523_v59  ;;  %v2899_v61 = vld [vmem:[#allocation2 + $0x54] sm:$0xff]   ;;  %4652 = vmatpush.bf16.msrb.mxu0 %v6112_v30  ;;  %v6510_v59 = vld [vmem:[#allocation2 + $0xc] sm:$0xe] }
 0x28b   : > { %v6506_v3 = vld [vmem:[#allocation2 + $0x54] sm:$0xf0]  ;;  %2873 = vst [vmem:[#allocation2 + $0x60] sm:$0xf] %v2872_v7  ;;  %v2908_v5 = vld [vmem:[#allocation2 + $0x5c] sm:$0x1]  ;;  %4302 = vmatmul.bf16.gmra.mxu1 %v2899_v61 }
 0x28c   : > { %v7976_v43 = vld [vmem:[#allocation2 + $0x54] sm:$0xff]   ;;  %v2758_v45 = vshrl.u32 %v2608_v55, 16  ;;  %v2420_v2 = vpop.f32.mrf.mxu0  ;;  %v3046_v6 = vunpack.c.l.b16 %v2908_v5  ;;  %v6508_v42 = vor.u32 %v6507_v9, %v6506_v3  ;;  %v2761_v53 = vshll.u32 %v2608_v55, 16  ;;  %6340 = vmatpush.bf16.msra.mxu1 %v7914_v40  ;;  %v2878_v55 = vld [vmem:[#allocation2 + $0x6c] sm:$0xf] }
 0x28d   : > { %v7978_v46 = vld [vmem:[#allocation2 + $0x54] sm:$0xf0]  ;;  %v2421_v24 = vadd.f32 %v2420_v2, %v2362_v49  ;;  %v3142_v23 = vshll.u32 %v2899_v61, 16  ;;  %4586 = vmatmul.bf16.gmra.mxu0 %v7976_v43  ;;  %v3140_v10 = vshrl.u32 %v2899_v61, 16  ;;  %v2934_v9 = vld [vmem:[#allocation2 + $0x14] sm:$0x1]  ;;  %6347 = vmatpush.bf16.msra.mxu2 %v6110_v39 }
 0x28e   : > { %v2760_v63 = vrot.slane %v2758_v45, 7  ;;  %v3054_v1 = vpack.c.b16 %v3046_v6, %v3046_v6  ;;  %v3204_v27 = vrot.slane %v6508_v42, 1  ;;  %4653 = vmatpush.bf16.msrb.mxu0 %v6111_v11  ;;  %v6109_v7 = vld [vmem:[#allocation3 + $0x218] sm:$0xff]  ;;  %v3271_v3 = vunpack.c.l.b16 %v2934_v9  ;;  %v6108_v6 = vld [vmem:[#allocation3 + $0x210] sm:$0xff]  ;;  %v6312_v9 = vld [vmem:[#allocation2 + $0x18] sm:$0xf0] }
 0x28f   : > { %v2443_v13 = vmax.f32 %v2421_v24, 0.0  ;;  %v3144_v21 = vrot.slane %v3142_v23, 1  ;;  %v8005_v5 = vld [vmem:[%s8504_s5 + $0x30] sm:$0xff]  ;;  %v6511_v42 = vor.u32 %v6510_v59, %v6509_v28  ;;  %v6106_v28 = vld [vmem:[#allocation3 + $0x200] sm:$0xff] }
 0x290   : > { %v2763_v18 = vor.u32 %v2761_v53, %v2760_v63  ;;  %v2765_v56 = vrot.slane %v2760_v63, 4  ;;  %v3205_v57 = vrot.slane %v3054_v1, 1  ;;  %v3147_v50 = vshll.u32 %v3054_v1, 16  ;;  %6341 = vmatpush.bf16.msra.mxu1 %v7927_v52  ;;  %6353 = vmatpush.bf16.msra.mxu3 %v8005_v5  ;;  %v2882_v11 = vld [vmem:[#allocation2 + $0x74] sm:$0x1] }
 0x291   : > { %v2524_v51 = vsel %vm7984_vm7, %v2443_v13, 0.0  ;;  %v3145_v54 = vor.u32 %v3144_v21, %v3140_v10  ;;  %6348 = vmatpush.bf16.msra.mxu2 %v6109_v7  ;;  %v3279_v24 = vpack.c.b16 %v3271_v3, %v3271_v3  ;;  %v3290_v63 = vshll.u32 %v7990_v14, 16  ;;  %v8028_v21 = vld [vmem:[%s8503_s4] ss:$0 sm:$0xff] }
 0x292   : > { %v2764_v17 = vsel %vm7606_vm2, %v2756_v32, %v2763_v18  ;;  %v2876_v25 = vsel %vm7494_vm4, %v2765_v56, %v2875_v41  ;;  %v2609_v22 = vpack.c.bf16 %v2524_v51, %v2524_v51  ;;  %v3206_v47 = vsel %vm693_vm0, %v3204_v27, %v3205_v57  ;;  %4654 = vmatpush.bf16.msrb.mxu0 %v6110_v39 }
 0x293   : > { %2874 = vst [vmem:[#allocation2 + $0x64] sm:$0xf] %v2764_v17  ;;  %v3149_v36 = vrot.slane %v3147_v50, 1  ;;  %v3416_v41 = vrot.slane %v3279_v24, 1  ;;  %v3292_v13 = vrot.slane %v3290_v63, 1  ;;  %v3288_v18 = vshrl.u32 %v7990_v14, 16 }
 0x294   : > { %2877 = vst [vmem:[#allocation2 + $0x68] sm:$0x1] %v2876_v25  ;;  %v2767_v58 = vshrl.u32 %v2609_v22, 16  ;;  %4400 = vmatmul.bf16.gmra.mxu3 %v3206_v47  ;;  %v2422_v34 = vpop.f32.mrf.mxu0  ;;  %v2770_v62 = vshll.u32 %v2609_v22, 16  ;;  %6342 = vmatpush.bf16.msra.mxu1 %v7942_v16  ;;  %v2935_v50 = vld [vmem:[#allocation2 + $0x20] sm:$0x1] }
 0x295   : > { %v2423_v40 = vadd.f32 %v2422_v34, %v2364_v26  ;;  %v3150_v8 = vsel %vm532_vm1, %v3145_v54, %v3149_v36  ;;  %6349 = vmatpush.bf16.msra.mxu2 %v6108_v6  ;;  %v3415_v26 = vrot.slane %v6511_v42, 1  ;;  %v3293_v10 = vor.u32 %v3292_v13, %v3288_v18  ;;  %v8035_v47 = vld [vmem:[%s8504_s5 + $0x28] sm:$0xff]  ;;  %v6293_v36 = vld [vmem:[#allocation2 + $0x18] sm:$0xff]   ;;  %v6513_v18 = vld [vmem:[#allocation2 + $0x24] sm:$0xe] }
 0x296   : > { %v2769_v49 = vrot.slane %v2767_v58, 7  ;;  %4351 = vmatmul.bf16.gmra.mxu2 %v3150_v8  ;;  %4655 = vmatpush.bf16.msrb.mxu0 %v6109_v7  ;;  %v3272_v25 = vunpack.c.l.b16 %v2935_v50  ;;  %v2967_v8 = vld [vmem:[#allocation2 + $0x20] sm:$0x1]  ;;  %v3302_v7 = vshll.u32 %v6293_v36, 16  ;;  %v2936_v13 = vld [vmem:[#allocation2 + $0x2c] sm:$0x1] }
 0x297   : > { %v2444_v61 = vmax.f32 %v2423_v40, 0.0  ;;  %v3417_v51 = vsel %vm693_vm0, %v3415_v26, %v3416_v41  ;;  %6354 = vmatpush.bf16.msra.mxu3 %v8035_v47  ;;  %v3503_v3 = vunpack.c.l.b16 %v2967_v8  ;;  %v8058_v26 = vld [vmem:[%s8504_s5 + $0x18] sm:$0xff] }
 0x298   : > { %v2772_v30 = vor.u32 %v2770_v62, %v2769_v49  ;;  %v4268_v2 = vpop.f32.mrf.mxu1  ;;  %6343 = vmatpush.bf16.msra.mxu1 %v7957_v33  ;;  %v2773_v23 = vrot.slane %v2769_v49, 4  ;;  %v3295_v33 = vshll.u32 %v3279_v24, 16  ;;  %v3280_v40 = vpack.c.b16 %v3272_v25, %v3272_v25  ;;  %v6313_v62 = vld [vmem:[#allocation2 + $0x18] sm:$0xe] }
 0x299   : > { %v2525_v15 = vsel %vm7984_vm7, %v2444_v61, 0.0  ;;  %6350 = vmatpush.bf16.msra.mxu2 %v6107_v20  ;;  %v4269_v22 = vadd.f32 %v8028_v21, %v4268_v2  ;;  %v2922_v2 = vld [vmem:[#allocation2 + $0x24] sm:$0xff]   ;;  %v3304_v42 = vrot.slane %v3302_v7, 1  ;;  %v5906_v7 = vld [vmem:[%s6842_s3 + $0x18] sm:$0xf] }
 0x29a   : > { %v2879_v52 = vsel %vm7578_vm11, %v2772_v30, %v2878_v55  ;;  %v2610_v45 = vpack.c.bf16 %v2525_v15, %v2525_v15  ;;  %v8015_v1 = vld [vmem:[#allocation2 + $0x60] sm:$0xff]   ;;  %4656 = vmatpush.bf16.msrb.mxu0 %v6108_v6  ;;  %v3297_v44 = vrot.slane %v3295_v33, 1  ;;  %v6314_v55 = vor.u32 %v6313_v62, %v6312_v9  ;;  %v6512_v6 = vld [vmem:[#allocation2 + $0x24] sm:$0xf0] }
 0x29b   : > { %2880 = vst [vmem:[#allocation2 + $0x6c] sm:$0xf] %v2879_v52  ;;  %4414 = vmatmul.bf16.vlgmr.msrb.gmra.mxu1 %v7990_v14  ;;  %v8047_v30 = vld [vmem:[%s8504_s5 + $0x20] sm:$0xff]  ;;  %v3419_v15 = vrot.slane %v3280_v40, 1  ;;  %v3307_v52 = vshll.u32 %v3280_v40, 16  ;;  %v6514_v25 = vor.u32 %v6513_v18, %v6512_v6 }
 0x29c   : > { %v2775_v53 = vshrl.u32 %v2610_v45, 16  ;;  %v2778_v16 = vshll.u32 %v2610_v45, 16  ;;  %v3298_v4 = vsel %vm532_vm1, %v3293_v10, %v3297_v44  ;;  %6355 = vmatpush.bf16.msra.mxu3 %v8047_v30  ;;  %v3418_v63 = vrot.slane %v6314_v55, 1  ;;  %v2937_v6 = vld [vmem:[#allocation2 + $0x38] sm:$0x1] }
 0x29d   : > { %4591 = vmatmul.bf16.gmra.mxu0 %v8015_v1  ;;  %6351 = vmatpush.bf16.msra.mxu2 %v6106_v28  ;;  %v3421_v9 = vrot.slane %v6514_v25, 1  ;;  %vm4725_vm11 = vsmask.f32 7440 }
 0x29e   : > { %v2777_v60 = vrot.slane %v2775_v53, 7  ;;  %4657 = vmatpush.bf16.msrb.mxu0 %v6107_v20  ;;  %v3420_v20 = vsel %vm693_vm0, %v3418_v63, %v3419_v15  ;;  %v5907_v15 = vld [vmem:[%s6842_s3 + $0x1c] sm:$0xf] }
 0x2a0   : > { %v2780_v27 = vor.u32 %v2778_v16, %v2777_v60  ;;  %v2782_v32 = vrot.slane %v2777_v60, 4  ;;  %v4270_v14 = vpop.f32.mrf.mxu1  ;;  %v3300_v60 = vshrl.u32 %v6293_v36, 16  ;;  %v8052_v16 = vpack.c.b16 %v3503_v3, %v3503_v3  ;;  %6356 = vmatpush.bf16.msra.mxu3 %v8058_v26 }
 0x2a1   : > { %v4271_v45 = vadd.f32 %v8028_v21, %v4270_v14 }
 0x2a2   : > { %v2781_v56 = vsel %vm7606_vm2, %v2773_v23, %v2780_v27  ;;  %v2883_v57 = vsel %vm7494_vm4, %v2782_v32, %v2882_v11  ;;  %4658 = vmatpush.bf16.msrb.mxu0 %v6106_v28  ;;  %v3309_v11 = vrot.slane %v3307_v52, 1  ;;  %v3305_v23 = vor.u32 %v3304_v42, %v3300_v60  ;;  %v8068_v28 = vld [vmem:[%s8504_s5 + $0x10] sm:$0xff] }
 0x2a3   : > { %2881 = vst [vmem:[#allocation2 + $0x70] sm:$0xf] %v2781_v56  ;;  %v3527_v32 = vshll.u32 %v8052_v16, 16  ;;  %v4737_v60 = vshll.u32 %v5907_v15, 16  ;;  %vm4724_vm4 = vsmask.f32 3328 }
 0x2a4   : > { %2884 = vst [vmem:[#allocation2 + $0x74] sm:$0x1] %v2883_v57  ;;  %4512 = vmatmul.bf16.vlgmr.msrb.gmra.mxu3 %v3417_v51  ;;  %v3310_v56 = vsel %vm532_vm1, %v3305_v23, %v3309_v11  ;;  %v3273_v57 = vunpack.c.l.b16 %v2936_v13  ;;  %v6325_v13 = vld [vmem:[#allocation2 + $0x18] sm:$0xe]  ;;  %v3274_v23 = vunpack.c.l.b16 %v2937_v6  ;;  %v6515_v6 = vld [vmem:[#allocation2 + $0x3c] sm:$0xf0]  ;;  %vm8112_vm2 = vmor %vm4724_vm4, %vm4725_vm11 }
 0x2a5   : > { %6357 = vmatpush.bf16.msra.mxu3 %v8068_v28  ;;  %v3529_v44 = vrot.slane %v3527_v32, 1 }
 0x2a6   : > { %4463 = vmatmul.bf16.vlgmr.msrb.gmra.mxu2 %v3298_v4  ;;  %v3281_v4 = vpack.c.b16 %v3273_v57, %v3273_v57  ;;  %v3282_v25 = vpack.c.b16 %v3274_v23, %v3274_v23 }
 0x2a7   : > { %v4366_v17 = vpop.f32.mrf.mxu3 }
 0x2a8   : > { %v4273_v49 = vpop.f32.mrf.mxu1  ;;  %v3422_v40 = vrot.slane %v3281_v4, 1  ;;  %v3319_v3 = vshll.u32 %v3281_v4, 16  ;;  %v6315_v4 = vld [vmem:[#allocation2 + $0x30] sm:$0xf0] }
 0x2a9   : > { %v4317_v39 = vpop.f32.mrf.mxu2  ;;  %v4274_v51 = vadd.f32 %v8028_v21, %v4273_v49  ;;  %v8085_v49 = vld [vmem:[%s8504_s5] sm:$0xff] }
 0x2aa   : > { %v4318_v54 = vadd.f32 %v4317_v39, %v4269_v22  ;;  %v8037_v58 = vld [vmem:[#allocation2 + $0x6c] sm:$0xff]   ;;  %v3423_v52 = vsel %vm693_vm0, %v3421_v9, %v3422_v40  ;;  %v3321_v11 = vrot.slane %v3319_v3, 1 }
 0x2ab   : > { %v8039_v34 = vld [vmem:[#allocation2 + $0x6c] sm:$0xf0]  ;;  %4419 = vmatmul.bf16.gmra.mxu1 %v6293_v36  ;;  %v8077_v22 = vld [vmem:[%s8504_s5 + $0x8] sm:$0xff]  ;;  %v3530_v36 = vsel %vm532_vm1, %v7740_v12, %v3529_v44 }
 0x2ac   : > { %v8042_v59 = vadd.f32 %v4366_v17, %v4318_v54  ;;  %v3314_v17 = vshll.u32 %v2922_v2, 16  ;;  %6358 = vmatpush.bf16.msra.mxu3 %v8077_v22  ;;  %v6316_v40 = vld [vmem:[#allocation2 + $0x30] sm:$0xe] }
 0x2ad   : > { %4596 = vmatmul.bf16.gmra.mxu0 %v8037_v58 }
 0x2ae   : > { %v3316_v8 = vrot.slane %v3314_v17, 1  ;;  %v5908_v17 = vld [vmem:[%s6842_s3 + $0x20] sm:$0x1] }
 0x2af   : > { %v4368_v61 = vpop.f32.mrf.mxu3 }
 0x2b0   : > { %v4275_v41 = vpop.f32.mrf.mxu1  ;;  %6359 = vmatpush.bf16.msra.mxu3 %v8085_v49 }
 0x2b1   : > { %v4319_v24 = vpop.f32.mrf.mxu2  ;;  %v4276_v62 = vadd.f32 %v8028_v21, %v4275_v41 }
 0x2b2   : > { %v4320_v53 = vadd.f32 %v4319_v24, %v4271_v45  ;;  %v4728_v24 = vshrl.u32 %v5906_v7, 16 }
 0x2b4   : > { %4517 = vmatmul.bf16.gmra.mxu3 %v3420_v20  ;;  %v8062_v33 = vadd.f32 %v4368_v61, %v4320_v53  ;;  %v3312_v61 = vshrl.u32 %v2922_v2, 16  ;;  %v4731_v53 = vshll.u32 %v5906_v7, 16 }
 0x2b6   : > { %4468 = vmatmul.bf16.gmra.mxu2 %v3310_v56  ;;  %v3317_v45 = vor.u32 %v3316_v8, %v3312_v61  ;;  %v4733_v57 = vrot.slane %v4731_v53, 5 }
 0x2b7   : > { %v4371_v27 = vpop.f32.mrf.mxu3 }
 0x2b8   : > { %v8072_v14 = vpop.f32.mrf.mxu0  ;;  %v4278_v39 = vpop.f32.mrf.mxu1  ;;  %v3322_v18 = vsel %vm532_vm1, %v3317_v45, %v3321_v11 }
 0x2b9   : > { %v4322_v10 = vpop.f32.mrf.mxu2  ;;  %v4279_v32 = vadd.f32 %v8028_v21, %v4278_v39 }
 0x2ba   : > { %v4323_v50 = vadd.f32 %v4322_v10, %v4274_v51  ;;  %v4739_v51 = vrot.slane %v4737_v60, 5 }
 0x2bb   : > { %4424 = vmatmul.bf16.gmra.mxu1 %v2922_v2  ;;  %v4741_v2 = vshrl.u32 %v5907_v15, 16  ;;  %v3331_v15 = vshll.u32 %v3282_v25, 16 }
 0x2bc   : > { %v8096_v20 = vadd.f32 %v4371_v27, %v4323_v50  ;;  %v3648_v50 = vrot.slane %v8052_v16, 1  ;;  %v6451_v16 = vld [vmem:[#allocation2 + $0x30] sm:$0xff]  }
 0x2bd   : > { %4610 = vmatmul.bf16.vlgmr.msra.gmra.mxu0 %v3530_v36  ;;  %v4743_v10 = vrot.slane %v4741_v2, 4  ;;  %v3333_v11 = vrot.slane %v3331_v15, 1 }
 0x2be   : > { %5019 = vmatpush.bf16.msra.mxu0 %v7968_v37  ;;  %v6324_v37 = vld [vmem:[#allocation2 + $0x18] sm:$0xf0] }
 0x2bf   : > { %v4373_v54 = vpop.f32.mrf.mxu3  ;;  %v6326_v56 = vor.u32 %v6325_v13, %v6324_v37 }
 0x2c0   : > { %v8093_v42 = vpop.f32.mrf.mxu0  ;;  %v4280_v63 = vpop.f32.mrf.mxu1 }
 0x2c1   : > { %v4324_v55 = vpop.f32.mrf.mxu2  ;;  %v3647_v36 = vrot.slane %v6326_v56, 1  ;;  %v4281_v45 = vadd.f32 %v8028_v21, %v4280_v63 }
 0x2c2   : > { %v4325_v12 = vadd.f32 %v4324_v55, %v4276_v62  ;;  %5020 = vmatpush.bf16.msra.mxu0 %v8005_v5  ;;  %v4730_v5 = vrot.slane %v4728_v24, 4  ;;  %v4747_v62 = vshll.u32 %v5908_v17, 16  ;;  %v6317_v55 = vor.u32 %v6316_v40, %v6315_v4 }
 0x2c3   : > { %v3649_v3 = vsel %vm693_vm0, %v3647_v36, %v3648_v50 }
 0x2c4   : > { %4522 = vmatmul.bf16.gmra.mxu3 %v3423_v52  ;;  %v4734_v8 = vor.u32 %v4733_v57, %v4730_v5  ;;  %v8106_v7 = vadd.f32 %v4373_v54, %v4325_v12  ;;  %v3425_v52 = vrot.slane %v3282_v25, 1  ;;  %v4749_v12 = vrot.slane %v4747_v62, 5  ;;  %v6516_v57 = vld [vmem:[#allocation2 + $0x3c] sm:$0xe] }
 0x2c5   : > { %v3424_v53 = vrot.slane %v6317_v55, 1  ;;  %v3334_v5 = vsel %vm532_vm1, %v7838_v48, %v3333_v11  ;;  %v6517_v40 = vor.u32 %v6516_v57, %v6515_v6  ;;  %v6319_v57 = vld [vmem:[#allocation2 + $0x48] sm:$0xe] }
 0x2c6   : > { %4473 = vmatmul.bf16.gmra.mxu2 %v3322_v18  ;;  %5021 = vmatpush.bf16.msra.mxu0 %v8035_v47  ;;  %v4744_v47 = vor.u32 %v4743_v10, %v4739_v51  ;;  %v4735_v24 = vrot.slane %v4734_v8, 4  ;;  %v2938_v18 = vld [vmem:[#allocation2 + $0x44] sm:$0x1] }
 0x2c7   : > { %v4376_v41 = vpop.f32.mrf.mxu3  ;;  %v3426_v13 = vsel %vm693_vm0, %v3424_v53, %v3425_v52  ;;  %v3275_v50 = vunpack.c.l.b16 %v2938_v18  ;;  %v3427_v55 = vrot.slane %v6517_v40, 1 }
 0x2c8   : > { %v4283_v9 = vpop.f32.mrf.mxu1  ;;  %v4745_v54 = vrot.slane %v4744_v47, 4 }
 0x2c9   : > { %v4327_v44 = vpop.f32.mrf.mxu2  ;;  %v3283_v36 = vpack.c.b16 %v3275_v50, %v3275_v50 }
 0x2ca   : > { %v4328_v27 = vadd.f32 %v4327_v44, %v4279_v32  ;;  %v8103_v39 = vpop.f32.mrf.mxu0  ;;  %5022 = vmatpush.bf16.msra.mxu0 %v8047_v30  ;;  %v2926_v30 = vld [vmem:[#allocation2 + $0x3c] sm:$0xff]   ;;  %v4750_v32 = vsel %vm8112_vm2, %v4745_v54, %v4749_v12 }
 0x2cb   : > { %4429 = vmatmul.bf16.gmra.mxu1 %v6451_v16  ;;  %v4940_v17 = vunpack.c.l.b16 %v4750_v32  ;;  %v3338_v4 = vshll.u32 %v2926_v30, 16  ;;  %v3343_v15 = vshll.u32 %v3283_v36, 16 }
 0x2cc   : > { %v8124_v56 = vadd.f32 %v4376_v41, %v4328_v27 }
 0x2cd   : > { %4659 = vmatmul.bf16.vlgmr.msrb.gmra.mxu0 %v3649_v3  ;;  %v3340_v3 = vrot.slane %v3338_v4, 1  ;;  %v6518_v4 = vld [vmem:[#allocation2 + $0x54] sm:$0xf0] }
 0x2ce   : > { %5023 = vmatpush.bf16.msra.mxu0 %v8058_v26  ;;  %v4740_v26 = vsel %vm8112_vm2, %v4735_v24, %v4739_v51 }
 0x2cf   : > { %v4378_v61 = vpop.f32.mrf.mxu3  ;;  %v4939_v44 = vunpack.c.l.b16 %v4740_v26 }
 0x2d0   : > { %v4285_v63 = vpop.f32.mrf.mxu1 }
 0x2d1   : > { %v4329_v37 = vpop.f32.mrf.mxu2  ;;  %v4955_v25 = vpack.c.b16 %v4940_v17, %v4939_v44  ;;  %v4286_v16 = vadd.f32 %v8028_v21, %v4285_v63 }
 0x2d2   : > { %v4330_v2 = vadd.f32 %v4329_v37, %v4281_v45  ;;  %v8117_v23 = vpop.f32.mrf.mxu0  ;;  %5024 = vmatpush.bf16.msra.mxu0 %v8068_v28  ;;  %v4284_v28 = vadd.f32 %v8028_v21, %v4283_v9  ;;  %v3336_v9 = vshrl.u32 %v2926_v30, 16  ;;  %v3345_v37 = vrot.slane %v3343_v15, 1 }
 0x2d4   : > { %4527 = vmatmul.bf16.gmra.mxu3 %v3426_v13  ;;  %v8133_v47 = vadd.f32 %v4378_v61, %v4330_v2  ;;  %v3341_v6 = vor.u32 %v3340_v3, %v3336_v9  ;;  %v2939_v61 = vld [vmem:[#allocation2 + $0x50] sm:$0x1]  ;;  %v6318_v13 = vld [vmem:[#allocation2 + $0x48] sm:$0xf0]  ;;  %v2940_v3 = vld [vmem:[#allocation2 + $0x5c] sm:$0x1] }
 0x2d6   : > { %4478 = vmatmul.bf16.gmra.mxu2 %v3334_v5  ;;  %5025 = vmatpush.bf16.msra.mxu0 %v8077_v22  ;;  %v3428_v22 = vrot.slane %v3283_v36, 1  ;;  %v3346_v2 = vsel %vm532_vm1, %v3341_v6, %v3345_v37 }
 0x2d7   : > { %v4381_v10 = vpop.f32.mrf.mxu3 }
 0x2d8   : > { %v4288_v27 = vpop.f32.mrf.mxu1  ;;  %v3429_v45 = vsel %vm693_vm0, %v3427_v55, %v3428_v22 }
 0x2d9   : > { %v4332_v51 = vpop.f32.mrf.mxu2  ;;  %v4289_v11 = vadd.f32 %v8028_v21, %v4288_v27 }
 0x2da   : > { %v4333_v41 = vadd.f32 %v4332_v51, %v4284_v28  ;;  %v8130_v8 = vpop.f32.mrf.mxu0  ;;  %5026 = vmatpush.bf16.msra.mxu0 %v8085_v49  ;;  %v2930_v51 = vld [vmem:[#allocation2 + $0x54] sm:$0xff]  }
 0x2db   : > { %4434 = vmatmul.bf16.gmra.mxu1 %v2926_v30  ;;  %v3276_v30 = vunpack.c.l.b16 %v2939_v61 }
 0x2dc   : > { %v8139_v12 = vadd.f32 %v4381_v10, %v4333_v41  ;;  %v6320_v10 = vor.u32 %v6319_v57, %v6318_v13 }
 0x2dd   : > { %5027 = vmatmul.bf16.vlgmr.msra.gmra.mxu0 %v4955_v25  ;;  %v3284_v26 = vpack.c.b16 %v3276_v30, %v3276_v30 }
 0x2de   : > { %v3430_v25 = vrot.slane %v6320_v10, 1 }
 0x2df   : > { %v4383_v62 = vpop.f32.mrf.mxu3  ;;  %v3431_v50 = vrot.slane %v3284_v26, 1  ;;  %v3355_v28 = vshll.u32 %v3284_v26, 16 }
 0x2e0   : > { %v4290_v54 = vpop.f32.mrf.mxu1 }
 0x2e1   : > { %v4334_v52 = vpop.f32.mrf.mxu2  ;;  %v4291_v36 = vadd.f32 %v8028_v21, %v4290_v54  ;;  %v3432_v41 = vsel %vm693_vm0, %v3430_v25, %v3431_v50  ;;  %v3357_v27 = vrot.slane %v3355_v28, 1 }
 0x2e2   : > { %v4335_v24 = vadd.f32 %v4334_v52, %v4286_v16  ;;  %v8137_v49 = vpop.f32.mrf.mxu0  ;;  %v3277_v52 = vunpack.c.l.b16 %v2940_v3 }
 0x2e3   : > { %8547 = vst [vmem:[#allocation11_spill] sm:$0xff] %v8137_v49  ;;  %v3358_v16 = vsel %vm532_vm1, %v7953_v0, %v3357_v27 }
 0x2e4   : > { %4532 = vmatmul.bf16.gmra.mxu3 %v3429_v45  ;;  %v8145_v44 = vadd.f32 %v4383_v62, %v4335_v24  ;;  %v3362_v24 = vshll.u32 %v2930_v51, 16  ;;  %v3285_v54 = vpack.c.b16 %v3277_v52, %v3277_v52 }
 0x2e6   : > { %4483 = vmatmul.bf16.gmra.mxu2 %v3346_v2  ;;  %v3364_v26 = vrot.slane %v3362_v24, 1  ;;  %v3367_v57 = vshll.u32 %v3285_v54, 16  ;;  %v6321_v24 = vld [vmem:[#allocation2 + $0x60] sm:$0xf0] }
 0x2e7   : > { %v4386_v53 = vpop.f32.mrf.mxu3 }
 0x2e8   : > { %v4293_v18 = vpop.f32.mrf.mxu1  ;;  %v3369_v27 = vrot.slane %v3367_v57, 1  ;;  %v6322_v57 = vld [vmem:[#allocation2 + $0x60] sm:$0xe] }
 0x2e9   : > { %v4337_v63 = vpop.f32.mrf.mxu2  ;;  %v4294_v45 = vadd.f32 %v8028_v21, %v4293_v18 }
 0x2ea   : > { %v4338_v32 = vadd.f32 %v4337_v63, %v4289_v11  ;;  %v8143_v5 = vpop.f32.mrf.mxu0  ;;  %v3434_v63 = vrot.slane %v3285_v54, 1 }
 0x2eb   : > { %8548 = vst [vmem:[#allocation12_spill] sm:$0xff] %v8143_v5  ;;  %4439 = vmatmul.bf16.gmra.mxu1 %v7920_v29  ;;  %v6519_v29 = vld [vmem:[#allocation2 + $0x54] sm:$0xe] }
 0x2ec   : > { %v8152_v9 = vadd.f32 %v4386_v53, %v4338_v32  ;;  %v6520_v61 = vor.u32 %v6519_v29, %v6518_v4  ;;  %v3360_v32 = vshrl.u32 %v2930_v51, 16 }
 0x2ee   : > { %v3433_v13 = vrot.slane %v6520_v61, 1  ;;  %v3365_v28 = vor.u32 %v3364_v26, %v3360_v32 }
 0x2ef   : > { %v4388_v17 = vpop.f32.mrf.mxu3 }
 0x2f0   : > { %v4295_v22 = vpop.f32.mrf.mxu1  ;;  %v3435_v50 = vsel %vm693_vm0, %v3433_v13, %v3434_v63  ;;  %v2968_v13 = vld [vmem:[#allocation2 + $0x2c] sm:$0x1] }
 0x2f1   : > { %v4339_v40 = vpop.f32.mrf.mxu2  ;;  %v4296_v18 = vadd.f32 %v8028_v21, %v4295_v22 }
 0x2f2   : > { %v4340_v55 = vadd.f32 %v4339_v40, %v4291_v36  ;;  %v8150_v62 = vpop.f32.mrf.mxu0  ;;  %v2941_v36 = vld [vmem:[#allocation2 + $0x68] sm:$0x1]  ;;  %v5909_v40 = vld [vmem:[%s6842_s3 + $0x24] sm:$0xf] }
 0x2f3   : > { %8549 = vst [vmem:[#allocation13_spill] sm:$0xff] %v8150_v62  ;;  %v3278_v29 = vunpack.c.l.b16 %v2941_v36  ;;  %v4752_v22 = vshrl.u32 %v5909_v40, 16  ;;  %v3594_v36 = vshll.u32 %v8015_v1, 16 }
 0x2f4   : > { %4537 = vmatmul.bf16.gmra.mxu3 %v3432_v41  ;;  %v8159_v11 = vadd.f32 %v4388_v17, %v4340_v55  ;;  %v5910_v55 = vld [vmem:[%s6842_s3 + $0x28] sm:$0xf] }
 0x2f5   : > { %v4761_v52 = vshll.u32 %v5910_v55, 16  ;;  %v3286_v61 = vpack.c.b16 %v3278_v29, %v3278_v29 }
 0x2f6   : > { %4488 = vmatmul.bf16.gmra.mxu2 %v3358_v16  ;;  %v4755_v16 = vshll.u32 %v5909_v40, 16  ;;  %v6323_v40 = vor.u32 %v6322_v57, %v6321_v24 }
 0x2f7   : > { %v4391_v15 = vpop.f32.mrf.mxu3 }
 0x2f8   : > { %v4298_v2 = vpop.f32.mrf.mxu1 }
 0x2f9   : > { %v4342_v6 = vpop.f32.mrf.mxu2 }
 0x2fa   : > { %v4343_v37 = vadd.f32 %v4342_v6, %v4294_v45  ;;  %v8157_v30 = vpop.f32.mrf.mxu0  ;;  %v4765_v45 = vshrl.u32 %v5910_v55, 16  ;;  %v4299_v6 = vadd.f32 %v8028_v21, %v4298_v2  ;;  %v3504_v2 = vunpack.c.l.b16 %v2968_v13 }
 0x2fb   : > { %8550 = vst [vmem:[#allocation14_spill] sm:$0xff] %v8157_v30  ;;  %4444 = vmatmul.bf16.gmra.mxu1 %v2930_v51  ;;  %v3370_v51 = vsel %vm532_vm1, %v3365_v28, %v3369_v27  ;;  %v3437_v55 = vrot.slane %v3286_v61, 1 }
 0x2fc   : > { %v8166_v41 = vadd.f32 %v4391_v15, %v4343_v37  ;;  %v4754_v15 = vrot.slane %v4752_v22, 4  ;;  %v4757_v37 = vrot.slane %v4755_v16, 5 }
 0x2fe   : > { %v4758_v22 = vor.u32 %v4757_v37, %v4754_v15 }
 0x2ff   : > { %v4393_v53 = vpop.f32.mrf.mxu3 }
 0x300   : > { %v4300_v25 = vpop.f32.mrf.mxu1 }
 0x301   : > { %v4344_v10 = vpop.f32.mrf.mxu2 }
 0x302   : > { %v4345_v4 = vadd.f32 %v4344_v10, %v4296_v18  ;;  %v8163_v17 = vpop.f32.mrf.mxu0  ;;  %v5911_v18 = vld [vmem:[%s6842_s3 + $0x2c] sm:$0x1]  ;;  %v4763_v10 = vrot.slane %v4761_v52, 5  ;;  %v4301_v52 = vadd.f32 %v8028_v21, %v4300_v25 }
 0x303   : > { %8551 = vst [vmem:[#allocation15_spill] sm:$0xff] %v8163_v17  ;;  %v4771_v29 = vshll.u32 %v5911_v18, 16  ;;  %v4759_v18 = vrot.slane %v4758_v22, 4  ;;  %v5913_v17 = vld [vmem:[%s6842_s3 + $0x34] sm:$0xf] }
 0x304   : > { %4542 = vmatmul.bf16.gmra.mxu3 %v3435_v50  ;;  %v4767_v50 = vrot.slane %v4765_v45, 4  ;;  %v8174_v28 = vadd.f32 %v4393_v53, %v4345_v4  ;;  %v8180_v53 = vpack.c.b16 %v3504_v2, %v3504_v2  ;;  %v3592_v4 = vshrl.u32 %v8015_v1, 16  ;;  %v5912_v2 = vld [vmem:[%s6842_s3 + $0x30] sm:$0xf] }
 0x305   : > { %v4779_v22 = vshll.u32 %v5912_v2, 16 }
 0x306   : > { %4493 = vmatmul.bf16.gmra.mxu2 %v3370_v51  ;;  %v3379_v51 = vshll.u32 %v3286_v61, 16  ;;  %v4768_v16 = vor.u32 %v4767_v50, %v4763_v10  ;;  %v4773_v61 = vrot.slane %v4771_v29, 5  ;;  %v4764_v29 = vsel %vm8112_vm2, %v4759_v18, %v4763_v10 }
 0x307   : > { %v4396_v3 = vpop.f32.mrf.mxu3  ;;  %v4781_v18 = vrot.slane %v4779_v22, 5 }
 0x308   : > { %v4303_v26 = vpop.f32.mrf.mxu1  ;;  %v3381_v13 = vrot.slane %v3379_v51, 1  ;;  %v4769_v50 = vrot.slane %v4768_v16, 4  ;;  %v3539_v51 = vshll.u32 %v8180_v53, 16  ;;  %v4789_v16 = vshrl.u32 %v5913_v17, 16 }
 0x309   : > { %v4347_v54 = vpop.f32.mrf.mxu2 }
 0x30a   : > { %v4348_v63 = vadd.f32 %v4347_v54, %v4299_v6  ;;  %v8171_v32 = vpop.f32.mrf.mxu0  ;;  %v3596_v6 = vrot.slane %v3594_v36, 1  ;;  %v3436_v54 = vrot.slane %v6323_v40, 1 }
 0x30b   : > { %8552 = vst [vmem:[#allocation16_spill] sm:$0xff] %v8171_v32  ;;  %4449 = vmatmul.bf16.gmra.mxu1 %v8015_v1  ;;  %v3534_v32 = vshll.u32 %v7759_v31, 16  ;;  %v3532_v1 = vshrl.u32 %v7759_v31, 16  ;;  %v4304_v31 = vadd.f32 %v8028_v21, %v4303_v26 }
 0x30c   : > { %v3438_v24 = vsel %vm693_vm0, %v3436_v54, %v3437_v55  ;;  %v8186_v36 = vadd.f32 %v4396_v3, %v4348_v63  ;;  %v8188_v25 = vor.u32 %v3596_v6, %v3592_v4  ;;  %v4774_v3 = vsel %vm8112_vm2, %v4769_v50, %v4773_v61  ;;  %v6522_v6 = vld [vmem:[#allocation2 + $0x24] sm:$0xe] }
 0x30d   : > { %v3536_v40 = vrot.slane %v3534_v32, 1  ;;  %v4776_v63 = vshrl.u32 %v5912_v2, 16  ;;  %v4785_v32 = vshll.u32 %v5913_v17, 16  ;;  %v3541_v4 = vrot.slane %v3539_v51, 1 }
 0x30e   : > { %v3382_v55 = vsel %vm532_vm1, %v8188_v25, %v3381_v13  ;;  %v2969_v13 = vld [vmem:[#allocation2 + $0x38] sm:$0x1]  ;;  %v4791_v2 = vrot.slane %v4789_v16, 4  ;;  %v6523_v51 = vor.u32 %v6522_v6, %v7761_v38 }
 0x30f   : > { %v4398_v27 = vpop.f32.mrf.mxu3  ;;  %v3537_v54 = vor.u32 %v3536_v40, %v3532_v1  ;;  %v4778_v61 = vrot.slane %v4776_v63, 4  ;;  %v4787_v17 = vrot.slane %v4785_v32, 5  ;;  %v3505_v40 = vunpack.c.l.b16 %v2969_v13  ;;  %v5914_v1 = vld [vmem:[%s6842_s3 + $0x38] sm:$0x1] }
 0x310   : > { %v4305_v15 = vpop.f32.mrf.mxu1  ;;  %v4795_v62 = vshll.u32 %v5914_v1, 16  ;;  %v3651_v32 = vrot.slane %v8180_v53, 1 }
 0x311   : > { %v4349_v45 = vpop.f32.mrf.mxu2  ;;  %v3542_v26 = vsel %vm532_vm1, %v3537_v54, %v3541_v4  ;;  %v4306_v63 = vadd.f32 %v8028_v21, %v4305_v15  ;;  %v5915_v21 = vld [vmem:[%s6842_s3 + $0x3c] sm:$0xf]  ;;  %v5916_v15 = vld [vmem:[%s6842_s3 + $0x40] sm:$0xf] }
 0x312   : > { %v4350_v57 = vadd.f32 %v4349_v45, %v4301_v52  ;;  %v8184_v37 = vpop.f32.mrf.mxu0  ;;  %v4941_v45 = vunpack.c.l.b16 %v4764_v29 }
 0x313   : > { %8553 = vst [vmem:[#allocation17_spill] sm:$0xff] %v8184_v37 }
 0x314   : > { %4547 = vmatmul.bf16.gmra.mxu3 %v3438_v24  ;;  %v4942_v24 = vunpack.c.l.b16 %v4774_v3  ;;  %v8205_v50 = vadd.f32 %v4398_v27, %v4350_v57  ;;  %v8211_v27 = vpack.c.b16 %v3505_v40, %v3505_v40  ;;  %v3650_v57 = vrot.slane %v6523_v51, 1 }
 0x315   : > { %v4813_v40 = vshrl.u32 %v5916_v15, 16 }
 0x316   : > { %4498 = vmatmul.bf16.gmra.mxu2 %v3382_v55  ;;  %v4956_v3 = vpack.c.b16 %v4942_v24, %v4941_v45  ;;  %v4797_v24 = vrot.slane %v4795_v62, 5  ;;  %v3551_v13 = vshll.u32 %v8211_v27, 16 }
 0x317   : > { %v4401_v30 = vpop.f32.mrf.mxu3 }
 0x318   : > { %v8201_v37 = vpop.f32.mrf.mxu1  ;;  %v3553_v62 = vrot.slane %v3551_v13, 1  ;;  %v6327_v13 = vld [vmem:[#allocation2 + $0x30] sm:$0xf0] }
 0x319   : > { %v4352_v52 = vpop.f32.mrf.mxu2 }
 0x31a   : > { %v4353_v55 = vadd.f32 %v4352_v52, %v4304_v31  ;;  %v8203_v10 = vpop.f32.mrf.mxu0  ;;  %v4782_v31 = vor.u32 %v4781_v18, %v4778_v61  ;;  %v4792_v52 = vor.u32 %v4791_v2, %v4787_v17  ;;  %v3652_v18 = vsel %vm693_vm0, %v3650_v57, %v3651_v32 }
 0x31b   : > { %8554 = vst [vmem:[#allocation18_spill] sm:$0xff] %v8203_v10  ;;  %4615 = vmatmul.bf16.vlgmr.msra.gmra.mxu1 %v3542_v26  ;;  %v4800_v2 = vshrl.u32 %v5915_v21, 16  ;;  %v4803_v26 = vshll.u32 %v5915_v21, 16  ;;  %v5917_v21 = vld [vmem:[%s6842_s3 + $0x44] sm:$0x1] }
 0x31c   : > { %v4783_v6 = vrot.slane %v4782_v31, 4  ;;  %v8218_v4 = vadd.f32 %v4401_v30, %v4353_v55  ;;  %v4793_v45 = vrot.slane %v4792_v52, 4  ;;  %v4809_v55 = vshll.u32 %v5916_v15, 16 }
 0x31d   : > { %v4802_v57 = vrot.slane %v4800_v2, 4 }
 0x31e   : > { %v4788_v53 = vsel %vm8112_vm2, %v4783_v6, %v4787_v17  ;;  %v4798_v30 = vsel %vm8112_vm2, %v4793_v45, %v4797_v24  ;;  %v4811_v6 = vrot.slane %v4809_v55, 5  ;;  %v4815_v45 = vrot.slane %v4813_v40, 4 }
 0x31f   : > { %v4403_v29 = vpop.f32.mrf.mxu3  ;;  %v4943_v51 = vunpack.c.l.b16 %v4788_v53  ;;  %v4944_v52 = vunpack.c.l.b16 %v4798_v30  ;;  %v3554_v24 = vsel %vm532_vm1, %v7838_v48, %v3553_v62  ;;  %v6328_v30 = vld [vmem:[#allocation2 + $0x30] sm:$0xe]  ;;  %v3654_v48 = vrot.slane %v8211_v27, 1 }
 0x320   : > { %v8214_v54 = vpop.f32.mrf.mxu1  ;;  %v6329_v2 = vor.u32 %v6328_v30, %v6327_v13 }
 0x321   : > { %v4354_v22 = vpop.f32.mrf.mxu2  ;;  %v4957_v53 = vpack.c.b16 %v4944_v52, %v4943_v51 }
 0x322   : > { %v4355_v16 = vadd.f32 %v4354_v22, %v4306_v63  ;;  %v8216_v38 = vpop.f32.mrf.mxu0  ;;  %v2970_v63 = vld [vmem:[#allocation2 + $0x44] sm:$0x1]  ;;  %v4805_v22 = vrot.slane %v4803_v26, 5  ;;  %v3653_v52 = vrot.slane %v6329_v2, 1 }
 0x323   : > { %8555 = vst [vmem:[#allocation19_spill] sm:$0xff] %v8216_v38 }
 0x324   : > { %5032 = vmatmul.bf16.vlgmr.msra.gmra.mxu3 %v4956_v3  ;;  %v8234_v17 = vadd.f32 %v4403_v29, %v4355_v16  ;;  %v4816_v29 = vor.u32 %v4815_v45, %v4811_v6  ;;  %v4819_v16 = vshll.u32 %v5917_v21, 16  ;;  %v5918_v45 = vld [vmem:[%s6842_s3 + $0x48] sm:$0xf]  ;;  %v3655_v21 = vsel %vm693_vm0, %v3653_v52, %v3654_v48 }
 0x325   : > { %v4827_v30 = vshll.u32 %v5918_v45, 16 }
 0x326   : > { %4664 = vmatmul.bf16.vlgmr.msra.gmra.mxu2 %v3652_v18  ;;  %v3506_v18 = vunpack.c.l.b16 %v2970_v63  ;;  %v4817_v63 = vrot.slane %v4816_v29, 4 }
 0x327   : > { %v8223_v61 = vpop.f32.mrf.mxu3 }
 0x328   : > { %v4420_v3 = vpop.f32.mrf.mxu1  ;;  %v8246_v55 = vpack.c.b16 %v3506_v18, %v3506_v18  ;;  %v3556_v18 = vshrl.u32 %v7860_v35, 16 }
 0x329   : > { %v8230_v1 = vpop.f32.mrf.mxu2  ;;  %v4421_v32 = vadd.f32 %v4420_v3, %v8096_v20  ;;  %v3558_v20 = vshll.u32 %v7860_v35, 16 }
 0x32a   : > { %v8232_v31 = vpop.f32.mrf.mxu0  ;;  %v3563_v27 = vshll.u32 %v8246_v55, 16 }
 0x32b   : > { %8556 = vst [vmem:[#allocation20_spill] sm:$0xff] %v8232_v31  ;;  %4620 = vmatmul.bf16.gmra.mxu1 %v3554_v24  ;;  %v4806_v31 = vor.u32 %v4805_v22, %v4802_v57  ;;  %v4821_v57 = vrot.slane %v4819_v16, 5  ;;  %v3560_v22 = vrot.slane %v3558_v20, 1  ;;  %v5919_v24 = vld [vmem:[%s6842_s3 + $0x4c] sm:$0xf] }
 0x32c   : > { %v4833_v2 = vshll.u32 %v5919_v24, 16  ;;  %v4837_v29 = vshrl.u32 %v5919_v24, 16  ;;  %v6525_v20 = vld [vmem:[#allocation2 + $0x3c] sm:$0xe]  ;;  %v3565_v48 = vrot.slane %v3563_v27, 1 }
 0x32d   : > { %v4807_v51 = vrot.slane %v4806_v31, 4  ;;  %v4824_v31 = vshrl.u32 %v5918_v45, 16  ;;  %v3561_v16 = vor.u32 %v3560_v22, %v3556_v18  ;;  %v5920_v18 = vld [vmem:[%s6842_s3 + $0x50] sm:$0x1] }
 0x32e   : > { %v4835_v5 = vrot.slane %v4833_v2, 5 }
 0x32f   : > { %v8240_v15 = vpop.f32.mrf.mxu3  ;;  %v3566_v22 = vsel %vm532_vm1, %v3561_v16, %v3565_v48 }
 0x330   : > { %v4422_v40 = vpop.f32.mrf.mxu1 }
 0x331   : > { %v8243_v26 = vpop.f32.mrf.mxu2  ;;  %v4423_v3 = vadd.f32 %v4422_v40, %v8106_v7  ;;  %v4822_v7 = vsel %vm8112_vm2, %v4817_v63, %v4821_v57  ;;  %v4839_v63 = vrot.slane %v4837_v29, 4 }
 0x332   : > { %v8248_v62 = vpop.f32.mrf.mxu0  ;;  %v4946_v10 = vunpack.c.l.b16 %v4822_v7 }
 0x333   : > { %8557 = vst [vmem:[#allocation21_spill] sm:$0xff] %v8248_v62  ;;  %v2971_v62 = vld [vmem:[#allocation2 + $0x50] sm:$0x1]  ;;  %v4840_v49 = vor.u32 %v4839_v63, %v4835_v5 }
 0x334   : > { %5037 = vmatmul.bf16.gmra.mxu3 %v4957_v53  ;;  %v4812_v53 = vsel %vm8112_vm2, %v4807_v51, %v4811_v6  ;;  %v4826_v6 = vrot.slane %v4824_v31, 4  ;;  %v4829_v51 = vrot.slane %v4827_v30, 5  ;;  %v3507_v24 = vunpack.c.l.b16 %v2971_v62 }
 0x335   : > { %v4945_v52 = vunpack.c.l.b16 %v4812_v53  ;;  %v4843_v31 = vshll.u32 %v5920_v18, 16 }
 0x336   : > { %4669 = vmatmul.bf16.gmra.mxu2 %v3655_v21  ;;  %v8268_v30 = vpack.c.b16 %v3507_v24, %v3507_v24 }
 0x337   : > { %v4518_v13 = vpop.f32.mrf.mxu3  ;;  %v4958_v53 = vpack.c.b16 %v4946_v10, %v4945_v52  ;;  %v4841_v10 = vrot.slane %v4840_v49, 4  ;;  %v4845_v16 = vrot.slane %v4843_v31, 5  ;;  %v5921_v52 = vld [vmem:[%s6842_s3 + $0x54] sm:$0xf] }
 0x338   : > { %v4425_v38 = vpop.f32.mrf.mxu1  ;;  %v3575_v48 = vshll.u32 %v8268_v30, 16 }
 0x339   : > { %v4469_v40 = vpop.f32.mrf.mxu2  ;;  %v4426_v45 = vadd.f32 %v4425_v38, %v8124_v56  ;;  %v4846_v49 = vsel %vm8112_vm2, %v4841_v10, %v4845_v16  ;;  %v6330_v16 = vld [vmem:[#allocation2 + $0x48] sm:$0xf0] }
 0x33a   : > { %v4470_v21 = vadd.f32 %v4469_v40, %v4421_v32  ;;  %v8260_v35 = vpop.f32.mrf.mxu0  ;;  %v6526_v32 = vor.u32 %v6525_v20, %v7862_v19  ;;  %v4830_v40 = vor.u32 %v4829_v51, %v4826_v6  ;;  %v3577_v24 = vrot.slane %v3575_v48, 1 }
 0x33b   : > { %4625 = vmatmul.bf16.gmra.mxu1 %v3566_v22 }
 0x33c   : > { %v8263_v57 = vadd.f32 %v4518_v13, %v4470_v21  ;;  %v3656_v38 = vrot.slane %v6526_v32, 1  ;;  %v3657_v13 = vrot.slane %v8246_v55, 1  ;;  %v4831_v29 = vrot.slane %v4830_v40, 4  ;;  %v5922_v21 = vld [vmem:[%s6842_s3 + $0x58] sm:$0xf] }
 0x33d   : > { %v4848_v55 = vshrl.u32 %v5921_v52, 16  ;;  %v4857_v22 = vshll.u32 %v5922_v21, 16  ;;  %v2972_v32 = vld [vmem:[#allocation2 + $0x5c] sm:$0x1]  ;;  %v3578_v10 = vsel %vm532_vm1, %v7953_v0, %v3577_v24  ;;  %v3660_v24 = vrot.slane %v8268_v30, 1 }
 0x33e   : > { %v3658_v51 = vsel %vm693_vm0, %v3656_v38, %v3657_v13  ;;  %v4836_v63 = vsel %vm8112_vm2, %v4831_v29, %v4835_v5  ;;  %v4948_v13 = vunpack.c.l.b16 %v4846_v49  ;;  %v5923_v29 = vld [vmem:[%s6842_s3 + $0x5c] sm:$0x1]  ;;  %v3508_v48 = vunpack.c.l.b16 %v2972_v32 }
 0x33f   : > { %v4520_v27 = vpop.f32.mrf.mxu3 }
 0x340   : > { %v4427_v62 = vpop.f32.mrf.mxu1  ;;  %v8296_v49 = vpack.c.b16 %v3508_v48, %v3508_v48  ;;  %v6528_v48 = vld [vmem:[#allocation2 + $0x54] sm:$0xe] }
 0x341   : > { %v4471_v56 = vpop.f32.mrf.mxu2  ;;  %v4428_v19 = vadd.f32 %v4427_v62, %v8133_v47  ;;  %v4861_v47 = vshrl.u32 %v5922_v21, 16  ;;  %v4416_v21 = vadd.f32 %v8201_v37, %v8042_v59 }
 0x342   : > { %v4472_v7 = vadd.f32 %v4471_v56, %v4423_v3  ;;  %v8271_v2 = vpop.f32.mrf.mxu0  ;;  %v4851_v3 = vshll.u32 %v5921_v52, 16 }
 0x343   : > { %v4863_v62 = vrot.slane %v4861_v47, 4 }
 0x344   : > { %5042 = vmatmul.bf16.gmra.mxu3 %v4958_v53  ;;  %v8274_v20 = vadd.f32 %v4520_v27, %v4472_v7  ;;  %v4947_v27 = vunpack.c.l.b16 %v4836_v63  ;;  %v4850_v53 = vrot.slane %v4848_v55, 4  ;;  %v4853_v40 = vrot.slane %v4851_v3, 5  ;;  %v6331_v3 = vld [vmem:[#allocation2 + $0x48] sm:$0xe] }
 0x345   : > { %v4859_v7 = vrot.slane %v4857_v22, 5  ;;  %v4867_v22 = vshll.u32 %v5923_v29, 16  ;;  %v6332_v47 = vor.u32 %v6331_v3, %v6330_v16  ;;  %v5925_v29 = vld [vmem:[%s6842_s3 + $0x64] sm:$0xf] }
 0x346   : > { %4674 = vmatmul.bf16.gmra.mxu2 %v3658_v51  ;;  %v4854_v51 = vor.u32 %v4853_v40, %v4850_v53  ;;  %v4959_v55 = vpack.c.b16 %v4948_v13, %v4947_v27 }
 0x347   : > { %v4523_v6 = vpop.f32.mrf.mxu3  ;;  %v4864_v63 = vor.u32 %v4863_v62, %v4859_v7  ;;  %v4869_v53 = vrot.slane %v4867_v22, 5  ;;  %v3587_v62 = vshll.u32 %v8296_v49, 16 }
 0x348   : > { %v4430_v56 = vpop.f32.mrf.mxu1  ;;  %v4855_v59 = vrot.slane %v4854_v51, 4  ;;  %v4881_v51 = vshll.u32 %v5925_v29, 16 }
 0x349   : > { %v4474_v18 = vpop.f32.mrf.mxu2  ;;  %v4431_v5 = vadd.f32 %v4430_v56, %v8139_v12  ;;  %v4465_v12 = vadd.f32 %v8230_v1, %v4416_v21  ;;  %v4865_v32 = vrot.slane %v4864_v63, 4  ;;  %v3580_v56 = vshrl.u32 %v7976_v43, 16 }
 0x34a   : > { %v4475_v31 = vadd.f32 %v4474_v18, %v4426_v45  ;;  %v8284_v38 = vpop.f32.mrf.mxu0 }
 0x34b   : > { %4630 = vmatmul.bf16.gmra.mxu1 %v3578_v10  ;;  %v4514_v1 = vadd.f32 %v8223_v61, %v4465_v12  ;;  %v4418_v10 = vadd.f32 %v8214_v54, %v8062_v33  ;;  %v8323_v33 = vld [vmem:[%s8505_s6] ss:$0 sm:$0xff] }
 0x34c   : > { %v8288_v52 = vadd.f32 %v4523_v6, %v4475_v31  ;;  %v3582_v6 = vshll.u32 %v7976_v43, 16  ;;  %v3659_v31 = vrot.slane %v6332_v47, 1  ;;  %v4870_v43 = vsel %vm8112_vm2, %v4865_v32, %v4869_v53 }
 0x34d   : > { %v4467_v3 = vadd.f32 %v8243_v26, %v4418_v10  ;;  %v4563_v63 = vadd.f32 %v8072_v14, %v4514_v1  ;;  %v6529_v10 = vor.u32 %v6528_v48, %v7978_v46  ;;  %v3663_v46 = vrot.slane %v8296_v49, 1  ;;  %v5927_v49 = vld [vmem:[%s6842_s3 + $0x6c] sm:$0xf] }
 0x34e   : > { %v3584_v30 = vrot.slane %v3582_v6, 1  ;;  %v3661_v61 = vsel %vm693_vm0, %v3659_v31, %v3660_v24  ;;  %v4950_v6 = vunpack.c.l.b16 %v4870_v43 }
 0x34f   : > { %v4525_v45 = vpop.f32.mrf.mxu3  ;;  %v4612_v22 = vadd.f32 %v8260_v35, %v4563_v63  ;;  %v4516_v53 = vadd.f32 %v8240_v15, %v4467_v3 }
 0x350   : > { %v4432_v18 = vpop.f32.mrf.mxu1  ;;  %v3585_v54 = vor.u32 %v3584_v30, %v3580_v56  ;;  %v5926_v56 = vld [vmem:[%s6842_s3 + $0x68] sm:$0x1] }
 0x351   : > { %v4476_v0 = vpop.f32.mrf.mxu2  ;;  %v8303_v40 = vadd.f32 %v4432_v18, %v8145_v44  ;;  %v4860_v44 = vsel %vm8112_vm2, %v4855_v59, %v4859_v7  ;;  %v3589_v7 = vrot.slane %v3587_v62, 1  ;;  %v4883_v18 = vrot.slane %v4881_v51, 5 }
 0x352   : > { %v4477_v37 = vadd.f32 %v4476_v0, %v4428_v19  ;;  %v8299_v27 = vpop.f32.mrf.mxu0  ;;  %v5924_v19 = vld [vmem:[%s6842_s3 + $0x60] sm:$0xf]  ;;  %v4949_v47 = vunpack.c.l.b16 %v4860_v44  ;;  %v2973_v0 = vld [vmem:[#allocation2 + $0x68] sm:$0x1]  ;;  %v4661_v1 = vadd.f32 %v8284_v38, %v4612_v22  ;;  %v4891_v44 = vshll.u32 %v5926_v56, 16 }
 0x353   : > { %v4872_v21 = vshrl.u32 %v5924_v19, 16  ;;  %v3509_v62 = vunpack.c.l.b16 %v2973_v0  ;;  %v3662_v51 = vrot.slane %v6529_v10, 1  ;;  %v2974_v10 = vld [vmem:[#allocation2 + $0x74] sm:$0x1] }
 0x354   : > { %5047 = vmatmul.bf16.gmra.mxu3 %v4959_v55  ;;  %v8306_v13 = vadd.f32 %v4525_v45, %v4477_v37  ;;  %v4875_v45 = vshll.u32 %v5924_v19, 16  ;;  %v4885_v55 = vshrl.u32 %v5925_v29, 16  ;;  %v4960_v15 = vpack.c.b16 %v4950_v6, %v4949_v47  ;;  %v5928_v6 = vld [vmem:[%s6842_s3 + $0x70] sm:$0xf] }
 0x355   : > { %v4874_v24 = vrot.slane %v4872_v21, 4  ;;  %v8339_v43 = vpack.c.b16 %v3509_v62, %v3509_v62 }
 0x356   : > { %4679 = vmatmul.bf16.gmra.mxu2 %v3661_v61  ;;  %v4877_v37 = vrot.slane %v4875_v45, 5  ;;  %v4887_v32 = vrot.slane %v4885_v55, 4 }
 0x357   : > { %v4528_v16 = vpop.f32.mrf.mxu3  ;;  %v3599_v47 = vshll.u32 %v8339_v43, 16 }
 0x358   : > { %v4435_v59 = vpop.f32.mrf.mxu1  ;;  %v4878_v61 = vor.u32 %v4877_v37, %v4874_v24  ;;  %v4888_v38 = vor.u32 %v4887_v32, %v4883_v18  ;;  %v3664_v24 = vsel %vm693_vm0, %v3662_v51, %v3663_v46  ;;  %v4905_v37 = vshll.u32 %v5928_v6, 16 }
 0x359   : > { %v4479_v12 = vpop.f32.mrf.mxu2  ;;  %v4436_v31 = vadd.f32 %v4435_v59, %v8152_v9  ;;  %v4565_v9 = vadd.f32 %v8093_v42, %v4516_v53  ;;  %v4909_v32 = vshrl.u32 %v5928_v6, 16  ;;  %v3601_v53 = vrot.slane %v3599_v47, 1 }
 0x35a   : > { %v4480_v26 = vadd.f32 %v4479_v12, %v4431_v5  ;;  %v5028_v14 = vpop.f32.mrf.mxu0  ;;  %v3590_v5 = vsel %vm532_vm1, %v3585_v54, %v3589_v7  ;;  %v4879_v3 = vrot.slane %v4878_v61, 4  ;;  %v4889_v63 = vrot.slane %v4888_v38, 4 }
 0x35b   : > { %v5029_v35 = vadd.f32 %v8323_v33, %v5028_v14  ;;  %4635 = vmatmul.bf16.gmra.mxu1 %v3590_v5  ;;  %v4893_v54 = vrot.slane %v4891_v44, 5  ;;  %v4899_v14 = vshll.u32 %v5927_v49, 16  ;;  %v4907_v61 = vrot.slane %v4905_v37, 5 }
 0x35c   : > { %v8334_v30 = vadd.f32 %v4528_v16, %v4480_v26  ;;  %v4614_v16 = vadd.f32 %v8271_v2, %v4565_v9  ;;  %v4884_v26 = vsel %vm8112_vm2, %v4879_v3, %v4883_v18  ;;  %v4911_v38 = vrot.slane %v4909_v32, 4 }
 0x35d   : > { %v5068_v19 = vadd.f32 %v5029_v35, %v4661_v1  ;;  %v4951_v5 = vunpack.c.l.b16 %v4884_v26  ;;  %v3602_v9 = vsel %vm532_vm1, %v8188_v25, %v3601_v53  ;;  %v3510_v46 = vunpack.c.l.b16 %v2974_v10 }
 0x35e   : > { %v4663_v2 = vadd.f32 %v8299_v27, %v4614_v16  ;;  %v4896_v27 = vshrl.u32 %v5927_v49, 16 }
 0x35f   : > { %v4530_v29 = vpop.f32.mrf.mxu3  ;;  %v5084_v21 = vmax.f32 %v5068_v19, 0.0  ;;  %v6333_v19 = vld [vmem:[#allocation2 + $0x60] sm:$0xf0]  ;;  %v3518_v25 = vpack.c.b16 %v3510_v46, %v3510_v46 }
 0x360   : > { %v4437_v55 = vpop.f32.mrf.mxu1 }
 0x361   : > { %5100 = vst [vmem:[%s8342_s22] sm:$0xff] %v5084_v21  ;;  %v4481_v45 = vpop.f32.mrf.mxu2  ;;  %v4438_v7 = vadd.f32 %v4437_v55, %v8159_v11  ;;  %v4894_v11 = vsel %vm8112_vm2, %v4889_v63, %v4893_v54  ;;  %v5929_v21 = vld [vmem:[%s6842_s3 + $0x74] sm:$0x1]  ;;  %v4912_v55 = vor.u32 %v4911_v38, %v4907_v61  ;;  %v3666_v63 = vrot.slane %v8339_v43, 1  ;;  %s6122_s3 = sshll.u32 %s6645_s27, 4 }
 0x362   : > { %v4482_v48 = vadd.f32 %v4481_v45, %v8303_v40  ;;  %v5030_v42 = vpop.f32.mrf.mxu0  ;;  %v4952_v62 = vunpack.c.l.b16 %v4894_v11  ;;  %v3611_v43 = vshll.u32 %v3518_v25, 16  ;;  %s5129_s11 = sadd.s32 %s6122_s3, %s5965_s13  ;;  %s6583_s13 = scalar_lea.hbm %s8506_s7, 512 }
 0x363   : > { %v5031_v22 = vadd.f32 %v8323_v33, %v5030_v42  ;;  %v4915_v42 = vshll.u32 %v5929_v21, 16  ;;  %v4913_v6 = vrot.slane %v4912_v55, 4  ;;  %s5966_s20 = sshll.u32 %s5129_s11, 3 }
 0x364   : > { %5052 = vmatmul.bf16.gmra.mxu3 %v4960_v15  ;;  %v8350_v12 = vadd.f32 %v4530_v29, %v4482_v48  ;;  %v4898_v29 = vrot.slane %v4896_v27, 4  ;;  %v4901_v15 = vrot.slane %v4899_v14, 5  ;;  %v4961_v45 = vpack.c.b16 %v4952_v62, %v4951_v5  ;;  %v6531_v14 = vld [vmem:[#allocation2 + $0x6c] sm:$0xe]  ;;  %s5131_s23 = scalar_lea.hbm %s8506_s7, %s5966_s20 }
 0x365   : > { %v5069_v40 = vadd.f32 %v5031_v22, %v4663_v2  ;;  %v3604_v27 = vshrl.u32 %v8037_v58, 16  ;;  %s5134_s17 = sshll.u32 %s5131_s23, 4  ;;  %s5135_s17 = int_to_ptr.hbm [resolvable:$true] %s5134_s17 }
 0x366   : > { %4684 = vmatmul.bf16.gmra.mxu2 %v3664_v24  ;;  %v4902_v48 = vor.u32 %v4901_v15, %v4898_v29  ;;  %v6532_v29 = vor.u32 %v6531_v14, %v8039_v34  ;;  %v4570_v14 = vadd.f32 %v8117_v23, %v8274_v20  ;;  %s6577_s9 = sshra.s32 %s5135_s17, 4  ;;  %s6578_s9 = int_to_ptr.hbm [resolvable:$true] %s6577_s9 }
 0x367   : > { %v4533_v0 = vpop.f32.mrf.mxu3  ;;  %v5085_v59 = vmax.f32 %v5069_v40, 0.0  ;;  %v4917_v40 = vrot.slane %v4915_v42, 5  ;;  %s6579_s21 = scalar_lea.hbm %s6578_s9, 128  ;;  %p6584_p6 = scmp.lt.s32.totalorder %s6578_s9, %s8506_s7 }
 0x368   : > { %v4440_v56 = vpop.f32.mrf.mxu1  ;;  %v4903_v49 = vrot.slane %v4902_v48, 4  ;;  %v3668_v15 = vrot.slane %v6532_v29, 1  ;;  %p6580_p2 = scmp.ne.s32.totalorder %s6578_s9, %s6579_s21  ;;  %p6585_p7 = scmp.lt.s32.totalorder %s6583_s13, %s6579_s21 }
 0x369   : > { %5101 = vst [vmem:[%s8342_s22 + $0x8] sm:$0xff] %v5085_v59  ;;  %v4484_v1 = vpop.f32.mrf.mxu2  ;;  %v4441_v18 = vadd.f32 %v4440_v56, %v8166_v41  ;;  %v3606_v41 = vshll.u32 %v8037_v58, 16  ;;  %v4918_v59 = vsel %vm8112_vm2, %v4913_v6, %v4917_v40 }
 0x36a   : > { %v4485_v35 = vadd.f32 %v4484_v1, %v4436_v31  ;;  %v6334_v31 = vld [vmem:[#allocation2 + $0x60] sm:$0xe]  ;;  %v3613_v1 = vrot.slane %v3611_v43, 1  ;;  %v4954_v56 = vunpack.c.l.b16 %v4918_v59  ;;  %p6581_p4 = pnand %p6580_p2, %p6760_p3  ;;  %p6586_p9 = por %p6585_p7, %p6584_p6 }
 0x36b   : > { %4640 = vmatmul.bf16.gmra.mxu1 %v3602_v9  ;;  %v6335_v51 = vor.u32 %v6334_v31, %v6333_v19  ;;  %v3608_v24 = vrot.slane %v3606_v41, 1 }
 0x36c   : > { %v8362_v44 = vadd.f32 %v4533_v0, %v4485_v35  ;;  %p6582_p5 = pneg %p6581_p4 }
 0x36d   : > { %v3665_v22 = vrot.slane %v6335_v51, 1 }
 0x36e   : > { %p6587_p10 = pnand %p6586_p9, %p6582_p5 }
 0x36f   : > { %v4535_v16 = vpop.f32.mrf.mxu3  ;;  %v3667_v11 = vsel %vm693_vm0, %v3665_v22, %v3666_v63 }
 0x370   : > { %v4442_v2 = vpop.f32.mrf.mxu1 }
 0x371   : > { %v4486_v3 = vpop.f32.mrf.mxu2  ;;  %v4443_v47 = vadd.f32 %v4442_v2, %v8174_v28  ;;  %v3609_v28 = vor.u32 %v3608_v24, %v3604_v27 }
 0x372   : > { %v4487_v54 = vadd.f32 %v4486_v3, %v4438_v7  ;;  %v4908_v7 = vsel %vm8112_vm2, %v4903_v49, %v4907_v61  ;;  %v3669_v61 = vrot.slane %v3518_v25, 1 }
 0x373   : > { %v4953_v35 = vunpack.c.l.b16 %v4908_v7  ;;  %v3614_v58 = vsel %vm532_vm1, %v3609_v28, %v3613_v1 }
 0x374   : > { %5057 = vmatmul.bf16.gmra.mxu3 %v4961_v45  ;;  %v8370_v0 = vadd.f32 %v4535_v16, %v4487_v54  ;;  %v3670_v16 = vsel %vm693_vm0, %v3668_v15, %v3669_v61  ;;  %v8558_v61 = vld [vmem:[#allocation11_spill] sm:$0xff] }
 0x375   : > { %v4962_v60 = vpack.c.b16 %v4954_v56, %v4953_v35 }
 0x376   : > { %4689 = vmatmul.bf16.gmra.mxu2 %v3667_v11 }
 0x377   : > { %v4538_v26 = vpop.f32.mrf.mxu3 }
 0x378   : > { %v4445_v53 = vpop.f32.mrf.mxu1 }
 0x379   : > { %v4489_v37 = vpop.f32.mrf.mxu2  ;;  %v4446_v5 = vadd.f32 %v4445_v53, %v8186_v36 }
 0x37a   : > { %v4490_v32 = vadd.f32 %v4489_v37, %v4441_v18 }
 0x37b   : > { %4645 = vmatmul.bf16.gmra.mxu1 %v3614_v58 }
 0x37c   : > { %v8379_v62 = vadd.f32 %v4538_v26, %v4490_v32  ;;  %v4568_v26 = vadd.f32 %v8103_v39, %v8263_v57 }
 0x37f   : > { %v4540_v19 = vpop.f32.mrf.mxu3 }
 0x380   : > { %v4447_v18 = vpop.f32.mrf.mxu1 }
 0x381   : > { %v4491_v10 = vpop.f32.mrf.mxu2  ;;  %v4448_v9 = vadd.f32 %v4447_v18, %v8205_v50 }
 0x382   : > { %v4492_v38 = vadd.f32 %v4491_v10, %v4443_v47 }
 0x384   : > { %5062 = vmatmul.bf16.gmra.mxu3 %v4962_v60  ;;  %v8384_v21 = vadd.f32 %v4540_v19, %v4492_v38  ;;  %v4575_v38 = vadd.f32 %v8558_v61, %v8306_v13 }
 0x386   : > { %4694 = vmatmul.bf16.gmra.mxu2 %v3670_v16 }
 0x387   : > { %v4543_v36 = vpop.f32.mrf.mxu3 }
 0x388   : > { %v4450_v51 = vpop.f32.mrf.mxu1 }
 0x389   : > { %v4494_v31 = vpop.f32.mrf.mxu2  ;;  %v4451_v34 = vadd.f32 %v4450_v51, %v8218_v4  ;;  %v8559_v51 = vld [vmem:[#allocation12_spill] sm:$0xff] }
 0x38a   : > { %v4495_v45 = vadd.f32 %v4494_v31, %v4446_v5  ;;  %v4573_v5 = vadd.f32 %v8130_v8, %v8288_v52 }
 0x38c   : > { %v8388_v46 = vadd.f32 %v4543_v36, %v4495_v45 }
 0x38f   : > { %v4545_v48 = vpop.f32.mrf.mxu3 }
 0x390   : > { %v4452_v41 = vpop.f32.mrf.mxu1 }
 0x391   : > { %v4496_v55 = vpop.f32.mrf.mxu2  ;;  %v4453_v3 = vadd.f32 %v4452_v41, %v8234_v17 }
 0x392   : > { %v4497_v42 = vadd.f32 %v4496_v55, %v4448_v9 }
 0x394   : > { %v8391_v50 = vadd.f32 %v4545_v48, %v4497_v42 }
 0x397   : > { %v4548_v63 = vpop.f32.mrf.mxu3 }
 0x398   : > { %v4616_v22 = vpop.f32.mrf.mxu1 }
 0x399   : > { %v4499_v54 = vpop.f32.mrf.mxu2  ;;  %v4617_v17 = vadd.f32 %v4616_v22, %v4568_v26 }
 0x39a   : > { %v4500_v2 = vadd.f32 %v4499_v54, %v4451_v34  ;;  %v4578_v34 = vadd.f32 %v8559_v51, %v8334_v30 }
 0x39c   : > { %v8393_v25 = vadd.f32 %v4548_v63, %v4500_v2  ;;  %v8560_v2 = vld [vmem:[#allocation13_spill] sm:$0xff] }
 0x39d   : > { %v4580_v22 = vadd.f32 %v8560_v2, %v8350_v12  ;;  %v8566_v2 = vld [vmem:[#allocation19_spill] sm:$0xff] }
 0x39f   : > { %v4550_v47 = vpop.f32.mrf.mxu3 }
 0x3a0   : > { %v4618_v6 = vpop.f32.mrf.mxu1 }
 0x3a1   : > { %v4501_v49 = vpop.f32.mrf.mxu2  ;;  %v4619_v32 = vadd.f32 %v4618_v6, %v4570_v14 }
 0x3a2   : > { %v4502_v4 = vadd.f32 %v4501_v49, %v4453_v3 }
 0x3a4   : > { %v8395_v40 = vadd.f32 %v4550_v47, %v4502_v4 }
 0x3a7   : > { %v5033_v24 = vpop.f32.mrf.mxu3 }
 0x3a8   : > { %v5034_v11 = vadd.f32 %v8323_v33, %v5033_v24  ;;  %v4621_v7 = vpop.f32.mrf.mxu1 }
 0x3a9   : > { %v4665_v27 = vpop.f32.mrf.mxu2  ;;  %v4622_v19 = vadd.f32 %v4621_v7, %v4573_v5 }
 0x3aa   : > { %v4666_v43 = vadd.f32 %v4665_v27, %v4617_v17 }
 0x3ac   : > { %v5070_v59 = vadd.f32 %v5034_v11, %v4666_v43  ;;  %v8561_v11 = vld [vmem:[#allocation14_spill] sm:$0xff] }
 0x3ad   : > { %v4583_v27 = vadd.f32 %v8561_v11, %v8362_v44 }
 0x3ae   : > { %v5086_v37 = vmax.f32 %v5070_v59, 0.0 }
 0x3af   : > { %v5035_v28 = vpop.f32.mrf.mxu3 }
 0x3b0   : > { %5102 = vst [vmem:[%s8342_s22 + $0x10] sm:$0xff] %v5086_v37  ;;  %v5036_v1 = vadd.f32 %v8323_v33, %v5035_v28  ;;  %v4623_v39 = vpop.f32.mrf.mxu1 }
 0x3b1   : > { %v4667_v53 = vpop.f32.mrf.mxu2  ;;  %v4624_v9 = vadd.f32 %v4623_v39, %v4575_v38 }
 0x3b2   : > { %v4668_v35 = vadd.f32 %v4667_v53, %v4619_v32  ;;  %v8562_v53 = vld [vmem:[#allocation15_spill] sm:$0xff] }
 0x3b4   : > { %v5071_v57 = vadd.f32 %v5036_v1, %v4668_v35  ;;  %v4585_v1 = vadd.f32 %v8562_v53, %v8370_v0 }
 0x3b6   : > { %v5087_v58 = vmax.f32 %v5071_v57, 0.0 }
 0x3b7   : > { %v5038_v56 = vpop.f32.mrf.mxu3 }
 0x3b8   : > { %5103 = vst [vmem:[%s8342_s22 + $0x18] sm:$0xff] %v5087_v58  ;;  %v5039_v29 = vadd.f32 %v8323_v33, %v5038_v56  ;;  %v4626_v60 = vpop.f32.mrf.mxu1 }
 0x3b9   : > { %v4670_v23 = vpop.f32.mrf.mxu2  ;;  %v4627_v55 = vadd.f32 %v4626_v60, %v4578_v34  ;;  %v8565_v34 = vld [vmem:[#allocation18_spill] sm:$0xff] }
 0x3ba   : > { %v4671_v20 = vadd.f32 %v4670_v23, %v4622_v19 }
 0x3bc   : > { %v5072_v10 = vadd.f32 %v5039_v29, %v4671_v20  ;;  %v8563_v29 = vld [vmem:[#allocation16_spill] sm:$0xff] }
 0x3bd   : > { %v4588_v23 = vadd.f32 %v8563_v29, %v8379_v62 }
 0x3be   : > { %v5088_v18 = vmax.f32 %v5072_v10, 0.0 }
 0x3bf   : > { %v5040_v15 = vpop.f32.mrf.mxu3 }
 0x3c0   : > { %5104 = vst [vmem:[%s8342_s22 + $0x20] sm:$0xff] %v5088_v18  ;;  %v5041_v8 = vadd.f32 %v8323_v33, %v5040_v15  ;;  %v4628_v16 = vpop.f32.mrf.mxu1  ;;  %v8564_v18 = vld [vmem:[#allocation17_spill] sm:$0xff] }
 0x3c1   : > { %v4672_v36 = vpop.f32.mrf.mxu2  ;;  %v4629_v49 = vadd.f32 %v4628_v16, %v4580_v22  ;;  %v4595_v22 = vadd.f32 %v8566_v2, %v8391_v50 }
 0x3c2   : > { %v4673_v52 = vadd.f32 %v4672_v36, %v4624_v9  ;;  %v4590_v9 = vadd.f32 %v8564_v18, %v8384_v21 }
 0x3c4   : > { %v5073_v31 = vadd.f32 %v5041_v8, %v4673_v52 }
 0x3c6   : > { %v5089_v48 = vmax.f32 %v5073_v31, 0.0 }
 0x3c7   : > { %v5043_v45 = vpop.f32.mrf.mxu3 }
 0x3c8   : > { %5105 = vst [vmem:[%s8342_s22 + $0x28] sm:$0xff] %v5089_v48  ;;  %v5044_v42 = vadd.f32 %v8323_v33, %v5043_v45  ;;  %v4631_v3 = vpop.f32.mrf.mxu1  ;;  %v4593_v48 = vadd.f32 %v8565_v34, %v8388_v46 }
 0x3c9   : > { %v4675_v13 = vpop.f32.mrf.mxu2  ;;  %v4632_v7 = vadd.f32 %v4631_v3, %v4583_v27 }
 0x3ca   : > { %v4676_v41 = vadd.f32 %v4675_v13, %v4627_v55 }
 0x3cc   : > { %v5074_v63 = vadd.f32 %v5044_v42, %v4676_v41 }
 0x3ce   : > { %v5090_v47 = vmax.f32 %v5074_v63, 0.0 }
 0x3cf   : > { %v5045_v54 = vpop.f32.mrf.mxu3 }
 0x3d0   : > { %5106 = vst [vmem:[%s8342_s22 + $0x30] sm:$0xff] %v5090_v47  ;;  %v5046_v30 = vadd.f32 %v8323_v33, %v5045_v54  ;;  %v4633_v24 = vpop.f32.mrf.mxu1 }
 0x3d1   : > { %v4677_v4 = vpop.f32.mrf.mxu2  ;;  %v4634_v39 = vadd.f32 %v4633_v24, %v4585_v1 }
 0x3d2   : > { %v4678_v6 = vadd.f32 %v4677_v4, %v4629_v49 }
 0x3d4   : > { %v5075_v26 = vadd.f32 %v5046_v30, %v4678_v6 }
 0x3d6   : > { %v5091_v43 = vmax.f32 %v5075_v26, 0.0 }
 0x3d7   : > { %v5048_v17 = vpop.f32.mrf.mxu3 }
 0x3d8   : > { %5107 = vst [vmem:[%s8342_s22 + $0x38] sm:$0xff] %v5091_v43  ;;  %v5049_v59 = vadd.f32 %v8323_v33, %v5048_v17  ;;  %v4636_v14 = vpop.f32.mrf.mxu1  ;;  %v8567_v17 = vld [vmem:[#allocation20_spill] sm:$0xff] }
 0x3d9   : > { %v4680_v12 = vpop.f32.mrf.mxu2  ;;  %v4637_v60 = vadd.f32 %v4636_v14, %v4588_v23  ;;  %v4598_v11 = vadd.f32 %v8567_v17, %v8393_v25  ;;  %v8568_v14 = vld [vmem:[#allocation21_spill] sm:$0xff] }
 0x3da   : > { %v4681_v28 = vadd.f32 %v4680_v12, %v4632_v7 }
 0x3dc   : > { %v5076_v37 = vadd.f32 %v5049_v59, %v4681_v28 }
 0x3de   : > { %v5092_v35 = vmax.f32 %v5076_v37, 0.0  ;;  %v4600_v37 = vadd.f32 %v8568_v14, %v8395_v40 }
 0x3df   : > { %v5050_v32 = vpop.f32.mrf.mxu3 }
 0x3e0   : > { %5108 = vst [vmem:[%s8342_s22 + $0x40] sm:$0xff] %v5092_v35  ;;  %v5051_v44 = vadd.f32 %v8323_v33, %v5050_v32  ;;  %v4638_v58 = vpop.f32.mrf.mxu1 }
 0x3e1   : > { %v4682_v57 = vpop.f32.mrf.mxu2  ;;  %v4639_v52 = vadd.f32 %v4638_v58, %v4590_v9 }
 0x3e2   : > { %v4683_v56 = vadd.f32 %v4682_v57, %v4634_v39 }
 0x3e4   : > { %v5077_v5 = vadd.f32 %v5051_v44, %v4683_v56 }
 0x3e6   : > { %v5093_v20 = vmax.f32 %v5077_v5, 0.0 }
 0x3e7   : > { %v5053_v19 = vpop.f32.mrf.mxu3 }
 0x3e8   : > { %5109 = vst [vmem:[%s8342_s22 + $0x48] sm:$0xff] %v5093_v20  ;;  %v5054_v10 = vadd.f32 %v8323_v33, %v5053_v19  ;;  %v4641_v8 = vpop.f32.mrf.mxu1 }
 0x3e9   : > { %v4685_v0 = vpop.f32.mrf.mxu2  ;;  %v4642_v42 = vadd.f32 %v4641_v8, %v4593_v48 }
 0x3ea   : > { %v4686_v15 = vadd.f32 %v4685_v0, %v4637_v60 }
 0x3ec   : > { %v5078_v61 = vadd.f32 %v5054_v10, %v4686_v15 }
 0x3ee   : > { %v5094_v36 = vmax.f32 %v5078_v61, 0.0 }
 0x3ef   : > { %v5055_v38 = vpop.f32.mrf.mxu3 }
 0x3f0   : > { %5110 = vst [vmem:[%s8342_s22 + $0x50] sm:$0xff] %v5094_v36  ;;  %v5056_v62 = vadd.f32 %v8323_v33, %v5055_v38  ;;  %v4643_v21 = vpop.f32.mrf.mxu1 }
 0x3f1   : > { %v4687_v16 = vpop.f32.mrf.mxu2  ;;  %v4644_v49 = vadd.f32 %v4643_v21, %v4595_v22 }
 0x3f2   : > { %v4688_v31 = vadd.f32 %v4687_v16, %v4639_v52 }
 0x3f4   : > { %v5079_v45 = vadd.f32 %v5056_v62, %v4688_v31 }
 0x3f6   : > { %v5095_v55 = vmax.f32 %v5079_v45, 0.0 }
 0x3f7   : > { %v5058_v51 = vpop.f32.mrf.mxu3 }
 0x3f8   : > { %5111 = vst [vmem:[%s8342_s22 + $0x58] sm:$0xff] %v5095_v55  ;;  %v5059_v13 = vadd.f32 %v8323_v33, %v5058_v51  ;;  %v4646_v6 = vpop.f32.mrf.mxu1 }
 0x3f9   : > { %v4690_v41 = vpop.f32.mrf.mxu2  ;;  %v4647_v43 = vadd.f32 %v4646_v6, %v4598_v11 }
 0x3fa   : > { %v4691_v3 = vadd.f32 %v4690_v41, %v4642_v42 }
 0x3fc   : > { %v5080_v63 = vadd.f32 %v5059_v13, %v4691_v3 }
 0x3fe   : > { %v5096_v47 = vmax.f32 %v5080_v63, 0.0 }
 0x3ff   : > { %v5060_v54 = vpop.f32.mrf.mxu3 }
 0x400   : > { %5112 = vst [vmem:[%s8342_s22 + $0x60] sm:$0xff] %v5096_v47  ;;  %v5061_v4 = vadd.f32 %v8323_v33, %v5060_v54  ;;  %v4648_v28 = vpop.f32.mrf.mxu1 }
 0x401   : > { %v4692_v46 = vpop.f32.mrf.mxu2  ;;  %v4649_v53 = vadd.f32 %v4648_v28, %v4600_v37 }
 0x402   : > { %v4693_v30 = vadd.f32 %v4692_v46, %v4644_v49 }
 0x404   : > { %v5081_v24 = vadd.f32 %v5061_v4, %v4693_v30 }
 0x406   : > { %v5097_v27 = vmax.f32 %v5081_v24, 0.0 }
 0x407   : > { %v5063_v26 = vpop.f32.mrf.mxu3 }
 0x408   : > { %5113 = vst [vmem:[%s8342_s22 + $0x68] sm:$0xff] %v5097_v27  ;;  %v5064_v50 = vadd.f32 %v8323_v33, %v5063_v26 }
 0x409   : > { %v4695_v7 = vpop.f32.mrf.mxu2 }
 0x40a   : > { %v4696_v59 = vadd.f32 %v4695_v7, %v4647_v43 }
 0x40c   : > { %v5082_v12 = vadd.f32 %v5064_v50, %v4696_v59 }
 0x40e   : > { %v5098_v25 = vmax.f32 %v5082_v12, 0.0 }
 0x40f   : > { %v5065_v32 = vpop.f32.mrf.mxu3 }
 0x410   : > { %5114 = vst [vmem:[%s8342_s22 + $0x70] sm:$0xff] %v5098_v25  ;;  %v5066_v35 = vadd.f32 %v8323_v33, %v5065_v32 }
 0x411   : > { %v4697_v1 = vpop.f32.mrf.mxu2 }
 0x412   : > { %v4698_v39 = vadd.f32 %v4697_v1, %v4649_v53 }
 0x414   : > { %v5083_v57 = vadd.f32 %v5066_v35, %v4698_v39 }
 0x416   : > { %v5099_v44 = vmax.f32 %v5083_v57, 0.0 }
 0x418   : > { %5115 = vst [vmem:[%s8342_s22 + $0x78] sm:$0xff] %v5099_v44 }
 0x419   : > { %6590 = shalt.err (!%p6587_p10)
}
 0x41a   : > { %s6666_s12 = smov 128   ;;  %s6667_s22 = smov 8  }
 0x41b   : > { %6365 = dma.vmem_to_hbm [thread:$0]  (%p6760_p3), %s5133_s19, 2048, %s5135_s17, %s5117_s18, %s6666_s12, %s6666_s12, %s6667_s22  }
 0x41c PF: > { %p6377_p11 = scmp.ge.s32.totalorder %s6661_s8, 2  ;;  %s5149_s27 = sand.u32 1, %s6633_s24  }
 0x41d   : > { %s5150_s28 = scalar_lea.sflag [#allocation5], %s5149_s27 }
 0x41e   : > { %p6372_p12 = pnand %p6377_p11, %p6769_p8 }
 0x420   : > { %p6373_p13 = pneg %p6372_p12 }
 0x422   : > { %6628 = dma.done.wait (%p6373_p13), %s5150_s28, 2048  }
 0x423   : > { %6630 = vsyncadd (%p6373_p13), %s5150_s28, 4294965248  ;;  %s21_s8 = sadd.s32 1, %s6661_s8   ;;  %s8569_s15 = sld [smem:[#allocation9_spill]] }
 0x424   : > { %p18_p0 = scmp.ge.s32.totalorder %s21_s8, 6   ;;  %s8570_s23 = sld [smem:[#allocation10_spill]] }
 0x425   : > { %s8571_s24 = smov %s6637_s25  ;;  %s8572_s25 = smov %s6641_s26 }
 0x426   : > { %s8573_s26 = smov %s6790_s10  ;;  %s8574_s27 = smov %s6653_s29 }
 0x427   : > { %s8575_s28 = smov %s6657_s30  ;;  %20 = sbr.rel (!%p18_p0) target bundleno = 8 (0x8), region = 93 }
 0x429   : > { %s8576_s29 = smov %s8569_s15 }
 0x42a   : > { %s8577_s30 = smov %s8570_s23 }
 0x42c   :  { %5156 = vsyncpa [#allocation4], 1 }
 0x42d   :  { %5158 = vsyncpa [#allocation4 + $0x1], 1 }
 0x42e   :  { %5159 = vsyncpa [#allocation5], 1 }
 0x42f   :  { %5161 = vsyncpa [#allocation5 + $0x1], 1 }

// kernel: tpu_custom_call.1
= control target key start
LH: loop header
LB: loop body
LE: loop exit
PB: predicated region body
PF: predicated region fallthrough
CT: control target
= control target key end

     0   :  { %s8499_s0 = inlined_call_operand.vmem [shape: bf16[2,20,18,128], index: 0, kind: input, shape index: {}]   ;;  %s8500_s1 = inlined_call_operand.vmem [shape: bf16[1152,128], index: 1, kind: input, shape index: {}]   ;;  %s8501_s2 = inlined_call_operand.vmem [shape: f32[1,128], index: 2, kind: input, shape index: {}]   ;;  %s8502_s3 = inlined_call_operand.hbm [shape: bf16[1152,128], index: 3, kind: input, shape index: {}]   ;;  %s8503_s4 = inlined_call_operand.vmem [shape: f32[1,128], index: 4, kind: input, shape index: {}]   ;;  %s8504_s5 = inlined_call_operand.vmem [shape: bf16[128,128], index: 5, kind: input, shape index: {}]   ;;  %s8505_s6 = inlined_call_operand.vmem [shape: f32[1,128], index: 6, kind: input, shape index: {}]   ;;  %s8506_s7 = inlined_call_operand.hbm [shape: f32[2,16,16,128], index: 7, kind: output, shape index: {}]  }
   0x1   :  { %8509 = sst [smem:[#allocation22_spill]] %s8502_s3 }
   0x2   :  { %12 = vsyncpa [#allocation4], 0 }
   0x3   :  { %13 = vsyncpa [#allocation5], 0 }
   0x4   :  { %15 = vsyncpa [#allocation5 + $0x1], 0  ;;  %s6708_s24 = smov 0   ;;  %s6710_s25 = smov 0  }
   0x5   :  { %s6712_s26 = smov 0   ;;  %s6714_s27 = smov 0  }
   0x6   :  { %s6716_s28 = smov 0   ;;  %s6718_s29 = smov 0  }
   0x7   :  { %s6720_s30 = smov 0   ;;  %s6722_s8 = smov 0  }
   0x8 LB: > { %s5233_s9 = sadd.s32 4294967295, %s6661_s8   ;;  %s5234_s10 = sadd.s32 4294967294, %s6661_s8   ;;  %s6661_s8 = sphi %s6722_s8, %s21_s8   ;;  %s6657_s30 = sphi %s6720_s30, %s8577_s30   ;;  %s6653_s29 = sphi %s6718_s29, %s8576_s29   ;;  %s6649_s28 = sphi %s6716_s28, %s8575_s28   ;;  %s6645_s27 = sphi %s6714_s27, %s8574_s27   ;;  %s6641_s26 = sphi %s6712_s26, %s8573_s26   ;;  %s6637_s25 = sphi %s6710_s25, %s8572_s25   ;;  %s6633_s24 = sphi %s6708_s24, %s8571_s24  }
   0x9   : > { %s30_s11 = sadd.s32 1, %s6653_s29  ;;  %s33_s12 = sadd.s32 1, %s6657_s30 }
   0xa   : > { %p31_p0 = scmp.ge.s32.totalorder %s30_s11, 2  ;;  %s194_s13 = sadd.s32 1, %s6641_s26 }
   0xb   : > { %p204_p1 = scmp.ne.s32.totalorder %s6641_s26, %s6637_s25  ;;  %p205_p2 = scmp.eq.s32.totalorder %s5233_s9, 3 }
   0xc   : > { %s8579_s11 = smov (%p31_p0, %s30_s11), 0  ;;  %s8581_s12 = smov (!%p31_p0, %s33_s12), %s6657_s30 }
   0xd   : > { %8510 = sst [smem:[#allocation9_spill]] %s8579_s11  ;;  %s190_s14 = ssub.s32 %s6653_s29, %s8579_s11 }
   0xe   : > { %p6760_p3 = por %p205_p2, %p204_p1  ;;  %p35_p4 = scmp.ge.s32.totalorder %s8581_s12, 2 }
   0xf   : > { %p210_p5 = scmp.ne.s32.totalorder %s6637_s25, %s6633_s24  ;;  %p211_p6 = scmp.eq.s32.totalorder %s5234_s10, 3 }
  0x10   : > { %p5235_p7 = scmp.ge.s32.totalorder %s6661_s8, 1  ;;  %s8583_s12 = smov (%p35_p4, %s8581_s12), 0 }
  0x11   : > { %8512 = sst [smem:[#allocation10_spill]] %s8583_s12  ;;  %p6769_p8 = por %p211_p6, %p210_p5 }
  0x12   : > { %p218_p9 = scmp.lt.s32.totalorder %s6661_s8, 5  ;;  %s189_s17 = ssub.s32 %s6657_s30, %s8583_s12 }
  0x13   : > { %s191_s18 = sor.u32 %s190_s14, %s189_s17  ;;  %p6780_p12 = scmp.eq.s32.totalorder %s5233_s9, 0 }
  0x14   : > { %p6776_p10 = pnand %p5235_p7, %p218_p9  ;;  %p192_p11 = scmp.eq.s32.totalorder %s191_s18, 0 }
  0x15   : > { %s8516_s3 = sld [smem:[#allocation22_spill]]  ;;  %s6663_s14 = smov [#allocation3]  }
  0x16   : > { %p6367_p13 = pneg %p6776_p10  ;;  %s237_s17 = sshll.u32 %s6663_s14, 4  ;;  %s238_s17 = int_to_ptr.vmem [resolvable:$true] %s237_s17 }
  0x17   : > { %s6790_s10 = scalar_select %p192_p11, %s6641_s26, %s194_s13  }
  0x18   : > { %p6368_p0 = pnand %p6780_p12, %p6367_p13  ;;  %s6664_s18 = smov 64  }
  0x19   : > { %s6665_s9 = smov 4   ;;  %270 = sbr.rel (%p6776_p10) target bundleno = 1052 (0x41c), region = 48 }
  0x1b   : > { %s235_s23 = sshll.u32 %s8516_s3, 4  ;;  %s236_s23 = int_to_ptr.hbm [resolvable:$true] %s235_s23 }
  0x1c   : > { %6370 = dma.hbm_to_vmem [thread:$0]  (!%p6368_p0), %s236_s23, 9216, %s238_s17, [#allocation4], %s6664_s18, %s6664_s18, %s6665_s9  }
  0x1e   : > { %6624 = dma.done.wait (%p6780_p12), [#allocation4], 9216  }
  0x1f   : > { %6626 = vsyncadd (%p6780_p12), [#allocation4], 4294958080  ;;  %p303_p1 = scmp.lt.s32.totalorder %s6649_s28, 1  ;;  %v5977_v0 = vld [vmem:[%s8500_s1 + $0x38] sm:$0xff]  ;;  %v5976_v4 = vld [vmem:[%s8500_s1 + $0x30] sm:$0xff]  ;;  %s5969_s20 = smul.u32 96, %s6645_s27 }
  0x20   : > { %v5993_v1 = vld [vmem:[%s8500_s1 + $0xb8] sm:$0xff]  ;;  %1894 = vmatpush.bf16.msra.mxu0 %v5977_v0  ;;  %v5992_v5 = vld [vmem:[%s8500_s1 + $0xb0] sm:$0xff]  ;;  %v5975_v8 = vld [vmem:[%s8500_s1 + $0x28] sm:$0xff]  ;;  %vm693_vm0 = vcmask 1046528   ;;  %vm532_vm1 = vsmask.f32 7424 }
  0x21   : > { %s304_s13 = scalar_select %p303_p1, %s6649_s28, 1  ;;  %v5985_v2 = vld [vmem:[%s8500_s1 + $0x78] sm:$0xff]  ;;  %2012 = vmatpush.bf16.msra.mxu2 %v5993_v1  ;;  %v5984_v6 = vld [vmem:[%s8500_s1 + $0x70] sm:$0xff]  ;;  %v5991_v9 = vld [vmem:[%s8500_s1 + $0xa8] sm:$0xff]  ;;  %vm2526_vm2 = vcmask 1040384   ;;  %vm2813_vm10 = vcmask 1043456  }
  0x22   : > { %v6001_v3 = vld [vmem:[%s8500_s1 + $0xf8] sm:$0xff]  ;;  %1953 = vmatpush.bf16.msra.mxu1 %v5985_v2  ;;  %v6000_v7 = vld [vmem:[%s8500_s1 + $0xf0] sm:$0xff]  ;;  %v5983_v10 = vld [vmem:[%s8500_s1 + $0x68] sm:$0xff]  ;;  %vm2527_vm3 = vsmask.f32 256  ;;  %s5242_s12 = sshll.u32 %s6645_s27, 3 }
  0x23   : > { %s6360_s14 = smul.u32 240, %s304_s13  ;;  %2071 = vmatpush.bf16.msra.mxu3 %v6001_v3  ;;  %v5999_v11 = vld [vmem:[%s8500_s1 + $0xe8] sm:$0xff]  ;;  %v5974_v12 = vld [vmem:[%s8500_s1 + $0x20] sm:$0xff]  ;;  %v5973_v17 = vld [vmem:[%s8500_s1 + $0x18] sm:$0xff]  ;;  %vm2559_vm5 = vsmask.f32 7938 }
  0x24   : > { %1895 = vmatpush.bf16.msra.mxu0 %v5976_v4  ;;  %v5990_v13 = vld [vmem:[%s8500_s1 + $0xa0] sm:$0xff]  ;;  %v5989_v18 = vld [vmem:[%s8500_s1 + $0x98] sm:$0xff]  ;;  %v5972_v23 = vld [vmem:[%s8500_s1 + $0x10] sm:$0xff]  ;;  %vm2611_vm14 = vsmask.f32 4368  ;;  %s5965_s13 = sshll.u32 %s6649_s28, 5 }
  0x25   : > { %2013 = vmatpush.bf16.msra.mxu2 %v5992_v5  ;;  %s307_s23 = scalar_lea.vmem %s8499_s0, %s6360_s14  ;;  %v5982_v14 = vld [vmem:[%s8500_s1 + $0x60] sm:$0xff]  ;;  %v5981_v19 = vld [vmem:[%s8500_s1 + $0x58] sm:$0xff]  ;;  %v5988_v24 = vld [vmem:[%s8500_s1 + $0x90] sm:$0xff]  ;;  %s5617_s14 = sadd.s32 4294967295, %s5242_s12 }
  0x26   : > { %1954 = vmatpush.bf16.msra.mxu1 %v5984_v6  ;;  %s6842_s3 = scalar_lea.vmem %s307_s23, %s5969_s20  ;;  %v5998_v15 = vld [vmem:[%s8500_s1 + $0xe0] sm:$0xff]  ;;  %v5997_v20 = vld [vmem:[%s8500_s1 + $0xd8] sm:$0xff]  ;;  %v5980_v25 = vld [vmem:[%s8500_s1 + $0x50] sm:$0xff]  ;;  %s300_s12 = sand.u32 1, %s6637_s25  }
  0x27   : > { %2072 = vmatpush.bf16.msra.mxu3 %v6000_v7  ;;  %v334_v16 = vld [vmem:[%s6842_s3 + $0x8] sm:$0x1]  ;;  %v6124_v22 = vld [vmem:[%s6842_s3] sm:$0xff]   ;;  %v5996_v26 = vld [vmem:[%s8500_s1 + $0xd0] sm:$0xff]  ;;  %s5117_s18 = scalar_lea.sflag [#allocation5], %s300_s12 }
  0x28   : > { %1896 = vmatpush.bf16.msra.mxu0 %v5975_v8  ;;  %v512_v21 = vunpack.c.l.b16 %v334_v16  ;;  %v536_v27 = vshll.u32 %v6124_v22, 16  ;;  %v6245_v28 = vld [vmem:[%s6842_s3] sm:$0xf0]  ;;  %v6246_v29 = vld [vmem:[%s6842_s3] sm:$0xe]  ;;  %v5971_v31 = vld [vmem:[%s8500_s1 + $0x8] sm:$0xff] }
  0x29   : > { %2014 = vmatpush.bf16.msra.mxu2 %v5991_v9  ;;  %v5987_v32 = vld [vmem:[%s8500_s1 + $0x88] sm:$0xff]  ;;  %v6247_v33 = vor.u32 %v6246_v29, %v6245_v28  ;;  %v534_v36 = vshrl.u32 %v6124_v22, 16  ;;  %v6900_v40 = vld [vmem:[%s6842_s3 + $0xc] sm:$0xf0]  ;;  %v5970_v43 = vld [vmem:[%s8500_s1] sm:$0xff] }
  0x2a   : > { %1955 = vmatpush.bf16.msra.mxu1 %v5983_v10  ;;  %v522_v30 = vpack.c.b16 %v512_v21, %v512_v21  ;;  %v5979_v34 = vld [vmem:[%s8500_s1 + $0x48] sm:$0xff]  ;;  %v538_v37 = vrot.slane %v536_v27, 1  ;;  %v6452_v42 = vld [vmem:[%s6842_s3 + $0xc] sm:$0xf0]  ;;  %v5986_v44 = vld [vmem:[%s8500_s1 + $0x80] sm:$0xff] }
  0x2b   : > { %2073 = vmatpush.bf16.msra.mxu3 %v5999_v11  ;;  %v5995_v35 = vld [vmem:[%s8500_s1 + $0xc8] sm:$0xff]  ;;  %v694_v45 = vrot.slane %v6247_v33, 1  ;;  %v5978_v47 = vld [vmem:[%s8500_s1 + $0x40] sm:$0xff]  ;;  %v6009_v51 = vld [vmem:[%s8500_s1 + $0x138] sm:$0xff] }
  0x2c   : > { %1897 = vmatpush.bf16.msra.mxu0 %v5974_v12  ;;  %v541_v38 = vshll.u32 %v522_v30, 16  ;;  %v6897_v39 = vld [vmem:[%s6842_s3 + $0xc] sm:$0xff]   ;;  %v695_v46 = vrot.slane %v522_v30, 1  ;;  %v5994_v48 = vld [vmem:[%s8500_s1 + $0xc0] sm:$0xff]  ;;  %v539_v49 = vor.u32 %v538_v37, %v534_v36  ;;  %v335_v52 = vld [vmem:[%s6842_s3 + $0x14] sm:$0x1] }
  0x2d   : > { %2015 = vmatpush.bf16.msra.mxu2 %v5990_v13  ;;  %v316_v41 = vld [vmem:[%s6842_s3 + $0xc] sm:$0xff]   ;;  %v513_v56 = vunpack.c.l.b16 %v335_v52  ;;  %v336_v5 = vld [vmem:[%s6842_s3 + $0x20] sm:$0x1]  ;;  %v6934_v8 = vld [vmem:[%s6842_s3 + $0x18] sm:$0xff]  }
  0x2e   : > { %1956 = vmatpush.bf16.msra.mxu1 %v5982_v14  ;;  %v543_v50 = vrot.slane %v541_v38, 1  ;;  %v696_v53 = vsel %vm693_vm0, %v694_v45, %v695_v46  ;;  %v6453_v55 = vld [vmem:[%s6842_s3 + $0xc] sm:$0xe]  ;;  %v6008_v57 = vld [vmem:[%s8500_s1 + $0x130] sm:$0xff]  ;;  %v548_v59 = vshll.u32 %v316_v41, 16  ;;  %v546_v62 = vshrl.u32 %v316_v41, 16  ;;  %vm7494_vm4 = vmand %vm2526_vm2, %vm2527_vm3 }
  0x2f   : > { %2074 = vmatpush.bf16.msra.mxu3 %v5998_v15  ;;  %v523_v58 = vpack.c.b16 %v513_v56, %v513_v56  ;;  %v6007_v60 = vld [vmem:[%s8500_s1 + $0x128] sm:$0xff]  ;;  %v6454_v61 = vor.u32 %v6453_v55, %v6452_v42  ;;  %v514_v9 = vunpack.c.l.b16 %v336_v5  ;;  %v6006_v10 = vld [vmem:[%s8500_s1 + $0x120] sm:$0xff]  ;;  %v839_v11 = vshll.u32 %v6934_v8, 16  ;;  %v6248_v12 = vld [vmem:[%s6842_s3 + $0x18] sm:$0xf0] }
  0x30   : > { %1898 = vmatpush.bf16.msra.mxu0 %v5973_v17  ;;  %v544_v54 = vsel %vm532_vm1, %v539_v49, %v543_v50  ;;  %v550_v63 = vrot.slane %v548_v59, 1  ;;  %v6249_v13 = vld [vmem:[%s6842_s3 + $0x18] sm:$0xe]  ;;  %v837_v16 = vshrl.u32 %v6934_v8, 16  ;;  %v320_v21 = vld [vmem:[%s6842_s3 + $0x24] sm:$0xff]   ;;  %vm7510_vm6 = vmand %vm2526_vm2, %vm2559_vm5 }
  0x31   : > { %2016 = vmatpush.bf16.msra.mxu2 %v5989_v18  ;;  %v553_v0 = vshll.u32 %v523_v58, 16  ;;  %v697_v1 = vrot.slane %v6454_v61, 1  ;;  %v698_v2 = vrot.slane %v523_v58, 1  ;;  %v524_v14 = vpack.c.b16 %v514_v9, %v514_v9  ;;  %v337_v27 = vld [vmem:[%s6842_s3 + $0x2c] sm:$0x1]  ;;  %v6005_v49 = vld [vmem:[%s8500_s1 + $0x118] sm:$0xff]  ;;  %vm7578_vm11 = vmand %vm2813_vm10, %vm2559_vm5 }
  0x32   : > { %1957 = vmatpush.bf16.msra.mxu1 %v5981_v19  ;;  %v551_v3 = vor.u32 %v550_v63, %v546_v62  ;;  %v6250_v15 = vor.u32 %v6249_v13, %v6248_v12  ;;  %v841_v17 = vrot.slane %v839_v11, 1  ;;  %v6945_v19 = vld [vmem:[%s6842_s3 + $0x24] sm:$0xff]   ;;  %v572_v33 = vshll.u32 %v320_v21, 16  ;;  %v6252_v52 = vld [vmem:[%s6842_s3 + $0x30] sm:$0xe]  ;;  %v6976_v58 = vld [vmem:[%s6842_s3 + $0x3c] sm:$0xff]  }
  0x33   : > { %2075 = vmatpush.bf16.msra.mxu3 %v5997_v20  ;;  %v555_v4 = vrot.slane %v553_v0, 1  ;;  %v699_v6 = vsel %vm693_vm0, %v697_v1, %v698_v2  ;;  %v565_v18 = vshll.u32 %v524_v14, 16  ;;  %v6948_v20 = vld [vmem:[%s6842_s3 + $0x24] sm:$0xf0]  ;;  %v6456_v30 = vld [vmem:[%s6842_s3 + $0x24] sm:$0xe]  ;;  %vm7606_vm2 = vmor %vm2527_vm3, %vm2611_vm14 }
  0x34   : > { %1899 = vmatpush.bf16.msra.mxu0 %v5972_v23  ;;  %v700_v23 = vrot.slane %v6250_v15, 1  ;;  %v574_v36 = vrot.slane %v572_v33, 1  ;;  %v6979_v59 = vld [vmem:[%s6842_s3 + $0x3c] sm:$0xf0]  ;;  %v339_v2 = vld [vmem:[%s6842_s3 + $0x44] sm:$0x1] }
  0x35   : > { %2017 = vmatpush.bf16.msra.mxu2 %v5988_v24  ;;  %v556_v7 = vsel %vm532_vm1, %v551_v3, %v555_v4  ;;  %v701_v24 = vrot.slane %v524_v14, 1  ;;  %v6458_v61 = vld [vmem:[%s6842_s3 + $0x3c] sm:$0xf0]  ;;  %v6459_v5 = vld [vmem:[%s6842_s3 + $0x3c] sm:$0xe] }
  0x36   : > { %1958 = vmatpush.bf16.msra.mxu1 %v5980_v25  ;;  %v6952_v25 = vor.u32 %v841_v17, %v837_v16  ;;  %v6460_v11 = vor.u32 %v6459_v5, %v6458_v61  ;;  %v6016_v61 = vld [vmem:[%s8500_s1 + $0x170] sm:$0xff] }
  0x37   : > { %2076 = vmatpush.bf16.msra.mxu3 %v5996_v26  ;;  %v567_v26 = vrot.slane %v565_v18, 1  ;;  %v702_v28 = vsel %vm693_vm0, %v700_v23, %v701_v24  ;;  %v6999_v24 = vld [vmem:[%s6842_s3 + $0x48] sm:$0xff]  }
  0x38   : > { %1900 = vmatpush.bf16.msra.mxu0 %v5971_v31  ;;  %v515_v31 = vunpack.c.l.b16 %v337_v27  ;;  %v709_v15 = vrot.slane %v6460_v11, 1  ;;  %v6003_v27 = vld [vmem:[%s8500_s1 + $0x108] sm:$0xff]  ;;  %v885_v33 = vshrl.u32 %v6999_v24, 16 }
  0x39   : > { %2018 = vmatpush.bf16.msra.mxu2 %v5987_v32  ;;  %v568_v29 = vsel %vm532_vm1, %v6952_v25, %v567_v26  ;;  %v342_v11 = vld [vmem:[%s6842_s3 + $0x68] sm:$0x1] }
  0x3a   : > { %1959 = vmatpush.bf16.msra.mxu1 %v5979_v34  ;;  %v525_v32 = vpack.c.b16 %v515_v31, %v515_v31 }
  0x3b   : > { %2077 = vmatpush.bf16.msra.mxu3 %v5995_v35  ;;  %v570_v35 = vshrl.u32 %v320_v21, 16 }
  0x3c   : > { %1901 = vmatpush.bf16.msra.mxu0 %v5970_v43  ;;  %v577_v37 = vshll.u32 %v525_v32, 16 }
  0x3d   : > { %2019 = vmatpush.bf16.msra.mxu2 %v5986_v44  ;;  %v575_v42 = vor.u32 %v574_v36, %v570_v35  ;;  %v338_v44 = vld [vmem:[%s6842_s3 + $0x38] sm:$0x1] }
  0x3e   : > { %1960 = vmatpush.bf16.msra.mxu1 %v5978_v47  ;;  %v579_v43 = vrot.slane %v577_v37, 1  ;;  %v6965_v47 = vld [vmem:[%s6842_s3 + $0x30] sm:$0xff]   ;;  %v7013_v37 = vld [vmem:[%s6842_s3 + $0x54] sm:$0xf0] }
  0x3f   : > { %2078 = vmatpush.bf16.msra.mxu3 %v5994_v48  ;;  %1902 = vmatmul.bf16.vlgmr.msra.gmra.mxu0 %v6124_v22  ;;  %v6455_v22 = vld [vmem:[%s6842_s3 + $0x24] sm:$0xf0]  ;;  %v516_v48 = vunpack.c.l.b16 %v338_v44  ;;  %v863_v50 = vshll.u32 %v6965_v47, 16  ;;  %v861_v55 = vshrl.u32 %v6965_v47, 16  ;;  %v7010_v36 = vld [vmem:[%s6842_s3 + $0x54] sm:$0xff]  }
  0x40   : > { %2130 = vmatpush.bf16.msrb.mxu0 %v6009_v51  ;;  %2020 = vmatmul.bf16.vlgmr.msra.gmra.mxu2 %v696_v53  ;;  %v6457_v34 = vor.u32 %v6456_v30, %v6455_v22  ;;  %v580_v46 = vsel %vm532_vm1, %v575_v42, %v579_v43  ;;  %v6251_v51 = vld [vmem:[%s6842_s3 + $0x30] sm:$0xf0]  ;;  %v6255_v30 = vld [vmem:[%s6842_s3 + $0x48] sm:$0xe] }
  0x41   : > { %1961 = vmatmul.bf16.vlgmr.msra.gmra.mxu1 %v544_v54  ;;  %v526_v53 = vpack.c.b16 %v516_v48, %v516_v48  ;;  %v6253_v54 = vor.u32 %v6252_v52, %v6251_v51  ;;  %v865_v56 = vrot.slane %v863_v50, 1  ;;  %v6462_v50 = vld [vmem:[%s6842_s3 + $0x54] sm:$0xe]  ;;  %v6025_v52 = vld [vmem:[%s8500_s1 + $0x1b8] sm:$0xff] }
  0x42   : > { %2079 = vmatmul.bf16.vlgmr.msra.gmra.mxu3 %v6897_v39  ;;  %v703_v38 = vrot.slane %v6457_v34, 1  ;;  %2248 = vmatpush.bf16.msrb.mxu2 %v6025_v52  ;;  %v6027_v52 = vld [vmem:[%s8500_s1 + $0x1c8] sm:$0xff] }
  0x43   : > { %v706_v62 = vrot.slane %v6253_v54, 1  ;;  %v707_v63 = vrot.slane %v526_v53, 1  ;;  %v6983_v0 = vor.u32 %v865_v56, %v861_v55  ;;  %v6033_v54 = vld [vmem:[%s8500_s1 + $0x1f8] sm:$0xff] }
  0x44   : > { %2131 = vmatpush.bf16.msrb.mxu0 %v6008_v57  ;;  %v589_v57 = vshll.u32 %v526_v53, 16  ;;  %v6017_v53 = vld [vmem:[%s8500_s1 + $0x178] sm:$0xff]  ;;  %2307 = vmatpush.bf16.msrb.mxu3 %v6033_v54  ;;  %v7113_v54 = vld [vmem:[%s8501_s2] ss:$0 sm:$0xff] }
  0x45   : > { %v708_v3 = vsel %vm693_vm0, %v706_v62, %v707_v63  ;;  %2189 = vmatpush.bf16.msrb.mxu1 %v6017_v53  ;;  %v6032_v62 = vld [vmem:[%s8500_s1 + $0x1f0] sm:$0xff] }
  0x46   : > { %v591_v1 = vrot.slane %v589_v57, 1  ;;  %v6024_v57 = vld [vmem:[%s8500_s1 + $0x1b0] sm:$0xff] }
  0x47   : > { %2249 = vmatpush.bf16.msrb.mxu2 %v6024_v57  ;;  %v6018_v57 = vld [vmem:[%s8500_s1 + $0x180] sm:$0xff] }
  0x48   : > { %2132 = vmatpush.bf16.msrb.mxu0 %v6007_v60  ;;  %v324_v60 = vld [vmem:[%s6842_s3 + $0x3c] sm:$0xff]   ;;  %v592_v4 = vsel %vm532_vm1, %v6983_v0, %v591_v1  ;;  %2308 = vmatpush.bf16.msrb.mxu3 %v6032_v62 }
  0x49   : > { %v594_v12 = vshrl.u32 %v324_v60, 16  ;;  %2190 = vmatpush.bf16.msrb.mxu1 %v6016_v61  ;;  %v6010_v62 = vld [vmem:[%s8500_s1 + $0x140] sm:$0xff] }
  0x4c   : > { %2133 = vmatpush.bf16.msrb.mxu0 %v6006_v10  ;;  %v596_v10 = vshll.u32 %v324_v60, 16 }
  0x4e   : > { %v598_v13 = vrot.slane %v596_v10, 1 }
  0x4f   : > { %1907 = vmatmul.bf16.gmra.mxu0 %v316_v41  ;;  %v704_v41 = vrot.slane %v525_v32, 1 }
  0x50   : > { %2025 = vmatmul.bf16.gmra.mxu2 %v699_v6  ;;  %2134 = vmatpush.bf16.msrb.mxu0 %v6005_v49  ;;  %v517_v6 = vunpack.c.l.b16 %v339_v2  ;;  %v599_v17 = vor.u32 %v598_v13, %v594_v12  ;;  %v6022_v12 = vld [vmem:[%s8500_s1 + $0x1a0] sm:$0xff] }
  0x51   : > { %1966 = vmatmul.bf16.gmra.mxu1 %v556_v7  ;;  %v705_v45 = vsel %vm693_vm0, %v703_v38, %v704_v41  ;;  %v6004_v7 = vld [vmem:[%s8500_s1 + $0x110] sm:$0xff]  ;;  %v6461_v41 = vld [vmem:[%s6842_s3 + $0x54] sm:$0xf0]  ;;  %v6002_v13 = vld [vmem:[%s8500_s1 + $0x100] sm:$0xff] }
  0x52   : > { %2084 = vmatmul.bf16.gmra.mxu3 %v6934_v8  ;;  %v527_v9 = vpack.c.b16 %v517_v6, %v517_v6  ;;  %v328_v38 = vld [vmem:[%s6842_s3 + $0x54] sm:$0xff]   ;;  %v6015_v6 = vld [vmem:[%s8500_s1 + $0x168] sm:$0xff] }
  0x53   : > { %v620_v56 = vshll.u32 %v328_v38, 16  ;;  %v618_v63 = vshrl.u32 %v328_v38, 16  ;;  %2191 = vmatpush.bf16.msrb.mxu1 %v6015_v6 }
  0x54   : > { %2135 = vmatpush.bf16.msrb.mxu0 %v6004_v7  ;;  %v601_v14 = vshll.u32 %v527_v9, 16  ;;  %v710_v16 = vrot.slane %v527_v9, 1  ;;  %v6031_v7 = vld [vmem:[%s8500_s1 + $0x1e8] sm:$0xff] }
  0x55   : > { %v622_v1 = vrot.slane %v620_v56, 1  ;;  %2309 = vmatpush.bf16.msrb.mxu3 %v6031_v7  ;;  %v343_v56 = vld [vmem:[%s6842_s3 + $0x74] sm:$0x1]  ;;  %v6041_v7 = vld [vmem:[%s8500_s1 + $0x238] sm:$0xff] }
  0x56   : > { %v603_v18 = vrot.slane %v601_v14, 1  ;;  %v711_v22 = vsel %vm693_vm0, %v709_v15, %v710_v16  ;;  %v6014_v15 = vld [vmem:[%s8500_s1 + $0x160] sm:$0xff] }
  0x57   : > { %v623_v9 = vor.u32 %v622_v1, %v618_v63  ;;  %v6030_v16 = vld [vmem:[%s8500_s1 + $0x1e0] sm:$0xff]  ;;  %2192 = vmatpush.bf16.msrb.mxu1 %v6014_v15 }
  0x58   : > { %v604_v23 = vsel %vm532_vm1, %v599_v17, %v603_v18  ;;  %2136 = vmatpush.bf16.msrb.mxu0 %v6003_v27  ;;  %v6238_v18 = vld [vmem:[%s6842_s3 + $0x60] sm:$0xff]  }
  0x59   : > { %2310 = vmatpush.bf16.msrb.mxu3 %v6030_v16  ;;  %v911_v27 = vshll.u32 %v6238_v18, 16  ;;  %v6026_v63 = vld [vmem:[%s8500_s1 + $0x1c0] sm:$0xff] }
  0x5c   : > { %2137 = vmatpush.bf16.msrb.mxu0 %v6002_v13 }
  0x5f   : > { %1912 = vmatmul.bf16.gmra.mxu0 %v6934_v8 }
  0x60   : > { %2030 = vmatmul.bf16.gmra.mxu2 %v702_v28  ;;  %v887_v28 = vshll.u32 %v6999_v24, 16  ;;  %2366 = vmatpush.bf16.msra.mxu0 %v6041_v7 }
  0x61   : > { %1971 = vmatmul.bf16.gmra.mxu1 %v568_v29  ;;  %v6254_v29 = vld [vmem:[%s6842_s3 + $0x48] sm:$0xf0] }
  0x62   : > { %2089 = vmatmul.bf16.gmra.mxu3 %v6945_v19  ;;  %v6256_v32 = vor.u32 %v6255_v30, %v6254_v29  ;;  %v889_v34 = vrot.slane %v887_v28, 1  ;;  %v6257_v28 = vld [vmem:[%s6842_s3 + $0x60] sm:$0xf0]  ;;  %v6258_v29 = vld [vmem:[%s6842_s3 + $0x60] sm:$0xe] }
  0x64   : > { %v712_v42 = vrot.slane %v6256_v32, 1  ;;  %v7017_v44 = vor.u32 %v889_v34, %v885_v33  ;;  %v6259_v32 = vor.u32 %v6258_v29, %v6257_v28  ;;  %v6012_v33 = vld [vmem:[%s8500_s1 + $0x150] sm:$0xff] }
  0x65   : > { %v6028_v34 = vld [vmem:[%s8500_s1 + $0x1d0] sm:$0xff] }
  0x66   : > { %v5267_v29 = vld [vmem:[%s6842_s3 + $0x14] sm:$0x1] }
  0x6f   : > { %1917 = vmatmul.bf16.gmra.mxu0 %v320_v21  ;;  %v340_v21 = vld [vmem:[%s6842_s3 + $0x50] sm:$0x1] }
  0x70   : > { %2035 = vmatmul.bf16.gmra.mxu2 %v705_v45  ;;  %v518_v26 = vunpack.c.l.b16 %v340_v21  ;;  %v520_v21 = vunpack.c.l.b16 %v342_v11 }
  0x71   : > { %1976 = vmatmul.bf16.gmra.mxu1 %v580_v46  ;;  %v341_v46 = vld [vmem:[%s6842_s3 + $0x5c] sm:$0x1] }
  0x72   : > { %2094 = vmatmul.bf16.gmra.mxu3 %v6965_v47  ;;  %v528_v31 = vpack.c.b16 %v518_v26, %v518_v26  ;;  %v519_v51 = vunpack.c.l.b16 %v341_v46  ;;  %v6029_v26 = vld [vmem:[%s8500_s1 + $0x1d8] sm:$0xff]  ;;  %v530_v30 = vpack.c.b16 %v520_v21, %v520_v21  ;;  %v6464_v46 = vld [vmem:[%s6842_s3 + $0x6c] sm:$0xf0] }
  0x73   : > { %2311 = vmatpush.bf16.msrb.mxu3 %v6029_v26 }
  0x74   : > { %v613_v35 = vshll.u32 %v528_v31, 16  ;;  %v713_v43 = vrot.slane %v528_v31, 1  ;;  %v529_v55 = vpack.c.b16 %v519_v51, %v519_v51  ;;  %v6020_v31 = vld [vmem:[%s8500_s1 + $0x190] sm:$0xff]  ;;  %v6011_v51 = vld [vmem:[%s8500_s1 + $0x148] sm:$0xff] }
  0x76   : > { %v615_v45 = vrot.slane %v613_v35, 1  ;;  %v714_v48 = vsel %vm693_vm0, %v712_v42, %v713_v43  ;;  %v625_v2 = vshll.u32 %v529_v55, 16  ;;  %v716_v5 = vrot.slane %v529_v55, 1  ;;  %v7090_v42 = vld [vmem:[%s6842_s3 + $0x6c] sm:$0xff]  }
  0x77   : > { %v909_v35 = vshrl.u32 %v6238_v18, 16  ;;  %v7093_v43 = vld [vmem:[%s6842_s3 + $0x6c] sm:$0xf0]  ;;  %2312 = vmatpush.bf16.msrb.mxu3 %v6028_v34 }
  0x78   : > { %v616_v49 = vsel %vm532_vm1, %v7017_v44, %v615_v45  ;;  %v627_v10 = vrot.slane %v625_v2, 1  ;;  %v7096_v45 = vld [vmem:[%s6842_s3 + $0x6c] sm:$0xff]  }
  0x79   : > { %v642_v16 = vshrl.u32 %v7096_v45, 16 }
  0x7a   : > { %v628_v17 = vsel %vm532_vm1, %v623_v9, %v627_v10  ;;  %v644_v10 = vshll.u32 %v7096_v45, 16 }
  0x7b   : > { %2313 = vmatpush.bf16.msrb.mxu3 %v6027_v52 }
  0x7f   : > { %1922 = vmatmul.bf16.gmra.mxu0 %v6965_v47  ;;  %2314 = vmatpush.bf16.msrb.mxu3 %v6026_v63 }
  0x80   : > { %2040 = vmatmul.bf16.gmra.mxu2 %v708_v3  ;;  %v6023_v3 = vld [vmem:[%s8500_s1 + $0x1a8] sm:$0xff] }
  0x81   : > { %1981 = vmatmul.bf16.gmra.mxu1 %v592_v4  ;;  %2250 = vmatpush.bf16.msrb.mxu2 %v6023_v3 }
  0x82   : > { %2099 = vmatmul.bf16.gmra.mxu3 %v6976_v58 }
  0x85   : > { %2251 = vmatpush.bf16.msrb.mxu2 %v6022_v12 }
  0x8f   : > { %1927 = vmatmul.bf16.gmra.mxu0 %v324_v60  ;;  %v6463_v60 = vor.u32 %v6462_v50, %v6461_v41  ;;  %v637_v41 = vshll.u32 %v530_v30, 16  ;;  %v719_v50 = vrot.slane %v530_v30, 1 }
  0x90   : > { %2045 = vmatmul.bf16.gmra.mxu2 %v711_v22  ;;  %v6021_v22 = vld [vmem:[%s8500_s1 + $0x198] sm:$0xff] }
  0x91   : > { %1986 = vmatmul.bf16.gmra.mxu1 %v604_v23  ;;  %v715_v4 = vrot.slane %v6463_v60, 1  ;;  %v6013_v23 = vld [vmem:[%s8500_s1 + $0x158] sm:$0xff]  ;;  %2252 = vmatpush.bf16.msrb.mxu2 %v6021_v22  ;;  %v639_v55 = vrot.slane %v637_v41, 1  ;;  %v646_v22 = vrot.slane %v644_v10, 1 }
  0x92   : > { %2104 = vmatmul.bf16.gmra.mxu3 %v6999_v24  ;;  %2193 = vmatpush.bf16.msrb.mxu1 %v6013_v23 }
  0x93   : > { %v717_v14 = vsel %vm693_vm0, %v715_v4, %v716_v5  ;;  %v6465_v4 = vld [vmem:[%s6842_s3 + $0x6c] sm:$0xe]  ;;  %v521_v5 = vunpack.c.l.b16 %v343_v56  ;;  %v647_v30 = vor.u32 %v646_v22, %v642_v16 }
  0x94   : > { %v6466_v15 = vor.u32 %v6465_v4, %v6464_v46  ;;  %v6468_v56 = vld [vmem:[%s6842_s3 + $0xc] sm:$0xe] }
  0x95   : > { %2253 = vmatpush.bf16.msrb.mxu2 %v6020_v31  ;;  %v531_v9 = vpack.c.b16 %v521_v5, %v521_v5  ;;  %v6469_v7 = vor.u32 %v6468_v56, %v6900_v40  ;;  %v5268_v40 = vld [vmem:[%s6842_s3 + $0x20] sm:$0x1] }
  0x96   : > { %2194 = vmatpush.bf16.msrb.mxu1 %v6012_v33 }
  0x97   : > { %v649_v23 = vshll.u32 %v531_v9, 16  ;;  %v722_v28 = vrot.slane %v531_v9, 1 }
  0x99   : > { %v651_v31 = vrot.slane %v649_v23, 1 }
  0x9a   : > { %2195 = vmatpush.bf16.msrb.mxu1 %v6011_v51 }
  0x9b   : > { %v652_v52 = vsel %vm532_vm1, %v647_v30, %v651_v31 }
  0x9e   : > { %2196 = vmatpush.bf16.msrb.mxu1 %v6010_v62 }
  0x9f   : > { %1932 = vmatmul.bf16.gmra.mxu0 %v6999_v24 }
  0xa0   : > { %2050 = vmatmul.bf16.gmra.mxu2 %v714_v48  ;;  %v6019_v48 = vld [vmem:[%s8500_s1 + $0x188] sm:$0xff] }
  0xa1   : > { %1991 = vmatmul.bf16.gmra.mxu1 %v616_v49  ;;  %v718_v49 = vrot.slane %v6259_v32, 1  ;;  %2254 = vmatpush.bf16.msrb.mxu2 %v6019_v48  ;;  %v5309_v32 = vld [vmem:[%s6842_s3 + $0x20] sm:$0x1] }
  0xa2   : > { %2109 = vmatmul.bf16.gmra.mxu3 %v7010_v36  ;;  %v1094_v48 = vunpack.c.l.b16 %v5309_v32 }
  0xa3   : > { %v720_v61 = vsel %vm693_vm0, %v718_v49, %v719_v50 }
  0xa4   : > { %v7153_v62 = vpack.c.b16 %v1094_v48, %v1094_v48 }
  0xa5   : > { %2255 = vmatpush.bf16.msrb.mxu2 %v6018_v57  ;;  %v827_v57 = vshll.u32 %v6897_v39, 16 }
  0xa6   : > { %v1122_v9 = vshll.u32 %v7153_v62, 16 }
  0xa7   : > { %v829_v4 = vrot.slane %v827_v57, 1 }
  0xa8   : > { %v1124_v22 = vrot.slane %v1122_v9, 1  ;;  %v6039_v9 = vld [vmem:[%s8500_s1 + $0x228] sm:$0xff] }
  0xaa   : > { %v1125_v32 = vsel %vm532_vm1, %v6952_v25, %v1124_v22 }
  0xaf   : > { %1937 = vmatmul.bf16.gmra.mxu0 %v328_v38  ;;  %v913_v38 = vrot.slane %v911_v27, 1  ;;  %v721_v27 = vrot.slane %v6466_v15, 1 }
  0xb0   : > { %2055 = vmatmul.bf16.gmra.mxu2 %v717_v14 }
  0xb1   : > { %1996 = vmatmul.bf16.gmra.mxu1 %v628_v17  ;;  %v7108_v53 = vor.u32 %v913_v38, %v909_v35  ;;  %v804_v38 = vunpack.c.l.b16 %v5267_v29  ;;  %v723_v46 = vsel %vm693_vm0, %v721_v27, %v722_v28 }
  0xb2   : > { %2114 = vmatmul.bf16.gmra.mxu3 %v6238_v18 }
  0xb3   : > { %v640_v3 = vsel %vm532_vm1, %v7108_v53, %v639_v55  ;;  %v7147_v55 = vld [vmem:[%s6842_s3 + $0x78] sm:$0xff]  }
  0xbc   : > { %v1903_v60 = vpop.f32.mrf.mxu0 }
  0xbd   : > { %v1904_v1 = vadd.f32 %v7113_v54, %v1903_v60 }
  0xbe   : > { %v1962_v2 = vpop.f32.mrf.mxu1 }
  0xbf   : > { %v1963_v6 = vadd.f32 %v1962_v2, %v1904_v1  ;;  %1942 = vmatmul.bf16.gmra.mxu0 %v6238_v18 }
  0xc0   : > { %2060 = vmatmul.bf16.gmra.mxu2 %v720_v61  ;;  %v814_v61 = vpack.c.b16 %v804_v38, %v804_v38 }
  0xc1   : > { %2001 = vmatmul.bf16.gmra.mxu1 %v640_v3  ;;  %v825_v3 = vshrl.u32 %v6897_v39, 16  ;;  %v7165_v39 = vld [vmem:[%s6842_s3 + $0x24] sm:$0xff]  }
  0xc2   : > { %2119 = vmatmul.bf16.gmra.mxu3 %v7090_v42  ;;  %v832_v5 = vshll.u32 %v814_v61, 16  ;;  %v1129_v56 = vshll.u32 %v7165_v39, 16 }
  0xc3   : > { %v2021_v11 = vpop.f32.mrf.mxu2  ;;  %v830_v15 = vor.u32 %v829_v4, %v825_v3  ;;  %v1127_v3 = vshrl.u32 %v7165_v39, 16 }
  0xc4   : > { %v2022_v12 = vadd.f32 %v2021_v11, %v1963_v6  ;;  %v1905_v14 = vpop.f32.mrf.mxu0  ;;  %v834_v16 = vrot.slane %v832_v5, 1 }
  0xc5   : > { %v2080_v13 = vpop.f32.mrf.mxu3  ;;  %v1906_v17 = vadd.f32 %v7113_v54, %v1905_v14 }
  0xc6   : > { %v7137_v18 = vadd.f32 %v2080_v13, %v2022_v12  ;;  %v1964_v21 = vpop.f32.mrf.mxu1  ;;  %v7168_v13 = vld [vmem:[%s6842_s3 + $0x24] sm:$0xf0]  ;;  %v835_v30 = vsel %vm532_vm1, %v830_v15, %v834_v16 }
  0xc7   : > { %v1965_v26 = vadd.f32 %v1964_v21, %v1906_v17  ;;  %v984_v17 = vrot.slane %v6469_v7, 1  ;;  %v985_v21 = vrot.slane %v814_v61, 1 }
  0xc9   : > { %v986_v31 = vsel %vm693_vm0, %v984_v17, %v985_v21  ;;  %v5269_v17 = vld [vmem:[%s6842_s3 + $0x2c] sm:$0x1]  ;;  %v5311_v21 = vld [vmem:[%s6842_s3 + $0x38] sm:$0x1] }
  0xcb   : > { %v2023_v33 = vpop.f32.mrf.mxu2 }
  0xcc   : > { %v2024_v34 = vadd.f32 %v2023_v33, %v1965_v26  ;;  %v1908_v41 = vpop.f32.mrf.mxu0  ;;  %v5310_v26 = vld [vmem:[%s6842_s3 + $0x2c] sm:$0x1]  ;;  %v805_v33 = vunpack.c.l.b16 %v5268_v40 }
  0xcd   : > { %v2082_v35 = vpop.f32.mrf.mxu3  ;;  %v1909_v49 = vadd.f32 %v7113_v54, %v1908_v41  ;;  %v1095_v41 = vunpack.c.l.b16 %v5310_v26 }
  0xce   : > { %v7143_v50 = vadd.f32 %v2082_v35, %v2024_v34  ;;  %v1967_v51 = vpop.f32.mrf.mxu1  ;;  %v815_v48 = vpack.c.b16 %v805_v33, %v805_v33 }
  0xcf   : > { %v1968_v60 = vadd.f32 %v1967_v51, %v1909_v49  ;;  %1947 = vmatmul.bf16.gmra.mxu0 %v7096_v45  ;;  %v6040_v45 = vld [vmem:[%s8500_s1 + $0x230] sm:$0xff]  ;;  %v6260_v49 = vld [vmem:[%s6842_s3 + $0x18] sm:$0xf0]  ;;  %v6261_v51 = vld [vmem:[%s6842_s3 + $0x18] sm:$0xe] }
  0xd0   : > { %2065 = vmatmul.bf16.gmra.mxu2 %v723_v46  ;;  %2367 = vmatpush.bf16.msra.mxu0 %v6040_v45  ;;  %v1131_v45 = vrot.slane %v1129_v56, 1 }
  0xd1   : > { %2006 = vmatmul.bf16.gmra.mxu1 %v652_v52  ;;  %v7182_v52 = vpack.c.b16 %v1095_v41, %v1095_v41  ;;  %v851_v41 = vshll.u32 %v6945_v19, 16 }
  0xd2   : > { %2124 = vmatmul.bf16.gmra.mxu3 %v7147_v55  ;;  %v1132_v15 = vor.u32 %v1131_v45, %v1127_v3  ;;  %v7217_v45 = vld [vmem:[%s6842_s3 + $0x3c] sm:$0xf0] }
  0xd3   : > { %v2026_v63 = vpop.f32.mrf.mxu2 }
  0xd4   : > { %v2027_v1 = vadd.f32 %v2026_v63, %v1968_v60  ;;  %v1910_v6 = vpop.f32.mrf.mxu0  ;;  %2368 = vmatpush.bf16.msra.mxu0 %v6039_v9 }
  0xd5   : > { %v2085_v2 = vpop.f32.mrf.mxu3  ;;  %v1911_v10 = vadd.f32 %v7113_v54, %v1910_v6  ;;  %v1134_v6 = vshll.u32 %v7182_v52, 16 }
  0xd6   : > { %v7162_v11 = vadd.f32 %v2085_v2, %v2027_v1  ;;  %v1969_v12 = vpop.f32.mrf.mxu1  ;;  %v844_v1 = vshll.u32 %v815_v48, 16  ;;  %v6262_v2 = vor.u32 %v6261_v51, %v6260_v49 }
  0xd7   : > { %v1970_v14 = vadd.f32 %v1969_v12, %v1911_v10  ;;  %v1136_v16 = vrot.slane %v1134_v6, 1 }
  0xd8   : > { %v846_v10 = vrot.slane %v844_v1, 1  ;;  %v987_v12 = vrot.slane %v6262_v2, 1 }
  0xdb   : > { %v2028_v23 = vpop.f32.mrf.mxu2 }
  0xdc   : > { %v2029_v27 = vadd.f32 %v2028_v23, %v1970_v14  ;;  %v1913_v29 = vpop.f32.mrf.mxu0  ;;  %v988_v14 = vrot.slane %v815_v48, 1 }
  0xdd   : > { %v2087_v28 = vpop.f32.mrf.mxu3  ;;  %v1914_v34 = vadd.f32 %v7113_v54, %v1913_v29  ;;  %v1096_v29 = vunpack.c.l.b16 %v5311_v21  ;;  %v6038_v21 = vld [vmem:[%s8500_s1 + $0x220] sm:$0xff] }
  0xde   : > { %v7177_v35 = vadd.f32 %v2087_v28, %v2029_v27  ;;  %v1972_v38 = vpop.f32.mrf.mxu1  ;;  %v847_v27 = vsel %vm532_vm1, %v6952_v25, %v846_v10  ;;  %v806_v28 = vunpack.c.l.b16 %v5269_v17  ;;  %v989_v33 = vsel %vm693_vm0, %v987_v12, %v988_v14  ;;  %v5270_v14 = vld [vmem:[%s6842_s3 + $0x38] sm:$0x1]  ;;  %2369 = vmatpush.bf16.msra.mxu0 %v6038_v21 }
  0xdf   : > { %v1973_v46 = vadd.f32 %v1972_v38, %v1914_v34  ;;  %2138 = vmatmul.bf16.vlgmr.msrb.gmra.mxu0 %v835_v30  ;;  %v1137_v34 = vsel %vm532_vm1, %v1132_v15, %v1136_v16  ;;  %v6471_v38 = vld [vmem:[%s6842_s3 + $0x24] sm:$0xe]  ;;  %v7205_v48 = vpack.c.b16 %v1096_v29, %v1096_v29 }
  0xe0   : > { %2256 = vmatmul.bf16.vlgmr.msrb.gmra.mxu2 %v6934_v8  ;;  %v816_v25 = vpack.c.b16 %v806_v28, %v806_v28  ;;  %v6472_v1 = vor.u32 %v6471_v38, %v6948_v20  ;;  %v5312_v20 = vld [vmem:[%s6842_s3 + $0x44] sm:$0x1] }
  0xe1   : > { %2197 = vmatmul.bf16.vlgmr.msrb.gmra.mxu1 %v986_v31 }
  0xe2   : > { %2315 = vmatmul.bf16.vlgmr.msrb.gmra.mxu3 %v1125_v32  ;;  %v990_v9 = vrot.slane %v6472_v1, 1  ;;  %v991_v10 = vrot.slane %v816_v25, 1 }
  0xe3   : > { %v2031_v57 = vpop.f32.mrf.mxu2 }
  0xe4   : > { %v2032_v60 = vadd.f32 %v2031_v57, %v1973_v46  ;;  %v1915_v63 = vpop.f32.mrf.mxu0  ;;  %v849_v57 = vshrl.u32 %v6945_v19, 16 }
  0xe5   : > { %v2090_v61 = vpop.f32.mrf.mxu3  ;;  %v1916_v8 = vadd.f32 %v7113_v54, %v1915_v63  ;;  %v856_v63 = vshll.u32 %v816_v25, 16 }
  0xe6   : > { %v7187_v4 = vadd.f32 %v2090_v61, %v2032_v60  ;;  %v1974_v5 = vpop.f32.mrf.mxu1  ;;  %v853_v60 = vrot.slane %v851_v41, 1  ;;  %v6263_v41 = vld [vmem:[%s6842_s3 + $0x30] sm:$0xf0] }
  0xe7   : > { %v1975_v7 = vadd.f32 %v1974_v5, %v1916_v8  ;;  %v7214_v5 = vld [vmem:[%s6842_s3 + $0x3c] sm:$0xff]  }
  0xe8   : > { %v854_v19 = vor.u32 %v853_v60, %v849_v57  ;;  %v1153_v38 = vshll.u32 %v7214_v5, 16 }
  0xeb   : > { %v2033_v22 = vpop.f32.mrf.mxu2 }
  0xec   : > { %v2034_v40 = vadd.f32 %v2033_v22, %v1975_v7  ;;  %v1918_v26 = vpop.f32.mrf.mxu0  ;;  %v858_v7 = vrot.slane %v856_v63, 1  ;;  %v1151_v63 = vshrl.u32 %v7214_v5, 16 }
  0xed   : > { %v2092_v23 = vpop.f32.mrf.mxu3  ;;  %v1919_v30 = vadd.f32 %v7113_v54, %v1918_v26 }
  0xee   : > { %v7198_v31 = vadd.f32 %v2092_v23, %v2034_v40  ;;  %v1977_v32 = vpop.f32.mrf.mxu1  ;;  %v859_v40 = vsel %vm532_vm1, %v854_v19, %v858_v7  ;;  %v992_v23 = vsel %vm693_vm0, %v990_v9, %v991_v10 }
  0xef   : > { %v1978_v46 = vadd.f32 %v1977_v32, %v1919_v30  ;;  %2143 = vmatmul.bf16.gmra.mxu0 %v847_v27  ;;  %v807_v27 = vunpack.c.l.b16 %v5270_v14  ;;  %v1097_v32 = vunpack.c.l.b16 %v5312_v20  ;;  %v5271_v14 = vld [vmem:[%s6842_s3 + $0x44] sm:$0x1] }
  0xf0   : > { %2261 = vmatmul.bf16.gmra.mxu2 %v7165_v39  ;;  %v1146_v39 = vshll.u32 %v7205_v48, 16 }
  0xf1   : > { %2202 = vmatmul.bf16.gmra.mxu1 %v989_v33  ;;  %v7235_v25 = vpack.c.b16 %v1097_v32, %v1097_v32 }
  0xf2   : > { %2320 = vmatmul.bf16.gmra.mxu3 %v1137_v34  ;;  %v1148_v12 = vrot.slane %v1146_v39, 1  ;;  %v817_v34 = vpack.c.b16 %v807_v27, %v807_v27 }
  0xf3   : > { %v2036_v49 = vpop.f32.mrf.mxu2 }
  0xf4   : > { %v2037_v51 = vadd.f32 %v2036_v49, %v1978_v46  ;;  %v1920_v61 = vpop.f32.mrf.mxu0  ;;  %v1149_v26 = vsel %vm532_vm1, %v6983_v0, %v1148_v12  ;;  %v6264_v46 = vld [vmem:[%s6842_s3 + $0x30] sm:$0xe]  ;;  %v868_v60 = vshll.u32 %v817_v34, 16  ;;  %v994_v9 = vrot.slane %v817_v34, 1 }
  0xf5   : > { %v2095_v56 = vpop.f32.mrf.mxu3  ;;  %v1921_v2 = vadd.f32 %v7113_v54, %v1920_v61  ;;  %v6265_v61 = vor.u32 %v6264_v46, %v6263_v41  ;;  %v875_v34 = vshll.u32 %v6976_v58, 16 }
  0xf6   : > { %v7211_v3 = vadd.f32 %v2095_v56, %v2037_v51  ;;  %v1979_v8 = vpop.f32.mrf.mxu1  ;;  %v870_v19 = vrot.slane %v868_v60, 1 }
  0xf7   : > { %v1980_v6 = vadd.f32 %v1979_v8, %v1921_v2  ;;  %v1155_v2 = vrot.slane %v1153_v38, 1  ;;  %v1158_v8 = vshll.u32 %v7235_v25, 16  ;;  %v993_v7 = vrot.slane %v6265_v61, 1 }
  0xf8   : > { %v877_v60 = vrot.slane %v875_v34, 1 }
  0xf9   : > { %v1156_v10 = vor.u32 %v1155_v2, %v1151_v63  ;;  %v1160_v12 = vrot.slane %v1158_v8, 1 }
  0xfb   : > { %v2038_v15 = vpop.f32.mrf.mxu2  ;;  %v1161_v32 = vsel %vm532_vm1, %v1156_v10, %v1160_v12 }
  0xfc   : > { %v2039_v16 = vadd.f32 %v2038_v15, %v1980_v6  ;;  %v1923_v22 = vpop.f32.mrf.mxu0  ;;  %v5313_v15 = vld [vmem:[%s6842_s3 + $0x50] sm:$0x1] }
  0xfd   : > { %v2097_v17 = vpop.f32.mrf.mxu3  ;;  %v1924_v28 = vadd.f32 %v7113_v54, %v1923_v22  ;;  %v871_v22 = vsel %vm532_vm1, %v6983_v0, %v870_v19  ;;  %v6037_v0 = vld [vmem:[%s8500_s1 + $0x218] sm:$0xff] }
  0xfe   : > { %v7229_v29 = vadd.f32 %v2097_v17, %v2039_v16  ;;  %v1982_v30 = vpop.f32.mrf.mxu1  ;;  %2370 = vmatpush.bf16.msra.mxu0 %v6037_v0  ;;  %v7269_v19 = vld [vmem:[%s6842_s3 + $0x54] sm:$0xf0] }
  0xff   : > { %v1983_v33 = vadd.f32 %v1982_v30, %v1924_v28  ;;  %2148 = vmatmul.bf16.gmra.mxu0 %v859_v40  ;;  %v808_v40 = vunpack.c.l.b16 %v5271_v14  ;;  %v995_v30 = vsel %vm693_vm0, %v993_v7, %v994_v9 }
 0x100   : > { %2266 = vmatmul.bf16.gmra.mxu2 %v6965_v47 }
 0x101   : > { %2207 = vmatmul.bf16.gmra.mxu1 %v992_v23  ;;  %v1098_v23 = vunpack.c.l.b16 %v5313_v15  ;;  %v818_v41 = vpack.c.b16 %v808_v40, %v808_v40  ;;  %v5272_v15 = vld [vmem:[%s6842_s3 + $0x50] sm:$0x1] }
 0x102   : > { %2325 = vmatmul.bf16.gmra.mxu3 %v1149_v26 }
 0x103   : > { %v2041_v49 = vpop.f32.mrf.mxu2  ;;  %v7257_v46 = vpack.c.b16 %v1098_v23, %v1098_v23  ;;  %v880_v61 = vshll.u32 %v818_v41, 16  ;;  %v997_v12 = vrot.slane %v818_v41, 1  ;;  %v6266_v41 = vld [vmem:[%s6842_s3 + $0x48] sm:$0xf0] }
 0x104   : > { %v2042_v51 = vadd.f32 %v2041_v49, %v1983_v33  ;;  %v1925_v57 = vpop.f32.mrf.mxu0  ;;  %v6474_v33 = vld [vmem:[%s6842_s3 + $0x3c] sm:$0xe] }
 0x105   : > { %v2100_v56 = vpop.f32.mrf.mxu3  ;;  %v1926_v47 = vadd.f32 %v7113_v54, %v1925_v57  ;;  %v873_v57 = vshrl.u32 %v6976_v58, 16  ;;  %v6475_v63 = vor.u32 %v6474_v33, %v6979_v59  ;;  %v882_v9 = vrot.slane %v880_v61, 1  ;;  %v5314_v59 = vld [vmem:[%s6842_s3 + $0x5c] sm:$0x1] }
 0x106   : > { %v7239_v1 = vadd.f32 %v2100_v56, %v2042_v51  ;;  %v1984_v39 = vpop.f32.mrf.mxu1  ;;  %v1099_v33 = vunpack.c.l.b16 %v5314_v59 }
 0x107   : > { %v1985_v6 = vadd.f32 %v1984_v39, %v1926_v47  ;;  %v1170_v47 = vshll.u32 %v7257_v46, 16  ;;  %v878_v58 = vor.u32 %v877_v60, %v873_v57  ;;  %v996_v10 = vrot.slane %v6475_v63, 1 }
 0x109   : > { %v1172_v14 = vrot.slane %v1170_v47, 1  ;;  %v998_v40 = vsel %vm693_vm0, %v996_v10, %v997_v12 }
 0x10b   : > { %v2043_v20 = vpop.f32.mrf.mxu2  ;;  %v1173_v23 = vsel %vm532_vm1, %v7017_v44, %v1172_v14  ;;  %v5273_v14 = vld [vmem:[%s6842_s3 + $0x5c] sm:$0x1] }
 0x10c   : > { %v2044_v16 = vadd.f32 %v2043_v20, %v1985_v6  ;;  %v1928_v21 = vpop.f32.mrf.mxu0  ;;  %v7266_v6 = vld [vmem:[%s6842_s3 + $0x54] sm:$0xff]  }
 0x10d   : > { %v2102_v17 = vpop.f32.mrf.mxu3  ;;  %v1929_v26 = vadd.f32 %v7113_v54, %v1928_v21  ;;  %v1177_v0 = vshll.u32 %v7266_v6, 16  ;;  %v1175_v47 = vshrl.u32 %v7266_v6, 16 }
 0x10e   : > { %v7247_v27 = vadd.f32 %v2102_v17, %v2044_v16  ;;  %v1987_v28 = vpop.f32.mrf.mxu1 }
 0x10f   : > { %v1988_v38 = vadd.f32 %v1987_v28, %v1929_v26  ;;  %2153 = vmatmul.bf16.gmra.mxu0 %v871_v22  ;;  %v883_v22 = vsel %vm532_vm1, %v878_v58, %v882_v9  ;;  %v809_v26 = vunpack.c.l.b16 %v5272_v15  ;;  %v1179_v58 = vrot.slane %v1177_v0, 1 }
 0x110   : > { %2271 = vmatmul.bf16.gmra.mxu2 %v7214_v5 }
 0x111   : > { %2212 = vmatmul.bf16.gmra.mxu1 %v995_v30  ;;  %v1180_v59 = vor.u32 %v1179_v58, %v1175_v47 }
 0x112   : > { %2330 = vmatmul.bf16.gmra.mxu3 %v1161_v32 }
 0x113   : > { %v2046_v49 = vpop.f32.mrf.mxu2 }
 0x114   : > { %v2047_v51 = vadd.f32 %v2046_v49, %v1988_v38  ;;  %v1930_v5 = vpop.f32.mrf.mxu0  ;;  %v819_v38 = vpack.c.b16 %v809_v26, %v809_v26  ;;  %v6267_v49 = vld [vmem:[%s6842_s3 + $0x48] sm:$0xe] }
 0x115   : > { %v2105_v56 = vpop.f32.mrf.mxu3  ;;  %v1931_v39 = vadd.f32 %v7113_v54, %v1930_v5  ;;  %v6036_v5 = vld [vmem:[%s8500_s1 + $0x210] sm:$0xff] }
 0x116   : > { %v7263_v2 = vadd.f32 %v2105_v56, %v2047_v51  ;;  %v1989_v8 = vpop.f32.mrf.mxu1  ;;  %v7284_v51 = vpack.c.b16 %v1099_v33, %v1099_v33  ;;  %v892_v63 = vshll.u32 %v819_v38, 16  ;;  %2371 = vmatpush.bf16.msra.mxu0 %v6036_v5 }
 0x117   : > { %v1990_v7 = vadd.f32 %v1989_v8, %v1931_v39 }
 0x118   : > { %v1182_v9 = vshll.u32 %v7284_v51, 16  ;;  %v894_v12 = vrot.slane %v892_v63, 1 }
 0x11b   : > { %v2048_v20 = vpop.f32.mrf.mxu2 }
 0x11c   : > { %v2049_v16 = vadd.f32 %v2048_v20, %v1990_v7  ;;  %v1933_v21 = vpop.f32.mrf.mxu0  ;;  %v1000_v20 = vrot.slane %v819_v38, 1 }
 0x11d   : > { %v2107_v17 = vpop.f32.mrf.mxu3  ;;  %v1934_v28 = vadd.f32 %v7113_v54, %v1933_v21 }
 0x11e   : > { %v7278_v30 = vadd.f32 %v2107_v17, %v2049_v16  ;;  %v1992_v32 = vpop.f32.mrf.mxu1  ;;  %v1184_v16 = vrot.slane %v1182_v9, 1  ;;  %v5315_v17 = vld [vmem:[%s6842_s3 + $0x68] sm:$0x1] }
 0x11f   : > { %v1993_v34 = vadd.f32 %v1992_v32, %v1934_v28  ;;  %2158 = vmatmul.bf16.gmra.mxu0 %v883_v22  ;;  %v895_v28 = vsel %vm532_vm1, %v7017_v44, %v894_v12  ;;  %v1100_v32 = vunpack.c.l.b16 %v5315_v17  ;;  %v7319_v17 = vld [vmem:[%s6842_s3 + $0x6c] sm:$0xf0] }
 0x120   : > { %2276 = vmatmul.bf16.gmra.mxu2 %v6999_v24  ;;  %v6268_v24 = vor.u32 %v6267_v49, %v6266_v41  ;;  %v1185_v41 = vsel %vm532_vm1, %v1180_v59, %v1184_v16  ;;  %v6243_v49 = vld [vmem:[%s6842_s3 + $0x60] sm:$0xff]   ;;  %v7316_v16 = vld [vmem:[%s6842_s3 + $0x6c] sm:$0xff]  }
 0x121   : > { %2217 = vmatmul.bf16.gmra.mxu1 %v998_v40  ;;  %v1189_v44 = vshll.u32 %v6243_v49, 16 }
 0x122   : > { %2335 = vmatmul.bf16.gmra.mxu3 %v1173_v23  ;;  %v999_v15 = vrot.slane %v6268_v24, 1  ;;  %v810_v23 = vunpack.c.l.b16 %v5273_v14 }
 0x123   : > { %v2051_v56 = vpop.f32.mrf.mxu2  ;;  %v1191_v12 = vrot.slane %v1189_v44, 1 }
 0x124   : > { %v2052_v57 = vadd.f32 %v2051_v56, %v1993_v34  ;;  %v1935_v61 = vpop.f32.mrf.mxu0  ;;  %v1001_v38 = vsel %vm693_vm0, %v999_v15, %v1000_v20  ;;  %v6477_v56 = vld [vmem:[%s6842_s3 + $0x54] sm:$0xe]  ;;  %v820_v5 = vpack.c.b16 %v810_v23, %v810_v23 }
 0x125   : > { %v2110_v60 = vpop.f32.mrf.mxu3  ;;  %v1936_v39 = vadd.f32 %v7113_v54, %v1935_v61  ;;  %v7307_v61 = vpack.c.b16 %v1100_v32, %v1100_v32  ;;  %v5274_v32 = vld [vmem:[%s6842_s3 + $0x68] sm:$0x1] }
 0x126   : > { %v7291_v8 = vadd.f32 %v2110_v60, %v2052_v57  ;;  %v1994_v7 = vpop.f32.mrf.mxu1  ;;  %v899_v57 = vshll.u32 %v7010_v36, 16  ;;  %v904_v58 = vshll.u32 %v820_v5, 16 }
 0x127   : > { %v1995_v10 = vadd.f32 %v1994_v7, %v1936_v39  ;;  %v897_v39 = vshrl.u32 %v7010_v36, 16  ;;  %v1194_v14 = vshll.u32 %v7307_v61, 16 }
 0x128   : > { %v901_v7 = vrot.slane %v899_v57, 1 }
 0x12b   : > { %v2053_v21 = vpop.f32.mrf.mxu2 }
 0x12c   : > { %v2054_v22 = vadd.f32 %v2053_v21, %v1995_v10  ;;  %v1938_v26 = vpop.f32.mrf.mxu0  ;;  %v1187_v10 = vshrl.u32 %v6243_v49, 16  ;;  %v902_v21 = vor.u32 %v901_v7, %v897_v39 }
 0x12d   : > { %v2112_v40 = vpop.f32.mrf.mxu3  ;;  %v1939_v33 = vadd.f32 %v7113_v54, %v1938_v26  ;;  %v1003_v26 = vrot.slane %v820_v5, 1 }
 0x12e   : > { %v7299_v34 = vadd.f32 %v2112_v40, %v2054_v22  ;;  %v1997_v0 = vpop.f32.mrf.mxu1  ;;  %v906_v22 = vrot.slane %v904_v58, 1  ;;  %v6035_v40 = vld [vmem:[%s8500_s1 + $0x208] sm:$0xff] }
 0x12f   : > { %v1998_v60 = vadd.f32 %v1997_v0, %v1939_v33  ;;  %2163 = vmatmul.bf16.gmra.mxu0 %v895_v28  ;;  %v1196_v28 = vrot.slane %v1194_v14, 1  ;;  %v5316_v0 = vld [vmem:[%s6842_s3 + $0x74] sm:$0x1] }
 0x130   : > { %2281 = vmatmul.bf16.gmra.mxu2 %v7266_v6  ;;  %v6478_v6 = vor.u32 %v6477_v56, %v7013_v37  ;;  %v1192_v37 = vor.u32 %v1191_v12, %v1187_v10  ;;  %2372 = vmatpush.bf16.msra.mxu0 %v6035_v40  ;;  %v907_v57 = vsel %vm532_vm1, %v902_v21, %v906_v22  ;;  %v1101_v39 = vunpack.c.l.b16 %v5316_v0  ;;  %v6269_v10 = vld [vmem:[%s6842_s3 + $0x60] sm:$0xf0]  ;;  %v6270_v12 = vld [vmem:[%s6842_s3 + $0x60] sm:$0xe] }
 0x131   : > { %2222 = vmatmul.bf16.gmra.mxu1 %v1001_v38  ;;  %v6271_v22 = vor.u32 %v6270_v12, %v6269_v10  ;;  %v6480_v10 = vld [vmem:[%s6842_s3 + $0x6c] sm:$0xe] }
 0x132   : > { %2340 = vmatmul.bf16.gmra.mxu3 %v1185_v41  ;;  %v1002_v23 = vrot.slane %v6478_v6, 1  ;;  %v1197_v44 = vsel %vm532_vm1, %v1192_v37, %v1196_v28  ;;  %v7335_v6 = vpack.c.b16 %v1101_v39, %v1101_v39  ;;  %v1199_v37 = vshrl.u32 %v7316_v16, 16 }
 0x133   : > { %v2056_v63 = vpop.f32.mrf.mxu2 }
 0x134   : > { %v2057_v24 = vadd.f32 %v2056_v63, %v1998_v60  ;;  %v1940_v9 = vpop.f32.mrf.mxu0  ;;  %v1004_v60 = vsel %vm693_vm0, %v1002_v23, %v1003_v26  ;;  %v811_v63 = vunpack.c.l.b16 %v5274_v32  ;;  %v1206_v26 = vshll.u32 %v7335_v6, 16 }
 0x135   : > { %v2115_v47 = vpop.f32.mrf.mxu3  ;;  %v1941_v15 = vadd.f32 %v7113_v54, %v1940_v9  ;;  %v1201_v9 = vshll.u32 %v7316_v16, 16  ;;  %v1005_v32 = vrot.slane %v6271_v22, 1 }
 0x136   : > { %v7313_v20 = vadd.f32 %v2115_v47, %v2057_v24  ;;  %v1999_v59 = vpop.f32.mrf.mxu1  ;;  %v821_v58 = vpack.c.b16 %v811_v63, %v811_v63 }
 0x137   : > { %v2000_v36 = vadd.f32 %v1999_v59, %v1941_v15  ;;  %v1203_v23 = vrot.slane %v1201_v9, 1 }
 0x138   : > { %v916_v21 = vshll.u32 %v821_v58, 16 }
 0x139   : > { %v1204_v0 = vor.u32 %v1203_v23, %v1199_v37 }
 0x13a   : > { %v918_v28 = vrot.slane %v916_v21, 1 }
 0x13b   : > { %v2058_v33 = vpop.f32.mrf.mxu2 }
 0x13c   : > { %v2059_v38 = vadd.f32 %v2058_v33, %v2000_v36  ;;  %v1943_v56 = vpop.f32.mrf.mxu0  ;;  %v1006_v33 = vrot.slane %v821_v58, 1 }
 0x13d   : > { %v2117_v41 = vpop.f32.mrf.mxu3  ;;  %v1944_v24 = vadd.f32 %v7113_v54, %v1943_v56 }
 0x13e   : > { %v7330_v5 = vadd.f32 %v2117_v41, %v2059_v38  ;;  %v2002_v47 = vpop.f32.mrf.mxu1  ;;  %v1208_v38 = vrot.slane %v1206_v26, 1  ;;  %v5275_v41 = vld [vmem:[%s6842_s3 + $0x74] sm:$0x1]  ;;  %v1007_v58 = vsel %vm693_vm0, %v1005_v32, %v1006_v33  ;;  %v921_v26 = vshrl.u32 %v7090_v42, 16 }
 0x13f   : > { %v2003_v7 = vadd.f32 %v2002_v47, %v1944_v24  ;;  %2168 = vmatmul.bf16.gmra.mxu0 %v907_v57  ;;  %v5317_v57 = vld [vmem:[%s6842_s3 + $0x80] sm:$0x1]  ;;  %v919_v24 = vsel %vm532_vm1, %v7108_v53, %v918_v28  ;;  %v812_v47 = vunpack.c.l.b16 %v5275_v41  ;;  %v6481_v32 = vor.u32 %v6480_v10, %v7093_v43  ;;  %v5318_v43 = vld [vmem:[%s6842_s3 + $0x8c] sm:$0x1] }
 0x140   : > { %2286 = vmatmul.bf16.gmra.mxu2 %v6243_v49  ;;  %v1209_v9 = vsel %vm532_vm1, %v1204_v0, %v1208_v38  ;;  %v1102_v12 = vunpack.c.l.b16 %v5317_v57  ;;  %v933_v33 = vshrl.u32 %v7147_v55, 16  ;;  %v5307_v57 = vld [vmem:[%s6842_s3 + $0x84] sm:$0xff]  }
 0x141   : > { %2227 = vmatmul.bf16.gmra.mxu1 %v1004_v60  ;;  %v822_v53 = vpack.c.b16 %v812_v47, %v812_v47  ;;  %v1008_v47 = vrot.slane %v6481_v32, 1 }
 0x142   : > { %2345 = vmatmul.bf16.gmra.mxu3 %v1197_v44  ;;  %v6034_v44 = vld [vmem:[%s8500_s1 + $0x200] sm:$0xff] }
 0x143   : > { %v2061_v14 = vpop.f32.mrf.mxu2  ;;  %2373 = vmatpush.bf16.msra.mxu0 %v6034_v44  ;;  %v928_v28 = vshll.u32 %v822_v53, 16  ;;  %v7375_v44 = vld [vmem:[%s6842_s3 + $0x84] sm:$0xf0] }
 0x144   : > { %v2062_v15 = vadd.f32 %v2061_v14, %v2003_v7  ;;  %v7337_v36 = vpop.f32.mrf.mxu0 }
 0x145   : > { %v2120_v59 = vpop.f32.mrf.mxu3 }
 0x146   : > { %v7339_v40 = vadd.f32 %v2120_v59, %v2062_v15  ;;  %v7341_v49 = vpop.f32.mrf.mxu1  ;;  %v923_v15 = vshll.u32 %v7090_v42, 16  ;;  %v7363_v59 = vpack.c.b16 %v1102_v12, %v1102_v12  ;;  %v1009_v42 = vrot.slane %v822_v53, 1 }
 0x148   : > { %v1218_v41 = vshll.u32 %v7363_v59, 16  ;;  %v1010_v12 = vsel %vm693_vm0, %v1008_v47, %v1009_v42 }
 0x14b   : > { %v7346_v56 = vpop.f32.mrf.mxu2 }
 0x14c   : > { %v1948_v63 = vpop.f32.mrf.mxu0 }
 0x14d   : > { %v7349_v60 = vpop.f32.mrf.mxu3  ;;  %v1949_v39 = vadd.f32 %v7113_v54, %v1948_v63  ;;  %v935_v54 = vshll.u32 %v7147_v55, 16 }
 0x14e   : > { %v2007_v7 = vpop.f32.mrf.mxu1 }
 0x14f   : > { %v2008_v14 = vadd.f32 %v2007_v7, %v1949_v39  ;;  %2173 = vmatmul.bf16.gmra.mxu0 %v919_v24  ;;  %v937_v0 = vrot.slane %v935_v54, 1  ;;  %v930_v24 = vrot.slane %v928_v28, 1  ;;  %v1220_v7 = vrot.slane %v1218_v41, 1 }
 0x150   : > { %2291 = vmatmul.bf16.gmra.mxu2 %v7316_v16  ;;  %v925_v16 = vrot.slane %v923_v15, 1 }
 0x151   : > { %2232 = vmatmul.bf16.gmra.mxu1 %v1007_v58  ;;  %v938_v39 = vor.u32 %v937_v0, %v933_v33  ;;  %v5276_v58 = vld [vmem:[%s6842_s3 + $0x80] sm:$0x1]  ;;  %v1223_v0 = vshrl.u32 %v5307_v57, 16 }
 0x152   : > { %2350 = vmatmul.bf16.gmra.mxu3 %v1209_v9  ;;  %v926_v63 = vor.u32 %v925_v16, %v921_v26  ;;  %v6273_v26 = vld [vmem:[%s6842_s3 + $0x78] sm:$0xe] }
 0x153   : > { %v2066_v21 = vpop.f32.mrf.mxu2  ;;  %v1221_v54 = vsel %vm532_vm1, %v938_v39, %v1220_v7 }
 0x154   : > { %v2067_v22 = vadd.f32 %v2066_v21, %v2008_v14  ;;  %v7365_v23 = vpop.f32.mrf.mxu0  ;;  %v931_v10 = vsel %vm532_vm1, %v926_v63, %v930_v24  ;;  %v813_v14 = vunpack.c.l.b16 %v5276_v58  ;;  %v1103_v21 = vunpack.c.l.b16 %v5318_v43  ;;  %v6057_v24 = vld [vmem:[#allocation3 + $0x78] sm:$0xff] }
 0x155   : > { %v2125_v37 = vpop.f32.mrf.mxu3  ;;  %4308 = vmatpush.bf16.msra.mxu2 %v6057_v24 }
 0x156   : > { %v7370_v38 = vadd.f32 %v2125_v37, %v2067_v22  ;;  %v823_v53 = vpack.c.b16 %v813_v14, %v813_v14  ;;  %v1225_v22 = vshll.u32 %v5307_v57, 16  ;;  %v6272_v37 = vld [vmem:[%s6842_s3 + $0x78] sm:$0xf0]  ;;  %v7388_v16 = vpack.c.b16 %v1103_v21, %v1103_v21 }
 0x157   : > { %v6274_v33 = vor.u32 %v6273_v26, %v6272_v37  ;;  %v6275_v21 = vld [vmem:[%s6842_s3 + $0x18] sm:$0xf0] }
 0x158   : > { %v940_v32 = vshll.u32 %v823_v53, 16  ;;  %v1227_v41 = vrot.slane %v1225_v22, 1  ;;  %v1230_v63 = vshll.u32 %v7388_v16, 16  ;;  %v1012_v7 = vrot.slane %v823_v53, 1  ;;  %v6276_v53 = vld [vmem:[%s6842_s3 + $0x18] sm:$0xe] }
 0x159   : > { %v1011_v42 = vrot.slane %v6274_v33, 1  ;;  %v6277_v37 = vor.u32 %v6276_v53, %v6275_v21 }
 0x15a   : > { %v942_v47 = vrot.slane %v940_v32, 1  ;;  %v1228_v58 = vor.u32 %v1227_v41, %v1223_v0  ;;  %v1232_v43 = vrot.slane %v1230_v63, 1  ;;  %v6064_v32 = vld [vmem:[#allocation3 + $0xb0] sm:$0xff] }
 0x15b   : > { %v1013_v14 = vsel %vm693_vm0, %v1011_v42, %v1012_v7  ;;  %v6048_v63 = vld [vmem:[#allocation3 + $0x30] sm:$0xff] }
 0x15c   : > { %v2139_v9 = vpop.f32.mrf.mxu0 }
 0x15d   : > { %v7382_v15 = vadd.f32 %v2139_v9, %v7137_v18  ;;  %v6049_v9 = vld [vmem:[#allocation3 + $0x38] sm:$0xff] }
 0x15e   : > { %4259 = vmatpush.bf16.msra.mxu1 %v6049_v9  ;;  %v6278_v9 = vld [vmem:[%s6842_s3 + $0x30] sm:$0xf0] }
 0x15f   : > { %2178 = vmatmul.bf16.gmra.mxu0 %v931_v10 }
 0x160   : > { %2296 = vmatmul.bf16.gmra.mxu2 %v7147_v55  ;;  %v6065_v55 = vld [vmem:[#allocation3 + $0xb8] sm:$0xff] }
 0x161   : > { %2237 = vmatmul.bf16.gmra.mxu1 %v1010_v12  ;;  %4357 = vmatpush.bf16.msra.mxu3 %v6065_v55 }
 0x162   : > { %2355 = vmatmul.bf16.gmra.mxu3 %v1221_v54  ;;  %v1233_v54 = vsel %vm532_vm1, %v1228_v58, %v1232_v43  ;;  %4260 = vmatpush.bf16.msra.mxu1 %v6048_v63  ;;  %v6055_v58 = vld [vmem:[#allocation3 + $0x68] sm:$0xff]  ;;  %v6281_v63 = vld [vmem:[%s6842_s3 + $0x48] sm:$0xf0] }
 0x163   : > { %v6063_v43 = vld [vmem:[#allocation3 + $0xa8] sm:$0xff] }
 0x164   : > { %v2141_v28 = vpop.f32.mrf.mxu0 }
 0x165   : > { %v7391_v18 = vadd.f32 %v2141_v28, %v7143_v50  ;;  %v943_v50 = vsel %vm532_vm1, %v938_v39, %v942_v47  ;;  %v1274_v39 = vrot.slane %v6277_v37, 1  ;;  %v6056_v28 = vld [vmem:[#allocation3 + $0x70] sm:$0xff]  ;;  %4358 = vmatpush.bf16.msra.mxu3 %v6064_v32  ;;  %v1278_v47 = vrot.slane %v7182_v52, 1  ;;  %v6054_v37 = vld [vmem:[#allocation3 + $0x60] sm:$0xff] }
 0x166   : > { %4309 = vmatpush.bf16.msra.mxu2 %v6056_v28 }
 0x169   : > { %4359 = vmatpush.bf16.msra.mxu3 %v6063_v43 }
 0x16a   : > { %4310 = vmatpush.bf16.msra.mxu2 %v6055_v58  ;;  %v7446_v58 = vpop.f32.mrf.mxu1 }
 0x16c   : > { %v2144_v10 = vpop.f32.mrf.mxu0 }
 0x16d   : > { %v7396_v12 = vadd.f32 %v2144_v10, %v7162_v11  ;;  %v1275_v11 = vrot.slane %v7153_v62, 1  ;;  %v6279_v10 = vld [vmem:[%s6842_s3 + $0x30] sm:$0xe] }
 0x16e   : > { %4311 = vmatpush.bf16.msra.mxu2 %v6054_v37 }
 0x16f   : > { %2183 = vmatmul.bf16.gmra.mxu0 %v943_v50  ;;  %v1276_v0 = vsel %vm693_vm0, %v1274_v39, %v1275_v11  ;;  %v6280_v50 = vor.u32 %v6279_v10, %v6278_v9  ;;  %v6062_v39 = vld [vmem:[#allocation3 + $0xa0] sm:$0xff]  ;;  %v6489_v10 = vld [vmem:[%s6842_s3 + $0x54] sm:$0xe] }
 0x170   : > { %2301 = vmatmul.bf16.gmra.mxu2 %v5307_v57  ;;  %v6483_v57 = vld [vmem:[%s6842_s3 + $0x24] sm:$0xe]  ;;  %4360 = vmatpush.bf16.msra.mxu3 %v6062_v39 }
 0x171   : > { %2242 = vmatmul.bf16.gmra.mxu1 %v1013_v14  ;;  %v6484_v24 = vor.u32 %v6483_v57, %v7168_v13  ;;  %v6047_v13 = vld [vmem:[#allocation3 + $0x28] sm:$0xff]  ;;  %v1280_v52 = vrot.slane %v6280_v50, 1 }
 0x172   : > { %2360 = vmatmul.bf16.gmra.mxu3 %v1233_v54  ;;  %4261 = vmatpush.bf16.msra.mxu1 %v6047_v13  ;;  %v1281_v54 = vrot.slane %v7205_v48, 1  ;;  %v6046_v48 = vld [vmem:[#allocation3 + $0x20] sm:$0xff]  ;;  %v7455_v13 = vpop.f32.mrf.mxu3 }
 0x173   : > { %v1277_v55 = vrot.slane %v6484_v24, 1 }
 0x174   : > { %v2146_v22 = vpop.f32.mrf.mxu0  ;;  %v1282_v21 = vsel %vm693_vm0, %v1280_v52, %v1281_v54  ;;  %v7461_v52 = vpop.f32.mrf.mxu1 }
 0x175   : > { %v7403_v26 = vadd.f32 %v2146_v22, %v7177_v35  ;;  %v6486_v22 = vld [vmem:[%s6842_s3 + $0x3c] sm:$0xe] }
 0x176   : > { %4262 = vmatpush.bf16.msra.mxu1 %v6046_v48  ;;  %v6284_v48 = vld [vmem:[%s6842_s3 + $0x60] sm:$0xf0] }
 0x17c   : > { %v2149_v33 = vpop.f32.mrf.mxu0 }
 0x17d   : > { %v7408_v41 = vadd.f32 %v2149_v33, %v7187_v4  ;;  %v1279_v4 = vsel %vm693_vm0, %v1277_v55, %v1278_v47  ;;  %v1284_v33 = vrot.slane %v7235_v25, 1  ;;  %v6053_v55 = vld [vmem:[#allocation3 + $0x58] sm:$0xff]  ;;  %v1287_v25 = vrot.slane %v7257_v46, 1 }
 0x17e   : > { %v6061_v47 = vld [vmem:[#allocation3 + $0x98] sm:$0xff]  ;;  %4312 = vmatpush.bf16.msra.mxu2 %v6053_v55  ;;  %v6490_v46 = vor.u32 %v6489_v10, %v7269_v19  ;;  %v7470_v19 = vpop.f32.mrf.mxu3 }
 0x17f   : > { %2374 = vmatmul.bf16.vlgmr.msra.gmra.mxu0 %v1276_v0  ;;  %4361 = vmatpush.bf16.msra.mxu3 %v6061_v47 }
 0x184   : > { %v2151_v35 = vpop.f32.mrf.mxu0 }
 0x185   : > { %v7413_v62 = vadd.f32 %v2151_v35, %v7198_v31 }
 0x18c   : > { %v2154_v42 = vpop.f32.mrf.mxu0 }
 0x18d   : > { %v7418_v7 = vadd.f32 %v2154_v42, %v7211_v3 }
 0x18f   : > { %2379 = vmatmul.bf16.gmra.mxu0 %v1279_v4  ;;  %v6045_v4 = vld [vmem:[#allocation3 + $0x18] sm:$0xff] }
 0x190   : > { %4263 = vmatpush.bf16.msra.mxu1 %v6045_v4 }
 0x194   : > { %v2156_v31 = vpop.f32.mrf.mxu0 }
 0x195   : > { %v7423_v14 = vadd.f32 %v2156_v31, %v7229_v29  ;;  %v6487_v29 = vor.u32 %v6486_v22, %v7217_v45  ;;  %v6282_v45 = vld [vmem:[%s6842_s3 + $0x48] sm:$0xe] }
 0x196   : > { %v6060_v22 = vld [vmem:[#allocation3 + $0x90] sm:$0xff] }
 0x197   : > { %v1283_v32 = vrot.slane %v6487_v29, 1  ;;  %4362 = vmatpush.bf16.msra.mxu3 %v6060_v22  ;;  %v7472_v29 = vpop.f32.mrf.mxu1 }
 0x199   : > { %v1285_v0 = vsel %vm693_vm0, %v1283_v32, %v1284_v33  ;;  %v6285_v32 = vld [vmem:[%s6842_s3 + $0x60] sm:$0xe] }
 0x19c   : > { %v2159_v3 = vpop.f32.mrf.mxu0 }
 0x19d   : > { %v7428_v53 = vadd.f32 %v2159_v3, %v7239_v1  ;;  %v1290_v3 = vrot.slane %v7284_v51, 1 }
 0x19f   : > { %2384 = vmatmul.bf16.gmra.mxu0 %v1282_v21  ;;  %v6052_v21 = vld [vmem:[#allocation3 + $0x50] sm:$0xff] }
 0x1a0   : > { %4313 = vmatpush.bf16.msra.mxu2 %v6052_v21  ;;  %v2561_v21 = vld [vmem:[#allocation2 + $0x8] sm:$0x1] }
 0x1a1   : > { %v2562_v22 = vsel %vm7510_vm6, 0, %v2561_v21 }
 0x1a2   : > { %2563 = vst [vmem:[#allocation2 + $0x8] sm:$0x1] %v2562_v22 }
 0x1a4   : > { %v2161_v11 = vpop.f32.mrf.mxu0 }
 0x1a5   : > { %v7433_v28 = vadd.f32 %v2161_v11, %v7247_v27  ;;  %v6283_v27 = vor.u32 %v6282_v45, %v6281_v63  ;;  %v1293_v45 = vrot.slane %v7307_v61, 1 }
 0x1a7   : > { %v1286_v42 = vrot.slane %v6283_v27, 1 }
 0x1a9   : > { %v1288_v43 = vsel %vm693_vm0, %v1286_v42, %v1287_v25  ;;  %v6492_v25 = vld [vmem:[%s6842_s3 + $0x6c] sm:$0xe] }
 0x1aa   : > { %v6493_v10 = vor.u32 %v6492_v25, %v7319_v17  ;;  %v6059_v17 = vld [vmem:[#allocation3 + $0x88] sm:$0xff] }
 0x1ab   : > { %4363 = vmatpush.bf16.msra.mxu3 %v6059_v17  ;;  %v2564_v17 = vld [vmem:[#allocation2 + $0x14] sm:$0x1] }
 0x1ac   : > { %v2164_v1 = vpop.f32.mrf.mxu0 }
 0x1ad   : > { %v7438_v57 = vadd.f32 %v2164_v1, %v7263_v2  ;;  %v6286_v1 = vor.u32 %v6285_v32, %v6284_v48 }
 0x1af   : > { %2389 = vmatmul.bf16.gmra.mxu0 %v1285_v0  ;;  %v1292_v63 = vrot.slane %v6286_v1, 1 }
 0x1b1   : > { %v1294_v47 = vsel %vm693_vm0, %v1292_v63, %v1293_v45  ;;  %v6287_v63 = vld [vmem:[%s6842_s3 + $0x78] sm:$0xf0]  ;;  %v6288_v45 = vld [vmem:[%s6842_s3 + $0x78] sm:$0xe] }
 0x1b4   : > { %v2166_v35 = vpop.f32.mrf.mxu0 }
 0x1b5   : > { %v7443_v24 = vadd.f32 %v2166_v35, %v7278_v30  ;;  %v7453_v30 = vpop.f32.mrf.mxu2  ;;  %v7484_v35 = vpop.f32.mrf.mxu1 }
 0x1bc   : > { %v2169_v2 = vpop.f32.mrf.mxu0 }
 0x1bd   : > { %v7450_v9 = vadd.f32 %v2169_v2, %v7291_v8  ;;  %v7463_v54 = vpop.f32.mrf.mxu2  ;;  %v1289_v8 = vrot.slane %v6490_v46, 1 }
 0x1bf   : > { %2394 = vmatmul.bf16.gmra.mxu0 %v1288_v43  ;;  %v1291_v39 = vsel %vm693_vm0, %v1289_v8, %v1290_v3  ;;  %v7502_v43 = vpop.f32.mrf.mxu1  ;;  %v1295_v8 = vrot.slane %v6493_v10, 1  ;;  %v1296_v3 = vrot.slane %v7335_v6, 1 }
 0x1c1   : > { %v1297_v32 = vsel %vm693_vm0, %v1295_v8, %v1296_v3  ;;  %v7539_v8 = vstv %s5617_s14  ;;  %v6042_v3 = vld [vmem:[#allocation3] sm:$0xff]  ;;  %s5240_s14 = sshll.u32 %s300_s12, 7 }
 0x1c2   : > { %vm2456_vm7 = vcmp.ge.s32.totalorder %v7539_v8, 0  ;;  %vm2466_vm8 = vcmp.lt.s32.totalorder %v7539_v8, 16  ;;  %s8342_s22 = scalar_lea.vmem [#allocation6], %s5240_s14 }
 0x1c3   : > { %vm7557_vm9 = vmand %vm2456_vm7, %vm2466_vm8  ;;  %s5132_s19 = sshll.u32 %s8342_s22, 4  ;;  %s5133_s19 = int_to_ptr.vmem [resolvable:$true] %s5132_s19 }
 0x1c4   : > { %v2171_v31 = vpop.f32.mrf.mxu0 }
 0x1c5   : > { %v7459_v50 = vadd.f32 %v2171_v31, %v7299_v34  ;;  %v6044_v34 = vld [vmem:[#allocation3 + $0x10] sm:$0xff]  ;;  %v7476_v51 = vpop.f32.mrf.mxu2 }
 0x1c6   : > { %4264 = vmatpush.bf16.msra.mxu1 %v6044_v34 }
 0x1c7   : > { %v7523_v6 = vpop.f32.mrf.mxu1 }
 0x1cc   : > { %v2174_v37 = vpop.f32.mrf.mxu0 }
 0x1cd   : > { %v7468_v11 = vadd.f32 %v2174_v37, %v7313_v20  ;;  %v7481_v20 = vpop.f32.mrf.mxu3  ;;  %v7486_v27 = vpop.f32.mrf.mxu2  ;;  %v6051_v37 = vld [vmem:[#allocation3 + $0x48] sm:$0xff] }
 0x1ce   : > { %4314 = vmatpush.bf16.msra.mxu2 %v6051_v37  ;;  %v1299_v37 = vrot.slane %v7363_v59, 1 }
 0x1cf   : > { %2399 = vmatmul.bf16.gmra.mxu0 %v1291_v39  ;;  %v6043_v39 = vld [vmem:[#allocation3 + $0x8] sm:$0xff]  ;;  %v7541_v21 = vpop.f32.mrf.mxu1 }
 0x1d0   : > { %4265 = vmatpush.bf16.msra.mxu1 %v6043_v39 }
 0x1d4   : > { %v2176_v33 = vpop.f32.mrf.mxu0  ;;  %4266 = vmatpush.bf16.msra.mxu1 %v6042_v3 }
 0x1d5   : > { %v7479_v0 = vadd.f32 %v2176_v33, %v7330_v5  ;;  %v2529_v5 = vld [vmem:[#allocation2] sm:$0x1]  ;;  %v7498_v61 = vpop.f32.mrf.mxu3  ;;  %v7507_v31 = vpop.f32.mrf.mxu2 }
 0x1d6   : > { %v2530_v2 = vsel %vm7494_vm4, 0, %v2529_v5  ;;  %v2199_v5 = vadd.f32 %v7461_v52, %v7382_v15  ;;  %v2565_v15 = vsel %vm7510_vm6, 0, %v2564_v17 }
 0x1d7   : > { %2531 = vst [vmem:[#allocation2] sm:$0x1] %v2530_v2 }
 0x1d8   : > { %v2258_v10 = vadd.f32 %v7463_v54, %v2199_v5  ;;  %v6050_v54 = vld [vmem:[#allocation3 + $0x40] sm:$0xff]  ;;  %2566 = vst [vmem:[#allocation2 + $0x14] sm:$0x1] %v2565_v15 }
 0x1d9   : > { %4315 = vmatpush.bf16.msra.mxu2 %v6050_v54 }
 0x1da   : > { %v2317_v52 = vadd.f32 %v7470_v19, %v2258_v10  ;;  %v6096_v10 = vld [vmem:[#allocation3 + $0x1b0] sm:$0xff] }
 0x1dc   : > { %v2179_v55 = vpop.f32.mrf.mxu0 }
 0x1dd   : > { %v7490_v42 = vadd.f32 %v2179_v55, %v7339_v40  ;;  %v7517_v34 = vpop.f32.mrf.mxu3  ;;  %v7525_v1 = vpop.f32.mrf.mxu2  ;;  %v2532_v55 = vld [vmem:[#allocation2 + $0xc] sm:$0x1] }
 0x1df   : > { %2404 = vmatmul.bf16.gmra.mxu0 %v1294_v47  ;;  %v2533_v47 = vsel %vm7494_vm4, 0, %v2532_v55 }
 0x1e0   : > { %2534 = vst [vmem:[#allocation2 + $0xc] sm:$0x1] %v2533_v47  ;;  %v6495_v47 = vld [vmem:[%s6842_s3 + $0x84] sm:$0xe] }
 0x1e4   : > { %v7504_v40 = vpop.f32.mrf.mxu0 }
 0x1e5   : > { %v7536_v2 = vpop.f32.mrf.mxu3  ;;  %v7544_v39 = vpop.f32.mrf.mxu2 }
 0x1ec   : > { %v2184_v48 = vpop.f32.mrf.mxu0 }
 0x1ed   : > { %v7521_v33 = vadd.f32 %v2184_v48, %v7370_v38  ;;  %v6289_v38 = vor.u32 %v6288_v45, %v6287_v63  ;;  %v6058_v48 = vld [vmem:[#allocation3 + $0x80] sm:$0xff]  ;;  %v2201_v45 = vadd.f32 %v7472_v29, %v7391_v18  ;;  %v7562_v3 = vpop.f32.mrf.mxu3 }
 0x1ee   : > { %4364 = vmatpush.bf16.msra.mxu3 %v6058_v48  ;;  %v2535_v29 = vld [vmem:[#allocation2 + $0x18] sm:$0x1]  ;;  %v6496_v48 = vor.u32 %v6495_v47, %v7375_v44 }
 0x1ef   : > { %2409 = vmatmul.bf16.gmra.mxu0 %v1297_v32  ;;  %v1298_v22 = vrot.slane %v6289_v38, 1  ;;  %v6097_v32 = vld [vmem:[#allocation3 + $0x1b8] sm:$0xff]  ;;  %v2260_v38 = vadd.f32 %v7476_v51, %v2201_v45  ;;  %v2536_v17 = vsel %vm7494_vm4, 0, %v2535_v29  ;;  %v7571_v51 = vpop.f32.mrf.mxu2  ;;  %v1302_v29 = vrot.slane %v7388_v16, 1 }
 0x1f0   : > { %4553 = vmatpush.bf16.msrb.mxu0 %v6097_v32  ;;  %2537 = vst [vmem:[#allocation2 + $0x18] sm:$0x1] %v2536_v17  ;;  %v6095_v32 = vld [vmem:[#allocation3 + $0x1a8] sm:$0xff]  ;;  %v1301_v47 = vrot.slane %v6496_v48, 1 }
 0x1f1   : > { %v1300_v59 = vsel %vm693_vm0, %v1298_v22, %v1299_v37  ;;  %v7566_v22 = vpop.f32.mrf.mxu1  ;;  %v2319_v15 = vadd.f32 %v7481_v20, %v2260_v38  ;;  %v2815_v38 = vld [vmem:[#allocation2] sm:$0xf] }
 0x1f2   : > { %v6107_v20 = vld [vmem:[#allocation3 + $0x208] sm:$0xff] }
 0x1f4   : > { %v7532_v25 = vpop.f32.mrf.mxu0  ;;  %4554 = vmatpush.bf16.msrb.mxu0 %v6096_v10 }
 0x1f5   : > { %v7586_v17 = vpop.f32.mrf.mxu3 }
 0x1f8   : > { %4555 = vmatpush.bf16.msrb.mxu0 %v6095_v32  ;;  %v1303_v32 = vsel %vm693_vm0, %v1301_v47, %v1302_v29  ;;  %v2819_v47 = vld [vmem:[#allocation2 + $0x8] sm:$0x1] }
 0x1f9   : > { %v7593_v16 = vpop.f32.mrf.mxu1 }
 0x1fc   : > { %v2375_v63 = vpop.f32.mrf.mxu0 }
 0x1fd   : > { %v2376_v55 = vadd.f32 %v2375_v63, %v2317_v52  ;;  %v2204_v63 = vadd.f32 %v7484_v35, %v7396_v12  ;;  %v6094_v12 = vld [vmem:[#allocation3 + $0x1a0] sm:$0xff] }
 0x1fe   : > { %4556 = vmatpush.bf16.msrb.mxu0 %v6094_v12 }
 0x1ff   : > { %v2425_v5 = vmax.f32 %v2376_v55, 0.0  ;;  %2414 = vmatmul.bf16.gmra.mxu0 %v1300_v59 }
 0x201   : > { %v2506_v18 = vsel %vm7557_vm9, %v2425_v5, 0.0  ;;  %v2263_v5 = vadd.f32 %v7486_v27, %v2204_v63  ;;  %v6093_v63 = vld [vmem:[#allocation3 + $0x198] sm:$0xff] }
 0x202   : > { %v2591_v37 = vpack.c.bf16 %v2506_v18, %v2506_v18  ;;  %v2447_v18 = vadd.s32 1, %v7539_v8  ;;  %4557 = vmatpush.bf16.msrb.mxu0 %v6093_v63 }
 0x204   : > { %v2614_v52 = vshrl.u32 %v2591_v37, 16  ;;  %v2377_v54 = vpop.f32.mrf.mxu0  ;;  %v2617_v55 = vshll.u32 %v2591_v37, 16  ;;  %v2567_v37 = vld [vmem:[#allocation2 + $0x20] sm:$0x1]  ;;  %vm2457_vm12 = vcmp.ge.s32.totalorder %v2447_v18, 0  ;;  %vm2467_vm13 = vcmp.lt.s32.totalorder %v2447_v18, 16 }
 0x205   : > { %v2378_v59 = vadd.f32 %v2377_v54, %v2319_v15  ;;  %v2322_v54 = vadd.f32 %v7498_v61, %v2263_v5  ;;  %vm7600_vm15 = vmand %vm2457_vm12, %vm2467_vm13 }
 0x206   : > { %v2616_v45 = vrot.slane %v2614_v52, 7  ;;  %v2568_v52 = vsel %vm7510_vm6, 0, %v2567_v37 }
 0x207   : > { %v2426_v10 = vmax.f32 %v2378_v59, 0.0  ;;  %2569 = vst [vmem:[#allocation2 + $0x20] sm:$0x1] %v2568_v52  ;;  %v2206_v59 = vadd.f32 %v7502_v43, %v7403_v26  ;;  %v2538_v52 = vld [vmem:[#allocation2 + $0x24] sm:$0x1] }
 0x208   : > { %v2619_v44 = vor.u32 %v2617_v55, %v2616_v45  ;;  %v2620_v26 = vrot.slane %v2616_v45, 4  ;;  %v2539_v45 = vsel %vm7494_vm4, 0, %v2538_v52 }
 0x209   : > { %v2507_v35 = vsel %vm7557_vm9, %v2426_v10, 0.0  ;;  %v2265_v18 = vadd.f32 %v7507_v31, %v2206_v59  ;;  %v6081_v59 = vld [vmem:[#allocation3 + $0x138] sm:$0xff]  ;;  %2540 = vst [vmem:[#allocation2 + $0x24] sm:$0x1] %v2539_v45 }
 0x20a   : > { %v2816_v27 = vsel %vm7578_vm11, %v2619_v44, %v2815_v38  ;;  %v2592_v15 = vpack.c.bf16 %v2507_v35, %v2507_v35  ;;  %v7598_v38 = vpop.f32.mrf.mxu2  ;;  %v6092_v35 = vld [vmem:[#allocation3 + $0x190] sm:$0xff]  ;;  %4455 = vmatpush.bf16.msrb.mxu2 %v6081_v59 }
 0x20b   : > { %2817 = vst [vmem:[#allocation2] sm:$0xf] %v2816_v27  ;;  %4558 = vmatpush.bf16.msrb.mxu0 %v6092_v35 }
 0x20c   : > { %v2622_v19 = vshrl.u32 %v2592_v15, 16  ;;  %v2380_v48 = vpop.f32.mrf.mxu0  ;;  %v2625_v61 = vshll.u32 %v2592_v15, 16 }
 0x20d   : > { %v2381_v55 = vadd.f32 %v2380_v48, %v2322_v54  ;;  %v2324_v54 = vadd.f32 %v7517_v34, %v2265_v18  ;;  %v7621_v48 = vpop.f32.mrf.mxu3  ;;  %v7624_v18 = vpop.f32.mrf.mxu1 }
 0x20e   : > { %v2624_v10 = vrot.slane %v2622_v19, 7  ;;  %v2209_v19 = vadd.f32 %v7523_v6, %v7408_v41  ;;  %v2822_v41 = vld [vmem:[#allocation2 + $0xc] sm:$0xf] }
 0x20f   : > { %v2427_v29 = vmax.f32 %v2381_v55, 0.0  ;;  %2419 = vmatmul.bf16.gmra.mxu0 %v1303_v32  ;;  %v6089_v55 = vld [vmem:[#allocation3 + $0x178] sm:$0xff] }
 0x210   : > { %v2627_v43 = vor.u32 %v2625_v61, %v2624_v10  ;;  %v2629_v12 = vrot.slane %v2624_v10, 4  ;;  %v6073_v61 = vld [vmem:[#allocation3 + $0xf8] sm:$0xff]  ;;  %v2268_v34 = vadd.f32 %v7525_v1, %v2209_v19  ;;  %4504 = vmatpush.bf16.msrb.mxu3 %v6089_v55  ;;  %v2570_v19 = vld [vmem:[#allocation2 + $0x2c] sm:$0x1] }
 0x211   : > { %v2508_v37 = vsel %vm7600_vm15, %v2427_v29, 0.0  ;;  %4406 = vmatpush.bf16.msrb.mxu1 %v6073_v61  ;;  %v2571_v61 = vsel %vm7510_vm6, 0, %v2570_v19 }
 0x212   : > { %v2628_v27 = vsel %vm7606_vm2, %v2620_v26, %v2627_v43  ;;  %v2820_v31 = vsel %vm7494_vm4, %v2629_v12, %v2819_v47  ;;  %v2593_v15 = vpack.c.bf16 %v2508_v37, %v2508_v37  ;;  %v6091_v47 = vld [vmem:[#allocation3 + $0x188] sm:$0xff]  ;;  %v2448_v43 = vadd.s32 2, %v7539_v8  ;;  %v7627_v12 = vpop.f32.mrf.mxu2  ;;  %v6090_v37 = vld [vmem:[#allocation3 + $0x180] sm:$0xff]  ;;  %2572 = vst [vmem:[#allocation2 + $0x2c] sm:$0x1] %v2571_v61 }
 0x213   : > { %2818 = vst [vmem:[#allocation2 + $0x4] sm:$0xf] %v2628_v27  ;;  %4559 = vmatpush.bf16.msrb.mxu0 %v6091_v47  ;;  %v6301_v1 = vld [vmem:[#allocation2] sm:$0xe]  ;;  %v2214_v61 = vadd.f32 %v7566_v22, %v7418_v7 }
 0x214   : > { %2821 = vst [vmem:[#allocation2 + $0x8] sm:$0x1] %v2820_v31  ;;  %v2631_v32 = vshrl.u32 %v2593_v15, 16  ;;  %v2382_v63 = vpop.f32.mrf.mxu0  ;;  %v2634_v26 = vshll.u32 %v2593_v15, 16  ;;  %v2327_v31 = vadd.f32 %v7536_v2, %v2268_v34  ;;  %vm2458_vm3 = vcmp.ge.s32.totalorder %v2448_v43, 0 }
 0x215   : > { %v2383_v10 = vadd.f32 %v2382_v63, %v2324_v54  ;;  %vm2468_vm5 = vcmp.lt.s32.totalorder %v2448_v43, 16 }
 0x216   : > { %v2633_v29 = vrot.slane %v2631_v32, 7  ;;  %v2211_v32 = vadd.f32 %v7541_v21, %v7413_v62  ;;  %vm7642_vm7 = vmand %vm2458_vm3, %vm2468_vm5 }
 0x217   : > { %v2428_v6 = vmax.f32 %v2383_v10, 0.0  ;;  %4560 = vmatpush.bf16.msrb.mxu0 %v6090_v37  ;;  %v2826_v37 = vld [vmem:[#allocation2 + $0x14] sm:$0x1] }
 0x218   : > { %v2636_v35 = vor.u32 %v2634_v26, %v2633_v29  ;;  %v2270_v47 = vadd.f32 %v7544_v39, %v2211_v32  ;;  %v7639_v26 = vpop.f32.mrf.mxu3 }
 0x219   : > { %v2509_v27 = vsel %vm7600_vm15, %v2428_v6, 0.0 }
 0x21a   : > { %v2823_v15 = vsel %vm7578_vm11, %v2636_v35, %v2822_v41  ;;  %v2594_v52 = vpack.c.bf16 %v2509_v27, %v2509_v27  ;;  %v6184_v54 = vld [vmem:[#allocation2] sm:$0xff]   ;;  %v2637_v35 = vrot.slane %v2633_v29, 4 }
 0x21b   : > { %v6300_v45 = vld [vmem:[#allocation2] sm:$0xf0]  ;;  %2824 = vst [vmem:[#allocation2 + $0xc] sm:$0xf] %v2823_v15  ;;  %v3058_v63 = vshll.u32 %v6184_v54, 16  ;;  %4267 = vmatmul.bf16.vlgmr.msra.gmra.mxu1 %v6184_v54 }
 0x21c   : > { %v2901_v5 = vld [vmem:[#allocation2 + $0x8] sm:$0x1]  ;;  %v6302_v59 = vor.u32 %v6301_v1, %v6300_v45  ;;  %v2639_v55 = vshrl.u32 %v2594_v52, 16  ;;  %v2385_v2 = vpop.f32.mrf.mxu0  ;;  %v2642_v21 = vshll.u32 %v2594_v52, 16  ;;  %v7646_v45 = vpop.f32.mrf.mxu1  ;;  %v3056_v52 = vshrl.u32 %v6184_v54, 16 }
 0x21d   : > { %v3039_v10 = vunpack.c.l.b16 %v2901_v5  ;;  %v2386_v34 = vadd.f32 %v2385_v2, %v2327_v31  ;;  %v3060_v27 = vrot.slane %v3058_v63, 1  ;;  %v2329_v5 = vadd.f32 %v7562_v3, %v2270_v47 }
 0x21e   : > { %v2641_v62 = vrot.slane %v2639_v55, 7  ;;  %v3183_v15 = vrot.slane %v6302_v59, 1  ;;  %v7651_v55 = vpop.f32.mrf.mxu2 }
 0x21f   : > { %v3047_v6 = vpack.c.b16 %v3039_v10, %v3039_v10  ;;  %v2429_v1 = vmax.f32 %v2386_v34, 0.0  ;;  %v2541_v10 = vld [vmem:[#allocation2 + $0x30] sm:$0x1]  ;;  %v3061_v3 = vor.u32 %v3060_v27, %v3056_v52  ;;  %v2449_v27 = vadd.s32 3, %v7539_v8 }
 0x220   : > { %v2644_v39 = vor.u32 %v2642_v21, %v2641_v62  ;;  %v2646_v31 = vrot.slane %v2641_v62, 4  ;;  %v2542_v47 = vsel %vm7494_vm4, 0, %v2541_v10  ;;  %v2273_v21 = vadd.f32 %v7571_v51, %v2214_v61  ;;  %v2573_v10 = vld [vmem:[#allocation2 + $0x38] sm:$0x1] }
 0x221   : > { %v3184_v19 = vrot.slane %v3047_v6, 1  ;;  %v3063_v32 = vshll.u32 %v3047_v6, 16  ;;  %v2510_v43 = vsel %vm7642_vm7, %v2429_v1, 0.0  ;;  %v6088_v1 = vld [vmem:[#allocation3 + $0x170] sm:$0xff]  ;;  %2543 = vst [vmem:[#allocation2 + $0x30] sm:$0x1] %v2542_v47 }
 0x222   : > { %v2645_v29 = vsel %vm7606_vm2, %v2637_v35, %v2644_v39  ;;  %v2827_v63 = vsel %vm7494_vm4, %v2646_v31, %v2826_v37  ;;  %v2595_v59 = vpack.c.bf16 %v2510_v43, %v2510_v43  ;;  %v6080_v37 = vld [vmem:[#allocation3 + $0x130] sm:$0xff]  ;;  %v2829_v39 = vld [vmem:[#allocation2 + $0x18] sm:$0xf]  ;;  %4505 = vmatpush.bf16.msrb.mxu3 %v6088_v1  ;;  %vm2459_vm8 = vcmp.ge.s32.totalorder %v2449_v27, 0 }
 0x223   : > { %v3185_v2 = vsel %vm693_vm0, %v3183_v15, %v3184_v19  ;;  %2825 = vst [vmem:[#allocation2 + $0x10] sm:$0xf] %v2645_v29  ;;  %v3065_v54 = vrot.slane %v3063_v32, 1  ;;  %v6072_v15 = vld [vmem:[#allocation3 + $0xf0] sm:$0xff]  ;;  %4456 = vmatpush.bf16.msrb.mxu2 %v6080_v37  ;;  %v7665_v19 = vpop.f32.mrf.mxu3  ;;  %vm2469_vm9 = vcmp.lt.s32.totalorder %v2449_v27, 16  ;;  %v2221_v1 = vadd.f32 %v7646_v45, %v7433_v28 }
 0x224   : > { %4365 = vmatmul.bf16.vlgmr.msra.gmra.mxu3 %v3185_v2  ;;  %2828 = vst [vmem:[#allocation2 + $0x14] sm:$0x1] %v2827_v63  ;;  %v2648_v34 = vshrl.u32 %v2595_v59, 16  ;;  %v2387_v62 = vpop.f32.mrf.mxu0  ;;  %v2651_v22 = vshll.u32 %v2595_v59, 16  ;;  %v6498_v51 = vld [vmem:[#allocation2 + $0xc] sm:$0xe]  ;;  %4407 = vmatpush.bf16.msrb.mxu1 %v6072_v15  ;;  %v7670_v43 = vpop.f32.mrf.mxu1  ;;  %vm7683_vm10 = vmand %vm2459_vm8, %vm2469_vm9 }
 0x225   : > { %v2388_v6 = vadd.f32 %v2387_v62, %v2329_v5  ;;  %v3066_v35 = vsel %vm532_vm1, %v3061_v3, %v3065_v54  ;;  %v2332_v5 = vadd.f32 %v7586_v17, %v2273_v21  ;;  %v2574_v3 = vsel %vm7510_vm6, 0, %v2573_v10 }
 0x226   : > { %v2650_v7 = vrot.slane %v2648_v34, 7  ;;  %4316 = vmatmul.bf16.vlgmr.msra.gmra.mxu2 %v3066_v35  ;;  %v2216_v17 = vadd.f32 %v7593_v16, %v7423_v14  ;;  %v7678_v41 = vpop.f32.mrf.mxu2  ;;  %2575 = vst [vmem:[#allocation2 + $0x38] sm:$0x1] %v2574_v3  ;;  %v2833_v16 = vld [vmem:[#allocation2 + $0x20] sm:$0x1] }
 0x227   : > { %v2430_v31 = vmax.f32 %v2388_v6, 0.0  ;;  %v2544_v3 = vld [vmem:[#allocation2 + $0x3c] sm:$0x1] }
 0x228   : > { %v2653_v32 = vor.u32 %v2651_v22, %v2650_v7  ;;  %v2275_v6 = vadd.f32 %v7598_v38, %v2216_v17  ;;  %v2654_v14 = vrot.slane %v2650_v7, 4 }
 0x229   : > { %v2511_v52 = vsel %vm7642_vm7, %v2430_v31, 0.0 }
 0x22a   : > { %v2830_v29 = vsel %vm7578_vm11, %v2653_v32, %v2829_v39  ;;  %v2596_v63 = vpack.c.bf16 %v2511_v52, %v2511_v52  ;;  %v2887_v59 = vld [vmem:[#allocation2 + $0xc] sm:$0xff]   ;;  %v2334_v17 = vadd.f32 %v7621_v48, %v2275_v6  ;;  %v2545_v48 = vsel %vm7494_vm4, 0, %v2544_v3 }
 0x22b   : > { %v6497_v2 = vld [vmem:[#allocation2 + $0xc] sm:$0xf0]  ;;  %2831 = vst [vmem:[#allocation2 + $0x18] sm:$0xf] %v2830_v29  ;;  %v2902_v61 = vld [vmem:[#allocation2 + $0x14] sm:$0x1]  ;;  %4272 = vmatmul.bf16.gmra.mxu1 %v2887_v59 }
 0x22c   : > { %v2656_v54 = vshrl.u32 %v2596_v63, 16  ;;  %v2390_v47 = vpop.f32.mrf.mxu0  ;;  %v3040_v34 = vunpack.c.l.b16 %v2902_v61  ;;  %v6499_v21 = vor.u32 %v6498_v51, %v6497_v2  ;;  %v2659_v37 = vshll.u32 %v2596_v63, 16  ;;  %v7689_v63 = vpop.f32.mrf.mxu3  ;;  %2546 = vst [vmem:[#allocation2 + $0x3c] sm:$0x1] %v2545_v48 }
 0x22d   : > { %v2391_v62 = vadd.f32 %v2390_v47, %v2332_v5  ;;  %v3070_v39 = vshll.u32 %v2887_v59, 16  ;;  %v3068_v29 = vshrl.u32 %v2887_v59, 16  ;;  %v7697_v59 = vpop.f32.mrf.mxu1 }
 0x22e   : > { %v2658_v35 = vrot.slane %v2656_v54, 7  ;;  %v3048_v15 = vpack.c.b16 %v3040_v34, %v3040_v34  ;;  %v3186_v31 = vrot.slane %v6499_v21, 1  ;;  %v6079_v21 = vld [vmem:[#allocation3 + $0x128] sm:$0xff]  ;;  %v7704_v6 = vpop.f32.mrf.mxu2 }
 0x22f   : > { %v2431_v22 = vmax.f32 %v2391_v62, 0.0  ;;  %v3072_v27 = vrot.slane %v3070_v39, 1  ;;  %4457 = vmatpush.bf16.msrb.mxu2 %v6079_v21 }
 0x230   : > { %v2661_v32 = vor.u32 %v2659_v37, %v2658_v35  ;;  %v2663_v5 = vrot.slane %v2658_v35, 4  ;;  %v3187_v51 = vrot.slane %v3048_v15, 1  ;;  %v3075_v52 = vshll.u32 %v3048_v15, 16  ;;  %v6087_v35 = vld [vmem:[#allocation3 + $0x168] sm:$0xff] }
 0x231   : > { %v2512_v38 = vsel %vm7683_vm10, %v2431_v22, 0.0  ;;  %v3073_v54 = vor.u32 %v3072_v27, %v3068_v29  ;;  %v2219_v37 = vadd.f32 %v7624_v18, %v7428_v53  ;;  %4506 = vmatpush.bf16.msrb.mxu3 %v6087_v35 }
 0x232   : > { %v2662_v2 = vsel %vm7606_vm2, %v2654_v14, %v2661_v32  ;;  %v2834_v7 = vsel %vm7494_vm4, %v2663_v5, %v2833_v16  ;;  %v2597_v10 = vpack.c.bf16 %v2512_v38, %v2512_v38  ;;  %v3188_v61 = vsel %vm693_vm0, %v3186_v31, %v3187_v51  ;;  %v6071_v16 = vld [vmem:[#allocation3 + $0xe8] sm:$0xff] }
 0x233   : > { %2832 = vst [vmem:[#allocation2 + $0x1c] sm:$0xf] %v2662_v2  ;;  %v3077_v47 = vrot.slane %v3075_v52, 1  ;;  %v2450_v31 = vadd.s32 4, %v7539_v8  ;;  %v2278_v32 = vadd.f32 %v7627_v12, %v2219_v37  ;;  %v2836_v5 = vld [vmem:[#allocation2 + $0x24] sm:$0xf]  ;;  %4408 = vmatpush.bf16.msrb.mxu1 %v6071_v16 }
 0x234   : > { %4370 = vmatmul.bf16.gmra.mxu3 %v3188_v61  ;;  %2835 = vst [vmem:[#allocation2 + $0x20] sm:$0x1] %v2834_v7  ;;  %v2665_v34 = vshrl.u32 %v2597_v10, 16  ;;  %v2392_v62 = vpop.f32.mrf.mxu0  ;;  %v2668_v39 = vshll.u32 %v2597_v10, 16  ;;  %v6304_v52 = vld [vmem:[#allocation2 + $0x18] sm:$0xe] }
 0x235   : > { %v2393_v15 = vadd.f32 %v2392_v62, %v2334_v17  ;;  %v3078_v14 = vsel %vm532_vm1, %v3073_v54, %v3077_v47  ;;  %vm2460_vm12 = vcmp.ge.s32.totalorder %v2450_v31, 0  ;;  %v2576_v7 = vld [vmem:[#allocation2 + $0x44] sm:$0x1]  ;;  %v2337_v10 = vadd.f32 %v7639_v26, %v2278_v32  ;;  %v7715_v17 = vpop.f32.mrf.mxu3  ;;  %v7720_v35 = vpop.f32.mrf.mxu1  ;;  %v2840_v16 = vld [vmem:[#allocation2 + $0x2c] sm:$0x1] }
 0x236   : > { %v2667_v22 = vrot.slane %v2665_v34, 7  ;;  %4321 = vmatmul.bf16.gmra.mxu2 %v3078_v14  ;;  %vm2470_vm13 = vcmp.lt.s32.totalorder %v2450_v31, 16  ;;  %v2577_v62 = vsel %vm7510_vm6, 0, %v2576_v7  ;;  %v2280_v26 = vadd.f32 %v7651_v55, %v2221_v1 }
 0x237   : > { %v2432_v53 = vmax.f32 %v2393_v15, 0.0  ;;  %2578 = vst [vmem:[#allocation2 + $0x44] sm:$0x1] %v2577_v62  ;;  %vm7724_vm14 = vmand %vm2460_vm12, %vm2470_vm13  ;;  %v6086_v62 = vld [vmem:[#allocation3 + $0x160] sm:$0xff] }
 0x238   : > { %v2670_v18 = vor.u32 %v2668_v39, %v2667_v22  ;;  %v2671_v14 = vrot.slane %v2667_v22, 4  ;;  %v2339_v7 = vadd.f32 %v7665_v19, %v2280_v26  ;;  %v6070_v19 = vld [vmem:[#allocation3 + $0xe0] sm:$0xff]  ;;  %v2451_v26 = vadd.s32 5, %v7539_v8  ;;  %4507 = vmatpush.bf16.msrb.mxu3 %v6086_v62 }
 0x239   : > { %v2513_v51 = vsel %vm7683_vm10, %v2432_v53, 0.0  ;;  %4409 = vmatpush.bf16.msrb.mxu1 %v6070_v19  ;;  %v2847_v62 = vld [vmem:[#allocation2 + $0x38] sm:$0x1] }
 0x23a   : > { %v2837_v38 = vsel %vm7578_vm11, %v2670_v18, %v2836_v5  ;;  %v2598_v29 = vpack.c.bf16 %v2513_v51, %v2513_v51  ;;  %v6216_v27 = vld [vmem:[#allocation2 + $0x18] sm:$0xff]   ;;  %v7728_v5 = vpop.f32.mrf.mxu2  ;;  %vm2461_vm15 = vcmp.ge.s32.totalorder %v2451_v26, 0  ;;  %vm2471_vm3 = vcmp.lt.s32.totalorder %v2451_v26, 16 }
 0x23b   : > { %v6303_v2 = vld [vmem:[#allocation2 + $0x18] sm:$0xf0]  ;;  %2838 = vst [vmem:[#allocation2 + $0x24] sm:$0xf] %v2837_v38  ;;  %v3522_v12 = vshll.u32 %v6216_v27, 16  ;;  %4561 = vmatmul.bf16.vlgmr.msrb.gmra.mxu0 %v6216_v27  ;;  %4277 = vmatmul.bf16.gmra.mxu1 %v6216_v27  ;;  %vm7769_vm5 = vmand %vm2461_vm15, %vm2471_vm3 }
 0x23c   : > { %v2903_v61 = vld [vmem:[#allocation2 + $0x20] sm:$0x1]  ;;  %v6305_v3 = vor.u32 %v6304_v52, %v6303_v2  ;;  %v2673_v54 = vshrl.u32 %v2598_v29, 16  ;;  %v2395_v47 = vpop.f32.mrf.mxu0  ;;  %v2676_v15 = vshll.u32 %v2598_v29, 16  ;;  %v3520_v52 = vshrl.u32 %v6216_v27, 16 }
 0x23d   : > { %v3041_v34 = vunpack.c.l.b16 %v2903_v61  ;;  %v2396_v21 = vadd.f32 %v2395_v47, %v2337_v10  ;;  %v3524_v48 = vrot.slane %v3522_v12, 1  ;;  %v2224_v10 = vadd.f32 %v7670_v43, %v7438_v57 }
 0x23e   : > { %v2675_v37 = vrot.slane %v2673_v54, 7  ;;  %v3189_v32 = vrot.slane %v6305_v3, 1 }
 0x23f   : > { %v3049_v45 = vpack.c.b16 %v3041_v34, %v3041_v34  ;;  %v2433_v39 = vmax.f32 %v2396_v21, 0.0  ;;  %v7740_v12 = vor.u32 %v3524_v48, %v3520_v52  ;;  %v2283_v1 = vadd.f32 %v7678_v41, %v2224_v10  ;;  %v6078_v34 = vld [vmem:[#allocation3 + $0x120] sm:$0xff]  ;;  %v7745_v21 = vpop.f32.mrf.mxu3 }
 0x240   : > { %v2678_v55 = vor.u32 %v2676_v15, %v2675_v37  ;;  %v2680_v53 = vrot.slane %v2675_v37, 4  ;;  %v2547_v37 = vld [vmem:[#allocation2 + $0x48] sm:$0x1]  ;;  %v2843_v15 = vld [vmem:[#allocation2 + $0x30] sm:$0xf]  ;;  %4458 = vmatpush.bf16.msrb.mxu2 %v6078_v34  ;;  %v2226_v10 = vadd.f32 %v7697_v59, %v7443_v24 }
 0x241   : > { %v3190_v18 = vrot.slane %v3049_v45, 1  ;;  %v3087_v51 = vshll.u32 %v3049_v45, 16  ;;  %v2514_v31 = vsel %vm7724_vm14, %v2433_v39, 0.0  ;;  %v2548_v41 = vsel %vm7494_vm4, 0, %v2547_v37 }
 0x242   : > { %v2679_v38 = vsel %vm7606_vm2, %v2671_v14, %v2678_v55  ;;  %v2841_v22 = vsel %vm7494_vm4, %v2680_v53, %v2840_v16  ;;  %v2599_v29 = vpack.c.bf16 %v2514_v31, %v2514_v31  ;;  %v7750_v14 = vpop.f32.mrf.mxu1  ;;  %2549 = vst [vmem:[#allocation2 + $0x48] sm:$0x1] %v2548_v41  ;;  %v2342_v48 = vadd.f32 %v7689_v63, %v2283_v1  ;;  %v7755_v55 = vpop.f32.mrf.mxu2 }
 0x243   : > { %v3191_v2 = vsel %vm693_vm0, %v3189_v32, %v3190_v18  ;;  %2839 = vst [vmem:[#allocation2 + $0x28] sm:$0xf] %v2679_v38  ;;  %v3089_v27 = vrot.slane %v3087_v51, 1  ;;  %v6501_v32 = vld [vmem:[#allocation2 + $0x24] sm:$0xe]  ;;  %v2285_v34 = vadd.f32 %v7704_v6, %v2226_v10  ;;  %v6077_v10 = vld [vmem:[#allocation3 + $0x118] sm:$0xff] }
 0x244   : > { %4375 = vmatmul.bf16.gmra.mxu3 %v3191_v2  ;;  %2842 = vst [vmem:[#allocation2 + $0x2c] sm:$0x1] %v2841_v22  ;;  %v2682_v61 = vshrl.u32 %v2599_v29, 16  ;;  %v2397_v3 = vpop.f32.mrf.mxu0  ;;  %v2685_v43 = vshll.u32 %v2599_v29, 16  ;;  %v2579_v22 = vld [vmem:[#allocation2 + $0x50] sm:$0x1]  ;;  %4459 = vmatpush.bf16.msrb.mxu2 %v6077_v10 }
 0x245   : > { %v2398_v54 = vadd.f32 %v2397_v3, %v2339_v7  ;;  %v3090_v47 = vsel %vm532_vm1, %v7740_v12, %v3089_v27  ;;  %v2580_v7 = vsel %vm7510_vm6, 0, %v2579_v22 }
 0x246   : > { %v2684_v57 = vrot.slane %v2682_v61, 7  ;;  %4326 = vmatmul.bf16.gmra.mxu2 %v3090_v47  ;;  %2581 = vst [vmem:[#allocation2 + $0x50] sm:$0x1] %v2580_v7 }
 0x247   : > { %v2434_v45 = vmax.f32 %v2398_v54, 0.0  ;;  %v7775_v24 = vpop.f32.mrf.mxu3 }
 0x248   : > { %v2687_v16 = vor.u32 %v2685_v43, %v2684_v57  ;;  %v2688_v59 = vrot.slane %v2684_v57, 4  ;;  %v2344_v57 = vadd.f32 %v7715_v17, %v2285_v34  ;;  %v2850_v34 = vld [vmem:[#allocation2 + $0x3c] sm:$0xf] }
 0x249   : > { %v2515_v39 = vsel %vm7724_vm14, %v2434_v45, 0.0 }
 0x24a   : > { %v2844_v53 = vsel %vm7578_vm11, %v2687_v16, %v2843_v15  ;;  %v2600_v18 = vpack.c.bf16 %v2515_v39, %v2515_v39  ;;  %v2891_v51 = vld [vmem:[#allocation2 + $0x24] sm:$0xff]  }
 0x24b   : > { %v6500_v52 = vld [vmem:[#allocation2 + $0x24] sm:$0xf0]  ;;  %2845 = vst [vmem:[#allocation2 + $0x30] sm:$0xf] %v2844_v53  ;;  %v2904_v63 = vld [vmem:[#allocation2 + $0x2c] sm:$0x1]  ;;  %4282 = vmatmul.bf16.gmra.mxu1 %v2891_v51 }
 0x24c   : > { %v7759_v31 = vld [vmem:[#allocation2 + $0x24] sm:$0xff]   ;;  %v2690_v28 = vshrl.u32 %v2600_v18, 16  ;;  %v2400_v29 = vpop.f32.mrf.mxu0  ;;  %v3042_v2 = vunpack.c.l.b16 %v2904_v63  ;;  %v2693_v3 = vshll.u32 %v2600_v18, 16  ;;  %v6502_v47 = vor.u32 %v6501_v32, %v6500_v52 }
 0x24d   : > { %v7761_v38 = vld [vmem:[#allocation2 + $0x24] sm:$0xf0]  ;;  %v2401_v27 = vadd.f32 %v2400_v29, %v2342_v48  ;;  %v3094_v43 = vshll.u32 %v2891_v51, 16  ;;  %4566 = vmatmul.bf16.gmra.mxu0 %v7759_v31  ;;  %v3092_v16 = vshrl.u32 %v2891_v51, 16  ;;  %v7779_v48 = vpop.f32.mrf.mxu1  ;;  %v2229_v63 = vadd.f32 %v7720_v35, %v7450_v9  ;;  %v7789_v51 = vpop.f32.mrf.mxu2 }
 0x24e   : > { %v2692_v61 = vrot.slane %v2690_v28, 7  ;;  %v3050_v54 = vpack.c.b16 %v3042_v2, %v3042_v2  ;;  %v3192_v26 = vrot.slane %v6502_v47, 1  ;;  %v2452_v35 = vadd.s32 6, %v7539_v8 }
 0x24f   : > { %v2435_v19 = vmax.f32 %v2401_v27, 0.0  ;;  %v3096_v53 = vrot.slane %v3094_v43, 1  ;;  %v6085_v27 = vld [vmem:[#allocation3 + $0x158] sm:$0xff]  ;;  %v2288_v17 = vadd.f32 %v7728_v5, %v2229_v63 }
 0x250   : > { %v2695_v37 = vor.u32 %v2693_v3, %v2692_v61  ;;  %v2697_v15 = vrot.slane %v2692_v61, 4  ;;  %v3193_v41 = vrot.slane %v3050_v54, 1  ;;  %v3099_v52 = vshll.u32 %v3050_v54, 16  ;;  %v6069_v61 = vld [vmem:[#allocation3 + $0xd8] sm:$0xff]  ;;  %4508 = vmatpush.bf16.msrb.mxu3 %v6085_v27 }
 0x251   : > { %v2516_v45 = vsel %vm7769_vm5, %v2435_v19, 0.0  ;;  %v3097_v29 = vor.u32 %v3096_v53, %v3092_v16  ;;  %v2550_v54 = vld [vmem:[#allocation2 + $0x54] sm:$0x1]  ;;  %4410 = vmatpush.bf16.msrb.mxu1 %v6069_v61  ;;  %v2347_v16 = vadd.f32 %v7745_v21, %v2288_v17  ;;  %vm2462_vm7 = vcmp.ge.s32.totalorder %v2452_v35, 0 }
 0x252   : > { %v2696_v6 = vsel %vm7606_vm2, %v2688_v59, %v2695_v37  ;;  %v2848_v39 = vsel %vm7494_vm4, %v2697_v15, %v2847_v62  ;;  %v2601_v32 = vpack.c.bf16 %v2516_v45, %v2516_v45  ;;  %v3194_v18 = vsel %vm693_vm0, %v3192_v26, %v3193_v41  ;;  %v7798_v59 = vpop.f32.mrf.mxu3  ;;  %v6307_v41 = vld [vmem:[#allocation2 + $0x30] sm:$0xe] }
 0x253   : > { %2846 = vst [vmem:[#allocation2 + $0x34] sm:$0xf] %v2696_v6  ;;  %v3101_v7 = vrot.slane %v3099_v52, 1  ;;  %v2551_v19 = vsel %vm7494_vm4, 0, %v2550_v54  ;;  %vm2472_vm8 = vcmp.lt.s32.totalorder %v2452_v35, 16  ;;  %v2231_v52 = vadd.f32 %v7750_v14, %v7459_v50 }
 0x254   : > { %2849 = vst [vmem:[#allocation2 + $0x38] sm:$0x1] %v2848_v39  ;;  %v2699_v22 = vshrl.u32 %v2601_v32, 16  ;;  %4380 = vmatmul.bf16.gmra.mxu3 %v3194_v18  ;;  %v2402_v28 = vpop.f32.mrf.mxu0  ;;  %v2702_v47 = vshll.u32 %v2601_v32, 16  ;;  %v2582_v18 = vld [vmem:[#allocation2 + $0x5c] sm:$0x1]  ;;  %vm7813_vm9 = vmand %vm2462_vm7, %vm2472_vm8 }
 0x255   : > { %v2403_v2 = vadd.f32 %v2402_v28, %v2344_v57  ;;  %v3102_v9 = vsel %vm532_vm1, %v3097_v29, %v3101_v7  ;;  %2552 = vst [vmem:[#allocation2 + $0x54] sm:$0x1] %v2551_v19  ;;  %v7803_v32 = vpop.f32.mrf.mxu1  ;;  %v2583_v28 = vsel %vm7510_vm6, 0, %v2582_v18  ;;  %v7809_v21 = vpop.f32.mrf.mxu2  ;;  %v2290_v27 = vadd.f32 %v7755_v55, %v2231_v52  ;;  %v2854_v14 = vld [vmem:[#allocation2 + $0x44] sm:$0x1]  ;;  %v6068_v18 = vld [vmem:[#allocation3 + $0xd0] sm:$0xff] }
 0x256   : > { %v2701_v3 = vrot.slane %v2699_v22, 7  ;;  %4331 = vmatmul.bf16.gmra.mxu2 %v3102_v9  ;;  %2584 = vst [vmem:[#allocation2 + $0x5c] sm:$0x1] %v2583_v28  ;;  %v2553_v52 = vld [vmem:[#allocation2 + $0x60] sm:$0x1]  ;;  %4411 = vmatpush.bf16.msrb.mxu1 %v6068_v18  ;;  %v2236_v7 = vadd.f32 %v7803_v32, %v7479_v0 }
 0x257   : > { %v2436_v62 = vmax.f32 %v2403_v2, 0.0  ;;  %v2857_v28 = vld [vmem:[#allocation2 + $0x48] sm:$0xf] }
 0x258   : > { %v2704_v43 = vor.u32 %v2702_v47, %v2701_v3  ;;  %v2705_v50 = vrot.slane %v2701_v3, 4 }
 0x259   : > { %v2517_v5 = vsel %vm7769_vm5, %v2436_v62, 0.0 }
 0x25a   : > { %v2851_v37 = vsel %vm7578_vm11, %v2704_v43, %v2850_v34  ;;  %v2602_v15 = vpack.c.bf16 %v2517_v5, %v2517_v5  ;;  %v6291_v26 = vld [vmem:[#allocation2 + $0x30] sm:$0xff]   ;;  %v2349_v5 = vadd.f32 %v7775_v24, %v2290_v27 }
 0x25b   : > { %v6306_v45 = vld [vmem:[#allocation2 + $0x30] sm:$0xf0]  ;;  %2852 = vst [vmem:[#allocation2 + $0x3c] sm:$0xf] %v2851_v37  ;;  %v2905_v6 = vld [vmem:[#allocation2 + $0x38] sm:$0x1]  ;;  %4287 = vmatmul.bf16.gmra.mxu1 %v6291_v26  ;;  %v2234_v37 = vadd.f32 %v7779_v48, %v7468_v11 }
 0x25c   : > { %v6308_v39 = vor.u32 %v6307_v41, %v6306_v45  ;;  %v2707_v1 = vshrl.u32 %v2602_v15, 16  ;;  %v2405_v53 = vpop.f32.mrf.mxu0  ;;  %v3043_v57 = vunpack.c.l.b16 %v2905_v6  ;;  %v3106_v22 = vshll.u32 %v6291_v26, 16  ;;  %v7831_v41 = vld [vmem:[%s8501_s2] ss:$0 sm:$0xff]  ;;  %v7835_v6 = vpop.f32.mrf.mxu3 }
 0x25d   : > { %v2406_v63 = vadd.f32 %v2405_v53, %v2347_v16  ;;  %v2710_v2 = vshll.u32 %v2602_v15, 16  ;;  %4571 = vmatmul.bf16.gmra.mxu0 %v6291_v26  ;;  %v3104_v15 = vshrl.u32 %v6291_v26, 16  ;;  %v1946_v16 = vadd.f32 %v7831_v41, %v7337_v36  ;;  %v6084_v53 = vld [vmem:[#allocation3 + $0x150] sm:$0xff]  ;;  %v7849_v27 = vpop.f32.mrf.mxu2 }
 0x25e   : > { %v2709_v29 = vrot.slane %v2707_v1, 7  ;;  %v3051_v10 = vpack.c.b16 %v3043_v57, %v3043_v57  ;;  %v3195_v17 = vrot.slane %v6308_v39, 1  ;;  %v3108_v35 = vrot.slane %v3106_v22, 1  ;;  %v6076_v1 = vld [vmem:[#allocation3 + $0x110] sm:$0xff]  ;;  %4509 = vmatpush.bf16.msrb.mxu3 %v6084_v53 }
 0x25f   : > { %v2437_v61 = vmax.f32 %v2406_v63, 0.0  ;;  %v2293_v11 = vadd.f32 %v7789_v51, %v2234_v37  ;;  %v2453_v57 = vadd.s32 7, %v7539_v8  ;;  %v7841_v63 = vpop.f32.mrf.mxu1  ;;  %4460 = vmatpush.bf16.msrb.mxu2 %v6076_v1  ;;  %v7869_v37 = vld [vmem:[#allocation3 + $0x1f0] sm:$0xff]  ;;  %v2295_v53 = vadd.f32 %v7809_v21, %v2236_v7 }
 0x260   : > { %v2712_v47 = vor.u32 %v2710_v2, %v2709_v29  ;;  %v2714_v54 = vrot.slane %v2709_v29, 4  ;;  %v3196_v34 = vrot.slane %v3051_v10, 1  ;;  %v3111_v62 = vshll.u32 %v3051_v10, 16 }
 0x261   : > { %v2518_v9 = vsel %vm7813_vm9, %v2437_v61, 0.0  ;;  %v7838_v48 = vor.u32 %v3108_v35, %v3104_v15  ;;  %v2554_v29 = vsel %vm7494_vm4, 0, %v2553_v52  ;;  %v2005_v61 = vadd.f32 %v7341_v49, %v1946_v16 }
 0x262   : > { %v2713_v19 = vsel %vm7606_vm2, %v2705_v50, %v2712_v47  ;;  %v2855_v55 = vsel %vm7494_vm4, %v2714_v54, %v2854_v14  ;;  %v2603_v3 = vpack.c.bf16 %v2518_v9, %v2518_v9  ;;  %v3197_v43 = vsel %vm693_vm0, %v3195_v17, %v3196_v34  ;;  %v6504_v10 = vld [vmem:[#allocation2 + $0x3c] sm:$0xe]  ;;  %2555 = vst [vmem:[#allocation2 + $0x60] sm:$0x1] %v2554_v29  ;;  %v7852_v14 = vld [vmem:[#allocation3 + $0x1f8] sm:$0xff] }
 0x263   : > { %2853 = vst [vmem:[#allocation2 + $0x40] sm:$0xf] %v2713_v19  ;;  %v3113_v45 = vrot.slane %v3111_v62, 1  ;;  %v2352_v17 = vadd.f32 %v7798_v59, %v2293_v11  ;;  %vm2463_vm10 = vcmp.ge.s32.totalorder %v2453_v57, 0  ;;  %vm2473_vm12 = vcmp.lt.s32.totalorder %v2453_v57, 16  ;;  %4602 = vmatpush.bf16.msra.mxu0 %v7852_v14 }
 0x264   : > { %2856 = vst [vmem:[#allocation2 + $0x44] sm:$0x1] %v2855_v55  ;;  %v2716_v39 = vshrl.u32 %v2603_v3, 16  ;;  %4385 = vmatmul.bf16.gmra.mxu3 %v3197_v43  ;;  %v2407_v24 = vpop.f32.mrf.mxu0  ;;  %v2719_v22 = vshll.u32 %v2603_v3, 16  ;;  %v2585_v59 = vld [vmem:[#allocation2 + $0x68] sm:$0x1]  ;;  %v2064_v16 = vadd.f32 %v7346_v56, %v2005_v61  ;;  %vm7876_vm13 = vmand %vm2463_vm10, %vm2473_vm12 }
 0x265   : > { %v2408_v26 = vadd.f32 %v2407_v24, %v2349_v5  ;;  %v3114_v51 = vsel %vm532_vm1, %v7838_v48, %v3113_v45  ;;  %v2586_v5 = vsel %vm7510_vm6, 0, %v2585_v59  ;;  %v2861_v11 = vld [vmem:[#allocation2 + $0x50] sm:$0x1]  ;;  %v2299_v61 = vpop.f32.mrf.mxu2 }
 0x266   : > { %v7843_v36 = vrot.slane %v2716_v39, 7  ;;  %4336 = vmatmul.bf16.gmra.mxu2 %v3114_v51  ;;  %2587 = vst [vmem:[#allocation2 + $0x68] sm:$0x1] %v2586_v5  ;;  %v7872_v39 = vpop.f32.mrf.mxu3  ;;  %v6075_v5 = vld [vmem:[#allocation3 + $0x108] sm:$0xff] }
 0x267   : > { %v2438_v2 = vmax.f32 %v2408_v26, 0.0  ;;  %4603 = vmatpush.bf16.msra.mxu0 %v7869_v37  ;;  %v2240_v52 = vpop.f32.mrf.mxu1  ;;  %4461 = vmatpush.bf16.msrb.mxu2 %v6075_v5 }
 0x268   : > { %v2721_v50 = vor.u32 %v2719_v22, %v7843_v36  ;;  %v2722_v22 = vrot.slane %v7843_v36, 4 }
 0x269   : > { %v2519_v47 = vsel %vm7813_vm9, %v2438_v2, 0.0  ;;  %v7884_v2 = vld [vmem:[#allocation3 + $0x1e8] sm:$0xff] }
 0x26a   : > { %v2858_v54 = vsel %vm7578_vm11, %v2721_v50, %v2857_v28  ;;  %v2604_v34 = vpack.c.bf16 %v2519_v47, %v2519_v47  ;;  %v2895_v62 = vld [vmem:[#allocation2 + $0x3c] sm:$0xff]  }
 0x26b   : > { %v6503_v9 = vld [vmem:[#allocation2 + $0x3c] sm:$0xf0]  ;;  %2859 = vst [vmem:[#allocation2 + $0x48] sm:$0xf] %v2858_v54  ;;  %v2906_v49 = vld [vmem:[#allocation2 + $0x44] sm:$0x1]  ;;  %4292 = vmatmul.bf16.gmra.mxu1 %v2895_v62  ;;  %4604 = vmatpush.bf16.msra.mxu0 %v7884_v2 }
 0x26c   : > { %v7860_v35 = vld [vmem:[#allocation2 + $0x3c] sm:$0xff]   ;;  %v2724_v55 = vshrl.u32 %v2604_v34, 16  ;;  %v2410_v3 = vpop.f32.mrf.mxu0  ;;  %v3044_v43 = vunpack.c.l.b16 %v2906_v49  ;;  %v6505_v45 = vor.u32 %v6504_v10, %v6503_v9  ;;  %v2727_v1 = vshll.u32 %v2604_v34, 16 }
 0x26d   : > { %v7862_v19 = vld [vmem:[#allocation2 + $0x3c] sm:$0xf0]  ;;  %v2411_v15 = vadd.f32 %v2410_v3, %v2352_v17  ;;  %v3118_v18 = vshll.u32 %v2895_v62, 16  ;;  %4576 = vmatmul.bf16.gmra.mxu0 %v7860_v35  ;;  %v3116_v10 = vshrl.u32 %v2895_v62, 16  ;;  %v2354_v34 = vadd.f32 %v7835_v6, %v2295_v53 }
 0x26e   : > { %v2726_v24 = vrot.slane %v2724_v55, 7  ;;  %v3052_v32 = vpack.c.b16 %v3044_v43, %v3044_v43  ;;  %v3198_v56 = vrot.slane %v6505_v45, 1  ;;  %v2239_v62 = vadd.f32 %v7841_v63, %v7490_v42  ;;  %v6067_v45 = vld [vmem:[#allocation3 + $0xc8] sm:$0xff]  ;;  %v2556_v63 = vld [vmem:[#allocation2 + $0x6c] sm:$0x1] }
 0x26f   : > { %v2439_v26 = vmax.f32 %v2411_v15, 0.0  ;;  %v3120_v21 = vrot.slane %v3118_v18, 1  ;;  %v2123_v55 = vadd.f32 %v7349_v60, %v2064_v16  ;;  %v6083_v15 = vld [vmem:[#allocation3 + $0x148] sm:$0xff]  ;;  %v1951_v6 = vadd.f32 %v7831_v41, %v7365_v23  ;;  %v2864_v60 = vld [vmem:[#allocation2 + $0x54] sm:$0xf]  ;;  %v2358_v23 = vpop.f32.mrf.mxu3  ;;  %4412 = vmatpush.bf16.msrb.mxu1 %v6067_v45 }
 0x270   : > { %v2729_v57 = vor.u32 %v2727_v1, %v2726_v24  ;;  %v2731_v28 = vrot.slane %v2726_v24, 4  ;;  %v3199_v29 = vrot.slane %v3052_v32, 1  ;;  %v3123_v50 = vshll.u32 %v3052_v32, 16  ;;  %v7904_v32 = vld [vmem:[#allocation3 + $0x1e0] sm:$0xff]  ;;  %4510 = vmatpush.bf16.msrb.mxu3 %v6083_v15 }
 0x271   : > { %v2520_v51 = vsel %vm7876_vm13, %v2439_v26, 0.0  ;;  %v3121_v9 = vor.u32 %v3120_v21, %v3116_v10  ;;  %v2298_v24 = vadd.f32 %v7849_v27, %v2239_v62  ;;  %v2182_v53 = vadd.f32 %v7504_v40, %v2123_v55  ;;  %4605 = vmatpush.bf16.msra.mxu0 %v7904_v32  ;;  %v7914_v40 = vld [vmem:[#allocation3 + $0x1d8] sm:$0xff] }
 0x272   : > { %v2730_v17 = vsel %vm7606_vm2, %v2722_v22, %v2729_v57  ;;  %v2862_v47 = vsel %vm7494_vm4, %v2731_v28, %v2861_v11  ;;  %v2605_v54 = vpack.c.bf16 %v2520_v51, %v2520_v51  ;;  %v3200_v36 = vsel %vm693_vm0, %v3198_v56, %v3199_v29  ;;  %v2243_v22 = vpop.f32.mrf.mxu1  ;;  %v6310_v10 = vld [vmem:[#allocation2 + $0x48] sm:$0xe] }
 0x273   : > { %2860 = vst [vmem:[#allocation2 + $0x4c] sm:$0xf] %v2730_v17  ;;  %v3125_v49 = vrot.slane %v3123_v50, 1  ;;  %v2454_v11 = vadd.s32 8, %v7539_v8  ;;  %v2557_v26 = vsel %vm7494_vm4, 0, %v2556_v63  ;;  %v2010_v18 = vadd.f32 %v7446_v58, %v1951_v6  ;;  %v2302_v58 = vpop.f32.mrf.mxu2 }
 0x274   : > { %2863 = vst [vmem:[#allocation2 + $0x50] sm:$0x1] %v2862_v47  ;;  %v2733_v59 = vshrl.u32 %v2605_v54, 16  ;;  %4390 = vmatmul.bf16.gmra.mxu3 %v3200_v36  ;;  %v2412_v7 = vpop.f32.mrf.mxu0  ;;  %v2736_v42 = vshll.u32 %v2605_v54, 16  ;;  %v2357_v56 = vadd.f32 %v7872_v39, %v2298_v24  ;;  %v2241_v21 = vadd.f32 %v2240_v52, %v2182_v53  ;;  %v2588_v36 = vld [vmem:[#allocation2 + $0x74] sm:$0x1] }
 0x275   : > { %v2413_v3 = vadd.f32 %v2412_v7, %v2354_v34  ;;  %v3126_v43 = vsel %vm532_vm1, %v3121_v9, %v3125_v49  ;;  %2558 = vst [vmem:[#allocation2 + $0x6c] sm:$0x1] %v2557_v26  ;;  %vm2464_vm14 = vcmp.ge.s32.totalorder %v2454_v11, 0  ;;  %vm2474_vm15 = vcmp.lt.s32.totalorder %v2454_v11, 16  ;;  %4606 = vmatpush.bf16.msra.mxu0 %v7914_v40  ;;  %v7927_v52 = vld [vmem:[#allocation3 + $0x1d0] sm:$0xff] }
 0x276   : > { %v7902_v1 = vrot.slane %v2733_v59, 7  ;;  %4341 = vmatmul.bf16.gmra.mxu2 %v3126_v43  ;;  %v2069_v17 = vadd.f32 %v7453_v30, %v2010_v18  ;;  %v2300_v34 = vadd.f32 %v2299_v61, %v2241_v21  ;;  %v2589_v62 = vsel %vm7510_vm6, 0, %v2588_v36  ;;  %vm7931_vm3 = vmand %vm2464_vm14, %vm2474_vm15  ;;  %v6066_v61 = vld [vmem:[#allocation3 + $0xc0] sm:$0xff]  ;;  %v2871_v36 = vld [vmem:[#allocation2 + $0x60] sm:$0xf] }
 0x277   : > { %v2440_v16 = vmax.f32 %v2413_v3, 0.0  ;;  %2590 = vst [vmem:[#allocation2 + $0x74] sm:$0x1] %v2589_v62  ;;  %v2868_v43 = vld [vmem:[#allocation2 + $0x5c] sm:$0x1]  ;;  %4413 = vmatpush.bf16.msrb.mxu1 %v6066_v61  ;;  %v2361_v11 = vpop.f32.mrf.mxu3  ;;  %v6112_v30 = vld [vmem:[#allocation3 + $0x230] sm:$0xff] }
 0x278   : > { %v2738_v41 = vor.u32 %v2736_v42, %v7902_v1  ;;  %v2739_v3 = vrot.slane %v7902_v1, 4  ;;  %v2128_v42 = vadd.f32 %v7455_v13, %v2069_v17  ;;  %v2359_v63 = vadd.f32 %v2358_v23, %v2300_v34  ;;  %v6082_v1 = vld [vmem:[#allocation3 + $0x140] sm:$0xff] }
 0x279   : > { %v2521_v27 = vsel %vm7876_vm13, %v2440_v16, 0.0  ;;  %4607 = vmatpush.bf16.msra.mxu0 %v7927_v52  ;;  %v7942_v16 = vld [vmem:[#allocation3 + $0x1c8] sm:$0xff]  ;;  %4511 = vmatpush.bf16.msrb.mxu3 %v6082_v1  ;;  %v2455_v17 = vadd.s32 9, %v7539_v8 }
 0x27a   : > { %v2865_v57 = vsel %vm7578_vm11, %v2738_v41, %v2864_v60  ;;  %v2606_v28 = vpack.c.bf16 %v2521_v27, %v2521_v27  ;;  %v7920_v29 = vld [vmem:[#allocation2 + $0x48] sm:$0xff]   ;;  %v2244_v27 = vadd.f32 %v2243_v22, %v7521_v33  ;;  %v2187_v18 = vadd.f32 %v7532_v25, %v2128_v42  ;;  %v7957_v33 = vld [vmem:[#allocation3 + $0x1c0] sm:$0xff]  ;;  %v6113_v25 = vld [vmem:[#allocation3 + $0x238] sm:$0xff] }
 0x27b   : > { %v6309_v51 = vld [vmem:[#allocation2 + $0x48] sm:$0xf0]  ;;  %2866 = vst [vmem:[#allocation2 + $0x54] sm:$0xf] %v2865_v57  ;;  %v2907_v0 = vld [vmem:[#allocation2 + $0x50] sm:$0x1]  ;;  %4297 = vmatmul.bf16.gmra.mxu1 %v7920_v29  ;;  %v2304_v22 = vpop.f32.mrf.mxu2 }
 0x27c   : > { %v6311_v50 = vor.u32 %v6310_v10, %v6309_v51  ;;  %v2741_v47 = vshrl.u32 %v2606_v28, 16  ;;  %v2415_v39 = vpop.f32.mrf.mxu0  ;;  %v3045_v54 = vunpack.c.l.b16 %v2907_v0  ;;  %v3130_v49 = vshll.u32 %v7920_v29, 16  ;;  %6336 = vmatpush.bf16.msra.mxu1 %v7852_v14  ;;  %v2245_v14 = vpop.f32.mrf.mxu1  ;;  %v6074_v10 = vld [vmem:[#allocation3 + $0x100] sm:$0xff] }
 0x27d   : > { %v2416_v9 = vadd.f32 %v2415_v39, %v2357_v56  ;;  %v2744_v7 = vshll.u32 %v2606_v28, 16  ;;  %4581 = vmatmul.bf16.gmra.mxu0 %v7920_v29  ;;  %v3128_v56 = vshrl.u32 %v7920_v29, 16  ;;  %v2303_v21 = vadd.f32 %v2302_v58, %v2244_v27  ;;  %4462 = vmatpush.bf16.msrb.mxu2 %v6074_v10 }
 0x27e   : > { %v2743_v59 = vrot.slane %v2741_v47, 7  ;;  %v3053_v55 = vpack.c.b16 %v3045_v54, %v3045_v54  ;;  %v3201_v5 = vrot.slane %v6311_v50, 1  ;;  %v3132_v60 = vrot.slane %v3130_v49, 1  ;;  %4608 = vmatpush.bf16.msra.mxu0 %v7942_v16 }
 0x27f   : > { %v2441_v46 = vmax.f32 %v2416_v9, 0.0  ;;  %v2246_v54 = vadd.f32 %v2245_v14, %v2187_v18  ;;  %v2362_v49 = vadd.f32 %v2361_v11, %v2303_v21  ;;  %vm2465_vm6 = vcmp.ge.s32.totalorder %v2455_v17, 0  ;;  %v6111_v11 = vld [vmem:[#allocation3 + $0x228] sm:$0xff]  ;;  %v7990_v14 = vld [vmem:[#allocation2 + $0xc] sm:$0xff]  }
 0x280   : > { %v2746_v15 = vor.u32 %v2744_v7, %v2743_v59  ;;  %v2748_v45 = vrot.slane %v2743_v59, 4  ;;  %v3202_v6 = vrot.slane %v3053_v55, 1  ;;  %v3135_v24 = vshll.u32 %v3053_v55, 16  ;;  %6337 = vmatpush.bf16.msra.mxu1 %v7869_v37  ;;  %v7968_v37 = vld [vmem:[%s8504_s5 + $0x38] sm:$0xff] }
 0x281   : > { %v2522_v53 = vsel %vm7931_vm3, %v2441_v46, 0.0  ;;  %v7953_v0 = vor.u32 %v3132_v60, %v3128_v56  ;;  %6344 = vmatpush.bf16.msra.mxu2 %v6113_v25  ;;  %v2305_v62 = vadd.f32 %v2304_v22, %v2246_v54  ;;  %vm2475_vm5 = vcmp.lt.s32.totalorder %v2455_v17, 16  ;;  %6352 = vmatpush.bf16.msra.mxu3 %v7968_v37 }
 0x282   : > { %v2747_v26 = vsel %vm7606_vm2, %v2739_v3, %v2746_v15  ;;  %v2869_v41 = vsel %vm7494_vm4, %v2748_v45, %v2868_v43  ;;  %v2607_v13 = vpack.c.bf16 %v2522_v53, %v2522_v53  ;;  %v3203_v23 = vsel %vm693_vm0, %v3201_v5, %v3202_v6  ;;  %v6507_v9 = vld [vmem:[#allocation2 + $0x54] sm:$0xe]  ;;  %4609 = vmatpush.bf16.msra.mxu0 %v7957_v33  ;;  %v2363_v15 = vpop.f32.mrf.mxu3  ;;  %vm7984_vm7 = vmand %vm2465_vm6, %vm2475_vm5 }
 0x283   : > { %2867 = vst [vmem:[#allocation2 + $0x58] sm:$0xf] %v2747_v26  ;;  %v3137_v57 = vrot.slane %v3135_v24, 1  ;;  %v2364_v26 = vadd.f32 %v2363_v15, %v2305_v62 }
 0x284   : > { %2870 = vst [vmem:[#allocation2 + $0x5c] sm:$0x1] %v2869_v41  ;;  %v2750_v28 = vshrl.u32 %v2607_v13, 16  ;;  %4395 = vmatmul.bf16.gmra.mxu3 %v3203_v23  ;;  %v2417_v51 = vpop.f32.mrf.mxu0  ;;  %v2753_v39 = vshll.u32 %v2607_v13, 16  ;;  %6338 = vmatpush.bf16.msra.mxu1 %v7884_v2  ;;  %v2875_v41 = vld [vmem:[#allocation2 + $0x68] sm:$0x1] }
 0x285   : > { %v2418_v50 = vadd.f32 %v2417_v51, %v2359_v63  ;;  %v3138_v34 = vsel %vm532_vm1, %v7953_v0, %v3137_v57  ;;  %6345 = vmatpush.bf16.msra.mxu2 %v6112_v30 }
 0x286   : > { %v7960_v47 = vrot.slane %v2750_v28, 7  ;;  %4346 = vmatmul.bf16.gmra.mxu2 %v3138_v34  ;;  %4651 = vmatpush.bf16.msrb.mxu0 %v6113_v25  ;;  %v6509_v28 = vld [vmem:[#allocation2 + $0xc] sm:$0xf0] }
 0x287   : > { %v2442_v58 = vmax.f32 %v2418_v50, 0.0 }
 0x288   : > { %v2755_v8 = vor.u32 %v2753_v39, %v7960_v47  ;;  %6339 = vmatpush.bf16.msra.mxu1 %v7904_v32  ;;  %v2756_v32 = vrot.slane %v7960_v47, 4  ;;  %v6110_v39 = vld [vmem:[#allocation3 + $0x220] sm:$0xff] }
 0x289   : > { %v2523_v59 = vsel %vm7931_vm3, %v2442_v58, 0.0  ;;  %6346 = vmatpush.bf16.msra.mxu2 %v6111_v11 }
 0x28a   : > { %v2872_v7 = vsel %vm7578_vm11, %v2755_v8, %v2871_v36  ;;  %v2608_v55 = vpack.c.bf16 %v2523_v59, %v2523_v59  ;;  %v2899_v61 = vld [vmem:[#allocation2 + $0x54] sm:$0xff]   ;;  %4652 = vmatpush.bf16.msrb.mxu0 %v6112_v30  ;;  %v6510_v59 = vld [vmem:[#allocation2 + $0xc] sm:$0xe] }
 0x28b   : > { %v6506_v3 = vld [vmem:[#allocation2 + $0x54] sm:$0xf0]  ;;  %2873 = vst [vmem:[#allocation2 + $0x60] sm:$0xf] %v2872_v7  ;;  %v2908_v5 = vld [vmem:[#allocation2 + $0x5c] sm:$0x1]  ;;  %4302 = vmatmul.bf16.gmra.mxu1 %v2899_v61 }
 0x28c   : > { %v7976_v43 = vld [vmem:[#allocation2 + $0x54] sm:$0xff]   ;;  %v2758_v45 = vshrl.u32 %v2608_v55, 16  ;;  %v2420_v2 = vpop.f32.mrf.mxu0  ;;  %v3046_v6 = vunpack.c.l.b16 %v2908_v5  ;;  %v6508_v42 = vor.u32 %v6507_v9, %v6506_v3  ;;  %v2761_v53 = vshll.u32 %v2608_v55, 16  ;;  %6340 = vmatpush.bf16.msra.mxu1 %v7914_v40  ;;  %v2878_v55 = vld [vmem:[#allocation2 + $0x6c] sm:$0xf] }
 0x28d   : > { %v7978_v46 = vld [vmem:[#allocation2 + $0x54] sm:$0xf0]  ;;  %v2421_v24 = vadd.f32 %v2420_v2, %v2362_v49  ;;  %v3142_v23 = vshll.u32 %v2899_v61, 16  ;;  %4586 = vmatmul.bf16.gmra.mxu0 %v7976_v43  ;;  %v3140_v10 = vshrl.u32 %v2899_v61, 16  ;;  %v2934_v9 = vld [vmem:[#allocation2 + $0x14] sm:$0x1]  ;;  %6347 = vmatpush.bf16.msra.mxu2 %v6110_v39 }
 0x28e   : > { %v2760_v63 = vrot.slane %v2758_v45, 7  ;;  %v3054_v1 = vpack.c.b16 %v3046_v6, %v3046_v6  ;;  %v3204_v27 = vrot.slane %v6508_v42, 1  ;;  %4653 = vmatpush.bf16.msrb.mxu0 %v6111_v11  ;;  %v6109_v7 = vld [vmem:[#allocation3 + $0x218] sm:$0xff]  ;;  %v3271_v3 = vunpack.c.l.b16 %v2934_v9  ;;  %v6108_v6 = vld [vmem:[#allocation3 + $0x210] sm:$0xff]  ;;  %v6312_v9 = vld [vmem:[#allocation2 + $0x18] sm:$0xf0] }
 0x28f   : > { %v2443_v13 = vmax.f32 %v2421_v24, 0.0  ;;  %v3144_v21 = vrot.slane %v3142_v23, 1  ;;  %v8005_v5 = vld [vmem:[%s8504_s5 + $0x30] sm:$0xff]  ;;  %v6511_v42 = vor.u32 %v6510_v59, %v6509_v28  ;;  %v6106_v28 = vld [vmem:[#allocation3 + $0x200] sm:$0xff] }
 0x290   : > { %v2763_v18 = vor.u32 %v2761_v53, %v2760_v63  ;;  %v2765_v56 = vrot.slane %v2760_v63, 4  ;;  %v3205_v57 = vrot.slane %v3054_v1, 1  ;;  %v3147_v50 = vshll.u32 %v3054_v1, 16  ;;  %6341 = vmatpush.bf16.msra.mxu1 %v7927_v52  ;;  %6353 = vmatpush.bf16.msra.mxu3 %v8005_v5  ;;  %v2882_v11 = vld [vmem:[#allocation2 + $0x74] sm:$0x1] }
 0x291   : > { %v2524_v51 = vsel %vm7984_vm7, %v2443_v13, 0.0  ;;  %v3145_v54 = vor.u32 %v3144_v21, %v3140_v10  ;;  %6348 = vmatpush.bf16.msra.mxu2 %v6109_v7  ;;  %v3279_v24 = vpack.c.b16 %v3271_v3, %v3271_v3  ;;  %v3290_v63 = vshll.u32 %v7990_v14, 16  ;;  %v8028_v21 = vld [vmem:[%s8503_s4] ss:$0 sm:$0xff] }
 0x292   : > { %v2764_v17 = vsel %vm7606_vm2, %v2756_v32, %v2763_v18  ;;  %v2876_v25 = vsel %vm7494_vm4, %v2765_v56, %v2875_v41  ;;  %v2609_v22 = vpack.c.bf16 %v2524_v51, %v2524_v51  ;;  %v3206_v47 = vsel %vm693_vm0, %v3204_v27, %v3205_v57  ;;  %4654 = vmatpush.bf16.msrb.mxu0 %v6110_v39 }
 0x293   : > { %2874 = vst [vmem:[#allocation2 + $0x64] sm:$0xf] %v2764_v17  ;;  %v3149_v36 = vrot.slane %v3147_v50, 1  ;;  %v3416_v41 = vrot.slane %v3279_v24, 1  ;;  %v3292_v13 = vrot.slane %v3290_v63, 1  ;;  %v3288_v18 = vshrl.u32 %v7990_v14, 16 }
 0x294   : > { %2877 = vst [vmem:[#allocation2 + $0x68] sm:$0x1] %v2876_v25  ;;  %v2767_v58 = vshrl.u32 %v2609_v22, 16  ;;  %4400 = vmatmul.bf16.gmra.mxu3 %v3206_v47  ;;  %v2422_v34 = vpop.f32.mrf.mxu0  ;;  %v2770_v62 = vshll.u32 %v2609_v22, 16  ;;  %6342 = vmatpush.bf16.msra.mxu1 %v7942_v16  ;;  %v2935_v50 = vld [vmem:[#allocation2 + $0x20] sm:$0x1] }
 0x295   : > { %v2423_v40 = vadd.f32 %v2422_v34, %v2364_v26  ;;  %v3150_v8 = vsel %vm532_vm1, %v3145_v54, %v3149_v36  ;;  %6349 = vmatpush.bf16.msra.mxu2 %v6108_v6  ;;  %v3415_v26 = vrot.slane %v6511_v42, 1  ;;  %v3293_v10 = vor.u32 %v3292_v13, %v3288_v18  ;;  %v8035_v47 = vld [vmem:[%s8504_s5 + $0x28] sm:$0xff]  ;;  %v6293_v36 = vld [vmem:[#allocation2 + $0x18] sm:$0xff]   ;;  %v6513_v18 = vld [vmem:[#allocation2 + $0x24] sm:$0xe] }
 0x296   : > { %v2769_v49 = vrot.slane %v2767_v58, 7  ;;  %4351 = vmatmul.bf16.gmra.mxu2 %v3150_v8  ;;  %4655 = vmatpush.bf16.msrb.mxu0 %v6109_v7  ;;  %v3272_v25 = vunpack.c.l.b16 %v2935_v50  ;;  %v2967_v8 = vld [vmem:[#allocation2 + $0x20] sm:$0x1]  ;;  %v3302_v7 = vshll.u32 %v6293_v36, 16  ;;  %v2936_v13 = vld [vmem:[#allocation2 + $0x2c] sm:$0x1] }
 0x297   : > { %v2444_v61 = vmax.f32 %v2423_v40, 0.0  ;;  %v3417_v51 = vsel %vm693_vm0, %v3415_v26, %v3416_v41  ;;  %6354 = vmatpush.bf16.msra.mxu3 %v8035_v47  ;;  %v3503_v3 = vunpack.c.l.b16 %v2967_v8  ;;  %v8058_v26 = vld [vmem:[%s8504_s5 + $0x18] sm:$0xff] }
 0x298   : > { %v2772_v30 = vor.u32 %v2770_v62, %v2769_v49  ;;  %v4268_v2 = vpop.f32.mrf.mxu1  ;;  %6343 = vmatpush.bf16.msra.mxu1 %v7957_v33  ;;  %v2773_v23 = vrot.slane %v2769_v49, 4  ;;  %v3295_v33 = vshll.u32 %v3279_v24, 16  ;;  %v3280_v40 = vpack.c.b16 %v3272_v25, %v3272_v25  ;;  %v6313_v62 = vld [vmem:[#allocation2 + $0x18] sm:$0xe] }
 0x299   : > { %v2525_v15 = vsel %vm7984_vm7, %v2444_v61, 0.0  ;;  %6350 = vmatpush.bf16.msra.mxu2 %v6107_v20  ;;  %v4269_v22 = vadd.f32 %v8028_v21, %v4268_v2  ;;  %v2922_v2 = vld [vmem:[#allocation2 + $0x24] sm:$0xff]   ;;  %v3304_v42 = vrot.slane %v3302_v7, 1  ;;  %v5906_v7 = vld [vmem:[%s6842_s3 + $0x18] sm:$0xf] }
 0x29a   : > { %v2879_v52 = vsel %vm7578_vm11, %v2772_v30, %v2878_v55  ;;  %v2610_v45 = vpack.c.bf16 %v2525_v15, %v2525_v15  ;;  %v8015_v1 = vld [vmem:[#allocation2 + $0x60] sm:$0xff]   ;;  %4656 = vmatpush.bf16.msrb.mxu0 %v6108_v6  ;;  %v3297_v44 = vrot.slane %v3295_v33, 1  ;;  %v6314_v55 = vor.u32 %v6313_v62, %v6312_v9  ;;  %v6512_v6 = vld [vmem:[#allocation2 + $0x24] sm:$0xf0] }
 0x29b   : > { %2880 = vst [vmem:[#allocation2 + $0x6c] sm:$0xf] %v2879_v52  ;;  %4414 = vmatmul.bf16.vlgmr.msrb.gmra.mxu1 %v7990_v14  ;;  %v8047_v30 = vld [vmem:[%s8504_s5 + $0x20] sm:$0xff]  ;;  %v3419_v15 = vrot.slane %v3280_v40, 1  ;;  %v3307_v52 = vshll.u32 %v3280_v40, 16  ;;  %v6514_v25 = vor.u32 %v6513_v18, %v6512_v6 }
 0x29c   : > { %v2775_v53 = vshrl.u32 %v2610_v45, 16  ;;  %v2778_v16 = vshll.u32 %v2610_v45, 16  ;;  %v3298_v4 = vsel %vm532_vm1, %v3293_v10, %v3297_v44  ;;  %6355 = vmatpush.bf16.msra.mxu3 %v8047_v30  ;;  %v3418_v63 = vrot.slane %v6314_v55, 1  ;;  %v2937_v6 = vld [vmem:[#allocation2 + $0x38] sm:$0x1] }
 0x29d   : > { %4591 = vmatmul.bf16.gmra.mxu0 %v8015_v1  ;;  %6351 = vmatpush.bf16.msra.mxu2 %v6106_v28  ;;  %v3421_v9 = vrot.slane %v6514_v25, 1  ;;  %vm4725_vm11 = vsmask.f32 7440 }
 0x29e   : > { %v2777_v60 = vrot.slane %v2775_v53, 7  ;;  %4657 = vmatpush.bf16.msrb.mxu0 %v6107_v20  ;;  %v3420_v20 = vsel %vm693_vm0, %v3418_v63, %v3419_v15  ;;  %v5907_v15 = vld [vmem:[%s6842_s3 + $0x1c] sm:$0xf] }
 0x2a0   : > { %v2780_v27 = vor.u32 %v2778_v16, %v2777_v60  ;;  %v2782_v32 = vrot.slane %v2777_v60, 4  ;;  %v4270_v14 = vpop.f32.mrf.mxu1  ;;  %v3300_v60 = vshrl.u32 %v6293_v36, 16  ;;  %v8052_v16 = vpack.c.b16 %v3503_v3, %v3503_v3  ;;  %6356 = vmatpush.bf16.msra.mxu3 %v8058_v26 }
 0x2a1   : > { %v4271_v45 = vadd.f32 %v8028_v21, %v4270_v14 }
 0x2a2   : > { %v2781_v56 = vsel %vm7606_vm2, %v2773_v23, %v2780_v27  ;;  %v2883_v57 = vsel %vm7494_vm4, %v2782_v32, %v2882_v11  ;;  %4658 = vmatpush.bf16.msrb.mxu0 %v6106_v28  ;;  %v3309_v11 = vrot.slane %v3307_v52, 1  ;;  %v3305_v23 = vor.u32 %v3304_v42, %v3300_v60  ;;  %v8068_v28 = vld [vmem:[%s8504_s5 + $0x10] sm:$0xff] }
 0x2a3   : > { %2881 = vst [vmem:[#allocation2 + $0x70] sm:$0xf] %v2781_v56  ;;  %v3527_v32 = vshll.u32 %v8052_v16, 16  ;;  %v4737_v60 = vshll.u32 %v5907_v15, 16  ;;  %vm4724_vm4 = vsmask.f32 3328 }
 0x2a4   : > { %2884 = vst [vmem:[#allocation2 + $0x74] sm:$0x1] %v2883_v57  ;;  %4512 = vmatmul.bf16.vlgmr.msrb.gmra.mxu3 %v3417_v51  ;;  %v3310_v56 = vsel %vm532_vm1, %v3305_v23, %v3309_v11  ;;  %v3273_v57 = vunpack.c.l.b16 %v2936_v13  ;;  %v6325_v13 = vld [vmem:[#allocation2 + $0x18] sm:$0xe]  ;;  %v3274_v23 = vunpack.c.l.b16 %v2937_v6  ;;  %v6515_v6 = vld [vmem:[#allocation2 + $0x3c] sm:$0xf0]  ;;  %vm8112_vm2 = vmor %vm4724_vm4, %vm4725_vm11 }
 0x2a5   : > { %6357 = vmatpush.bf16.msra.mxu3 %v8068_v28  ;;  %v3529_v44 = vrot.slane %v3527_v32, 1 }
 0x2a6   : > { %4463 = vmatmul.bf16.vlgmr.msrb.gmra.mxu2 %v3298_v4  ;;  %v3281_v4 = vpack.c.b16 %v3273_v57, %v3273_v57  ;;  %v3282_v25 = vpack.c.b16 %v3274_v23, %v3274_v23 }
 0x2a7   : > { %v4366_v17 = vpop.f32.mrf.mxu3 }
 0x2a8   : > { %v4273_v49 = vpop.f32.mrf.mxu1  ;;  %v3422_v40 = vrot.slane %v3281_v4, 1  ;;  %v3319_v3 = vshll.u32 %v3281_v4, 16  ;;  %v6315_v4 = vld [vmem:[#allocation2 + $0x30] sm:$0xf0] }
 0x2a9   : > { %v4317_v39 = vpop.f32.mrf.mxu2  ;;  %v4274_v51 = vadd.f32 %v8028_v21, %v4273_v49  ;;  %v8085_v49 = vld [vmem:[%s8504_s5] sm:$0xff] }
 0x2aa   : > { %v4318_v54 = vadd.f32 %v4317_v39, %v4269_v22  ;;  %v8037_v58 = vld [vmem:[#allocation2 + $0x6c] sm:$0xff]   ;;  %v3423_v52 = vsel %vm693_vm0, %v3421_v9, %v3422_v40  ;;  %v3321_v11 = vrot.slane %v3319_v3, 1 }
 0x2ab   : > { %v8039_v34 = vld [vmem:[#allocation2 + $0x6c] sm:$0xf0]  ;;  %4419 = vmatmul.bf16.gmra.mxu1 %v6293_v36  ;;  %v8077_v22 = vld [vmem:[%s8504_s5 + $0x8] sm:$0xff]  ;;  %v3530_v36 = vsel %vm532_vm1, %v7740_v12, %v3529_v44 }
 0x2ac   : > { %v8042_v59 = vadd.f32 %v4366_v17, %v4318_v54  ;;  %v3314_v17 = vshll.u32 %v2922_v2, 16  ;;  %6358 = vmatpush.bf16.msra.mxu3 %v8077_v22  ;;  %v6316_v40 = vld [vmem:[#allocation2 + $0x30] sm:$0xe] }
 0x2ad   : > { %4596 = vmatmul.bf16.gmra.mxu0 %v8037_v58 }
 0x2ae   : > { %v3316_v8 = vrot.slane %v3314_v17, 1  ;;  %v5908_v17 = vld [vmem:[%s6842_s3 + $0x20] sm:$0x1] }
 0x2af   : > { %v4368_v61 = vpop.f32.mrf.mxu3 }
 0x2b0   : > { %v4275_v41 = vpop.f32.mrf.mxu1  ;;  %6359 = vmatpush.bf16.msra.mxu3 %v8085_v49 }
 0x2b1   : > { %v4319_v24 = vpop.f32.mrf.mxu2  ;;  %v4276_v62 = vadd.f32 %v8028_v21, %v4275_v41 }
 0x2b2   : > { %v4320_v53 = vadd.f32 %v4319_v24, %v4271_v45  ;;  %v4728_v24 = vshrl.u32 %v5906_v7, 16 }
 0x2b4   : > { %4517 = vmatmul.bf16.gmra.mxu3 %v3420_v20  ;;  %v8062_v33 = vadd.f32 %v4368_v61, %v4320_v53  ;;  %v3312_v61 = vshrl.u32 %v2922_v2, 16  ;;  %v4731_v53 = vshll.u32 %v5906_v7, 16 }
 0x2b6   : > { %4468 = vmatmul.bf16.gmra.mxu2 %v3310_v56  ;;  %v3317_v45 = vor.u32 %v3316_v8, %v3312_v61  ;;  %v4733_v57 = vrot.slane %v4731_v53, 5 }
 0x2b7   : > { %v4371_v27 = vpop.f32.mrf.mxu3 }
 0x2b8   : > { %v8072_v14 = vpop.f32.mrf.mxu0  ;;  %v4278_v39 = vpop.f32.mrf.mxu1  ;;  %v3322_v18 = vsel %vm532_vm1, %v3317_v45, %v3321_v11 }
 0x2b9   : > { %v4322_v10 = vpop.f32.mrf.mxu2  ;;  %v4279_v32 = vadd.f32 %v8028_v21, %v4278_v39 }
 0x2ba   : > { %v4323_v50 = vadd.f32 %v4322_v10, %v4274_v51  ;;  %v4739_v51 = vrot.slane %v4737_v60, 5 }
 0x2bb   : > { %4424 = vmatmul.bf16.gmra.mxu1 %v2922_v2  ;;  %v4741_v2 = vshrl.u32 %v5907_v15, 16  ;;  %v3331_v15 = vshll.u32 %v3282_v25, 16 }
 0x2bc   : > { %v8096_v20 = vadd.f32 %v4371_v27, %v4323_v50  ;;  %v3648_v50 = vrot.slane %v8052_v16, 1  ;;  %v6451_v16 = vld [vmem:[#allocation2 + $0x30] sm:$0xff]  }
 0x2bd   : > { %4610 = vmatmul.bf16.vlgmr.msra.gmra.mxu0 %v3530_v36  ;;  %v4743_v10 = vrot.slane %v4741_v2, 4  ;;  %v3333_v11 = vrot.slane %v3331_v15, 1 }
 0x2be   : > { %5019 = vmatpush.bf16.msra.mxu0 %v7968_v37  ;;  %v6324_v37 = vld [vmem:[#allocation2 + $0x18] sm:$0xf0] }
 0x2bf   : > { %v4373_v54 = vpop.f32.mrf.mxu3  ;;  %v6326_v56 = vor.u32 %v6325_v13, %v6324_v37 }
 0x2c0   : > { %v8093_v42 = vpop.f32.mrf.mxu0  ;;  %v4280_v63 = vpop.f32.mrf.mxu1 }
 0x2c1   : > { %v4324_v55 = vpop.f32.mrf.mxu2  ;;  %v3647_v36 = vrot.slane %v6326_v56, 1  ;;  %v4281_v45 = vadd.f32 %v8028_v21, %v4280_v63 }
 0x2c2   : > { %v4325_v12 = vadd.f32 %v4324_v55, %v4276_v62  ;;  %5020 = vmatpush.bf16.msra.mxu0 %v8005_v5  ;;  %v4730_v5 = vrot.slane %v4728_v24, 4  ;;  %v4747_v62 = vshll.u32 %v5908_v17, 16  ;;  %v6317_v55 = vor.u32 %v6316_v40, %v6315_v4 }
 0x2c3   : > { %v3649_v3 = vsel %vm693_vm0, %v3647_v36, %v3648_v50 }
 0x2c4   : > { %4522 = vmatmul.bf16.gmra.mxu3 %v3423_v52  ;;  %v4734_v8 = vor.u32 %v4733_v57, %v4730_v5  ;;  %v8106_v7 = vadd.f32 %v4373_v54, %v4325_v12  ;;  %v3425_v52 = vrot.slane %v3282_v25, 1  ;;  %v4749_v12 = vrot.slane %v4747_v62, 5  ;;  %v6516_v57 = vld [vmem:[#allocation2 + $0x3c] sm:$0xe] }
 0x2c5   : > { %v3424_v53 = vrot.slane %v6317_v55, 1  ;;  %v3334_v5 = vsel %vm532_vm1, %v7838_v48, %v3333_v11  ;;  %v6517_v40 = vor.u32 %v6516_v57, %v6515_v6  ;;  %v6319_v57 = vld [vmem:[#allocation2 + $0x48] sm:$0xe] }
 0x2c6   : > { %4473 = vmatmul.bf16.gmra.mxu2 %v3322_v18  ;;  %5021 = vmatpush.bf16.msra.mxu0 %v8035_v47  ;;  %v4744_v47 = vor.u32 %v4743_v10, %v4739_v51  ;;  %v4735_v24 = vrot.slane %v4734_v8, 4  ;;  %v2938_v18 = vld [vmem:[#allocation2 + $0x44] sm:$0x1] }
 0x2c7   : > { %v4376_v41 = vpop.f32.mrf.mxu3  ;;  %v3426_v13 = vsel %vm693_vm0, %v3424_v53, %v3425_v52  ;;  %v3275_v50 = vunpack.c.l.b16 %v2938_v18  ;;  %v3427_v55 = vrot.slane %v6517_v40, 1 }
 0x2c8   : > { %v4283_v9 = vpop.f32.mrf.mxu1  ;;  %v4745_v54 = vrot.slane %v4744_v47, 4 }
 0x2c9   : > { %v4327_v44 = vpop.f32.mrf.mxu2  ;;  %v3283_v36 = vpack.c.b16 %v3275_v50, %v3275_v50 }
 0x2ca   : > { %v4328_v27 = vadd.f32 %v4327_v44, %v4279_v32  ;;  %v8103_v39 = vpop.f32.mrf.mxu0  ;;  %5022 = vmatpush.bf16.msra.mxu0 %v8047_v30  ;;  %v2926_v30 = vld [vmem:[#allocation2 + $0x3c] sm:$0xff]   ;;  %v4750_v32 = vsel %vm8112_vm2, %v4745_v54, %v4749_v12 }
 0x2cb   : > { %4429 = vmatmul.bf16.gmra.mxu1 %v6451_v16  ;;  %v4940_v17 = vunpack.c.l.b16 %v4750_v32  ;;  %v3338_v4 = vshll.u32 %v2926_v30, 16  ;;  %v3343_v15 = vshll.u32 %v3283_v36, 16 }
 0x2cc   : > { %v8124_v56 = vadd.f32 %v4376_v41, %v4328_v27 }
 0x2cd   : > { %4659 = vmatmul.bf16.vlgmr.msrb.gmra.mxu0 %v3649_v3  ;;  %v3340_v3 = vrot.slane %v3338_v4, 1  ;;  %v6518_v4 = vld [vmem:[#allocation2 + $0x54] sm:$0xf0] }
 0x2ce   : > { %5023 = vmatpush.bf16.msra.mxu0 %v8058_v26  ;;  %v4740_v26 = vsel %vm8112_vm2, %v4735_v24, %v4739_v51 }
 0x2cf   : > { %v4378_v61 = vpop.f32.mrf.mxu3  ;;  %v4939_v44 = vunpack.c.l.b16 %v4740_v26 }
 0x2d0   : > { %v4285_v63 = vpop.f32.mrf.mxu1 }
 0x2d1   : > { %v4329_v37 = vpop.f32.mrf.mxu2  ;;  %v4955_v25 = vpack.c.b16 %v4940_v17, %v4939_v44  ;;  %v4286_v16 = vadd.f32 %v8028_v21, %v4285_v63 }
 0x2d2   : > { %v4330_v2 = vadd.f32 %v4329_v37, %v4281_v45  ;;  %v8117_v23 = vpop.f32.mrf.mxu0  ;;  %5024 = vmatpush.bf16.msra.mxu0 %v8068_v28  ;;  %v4284_v28 = vadd.f32 %v8028_v21, %v4283_v9  ;;  %v3336_v9 = vshrl.u32 %v2926_v30, 16  ;;  %v3345_v37 = vrot.slane %v3343_v15, 1 }
 0x2d4   : > { %4527 = vmatmul.bf16.gmra.mxu3 %v3426_v13  ;;  %v8133_v47 = vadd.f32 %v4378_v61, %v4330_v2  ;;  %v3341_v6 = vor.u32 %v3340_v3, %v3336_v9  ;;  %v2939_v61 = vld [vmem:[#allocation2 + $0x50] sm:$0x1]  ;;  %v6318_v13 = vld [vmem:[#allocation2 + $0x48] sm:$0xf0]  ;;  %v2940_v3 = vld [vmem:[#allocation2 + $0x5c] sm:$0x1] }
 0x2d6   : > { %4478 = vmatmul.bf16.gmra.mxu2 %v3334_v5  ;;  %5025 = vmatpush.bf16.msra.mxu0 %v8077_v22  ;;  %v3428_v22 = vrot.slane %v3283_v36, 1  ;;  %v3346_v2 = vsel %vm532_vm1, %v3341_v6, %v3345_v37 }
 0x2d7   : > { %v4381_v10 = vpop.f32.mrf.mxu3 }
 0x2d8   : > { %v4288_v27 = vpop.f32.mrf.mxu1  ;;  %v3429_v45 = vsel %vm693_vm0, %v3427_v55, %v3428_v22 }
 0x2d9   : > { %v4332_v51 = vpop.f32.mrf.mxu2  ;;  %v4289_v11 = vadd.f32 %v8028_v21, %v4288_v27 }
 0x2da   : > { %v4333_v41 = vadd.f32 %v4332_v51, %v4284_v28  ;;  %v8130_v8 = vpop.f32.mrf.mxu0  ;;  %5026 = vmatpush.bf16.msra.mxu0 %v8085_v49  ;;  %v2930_v51 = vld [vmem:[#allocation2 + $0x54] sm:$0xff]  }
 0x2db   : > { %4434 = vmatmul.bf16.gmra.mxu1 %v2926_v30  ;;  %v3276_v30 = vunpack.c.l.b16 %v2939_v61 }
 0x2dc   : > { %v8139_v12 = vadd.f32 %v4381_v10, %v4333_v41  ;;  %v6320_v10 = vor.u32 %v6319_v57, %v6318_v13 }
 0x2dd   : > { %5027 = vmatmul.bf16.vlgmr.msra.gmra.mxu0 %v4955_v25  ;;  %v3284_v26 = vpack.c.b16 %v3276_v30, %v3276_v30 }
 0x2de   : > { %v3430_v25 = vrot.slane %v6320_v10, 1 }
 0x2df   : > { %v4383_v62 = vpop.f32.mrf.mxu3  ;;  %v3431_v50 = vrot.slane %v3284_v26, 1  ;;  %v3355_v28 = vshll.u32 %v3284_v26, 16 }
 0x2e0   : > { %v4290_v54 = vpop.f32.mrf.mxu1 }
 0x2e1   : > { %v4334_v52 = vpop.f32.mrf.mxu2  ;;  %v4291_v36 = vadd.f32 %v8028_v21, %v4290_v54  ;;  %v3432_v41 = vsel %vm693_vm0, %v3430_v25, %v3431_v50  ;;  %v3357_v27 = vrot.slane %v3355_v28, 1 }
 0x2e2   : > { %v4335_v24 = vadd.f32 %v4334_v52, %v4286_v16  ;;  %v8137_v49 = vpop.f32.mrf.mxu0  ;;  %v3277_v52 = vunpack.c.l.b16 %v2940_v3 }
 0x2e3   : > { %8547 = vst [vmem:[#allocation11_spill] sm:$0xff] %v8137_v49  ;;  %v3358_v16 = vsel %vm532_vm1, %v7953_v0, %v3357_v27 }
 0x2e4   : > { %4532 = vmatmul.bf16.gmra.mxu3 %v3429_v45  ;;  %v8145_v44 = vadd.f32 %v4383_v62, %v4335_v24  ;;  %v3362_v24 = vshll.u32 %v2930_v51, 16  ;;  %v3285_v54 = vpack.c.b16 %v3277_v52, %v3277_v52 }
 0x2e6   : > { %4483 = vmatmul.bf16.gmra.mxu2 %v3346_v2  ;;  %v3364_v26 = vrot.slane %v3362_v24, 1  ;;  %v3367_v57 = vshll.u32 %v3285_v54, 16  ;;  %v6321_v24 = vld [vmem:[#allocation2 + $0x60] sm:$0xf0] }
 0x2e7   : > { %v4386_v53 = vpop.f32.mrf.mxu3 }
 0x2e8   : > { %v4293_v18 = vpop.f32.mrf.mxu1  ;;  %v3369_v27 = vrot.slane %v3367_v57, 1  ;;  %v6322_v57 = vld [vmem:[#allocation2 + $0x60] sm:$0xe] }
 0x2e9   : > { %v4337_v63 = vpop.f32.mrf.mxu2  ;;  %v4294_v45 = vadd.f32 %v8028_v21, %v4293_v18 }
 0x2ea   : > { %v4338_v32 = vadd.f32 %v4337_v63, %v4289_v11  ;;  %v8143_v5 = vpop.f32.mrf.mxu0  ;;  %v3434_v63 = vrot.slane %v3285_v54, 1 }
 0x2eb   : > { %8548 = vst [vmem:[#allocation12_spill] sm:$0xff] %v8143_v5  ;;  %4439 = vmatmul.bf16.gmra.mxu1 %v7920_v29  ;;  %v6519_v29 = vld [vmem:[#allocation2 + $0x54] sm:$0xe] }
 0x2ec   : > { %v8152_v9 = vadd.f32 %v4386_v53, %v4338_v32  ;;  %v6520_v61 = vor.u32 %v6519_v29, %v6518_v4  ;;  %v3360_v32 = vshrl.u32 %v2930_v51, 16 }
 0x2ee   : > { %v3433_v13 = vrot.slane %v6520_v61, 1  ;;  %v3365_v28 = vor.u32 %v3364_v26, %v3360_v32 }
 0x2ef   : > { %v4388_v17 = vpop.f32.mrf.mxu3 }
 0x2f0   : > { %v4295_v22 = vpop.f32.mrf.mxu1  ;;  %v3435_v50 = vsel %vm693_vm0, %v3433_v13, %v3434_v63  ;;  %v2968_v13 = vld [vmem:[#allocation2 + $0x2c] sm:$0x1] }
 0x2f1   : > { %v4339_v40 = vpop.f32.mrf.mxu2  ;;  %v4296_v18 = vadd.f32 %v8028_v21, %v4295_v22 }
 0x2f2   : > { %v4340_v55 = vadd.f32 %v4339_v40, %v4291_v36  ;;  %v8150_v62 = vpop.f32.mrf.mxu0  ;;  %v2941_v36 = vld [vmem:[#allocation2 + $0x68] sm:$0x1]  ;;  %v5909_v40 = vld [vmem:[%s6842_s3 + $0x24] sm:$0xf] }
 0x2f3   : > { %8549 = vst [vmem:[#allocation13_spill] sm:$0xff] %v8150_v62  ;;  %v3278_v29 = vunpack.c.l.b16 %v2941_v36  ;;  %v4752_v22 = vshrl.u32 %v5909_v40, 16  ;;  %v3594_v36 = vshll.u32 %v8015_v1, 16 }
 0x2f4   : > { %4537 = vmatmul.bf16.gmra.mxu3 %v3432_v41  ;;  %v8159_v11 = vadd.f32 %v4388_v17, %v4340_v55  ;;  %v5910_v55 = vld [vmem:[%s6842_s3 + $0x28] sm:$0xf] }
 0x2f5   : > { %v4761_v52 = vshll.u32 %v5910_v55, 16  ;;  %v3286_v61 = vpack.c.b16 %v3278_v29, %v3278_v29 }
 0x2f6   : > { %4488 = vmatmul.bf16.gmra.mxu2 %v3358_v16  ;;  %v4755_v16 = vshll.u32 %v5909_v40, 16  ;;  %v6323_v40 = vor.u32 %v6322_v57, %v6321_v24 }
 0x2f7   : > { %v4391_v15 = vpop.f32.mrf.mxu3 }
 0x2f8   : > { %v4298_v2 = vpop.f32.mrf.mxu1 }
 0x2f9   : > { %v4342_v6 = vpop.f32.mrf.mxu2 }
 0x2fa   : > { %v4343_v37 = vadd.f32 %v4342_v6, %v4294_v45  ;;  %v8157_v30 = vpop.f32.mrf.mxu0  ;;  %v4765_v45 = vshrl.u32 %v5910_v55, 16  ;;  %v4299_v6 = vadd.f32 %v8028_v21, %v4298_v2  ;;  %v3504_v2 = vunpack.c.l.b16 %v2968_v13 }
 0x2fb   : > { %8550 = vst [vmem:[#allocation14_spill] sm:$0xff] %v8157_v30  ;;  %4444 = vmatmul.bf16.gmra.mxu1 %v2930_v51  ;;  %v3370_v51 = vsel %vm532_vm1, %v3365_v28, %v3369_v27  ;;  %v3437_v55 = vrot.slane %v3286_v61, 1 }
 0x2fc   : > { %v8166_v41 = vadd.f32 %v4391_v15, %v4343_v37  ;;  %v4754_v15 = vrot.slane %v4752_v22, 4  ;;  %v4757_v37 = vrot.slane %v4755_v16, 5 }
 0x2fe   : > { %v4758_v22 = vor.u32 %v4757_v37, %v4754_v15 }
 0x2ff   : > { %v4393_v53 = vpop.f32.mrf.mxu3 }
 0x300   : > { %v4300_v25 = vpop.f32.mrf.mxu1 }
 0x301   : > { %v4344_v10 = vpop.f32.mrf.mxu2 }
 0x302   : > { %v4345_v4 = vadd.f32 %v4344_v10, %v4296_v18  ;;  %v8163_v17 = vpop.f32.mrf.mxu0  ;;  %v5911_v18 = vld [vmem:[%s6842_s3 + $0x2c] sm:$0x1]  ;;  %v4763_v10 = vrot.slane %v4761_v52, 5  ;;  %v4301_v52 = vadd.f32 %v8028_v21, %v4300_v25 }
 0x303   : > { %8551 = vst [vmem:[#allocation15_spill] sm:$0xff] %v8163_v17  ;;  %v4771_v29 = vshll.u32 %v5911_v18, 16  ;;  %v4759_v18 = vrot.slane %v4758_v22, 4  ;;  %v5913_v17 = vld [vmem:[%s6842_s3 + $0x34] sm:$0xf] }
 0x304   : > { %4542 = vmatmul.bf16.gmra.mxu3 %v3435_v50  ;;  %v4767_v50 = vrot.slane %v4765_v45, 4  ;;  %v8174_v28 = vadd.f32 %v4393_v53, %v4345_v4  ;;  %v8180_v53 = vpack.c.b16 %v3504_v2, %v3504_v2  ;;  %v3592_v4 = vshrl.u32 %v8015_v1, 16  ;;  %v5912_v2 = vld [vmem:[%s6842_s3 + $0x30] sm:$0xf] }
 0x305   : > { %v4779_v22 = vshll.u32 %v5912_v2, 16 }
 0x306   : > { %4493 = vmatmul.bf16.gmra.mxu2 %v3370_v51  ;;  %v3379_v51 = vshll.u32 %v3286_v61, 16  ;;  %v4768_v16 = vor.u32 %v4767_v50, %v4763_v10  ;;  %v4773_v61 = vrot.slane %v4771_v29, 5  ;;  %v4764_v29 = vsel %vm8112_vm2, %v4759_v18, %v4763_v10 }
 0x307   : > { %v4396_v3 = vpop.f32.mrf.mxu3  ;;  %v4781_v18 = vrot.slane %v4779_v22, 5 }
 0x308   : > { %v4303_v26 = vpop.f32.mrf.mxu1  ;;  %v3381_v13 = vrot.slane %v3379_v51, 1  ;;  %v4769_v50 = vrot.slane %v4768_v16, 4  ;;  %v3539_v51 = vshll.u32 %v8180_v53, 16  ;;  %v4789_v16 = vshrl.u32 %v5913_v17, 16 }
 0x309   : > { %v4347_v54 = vpop.f32.mrf.mxu2 }
 0x30a   : > { %v4348_v63 = vadd.f32 %v4347_v54, %v4299_v6  ;;  %v8171_v32 = vpop.f32.mrf.mxu0  ;;  %v3596_v6 = vrot.slane %v3594_v36, 1  ;;  %v3436_v54 = vrot.slane %v6323_v40, 1 }
 0x30b   : > { %8552 = vst [vmem:[#allocation16_spill] sm:$0xff] %v8171_v32  ;;  %4449 = vmatmul.bf16.gmra.mxu1 %v8015_v1  ;;  %v3534_v32 = vshll.u32 %v7759_v31, 16  ;;  %v3532_v1 = vshrl.u32 %v7759_v31, 16  ;;  %v4304_v31 = vadd.f32 %v8028_v21, %v4303_v26 }
 0x30c   : > { %v3438_v24 = vsel %vm693_vm0, %v3436_v54, %v3437_v55  ;;  %v8186_v36 = vadd.f32 %v4396_v3, %v4348_v63  ;;  %v8188_v25 = vor.u32 %v3596_v6, %v3592_v4  ;;  %v4774_v3 = vsel %vm8112_vm2, %v4769_v50, %v4773_v61  ;;  %v6522_v6 = vld [vmem:[#allocation2 + $0x24] sm:$0xe] }
 0x30d   : > { %v3536_v40 = vrot.slane %v3534_v32, 1  ;;  %v4776_v63 = vshrl.u32 %v5912_v2, 16  ;;  %v4785_v32 = vshll.u32 %v5913_v17, 16  ;;  %v3541_v4 = vrot.slane %v3539_v51, 1 }
 0x30e   : > { %v3382_v55 = vsel %vm532_vm1, %v8188_v25, %v3381_v13  ;;  %v2969_v13 = vld [vmem:[#allocation2 + $0x38] sm:$0x1]  ;;  %v4791_v2 = vrot.slane %v4789_v16, 4  ;;  %v6523_v51 = vor.u32 %v6522_v6, %v7761_v38 }
 0x30f   : > { %v4398_v27 = vpop.f32.mrf.mxu3  ;;  %v3537_v54 = vor.u32 %v3536_v40, %v3532_v1  ;;  %v4778_v61 = vrot.slane %v4776_v63, 4  ;;  %v4787_v17 = vrot.slane %v4785_v32, 5  ;;  %v3505_v40 = vunpack.c.l.b16 %v2969_v13  ;;  %v5914_v1 = vld [vmem:[%s6842_s3 + $0x38] sm:$0x1] }
 0x310   : > { %v4305_v15 = vpop.f32.mrf.mxu1  ;;  %v4795_v62 = vshll.u32 %v5914_v1, 16  ;;  %v3651_v32 = vrot.slane %v8180_v53, 1 }
 0x311   : > { %v4349_v45 = vpop.f32.mrf.mxu2  ;;  %v3542_v26 = vsel %vm532_vm1, %v3537_v54, %v3541_v4  ;;  %v4306_v63 = vadd.f32 %v8028_v21, %v4305_v15  ;;  %v5915_v21 = vld [vmem:[%s6842_s3 + $0x3c] sm:$0xf]  ;;  %v5916_v15 = vld [vmem:[%s6842_s3 + $0x40] sm:$0xf] }
 0x312   : > { %v4350_v57 = vadd.f32 %v4349_v45, %v4301_v52  ;;  %v8184_v37 = vpop.f32.mrf.mxu0  ;;  %v4941_v45 = vunpack.c.l.b16 %v4764_v29 }
 0x313   : > { %8553 = vst [vmem:[#allocation17_spill] sm:$0xff] %v8184_v37 }
 0x314   : > { %4547 = vmatmul.bf16.gmra.mxu3 %v3438_v24  ;;  %v4942_v24 = vunpack.c.l.b16 %v4774_v3  ;;  %v8205_v50 = vadd.f32 %v4398_v27, %v4350_v57  ;;  %v8211_v27 = vpack.c.b16 %v3505_v40, %v3505_v40  ;;  %v3650_v57 = vrot.slane %v6523_v51, 1 }
 0x315   : > { %v4813_v40 = vshrl.u32 %v5916_v15, 16 }
 0x316   : > { %4498 = vmatmul.bf16.gmra.mxu2 %v3382_v55  ;;  %v4956_v3 = vpack.c.b16 %v4942_v24, %v4941_v45  ;;  %v4797_v24 = vrot.slane %v4795_v62, 5  ;;  %v3551_v13 = vshll.u32 %v8211_v27, 16 }
 0x317   : > { %v4401_v30 = vpop.f32.mrf.mxu3 }
 0x318   : > { %v8201_v37 = vpop.f32.mrf.mxu1  ;;  %v3553_v62 = vrot.slane %v3551_v13, 1  ;;  %v6327_v13 = vld [vmem:[#allocation2 + $0x30] sm:$0xf0] }
 0x319   : > { %v4352_v52 = vpop.f32.mrf.mxu2 }
 0x31a   : > { %v4353_v55 = vadd.f32 %v4352_v52, %v4304_v31  ;;  %v8203_v10 = vpop.f32.mrf.mxu0  ;;  %v4782_v31 = vor.u32 %v4781_v18, %v4778_v61  ;;  %v4792_v52 = vor.u32 %v4791_v2, %v4787_v17  ;;  %v3652_v18 = vsel %vm693_vm0, %v3650_v57, %v3651_v32 }
 0x31b   : > { %8554 = vst [vmem:[#allocation18_spill] sm:$0xff] %v8203_v10  ;;  %4615 = vmatmul.bf16.vlgmr.msra.gmra.mxu1 %v3542_v26  ;;  %v4800_v2 = vshrl.u32 %v5915_v21, 16  ;;  %v4803_v26 = vshll.u32 %v5915_v21, 16  ;;  %v5917_v21 = vld [vmem:[%s6842_s3 + $0x44] sm:$0x1] }
 0x31c   : > { %v4783_v6 = vrot.slane %v4782_v31, 4  ;;  %v8218_v4 = vadd.f32 %v4401_v30, %v4353_v55  ;;  %v4793_v45 = vrot.slane %v4792_v52, 4  ;;  %v4809_v55 = vshll.u32 %v5916_v15, 16 }
 0x31d   : > { %v4802_v57 = vrot.slane %v4800_v2, 4 }
 0x31e   : > { %v4788_v53 = vsel %vm8112_vm2, %v4783_v6, %v4787_v17  ;;  %v4798_v30 = vsel %vm8112_vm2, %v4793_v45, %v4797_v24  ;;  %v4811_v6 = vrot.slane %v4809_v55, 5  ;;  %v4815_v45 = vrot.slane %v4813_v40, 4 }
 0x31f   : > { %v4403_v29 = vpop.f32.mrf.mxu3  ;;  %v4943_v51 = vunpack.c.l.b16 %v4788_v53  ;;  %v4944_v52 = vunpack.c.l.b16 %v4798_v30  ;;  %v3554_v24 = vsel %vm532_vm1, %v7838_v48, %v3553_v62  ;;  %v6328_v30 = vld [vmem:[#allocation2 + $0x30] sm:$0xe]  ;;  %v3654_v48 = vrot.slane %v8211_v27, 1 }
 0x320   : > { %v8214_v54 = vpop.f32.mrf.mxu1  ;;  %v6329_v2 = vor.u32 %v6328_v30, %v6327_v13 }
 0x321   : > { %v4354_v22 = vpop.f32.mrf.mxu2  ;;  %v4957_v53 = vpack.c.b16 %v4944_v52, %v4943_v51 }
 0x322   : > { %v4355_v16 = vadd.f32 %v4354_v22, %v4306_v63  ;;  %v8216_v38 = vpop.f32.mrf.mxu0  ;;  %v2970_v63 = vld [vmem:[#allocation2 + $0x44] sm:$0x1]  ;;  %v4805_v22 = vrot.slane %v4803_v26, 5  ;;  %v3653_v52 = vrot.slane %v6329_v2, 1 }
 0x323   : > { %8555 = vst [vmem:[#allocation19_spill] sm:$0xff] %v8216_v38 }
 0x324   : > { %5032 = vmatmul.bf16.vlgmr.msra.gmra.mxu3 %v4956_v3  ;;  %v8234_v17 = vadd.f32 %v4403_v29, %v4355_v16  ;;  %v4816_v29 = vor.u32 %v4815_v45, %v4811_v6  ;;  %v4819_v16 = vshll.u32 %v5917_v21, 16  ;;  %v5918_v45 = vld [vmem:[%s6842_s3 + $0x48] sm:$0xf]  ;;  %v3655_v21 = vsel %vm693_vm0, %v3653_v52, %v3654_v48 }
 0x325   : > { %v4827_v30 = vshll.u32 %v5918_v45, 16 }
 0x326   : > { %4664 = vmatmul.bf16.vlgmr.msra.gmra.mxu2 %v3652_v18  ;;  %v3506_v18 = vunpack.c.l.b16 %v2970_v63  ;;  %v4817_v63 = vrot.slane %v4816_v29, 4 }
 0x327   : > { %v8223_v61 = vpop.f32.mrf.mxu3 }
 0x328   : > { %v4420_v3 = vpop.f32.mrf.mxu1  ;;  %v8246_v55 = vpack.c.b16 %v3506_v18, %v3506_v18  ;;  %v3556_v18 = vshrl.u32 %v7860_v35, 16 }
 0x329   : > { %v8230_v1 = vpop.f32.mrf.mxu2  ;;  %v4421_v32 = vadd.f32 %v4420_v3, %v8096_v20  ;;  %v3558_v20 = vshll.u32 %v7860_v35, 16 }
 0x32a   : > { %v8232_v31 = vpop.f32.mrf.mxu0  ;;  %v3563_v27 = vshll.u32 %v8246_v55, 16 }
 0x32b   : > { %8556 = vst [vmem:[#allocation20_spill] sm:$0xff] %v8232_v31  ;;  %4620 = vmatmul.bf16.gmra.mxu1 %v3554_v24  ;;  %v4806_v31 = vor.u32 %v4805_v22, %v4802_v57  ;;  %v4821_v57 = vrot.slane %v4819_v16, 5  ;;  %v3560_v22 = vrot.slane %v3558_v20, 1  ;;  %v5919_v24 = vld [vmem:[%s6842_s3 + $0x4c] sm:$0xf] }
 0x32c   : > { %v4833_v2 = vshll.u32 %v5919_v24, 16  ;;  %v4837_v29 = vshrl.u32 %v5919_v24, 16  ;;  %v6525_v20 = vld [vmem:[#allocation2 + $0x3c] sm:$0xe]  ;;  %v3565_v48 = vrot.slane %v3563_v27, 1 }
 0x32d   : > { %v4807_v51 = vrot.slane %v4806_v31, 4  ;;  %v4824_v31 = vshrl.u32 %v5918_v45, 16  ;;  %v3561_v16 = vor.u32 %v3560_v22, %v3556_v18  ;;  %v5920_v18 = vld [vmem:[%s6842_s3 + $0x50] sm:$0x1] }
 0x32e   : > { %v4835_v5 = vrot.slane %v4833_v2, 5 }
 0x32f   : > { %v8240_v15 = vpop.f32.mrf.mxu3  ;;  %v3566_v22 = vsel %vm532_vm1, %v3561_v16, %v3565_v48 }
 0x330   : > { %v4422_v40 = vpop.f32.mrf.mxu1 }
 0x331   : > { %v8243_v26 = vpop.f32.mrf.mxu2  ;;  %v4423_v3 = vadd.f32 %v4422_v40, %v8106_v7  ;;  %v4822_v7 = vsel %vm8112_vm2, %v4817_v63, %v4821_v57  ;;  %v4839_v63 = vrot.slane %v4837_v29, 4 }
 0x332   : > { %v8248_v62 = vpop.f32.mrf.mxu0  ;;  %v4946_v10 = vunpack.c.l.b16 %v4822_v7 }
 0x333   : > { %8557 = vst [vmem:[#allocation21_spill] sm:$0xff] %v8248_v62  ;;  %v2971_v62 = vld [vmem:[#allocation2 + $0x50] sm:$0x1]  ;;  %v4840_v49 = vor.u32 %v4839_v63, %v4835_v5 }
 0x334   : > { %5037 = vmatmul.bf16.gmra.mxu3 %v4957_v53  ;;  %v4812_v53 = vsel %vm8112_vm2, %v4807_v51, %v4811_v6  ;;  %v4826_v6 = vrot.slane %v4824_v31, 4  ;;  %v4829_v51 = vrot.slane %v4827_v30, 5  ;;  %v3507_v24 = vunpack.c.l.b16 %v2971_v62 }
 0x335   : > { %v4945_v52 = vunpack.c.l.b16 %v4812_v53  ;;  %v4843_v31 = vshll.u32 %v5920_v18, 16 }
 0x336   : > { %4669 = vmatmul.bf16.gmra.mxu2 %v3655_v21  ;;  %v8268_v30 = vpack.c.b16 %v3507_v24, %v3507_v24 }
 0x337   : > { %v4518_v13 = vpop.f32.mrf.mxu3  ;;  %v4958_v53 = vpack.c.b16 %v4946_v10, %v4945_v52  ;;  %v4841_v10 = vrot.slane %v4840_v49, 4  ;;  %v4845_v16 = vrot.slane %v4843_v31, 5  ;;  %v5921_v52 = vld [vmem:[%s6842_s3 + $0x54] sm:$0xf] }
 0x338   : > { %v4425_v38 = vpop.f32.mrf.mxu1  ;;  %v3575_v48 = vshll.u32 %v8268_v30, 16 }
 0x339   : > { %v4469_v40 = vpop.f32.mrf.mxu2  ;;  %v4426_v45 = vadd.f32 %v4425_v38, %v8124_v56  ;;  %v4846_v49 = vsel %vm8112_vm2, %v4841_v10, %v4845_v16  ;;  %v6330_v16 = vld [vmem:[#allocation2 + $0x48] sm:$0xf0] }
 0x33a   : > { %v4470_v21 = vadd.f32 %v4469_v40, %v4421_v32  ;;  %v8260_v35 = vpop.f32.mrf.mxu0  ;;  %v6526_v32 = vor.u32 %v6525_v20, %v7862_v19  ;;  %v4830_v40 = vor.u32 %v4829_v51, %v4826_v6  ;;  %v3577_v24 = vrot.slane %v3575_v48, 1 }
 0x33b   : > { %4625 = vmatmul.bf16.gmra.mxu1 %v3566_v22 }
 0x33c   : > { %v8263_v57 = vadd.f32 %v4518_v13, %v4470_v21  ;;  %v3656_v38 = vrot.slane %v6526_v32, 1  ;;  %v3657_v13 = vrot.slane %v8246_v55, 1  ;;  %v4831_v29 = vrot.slane %v4830_v40, 4  ;;  %v5922_v21 = vld [vmem:[%s6842_s3 + $0x58] sm:$0xf] }
 0x33d   : > { %v4848_v55 = vshrl.u32 %v5921_v52, 16  ;;  %v4857_v22 = vshll.u32 %v5922_v21, 16  ;;  %v2972_v32 = vld [vmem:[#allocation2 + $0x5c] sm:$0x1]  ;;  %v3578_v10 = vsel %vm532_vm1, %v7953_v0, %v3577_v24  ;;  %v3660_v24 = vrot.slane %v8268_v30, 1 }
 0x33e   : > { %v3658_v51 = vsel %vm693_vm0, %v3656_v38, %v3657_v13  ;;  %v4836_v63 = vsel %vm8112_vm2, %v4831_v29, %v4835_v5  ;;  %v4948_v13 = vunpack.c.l.b16 %v4846_v49  ;;  %v5923_v29 = vld [vmem:[%s6842_s3 + $0x5c] sm:$0x1]  ;;  %v3508_v48 = vunpack.c.l.b16 %v2972_v32 }
 0x33f   : > { %v4520_v27 = vpop.f32.mrf.mxu3 }
 0x340   : > { %v4427_v62 = vpop.f32.mrf.mxu1  ;;  %v8296_v49 = vpack.c.b16 %v3508_v48, %v3508_v48  ;;  %v6528_v48 = vld [vmem:[#allocation2 + $0x54] sm:$0xe] }
 0x341   : > { %v4471_v56 = vpop.f32.mrf.mxu2  ;;  %v4428_v19 = vadd.f32 %v4427_v62, %v8133_v47  ;;  %v4861_v47 = vshrl.u32 %v5922_v21, 16  ;;  %v4416_v21 = vadd.f32 %v8201_v37, %v8042_v59 }
 0x342   : > { %v4472_v7 = vadd.f32 %v4471_v56, %v4423_v3  ;;  %v8271_v2 = vpop.f32.mrf.mxu0  ;;  %v4851_v3 = vshll.u32 %v5921_v52, 16 }
 0x343   : > { %v4863_v62 = vrot.slane %v4861_v47, 4 }
 0x344   : > { %5042 = vmatmul.bf16.gmra.mxu3 %v4958_v53  ;;  %v8274_v20 = vadd.f32 %v4520_v27, %v4472_v7  ;;  %v4947_v27 = vunpack.c.l.b16 %v4836_v63  ;;  %v4850_v53 = vrot.slane %v4848_v55, 4  ;;  %v4853_v40 = vrot.slane %v4851_v3, 5  ;;  %v6331_v3 = vld [vmem:[#allocation2 + $0x48] sm:$0xe] }
 0x345   : > { %v4859_v7 = vrot.slane %v4857_v22, 5  ;;  %v4867_v22 = vshll.u32 %v5923_v29, 16  ;;  %v6332_v47 = vor.u32 %v6331_v3, %v6330_v16  ;;  %v5925_v29 = vld [vmem:[%s6842_s3 + $0x64] sm:$0xf] }
 0x346   : > { %4674 = vmatmul.bf16.gmra.mxu2 %v3658_v51  ;;  %v4854_v51 = vor.u32 %v4853_v40, %v4850_v53  ;;  %v4959_v55 = vpack.c.b16 %v4948_v13, %v4947_v27 }
 0x347   : > { %v4523_v6 = vpop.f32.mrf.mxu3  ;;  %v4864_v63 = vor.u32 %v4863_v62, %v4859_v7  ;;  %v4869_v53 = vrot.slane %v4867_v22, 5  ;;  %v3587_v62 = vshll.u32 %v8296_v49, 16 }
 0x348   : > { %v4430_v56 = vpop.f32.mrf.mxu1  ;;  %v4855_v59 = vrot.slane %v4854_v51, 4  ;;  %v4881_v51 = vshll.u32 %v5925_v29, 16 }
 0x349   : > { %v4474_v18 = vpop.f32.mrf.mxu2  ;;  %v4431_v5 = vadd.f32 %v4430_v56, %v8139_v12  ;;  %v4465_v12 = vadd.f32 %v8230_v1, %v4416_v21  ;;  %v4865_v32 = vrot.slane %v4864_v63, 4  ;;  %v3580_v56 = vshrl.u32 %v7976_v43, 16 }
 0x34a   : > { %v4475_v31 = vadd.f32 %v4474_v18, %v4426_v45  ;;  %v8284_v38 = vpop.f32.mrf.mxu0 }
 0x34b   : > { %4630 = vmatmul.bf16.gmra.mxu1 %v3578_v10  ;;  %v4514_v1 = vadd.f32 %v8223_v61, %v4465_v12  ;;  %v4418_v10 = vadd.f32 %v8214_v54, %v8062_v33  ;;  %v8323_v33 = vld [vmem:[%s8505_s6] ss:$0 sm:$0xff] }
 0x34c   : > { %v8288_v52 = vadd.f32 %v4523_v6, %v4475_v31  ;;  %v3582_v6 = vshll.u32 %v7976_v43, 16  ;;  %v3659_v31 = vrot.slane %v6332_v47, 1  ;;  %v4870_v43 = vsel %vm8112_vm2, %v4865_v32, %v4869_v53 }
 0x34d   : > { %v4467_v3 = vadd.f32 %v8243_v26, %v4418_v10  ;;  %v4563_v63 = vadd.f32 %v8072_v14, %v4514_v1  ;;  %v6529_v10 = vor.u32 %v6528_v48, %v7978_v46  ;;  %v3663_v46 = vrot.slane %v8296_v49, 1  ;;  %v5927_v49 = vld [vmem:[%s6842_s3 + $0x6c] sm:$0xf] }
 0x34e   : > { %v3584_v30 = vrot.slane %v3582_v6, 1  ;;  %v3661_v61 = vsel %vm693_vm0, %v3659_v31, %v3660_v24  ;;  %v4950_v6 = vunpack.c.l.b16 %v4870_v43 }
 0x34f   : > { %v4525_v45 = vpop.f32.mrf.mxu3  ;;  %v4612_v22 = vadd.f32 %v8260_v35, %v4563_v63  ;;  %v4516_v53 = vadd.f32 %v8240_v15, %v4467_v3 }
 0x350   : > { %v4432_v18 = vpop.f32.mrf.mxu1  ;;  %v3585_v54 = vor.u32 %v3584_v30, %v3580_v56  ;;  %v5926_v56 = vld [vmem:[%s6842_s3 + $0x68] sm:$0x1] }
 0x351   : > { %v4476_v0 = vpop.f32.mrf.mxu2  ;;  %v8303_v40 = vadd.f32 %v4432_v18, %v8145_v44  ;;  %v4860_v44 = vsel %vm8112_vm2, %v4855_v59, %v4859_v7  ;;  %v3589_v7 = vrot.slane %v3587_v62, 1  ;;  %v4883_v18 = vrot.slane %v4881_v51, 5 }
 0x352   : > { %v4477_v37 = vadd.f32 %v4476_v0, %v4428_v19  ;;  %v8299_v27 = vpop.f32.mrf.mxu0  ;;  %v5924_v19 = vld [vmem:[%s6842_s3 + $0x60] sm:$0xf]  ;;  %v4949_v47 = vunpack.c.l.b16 %v4860_v44  ;;  %v2973_v0 = vld [vmem:[#allocation2 + $0x68] sm:$0x1]  ;;  %v4661_v1 = vadd.f32 %v8284_v38, %v4612_v22  ;;  %v4891_v44 = vshll.u32 %v5926_v56, 16 }
 0x353   : > { %v4872_v21 = vshrl.u32 %v5924_v19, 16  ;;  %v3509_v62 = vunpack.c.l.b16 %v2973_v0  ;;  %v3662_v51 = vrot.slane %v6529_v10, 1  ;;  %v2974_v10 = vld [vmem:[#allocation2 + $0x74] sm:$0x1] }
 0x354   : > { %5047 = vmatmul.bf16.gmra.mxu3 %v4959_v55  ;;  %v8306_v13 = vadd.f32 %v4525_v45, %v4477_v37  ;;  %v4875_v45 = vshll.u32 %v5924_v19, 16  ;;  %v4885_v55 = vshrl.u32 %v5925_v29, 16  ;;  %v4960_v15 = vpack.c.b16 %v4950_v6, %v4949_v47  ;;  %v5928_v6 = vld [vmem:[%s6842_s3 + $0x70] sm:$0xf] }
 0x355   : > { %v4874_v24 = vrot.slane %v4872_v21, 4  ;;  %v8339_v43 = vpack.c.b16 %v3509_v62, %v3509_v62 }
 0x356   : > { %4679 = vmatmul.bf16.gmra.mxu2 %v3661_v61  ;;  %v4877_v37 = vrot.slane %v4875_v45, 5  ;;  %v4887_v32 = vrot.slane %v4885_v55, 4 }
 0x357   : > { %v4528_v16 = vpop.f32.mrf.mxu3  ;;  %v3599_v47 = vshll.u32 %v8339_v43, 16 }
 0x358   : > { %v4435_v59 = vpop.f32.mrf.mxu1  ;;  %v4878_v61 = vor.u32 %v4877_v37, %v4874_v24  ;;  %v4888_v38 = vor.u32 %v4887_v32, %v4883_v18  ;;  %v3664_v24 = vsel %vm693_vm0, %v3662_v51, %v3663_v46  ;;  %v4905_v37 = vshll.u32 %v5928_v6, 16 }
 0x359   : > { %v4479_v12 = vpop.f32.mrf.mxu2  ;;  %v4436_v31 = vadd.f32 %v4435_v59, %v8152_v9  ;;  %v4565_v9 = vadd.f32 %v8093_v42, %v4516_v53  ;;  %v4909_v32 = vshrl.u32 %v5928_v6, 16  ;;  %v3601_v53 = vrot.slane %v3599_v47, 1 }
 0x35a   : > { %v4480_v26 = vadd.f32 %v4479_v12, %v4431_v5  ;;  %v5028_v14 = vpop.f32.mrf.mxu0  ;;  %v3590_v5 = vsel %vm532_vm1, %v3585_v54, %v3589_v7  ;;  %v4879_v3 = vrot.slane %v4878_v61, 4  ;;  %v4889_v63 = vrot.slane %v4888_v38, 4 }
 0x35b   : > { %v5029_v35 = vadd.f32 %v8323_v33, %v5028_v14  ;;  %4635 = vmatmul.bf16.gmra.mxu1 %v3590_v5  ;;  %v4893_v54 = vrot.slane %v4891_v44, 5  ;;  %v4899_v14 = vshll.u32 %v5927_v49, 16  ;;  %v4907_v61 = vrot.slane %v4905_v37, 5 }
 0x35c   : > { %v8334_v30 = vadd.f32 %v4528_v16, %v4480_v26  ;;  %v4614_v16 = vadd.f32 %v8271_v2, %v4565_v9  ;;  %v4884_v26 = vsel %vm8112_vm2, %v4879_v3, %v4883_v18  ;;  %v4911_v38 = vrot.slane %v4909_v32, 4 }
 0x35d   : > { %v5068_v19 = vadd.f32 %v5029_v35, %v4661_v1  ;;  %v4951_v5 = vunpack.c.l.b16 %v4884_v26  ;;  %v3602_v9 = vsel %vm532_vm1, %v8188_v25, %v3601_v53  ;;  %v3510_v46 = vunpack.c.l.b16 %v2974_v10 }
 0x35e   : > { %v4663_v2 = vadd.f32 %v8299_v27, %v4614_v16  ;;  %v4896_v27 = vshrl.u32 %v5927_v49, 16 }
 0x35f   : > { %v4530_v29 = vpop.f32.mrf.mxu3  ;;  %v5084_v21 = vmax.f32 %v5068_v19, 0.0  ;;  %v6333_v19 = vld [vmem:[#allocation2 + $0x60] sm:$0xf0]  ;;  %v3518_v25 = vpack.c.b16 %v3510_v46, %v3510_v46 }
 0x360   : > { %v4437_v55 = vpop.f32.mrf.mxu1 }
 0x361   : > { %5100 = vst [vmem:[%s8342_s22] sm:$0xff] %v5084_v21  ;;  %v4481_v45 = vpop.f32.mrf.mxu2  ;;  %v4438_v7 = vadd.f32 %v4437_v55, %v8159_v11  ;;  %v4894_v11 = vsel %vm8112_vm2, %v4889_v63, %v4893_v54  ;;  %v5929_v21 = vld [vmem:[%s6842_s3 + $0x74] sm:$0x1]  ;;  %v4912_v55 = vor.u32 %v4911_v38, %v4907_v61  ;;  %v3666_v63 = vrot.slane %v8339_v43, 1  ;;  %s6122_s3 = sshll.u32 %s6645_s27, 4 }
 0x362   : > { %v4482_v48 = vadd.f32 %v4481_v45, %v8303_v40  ;;  %v5030_v42 = vpop.f32.mrf.mxu0  ;;  %v4952_v62 = vunpack.c.l.b16 %v4894_v11  ;;  %v3611_v43 = vshll.u32 %v3518_v25, 16  ;;  %s5129_s11 = sadd.s32 %s6122_s3, %s5965_s13  ;;  %s6583_s13 = scalar_lea.hbm %s8506_s7, 512 }
 0x363   : > { %v5031_v22 = vadd.f32 %v8323_v33, %v5030_v42  ;;  %v4915_v42 = vshll.u32 %v5929_v21, 16  ;;  %v4913_v6 = vrot.slane %v4912_v55, 4  ;;  %s5966_s20 = sshll.u32 %s5129_s11, 3 }
 0x364   : > { %5052 = vmatmul.bf16.gmra.mxu3 %v4960_v15  ;;  %v8350_v12 = vadd.f32 %v4530_v29, %v4482_v48  ;;  %v4898_v29 = vrot.slane %v4896_v27, 4  ;;  %v4901_v15 = vrot.slane %v4899_v14, 5  ;;  %v4961_v45 = vpack.c.b16 %v4952_v62, %v4951_v5  ;;  %v6531_v14 = vld [vmem:[#allocation2 + $0x6c] sm:$0xe]  ;;  %s5131_s23 = scalar_lea.hbm %s8506_s7, %s5966_s20 }
 0x365   : > { %v5069_v40 = vadd.f32 %v5031_v22, %v4663_v2  ;;  %v3604_v27 = vshrl.u32 %v8037_v58, 16  ;;  %s5134_s17 = sshll.u32 %s5131_s23, 4  ;;  %s5135_s17 = int_to_ptr.hbm [resolvable:$true] %s5134_s17 }
 0x366   : > { %4684 = vmatmul.bf16.gmra.mxu2 %v3664_v24  ;;  %v4902_v48 = vor.u32 %v4901_v15, %v4898_v29  ;;  %v6532_v29 = vor.u32 %v6531_v14, %v8039_v34  ;;  %v4570_v14 = vadd.f32 %v8117_v23, %v8274_v20  ;;  %s6577_s9 = sshra.s32 %s5135_s17, 4  ;;  %s6578_s9 = int_to_ptr.hbm [resolvable:$true] %s6577_s9 }
 0x367   : > { %v4533_v0 = vpop.f32.mrf.mxu3  ;;  %v5085_v59 = vmax.f32 %v5069_v40, 0.0  ;;  %v4917_v40 = vrot.slane %v4915_v42, 5  ;;  %s6579_s21 = scalar_lea.hbm %s6578_s9, 128  ;;  %p6584_p6 = scmp.lt.s32.totalorder %s6578_s9, %s8506_s7 }
 0x368   : > { %v4440_v56 = vpop.f32.mrf.mxu1  ;;  %v4903_v49 = vrot.slane %v4902_v48, 4  ;;  %v3668_v15 = vrot.slane %v6532_v29, 1  ;;  %p6580_p2 = scmp.ne.s32.totalorder %s6578_s9, %s6579_s21  ;;  %p6585_p7 = scmp.lt.s32.totalorder %s6583_s13, %s6579_s21 }
 0x369   : > { %5101 = vst [vmem:[%s8342_s22 + $0x8] sm:$0xff] %v5085_v59  ;;  %v4484_v1 = vpop.f32.mrf.mxu2  ;;  %v4441_v18 = vadd.f32 %v4440_v56, %v8166_v41  ;;  %v3606_v41 = vshll.u32 %v8037_v58, 16  ;;  %v4918_v59 = vsel %vm8112_vm2, %v4913_v6, %v4917_v40 }
 0x36a   : > { %v4485_v35 = vadd.f32 %v4484_v1, %v4436_v31  ;;  %v6334_v31 = vld [vmem:[#allocation2 + $0x60] sm:$0xe]  ;;  %v3613_v1 = vrot.slane %v3611_v43, 1  ;;  %v4954_v56 = vunpack.c.l.b16 %v4918_v59  ;;  %p6581_p4 = pnand %p6580_p2, %p6760_p3  ;;  %p6586_p9 = por %p6585_p7, %p6584_p6 }
 0x36b   : > { %4640 = vmatmul.bf16.gmra.mxu1 %v3602_v9  ;;  %v6335_v51 = vor.u32 %v6334_v31, %v6333_v19  ;;  %v3608_v24 = vrot.slane %v3606_v41, 1 }
 0x36c   : > { %v8362_v44 = vadd.f32 %v4533_v0, %v4485_v35  ;;  %p6582_p5 = pneg %p6581_p4 }
 0x36d   : > { %v3665_v22 = vrot.slane %v6335_v51, 1 }
 0x36e   : > { %p6587_p10 = pnand %p6586_p9, %p6582_p5 }
 0x36f   : > { %v4535_v16 = vpop.f32.mrf.mxu3  ;;  %v3667_v11 = vsel %vm693_vm0, %v3665_v22, %v3666_v63 }
 0x370   : > { %v4442_v2 = vpop.f32.mrf.mxu1 }
 0x371   : > { %v4486_v3 = vpop.f32.mrf.mxu2  ;;  %v4443_v47 = vadd.f32 %v4442_v2, %v8174_v28  ;;  %v3609_v28 = vor.u32 %v3608_v24, %v3604_v27 }
 0x372   : > { %v4487_v54 = vadd.f32 %v4486_v3, %v4438_v7  ;;  %v4908_v7 = vsel %vm8112_vm2, %v4903_v49, %v4907_v61  ;;  %v3669_v61 = vrot.slane %v3518_v25, 1 }
 0x373   : > { %v4953_v35 = vunpack.c.l.b16 %v4908_v7  ;;  %v3614_v58 = vsel %vm532_vm1, %v3609_v28, %v3613_v1 }
 0x374   : > { %5057 = vmatmul.bf16.gmra.mxu3 %v4961_v45  ;;  %v8370_v0 = vadd.f32 %v4535_v16, %v4487_v54  ;;  %v3670_v16 = vsel %vm693_vm0, %v3668_v15, %v3669_v61  ;;  %v8558_v61 = vld [vmem:[#allocation11_spill] sm:$0xff] }
 0x375   : > { %v4962_v60 = vpack.c.b16 %v4954_v56, %v4953_v35 }
 0x376   : > { %4689 = vmatmul.bf16.gmra.mxu2 %v3667_v11 }
 0x377   : > { %v4538_v26 = vpop.f32.mrf.mxu3 }
 0x378   : > { %v4445_v53 = vpop.f32.mrf.mxu1 }
 0x379   : > { %v4489_v37 = vpop.f32.mrf.mxu2  ;;  %v4446_v5 = vadd.f32 %v4445_v53, %v8186_v36 }
 0x37a   : > { %v4490_v32 = vadd.f32 %v4489_v37, %v4441_v18 }
 0x37b   : > { %4645 = vmatmul.bf16.gmra.mxu1 %v3614_v58 }
 0x37c   : > { %v8379_v62 = vadd.f32 %v4538_v26, %v4490_v32  ;;  %v4568_v26 = vadd.f32 %v8103_v39, %v8263_v57 }
 0x37f   : > { %v4540_v19 = vpop.f32.mrf.mxu3 }
 0x380   : > { %v4447_v18 = vpop.f32.mrf.mxu1 }
 0x381   : > { %v4491_v10 = vpop.f32.mrf.mxu2  ;;  %v4448_v9 = vadd.f32 %v4447_v18, %v8205_v50 }
 0x382   : > { %v4492_v38 = vadd.f32 %v4491_v10, %v4443_v47 }
 0x384   : > { %5062 = vmatmul.bf16.gmra.mxu3 %v4962_v60  ;;  %v8384_v21 = vadd.f32 %v4540_v19, %v4492_v38  ;;  %v4575_v38 = vadd.f32 %v8558_v61, %v8306_v13 }
 0x386   : > { %4694 = vmatmul.bf16.gmra.mxu2 %v3670_v16 }
 0x387   : > { %v4543_v36 = vpop.f32.mrf.mxu3 }
 0x388   : > { %v4450_v51 = vpop.f32.mrf.mxu1 }
 0x389   : > { %v4494_v31 = vpop.f32.mrf.mxu2  ;;  %v4451_v34 = vadd.f32 %v4450_v51, %v8218_v4  ;;  %v8559_v51 = vld [vmem:[#allocation12_spill] sm:$0xff] }
 0x38a   : > { %v4495_v45 = vadd.f32 %v4494_v31, %v4446_v5  ;;  %v4573_v5 = vadd.f32 %v8130_v8, %v8288_v52 }
 0x38c   : > { %v8388_v46 = vadd.f32 %v4543_v36, %v4495_v45 }
 0x38f   : > { %v4545_v48 = vpop.f32.mrf.mxu3 }
 0x390   : > { %v4452_v41 = vpop.f32.mrf.mxu1 }
 0x391   : > { %v4496_v55 = vpop.f32.mrf.mxu2  ;;  %v4453_v3 = vadd.f32 %v4452_v41, %v8234_v17 }
 0x392   : > { %v4497_v42 = vadd.f32 %v4496_v55, %v4448_v9 }
 0x394   : > { %v8391_v50 = vadd.f32 %v4545_v48, %v4497_v42 }
 0x397   : > { %v4548_v63 = vpop.f32.mrf.mxu3 }
 0x398   : > { %v4616_v22 = vpop.f32.mrf.mxu1 }
 0x399   : > { %v4499_v54 = vpop.f32.mrf.mxu2  ;;  %v4617_v17 = vadd.f32 %v4616_v22, %v4568_v26 }
 0x39a   : > { %v4500_v2 = vadd.f32 %v4499_v54, %v4451_v34  ;;  %v4578_v34 = vadd.f32 %v8559_v51, %v8334_v30 }
 0x39c   : > { %v8393_v25 = vadd.f32 %v4548_v63, %v4500_v2  ;;  %v8560_v2 = vld [vmem:[#allocation13_spill] sm:$0xff] }
 0x39d   : > { %v4580_v22 = vadd.f32 %v8560_v2, %v8350_v12  ;;  %v8566_v2 = vld [vmem:[#allocation19_spill] sm:$0xff] }
 0x39f   : > { %v4550_v47 = vpop.f32.mrf.mxu3 }
 0x3a0   : > { %v4618_v6 = vpop.f32.mrf.mxu1 }
 0x3a1   : > { %v4501_v49 = vpop.f32.mrf.mxu2  ;;  %v4619_v32 = vadd.f32 %v4618_v6, %v4570_v14 }
 0x3a2   : > { %v4502_v4 = vadd.f32 %v4501_v49, %v4453_v3 }
 0x3a4   : > { %v8395_v40 = vadd.f32 %v4550_v47, %v4502_v4 }
 0x3a7   : > { %v5033_v24 = vpop.f32.mrf.mxu3 }
 0x3a8   : > { %v5034_v11 = vadd.f32 %v8323_v33, %v5033_v24  ;;  %v4621_v7 = vpop.f32.mrf.mxu1 }
 0x3a9   : > { %v4665_v27 = vpop.f32.mrf.mxu2  ;;  %v4622_v19 = vadd.f32 %v4621_v7, %v4573_v5 }
 0x3aa   : > { %v4666_v43 = vadd.f32 %v4665_v27, %v4617_v17 }
 0x3ac   : > { %v5070_v59 = vadd.f32 %v5034_v11, %v4666_v43  ;;  %v8561_v11 = vld [vmem:[#allocation14_spill] sm:$0xff] }
 0x3ad   : > { %v4583_v27 = vadd.f32 %v8561_v11, %v8362_v44 }
 0x3ae   : > { %v5086_v37 = vmax.f32 %v5070_v59, 0.0 }
 0x3af   : > { %v5035_v28 = vpop.f32.mrf.mxu3 }
 0x3b0   : > { %5102 = vst [vmem:[%s8342_s22 + $0x10] sm:$0xff] %v5086_v37  ;;  %v5036_v1 = vadd.f32 %v8323_v33, %v5035_v28  ;;  %v4623_v39 = vpop.f32.mrf.mxu1 }
 0x3b1   : > { %v4667_v53 = vpop.f32.mrf.mxu2  ;;  %v4624_v9 = vadd.f32 %v4623_v39, %v4575_v38 }
 0x3b2   : > { %v4668_v35 = vadd.f32 %v4667_v53, %v4619_v32  ;;  %v8562_v53 = vld [vmem:[#allocation15_spill] sm:$0xff] }
 0x3b4   : > { %v5071_v57 = vadd.f32 %v5036_v1, %v4668_v35  ;;  %v4585_v1 = vadd.f32 %v8562_v53, %v8370_v0 }
 0x3b6   : > { %v5087_v58 = vmax.f32 %v5071_v57, 0.0 }
 0x3b7   : > { %v5038_v56 = vpop.f32.mrf.mxu3 }
 0x3b8   : > { %5103 = vst [vmem:[%s8342_s22 + $0x18] sm:$0xff] %v5087_v58  ;;  %v5039_v29 = vadd.f32 %v8323_v33, %v5038_v56  ;;  %v4626_v60 = vpop.f32.mrf.mxu1 }
 0x3b9   : > { %v4670_v23 = vpop.f32.mrf.mxu2  ;;  %v4627_v55 = vadd.f32 %v4626_v60, %v4578_v34  ;;  %v8565_v34 = vld [vmem:[#allocation18_spill] sm:$0xff] }
 0x3ba   : > { %v4671_v20 = vadd.f32 %v4670_v23, %v4622_v19 }
 0x3bc   : > { %v5072_v10 = vadd.f32 %v5039_v29, %v4671_v20  ;;  %v8563_v29 = vld [vmem:[#allocation16_spill] sm:$0xff] }
 0x3bd   : > { %v4588_v23 = vadd.f32 %v8563_v29, %v8379_v62 }
 0x3be   : > { %v5088_v18 = vmax.f32 %v5072_v10, 0.0 }
 0x3bf   : > { %v5040_v15 = vpop.f32.mrf.mxu3 }
 0x3c0   : > { %5104 = vst [vmem:[%s8342_s22 + $0x20] sm:$0xff] %v5088_v18  ;;  %v5041_v8 = vadd.f32 %v8323_v33, %v5040_v15  ;;  %v4628_v16 = vpop.f32.mrf.mxu1  ;;  %v8564_v18 = vld [vmem:[#allocation17_spill] sm:$0xff] }
 0x3c1   : > { %v4672_v36 = vpop.f32.mrf.mxu2  ;;  %v4629_v49 = vadd.f32 %v4628_v16, %v4580_v22  ;;  %v4595_v22 = vadd.f32 %v8566_v2, %v8391_v50 }
 0x3c2   : > { %v4673_v52 = vadd.f32 %v4672_v36, %v4624_v9  ;;  %v4590_v9 = vadd.f32 %v8564_v18, %v8384_v21 }
 0x3c4   : > { %v5073_v31 = vadd.f32 %v5041_v8, %v4673_v52 }
 0x3c6   : > { %v5089_v48 = vmax.f32 %v5073_v31, 0.0 }
 0x3c7   : > { %v5043_v45 = vpop.f32.mrf.mxu3 }
 0x3c8   : > { %5105 = vst [vmem:[%s8342_s22 + $0x28] sm:$0xff] %v5089_v48  ;;  %v5044_v42 = vadd.f32 %v8323_v33, %v5043_v45  ;;  %v4631_v3 = vpop.f32.mrf.mxu1  ;;  %v4593_v48 = vadd.f32 %v8565_v34, %v8388_v46 }
 0x3c9   : > { %v4675_v13 = vpop.f32.mrf.mxu2  ;;  %v4632_v7 = vadd.f32 %v4631_v3, %v4583_v27 }
 0x3ca   : > { %v4676_v41 = vadd.f32 %v4675_v13, %v4627_v55 }
 0x3cc   : > { %v5074_v63 = vadd.f32 %v5044_v42, %v4676_v41 }
 0x3ce   : > { %v5090_v47 = vmax.f32 %v5074_v63, 0.0 }
 0x3cf   : > { %v5045_v54 = vpop.f32.mrf.mxu3 }
 0x3d0   : > { %5106 = vst [vmem:[%s8342_s22 + $0x30] sm:$0xff] %v5090_v47  ;;  %v5046_v30 = vadd.f32 %v8323_v33, %v5045_v54  ;;  %v4633_v24 = vpop.f32.mrf.mxu1 }
 0x3d1   : > { %v4677_v4 = vpop.f32.mrf.mxu2  ;;  %v4634_v39 = vadd.f32 %v4633_v24, %v4585_v1 }
 0x3d2   : > { %v4678_v6 = vadd.f32 %v4677_v4, %v4629_v49 }
 0x3d4   : > { %v5075_v26 = vadd.f32 %v5046_v30, %v4678_v6 }
 0x3d6   : > { %v5091_v43 = vmax.f32 %v5075_v26, 0.0 }
 0x3d7   : > { %v5048_v17 = vpop.f32.mrf.mxu3 }
 0x3d8   : > { %5107 = vst [vmem:[%s8342_s22 + $0x38] sm:$0xff] %v5091_v43  ;;  %v5049_v59 = vadd.f32 %v8323_v33, %v5048_v17  ;;  %v4636_v14 = vpop.f32.mrf.mxu1  ;;  %v8567_v17 = vld [vmem:[#allocation20_spill] sm:$0xff] }
 0x3d9   : > { %v4680_v12 = vpop.f32.mrf.mxu2  ;;  %v4637_v60 = vadd.f32 %v4636_v14, %v4588_v23  ;;  %v4598_v11 = vadd.f32 %v8567_v17, %v8393_v25  ;;  %v8568_v14 = vld [vmem:[#allocation21_spill] sm:$0xff] }
 0x3da   : > { %v4681_v28 = vadd.f32 %v4680_v12, %v4632_v7 }
 0x3dc   : > { %v5076_v37 = vadd.f32 %v5049_v59, %v4681_v28 }
 0x3de   : > { %v5092_v35 = vmax.f32 %v5076_v37, 0.0  ;;  %v4600_v37 = vadd.f32 %v8568_v14, %v8395_v40 }
 0x3df   : > { %v5050_v32 = vpop.f32.mrf.mxu3 }
 0x3e0   : > { %5108 = vst [vmem:[%s8342_s22 + $0x40] sm:$0xff] %v5092_v35  ;;  %v5051_v44 = vadd.f32 %v8323_v33, %v5050_v32  ;;  %v4638_v58 = vpop.f32.mrf.mxu1 }
 0x3e1   : > { %v4682_v57 = vpop.f32.mrf.mxu2  ;;  %v4639_v52 = vadd.f32 %v4638_v58, %v4590_v9 }
 0x3e2   : > { %v4683_v56 = vadd.f32 %v4682_v57, %v4634_v39 }
 0x3e4   : > { %v5077_v5 = vadd.f32 %v5051_v44, %v4683_v56 }
 0x3e6   : > { %v5093_v20 = vmax.f32 %v5077_v5, 0.0 }
 0x3e7   : > { %v5053_v19 = vpop.f32.mrf.mxu3 }
 0x3e8   : > { %5109 = vst [vmem:[%s8342_s22 + $0x48] sm:$0xff] %v5093_v20  ;;  %v5054_v10 = vadd.f32 %v8323_v33, %v5053_v19  ;;  %v4641_v8 = vpop.f32.mrf.mxu1 }
 0x3e9   : > { %v4685_v0 = vpop.f32.mrf.mxu2  ;;  %v4642_v42 = vadd.f32 %v4641_v8, %v4593_v48 }
 0x3ea   : > { %v4686_v15 = vadd.f32 %v4685_v0, %v4637_v60 }
 0x3ec   : > { %v5078_v61 = vadd.f32 %v5054_v10, %v4686_v15 }
 0x3ee   : > { %v5094_v36 = vmax.f32 %v5078_v61, 0.0 }
 0x3ef   : > { %v5055_v38 = vpop.f32.mrf.mxu3 }
 0x3f0   : > { %5110 = vst [vmem:[%s8342_s22 + $0x50] sm:$0xff] %v5094_v36  ;;  %v5056_v62 = vadd.f32 %v8323_v33, %v5055_v38  ;;  %v4643_v21 = vpop.f32.mrf.mxu1 }
 0x3f1   : > { %v4687_v16 = vpop.f32.mrf.mxu2  ;;  %v4644_v49 = vadd.f32 %v4643_v21, %v4595_v22 }
 0x3f2   : > { %v4688_v31 = vadd.f32 %v4687_v16, %v4639_v52 }
 0x3f4   : > { %v5079_v45 = vadd.f32 %v5056_v62, %v4688_v31 }
 0x3f6   : > { %v5095_v55 = vmax.f32 %v5079_v45, 0.0 }
 0x3f7   : > { %v5058_v51 = vpop.f32.mrf.mxu3 }
 0x3f8   : > { %5111 = vst [vmem:[%s8342_s22 + $0x58] sm:$0xff] %v5095_v55  ;;  %v5059_v13 = vadd.f32 %v8323_v33, %v5058_v51  ;;  %v4646_v6 = vpop.f32.mrf.mxu1 }
 0x3f9   : > { %v4690_v41 = vpop.f32.mrf.mxu2  ;;  %v4647_v43 = vadd.f32 %v4646_v6, %v4598_v11 }
 0x3fa   : > { %v4691_v3 = vadd.f32 %v4690_v41, %v4642_v42 }
 0x3fc   : > { %v5080_v63 = vadd.f32 %v5059_v13, %v4691_v3 }
 0x3fe   : > { %v5096_v47 = vmax.f32 %v5080_v63, 0.0 }
 0x3ff   : > { %v5060_v54 = vpop.f32.mrf.mxu3 }
 0x400   : > { %5112 = vst [vmem:[%s8342_s22 + $0x60] sm:$0xff] %v5096_v47  ;;  %v5061_v4 = vadd.f32 %v8323_v33, %v5060_v54  ;;  %v4648_v28 = vpop.f32.mrf.mxu1 }
 0x401   : > { %v4692_v46 = vpop.f32.mrf.mxu2  ;;  %v4649_v53 = vadd.f32 %v4648_v28, %v4600_v37 }
 0x402   : > { %v4693_v30 = vadd.f32 %v4692_v46, %v4644_v49 }
 0x404   : > { %v5081_v24 = vadd.f32 %v5061_v4, %v4693_v30 }
 0x406   : > { %v5097_v27 = vmax.f32 %v5081_v24, 0.0 }
 0x407   : > { %v5063_v26 = vpop.f32.mrf.mxu3 }
 0x408   : > { %5113 = vst [vmem:[%s8342_s22 + $0x68] sm:$0xff] %v5097_v27  ;;  %v5064_v50 = vadd.f32 %v8323_v33, %v5063_v26 }
 0x409   : > { %v4695_v7 = vpop.f32.mrf.mxu2 }
 0x40a   : > { %v4696_v59 = vadd.f32 %v4695_v7, %v4647_v43 }
 0x40c   : > { %v5082_v12 = vadd.f32 %v5064_v50, %v4696_v59 }
 0x40e   : > { %v5098_v25 = vmax.f32 %v5082_v12, 0.0 }
 0x40f   : > { %v5065_v32 = vpop.f32.mrf.mxu3 }
 0x410   : > { %5114 = vst [vmem:[%s8342_s22 + $0x70] sm:$0xff] %v5098_v25  ;;  %v5066_v35 = vadd.f32 %v8323_v33, %v5065_v32 }
 0x411   : > { %v4697_v1 = vpop.f32.mrf.mxu2 }
 0x412   : > { %v4698_v39 = vadd.f32 %v4697_v1, %v4649_v53 }
 0x414   : > { %v5083_v57 = vadd.f32 %v5066_v35, %v4698_v39 }
 0x416   : > { %v5099_v44 = vmax.f32 %v5083_v57, 0.0 }
 0x418   : > { %5115 = vst [vmem:[%s8342_s22 + $0x78] sm:$0xff] %v5099_v44 }
 0x419   : > { %6590 = shalt.err (!%p6587_p10)
}
 0x41a   : > { %s6666_s12 = smov 128   ;;  %s6667_s22 = smov 8  }
 0x41b   : > { %6365 = dma.vmem_to_hbm [thread:$0]  (%p6760_p3), %s5133_s19, 2048, %s5135_s17, %s5117_s18, %s6666_s12, %s6666_s12, %s6667_s22  }
 0x41c PF: > { %p6377_p11 = scmp.ge.s32.totalorder %s6661_s8, 2  ;;  %s5149_s27 = sand.u32 1, %s6633_s24  }
 0x41d   : > { %s5150_s28 = scalar_lea.sflag [#allocation5], %s5149_s27 }
 0x41e   : > { %p6372_p12 = pnand %p6377_p11, %p6769_p8 }
 0x420   : > { %p6373_p13 = pneg %p6372_p12 }
 0x422   : > { %6628 = dma.done.wait (%p6373_p13), %s5150_s28, 2048  }
 0x423   : > { %6630 = vsyncadd (%p6373_p13), %s5150_s28, 4294965248  ;;  %s21_s8 = sadd.s32 1, %s6661_s8   ;;  %s8569_s15 = sld [smem:[#allocation9_spill]] }
 0x424   : > { %p18_p0 = scmp.ge.s32.totalorder %s21_s8, 6   ;;  %s8570_s23 = sld [smem:[#allocation10_spill]] }
 0x425   : > { %s8571_s24 = smov %s6637_s25  ;;  %s8572_s25 = smov %s6641_s26 }
 0x426   : > { %s8573_s26 = smov %s6790_s10  ;;  %s8574_s27 = smov %s6653_s29 }
 0x427   : > { %s8575_s28 = smov %s6657_s30  ;;  %20 = sbr.rel (!%p18_p0) target bundleno = 8 (0x8), region = 93 }
 0x429   : > { %s8576_s29 = smov %s8569_s15 }
 0x42a   : > { %s8577_s30 = smov %s8570_s23 }
 0x42c   :  { %5156 = vsyncpa [#allocation4], 1 }
 0x42d   :  { %5158 = vsyncpa [#allocation4 + $0x1], 1 }
 0x42e   :  { %5159 = vsyncpa [#allocation5], 1 }
 0x42f   :  { %5161 = vsyncpa [#allocation5 + $0x1], 1 }

</bundles_post_ra>
